<compile_context>
chip_gen: v5e
topology: v5e:2x2
jax: 0.10.0
libtpu: 0.0.40
codegen_flags: <defaults>
</compile_context>

<pallas_src>
import functools

import jax
import jax.numpy as jnp
from jax.experimental import pallas as pl
from jax.experimental.pallas import tpu as pltpu

POS_FREQS = 10
VIEW_FREQS = 4
POS_SIZE = 3 * POS_FREQS * 2      # 60
VIEW_SIZE = 3 * VIEW_FREQS * 2    # 24
H3 = 128                          # block3 hidden width

COMPUTE_DTYPE = jnp.bfloat16      # MXU operand dtype (accumulation stays f32)


# ----------------------------------------------------------------------------
# glue: NeRF positional encoding (freq = 2^i * pi, stacked [sin, cos])
# ----------------------------------------------------------------------------
def positional_encoding(x, freqs):
    freq_bands = (2.0 ** jnp.arange(freqs, dtype=jnp.float32)) * jnp.pi     # (F,)
    spectrum = x[..., None] * freq_bands                                    # (*,3,F)
    enc = jnp.stack([jnp.sin(spectrum), jnp.cos(spectrum)], axis=-2)        # (*,3,2,F)
    return enc.reshape(x.shape[:-1] + (x.shape[-1] * 2 * freqs,))


def _relu(x):
    return jnp.maximum(x, 0.0)


def _softplus(x):
    # numerically stable softplus (matches F.softplus, beta=1)
    return jnp.maximum(x, 0.0) + jnp.log1p(jnp.exp(-jnp.abs(x)))


# ----------------------------------------------------------------------------
# Pallas kernel: whole fused MLP for one tile of points
# ----------------------------------------------------------------------------
def nerf_mlp_kernel(
    ep_ref, ev_ref,
    # block1: 5 x Linear(+ReLU)
    w1_0, b1_0, w1_1, b1_1, w1_2, b1_2, w1_3, b1_3, w1_4, b1_4,
    # block2: first layer split-K (h / ep), 2 x Linear(+ReLU)
    w2_0h, w2_0e, b2_0, w2_1, b2_1, w2_2, b2_2,
    # fused block2-tail + block3-head: (256,129) = [W_comb | density col]
    w_big, b_big, w3_0v,
    # block3 remainder: 3 x Linear(+ReLU), Linear(128,3)+Softplus
    w3_1, b3_1, w3_2, b3_2, w3_3, b3_3, w3_4, b3_4,
    out_ref,
):
    dot = functools.partial(jnp.dot, preferred_element_type=jnp.float32)

    def relu_c(x):  # f32 -> bf16 for the next MXU pass
        return jnp.maximum(x, 0.0).astype(COMPUTE_DTYPE)

    ep = ep_ref[...]          # (TN, 60)  bf16
    ev = ev_ref[...]          # (TN, 24)  bf16

    # ---- block1 ----
    h = relu_c(dot(ep, w1_0[...]) + b1_0[...])
    h = relu_c(dot(h, w1_1[...]) + b1_1[...])
    h = relu_c(dot(h, w1_2[...]) + b1_2[...])
    h = relu_c(dot(h, w1_3[...]) + b1_3[...])
    h = relu_c(dot(h, w1_4[...]) + b1_4[...])                     # (TN, 256)

    # ---- block2 (skip-concat with ep realized as split-K dual matmul) ----
    h2 = relu_c(dot(h, w2_0h[...]) + dot(ep, w2_0e[...]) + b2_0[...])
    h2 = relu_c(dot(h2, w2_1[...]) + b2_1[...])
    h2 = relu_c(dot(h2, w2_2[...]) + b2_2[...])                   # (TN, 256)

    # ---- fused block2-tail + block3-head ----
    # big[:, :128]   = h2 @ (w23[:,1:] @ w30[:256]) + folded bias  (h3 preact)
    # big[:, 128:129]= h2 @ w23[:, :1] + b23[:, :1]                (density raw)
    big = dot(h2, w_big[...]) + b_big[...]                        # (TN, 129) f32
    dens_raw = big[:, H3:H3 + 1]                                  # (TN, 1)
    h3 = relu_c(big[:, :H3] + dot(ev, w3_0v[...]))                # (TN, 128)

    # ---- block3 remainder ----
    h3 = relu_c(dot(h3, w3_1[...]) + b3_1[...])
    h3 = relu_c(dot(h3, w3_2[...]) + b3_2[...])
    h3 = relu_c(dot(h3, w3_3[...]) + b3_3[...])
    color_raw = dot(h3, w3_4[...]) + b3_4[...]                    # (TN, 3)  f32

    # single store: density in lane 0, RGB in lanes 1..3
    out_ref[...] = _softplus(jnp.concatenate([dens_raw, color_raw], axis=-1))


# ----------------------------------------------------------------------------
# Parameter construction (deterministic synthetic init, nn.Linear-like scaling)
# ----------------------------------------------------------------------------
def make_params(key):
    def linear(key, fan_in, fan_out):
        kw, kb = jax.random.split(key)
        bound = 1.0 / (fan_in ** 0.5)
        w = jax.random.uniform(kw, (fan_in, fan_out), jnp.float32, -bound, bound)
        b = jax.random.uniform(kb, (1, fan_out), jnp.float32, -bound, bound)
        return w, b

    keys = iter(jax.random.split(key, 14))
    params = {
        "b1": [linear(next(keys), POS_SIZE, 256)]
              + [linear(next(keys), 256, 256) for _ in range(4)],
        "b2": [linear(next(keys), 256 + POS_SIZE, 256),
               linear(next(keys), 256, 256),
               linear(next(keys), 256, 256),
               linear(next(keys), 256, 257)],
        "b3": [linear(next(keys), 256 + VIEW_SIZE, 128),
               linear(next(keys), 128, 128),
               linear(next(keys), 128, 128),
               linear(next(keys), 128, 128),
               linear(next(keys), 128, 3)],
    }
    return params


def prepare_kernel_params(params):
    """Split skip layers, fuse block2-tail into block3-head, cast to bf16."""
    cd = COMPUTE_DTYPE
    hp = jax.lax.Precision.HIGHEST

    (w20, b20), (w21, b21), (w22, b22), (w23, b23) = params["b2"]
    (w30, b30), (w31, b31), (w32, b32), (w33, b33), (w34, b34) = params["b3"]

    # feat = h2 @ w23[:,1:] + b23[:,1:] ; h3_pre = feat @ w30[:256] + ev @ w30[256:] + b30
    w_comb = jnp.dot(w23[:, 1:], w30[:256], precision=hp)             # (256, 128)
    b_comb = jnp.dot(b23[:, 1:], w30[:256], precision=hp) + b30       # (1, 128)
    w_big = jnp.concatenate([w_comb, w23[:, :1]], axis=1)             # (256, 129)
    b_big = jnp.concatenate([b_comb, b23[:, :1]], axis=1)             # (1, 129)

    return {
        "b1": [(w.astype(cd), b) for w, b in params["b1"]],
        "w2_0h": w20[:256].astype(cd), "w2_0e": w20[256:].astype(cd), "b2_0": b20,
        "w2_1": w21.astype(cd), "b2_1": b21,
        "w2_2": w22.astype(cd), "b2_2": b22,
        "w_big": w_big.astype(cd), "b_big": b_big,
        "w3_0v": w30[256:].astype(cd),
        "w3_1": w31.astype(cd), "b3_1": b31,
        "w3_2": w32.astype(cd), "b3_2": b32,
        "w3_3": w33.astype(cd), "b3_3": b33,
        "w3_4": w34.astype(cd), "b3_4": b34,
    }


def flatten_kernel_params(kp):
    flat = []
    for w, b in kp["b1"]:
        flat += [w, b]
    flat += [kp["w2_0h"], kp["w2_0e"], kp["b2_0"],
             kp["w2_1"], kp["b2_1"], kp["w2_2"], kp["b2_2"],
             kp["w_big"], kp["b_big"], kp["w3_0v"],
             kp["w3_1"], kp["b3_1"], kp["w3_2"], kp["b3_2"],
             kp["w3_3"], kp["b3_3"], kp["w3_4"], kp["b3_4"]]
    return flat


# ----------------------------------------------------------------------------
# Wrapper
# ----------------------------------------------------------------------------
def original_nerf_decoder(pos, view_dir, params, *, tile_n=1024):
    """pos: (*, 3), view_dir: (*, 3) -> (density (*,), color (*, 3))"""
    lead_shape = pos.shape[:-1]
    pos2 = pos.reshape(-1, 3).astype(jnp.float32)
    view2 = view_dir.reshape(-1, 3).astype(jnp.float32)
    n = pos2.shape[0]

    # MXU-friendly tile: multiple of 256, never larger than the rounded input,
    # and capped so the grid has >= 2 steps when possible (v7x: 2 TensorCores).
    base = 256
    n_round = -(-n // base) * base
    eff_tile = min(max(base, (tile_n // base) * base), n_round)
    if n_round >= 2 * base:
        eff_tile = min(eff_tile, max(base, (n_round // (2 * base)) * base))
    n_pad = -(-n // eff_tile) * eff_tile
    pad = n_pad - n
    if pad:
        pos2 = jnp.pad(pos2, ((0, pad), (0, 0)))
        view2 = jnp.pad(view2, ((0, pad), (0, 0)))

    # positional encoding stays in XLA glue (f32), fed to the kernel as bf16
    ep = positional_encoding(pos2, POS_FREQS).astype(COMPUTE_DTYPE)    # (N, 60)
    ev = positional_encoding(view2, VIEW_FREQS).astype(COMPUTE_DTYPE)  # (N, 24)

    flat_params = flatten_kernel_params(prepare_kernel_params(params))
    grid = (n_pad // eff_tile,)

    row_spec = lambda c: pl.BlockSpec((eff_tile, c), lambda i: (i, 0))
    full_spec = lambda arr: pl.BlockSpec(arr.shape, lambda i: (0, 0))

    in_specs = [row_spec(POS_SIZE), row_spec(VIEW_SIZE)] + [
        full_spec(p) for p in flat_params
    ]
    out_specs = row_spec(4)
    out_shape = jax.ShapeDtypeStruct((n_pad, 4), jnp.float32)

    # advisory cost estimate (kernel is heavily MXU-bound)
    macs_per_point = (
        POS_SIZE * 256 + 4 * 256 * 256            # block1
        + 256 * 256 + POS_SIZE * 256              # block2 split-K layer 0
        + 2 * 256 * 256                           # block2 layers 1, 2
        + 256 * 129                               # fused tail/head (+density col)
        + VIEW_SIZE * 128                         # view skip
        + 3 * 128 * 128 + 128 * 3                 # block3 remainder
    )
    weight_bytes = sum(int(p.size) * p.dtype.itemsize for p in flat_params)
    cost = pl.CostEstimate(
        flops=2 * macs_per_point * n_pad,
        transcendentals=8 * n_pad,                # softplus: exp + log1p x 4 lanes
        bytes_accessed=int(n_pad * ((POS_SIZE + VIEW_SIZE) * 2 + 4 * 4))
        + weight_bytes,                           # constant index_map: DMA'd once
    )

    out = pl.pallas_call(
        nerf_mlp_kernel,
        out_shape=out_shape,
        grid_spec=pltpu.PrefetchScalarGridSpec(
            num_scalar_prefetch=0,
            grid=grid,
            in_specs=in_specs,
            out_specs=out_specs,
        ),
        compiler_params=pltpu.CompilerParams(
            dimension_semantics=("parallel",),
            vmem_limit_bytes=48 * 1024 * 1024,
        ),
        cost_estimate=cost,
    )(ep, ev, *flat_params)

    density = out[:n, 0].reshape(lead_shape)
    color = out[:n, 1:4].reshape(lead_shape + (3,))
    return density, color


# ----------------------------------------------------------------------------
# Pure-JAX references for correctness checks
# ----------------------------------------------------------------------------
def reference_forward_f32(pos, view_dir, params):
    """Exact PyTorch-module semantics in f32."""
    lead_shape = pos.shape[:-1]
    ep = positional_encoding(pos.reshape(-1, 3), POS_FREQS)
    ev = positional_encoding(view_dir.reshape(-1, 3), VIEW_FREQS)

    h = ep
    for w, b in params["b1"]:
        h = _relu(h @ w + b)
    h2 = jnp.concatenate([h, ep], axis=-1)
    for w, b in params["b2"][:-1]:
        h2 = _relu(h2 @ w + b)
    w, b = params["b2"][-1]
    out1 = h2 @ w + b
    dens = _softplus(out1[:, 0])
    h3 = jnp.concatenate([out1[:, 1:], ev], axis=-1)
    for w, b in params["b3"][:-1]:
        h3 = _relu(h3 @ w + b)
    w, b = params["b3"][-1]
    color = _softplus(h3 @ w + b)
    return dens.reshape(lead_shape), color.reshape(lead_shape + (3,))


def reference_forward_bf16(pos, view_dir, params):
    """Mirror of the kernel numerics (same fused bf16 params, f32 accumulation)."""
    kp = prepare_kernel_params(params)
    dot = lambda a, w: jnp.dot(a, w, preferred_element_type=jnp.float32)
    relu_c = lambda x: jnp.maximum(x, 0.0).astype(COMPUTE_DTYPE)

    lead_shape = pos.shape[:-1]
    ep = positional_encoding(pos.reshape(-1, 3), POS_FREQS).astype(COMPUTE_DTYPE)
    ev = positional_encoding(view_dir.reshape(-1, 3), VIEW_FREQS).astype(COMPUTE_DTYPE)

    h = ep
    for w, b in kp["b1"]:
        h = relu_c(dot(h, w) + b)
    h2 = relu_c(dot(h, kp["w2_0h"]) + dot(ep, kp["w2_0e"]) + kp["b2_0"])
    h2 = relu_c(dot(h2, kp["w2_1"]) + kp["b2_1"])
    h2 = relu_c(dot(h2, kp["w2_2"]) + kp["b2_2"])
    big = dot(h2, kp["w_big"]) + kp["b_big"]
    dens = _softplus(big[:, H3:H3 + 1])
    h3 = relu_c(big[:, :H3] + dot(ev, kp["w3_0v"]))
    h3 = relu_c(dot(h3, kp["w3_1"]) + kp["b3_1"])
    h3 = relu_c(dot(h3, kp["w3_2"]) + kp["b3_2"])
    h3 = relu_c(dot(h3, kp["w3_3"]) + kp["b3_3"])
    color = _softplus(dot(h3, kp["w3_4"]) + kp["b3_4"])
    return dens[:, 0].reshape(lead_shape), color.reshape(lead_shape + (3,))


if __name__ == "__main__":
    key = jax.random.PRNGKey(0)
    k_params, k_pos, k_view = jax.random.split(key, 3)

    params = make_params(k_params)

    # small input: batch of 2 rays x 128 samples, 3-D positions / view dirs
    pos = jax.random.normal(k_pos, (2, 128, 3), jnp.float32)
    view_dir = jax.random.normal(k_view, (2, 128, 3), jnp.float32)
    view_dir = view_dir / jnp.linalg.norm(view_dir, axis=-1, keepdims=True)

    density, color = original_nerf_decoder(pos, view_dir, params)
    density, color = jax.block_until_ready((density, color))

    assert density.shape == (2, 128) and color.shape == (2, 128, 3)
    assert bool(jnp.all(jnp.isfinite(density))) and bool(jnp.all(jnp.isfinite(color)))

    # tight check vs a fused-bf16-matched pure-JAX reference (same numerics)
    d_bf, c_bf = reference_forward_bf16(pos, view_dir, params)
    assert jnp.allclose(density, d_bf, atol=2e-3, rtol=2e-3)
    assert jnp.allclose(color, c_bf, atol=2e-3, rtol=2e-3)

    # loose sanity check vs the exact-f32 PyTorch-semantics reference
    d_f32, c_f32 = reference_forward_f32(pos, view_dir, params)
    assert jnp.allclose(density, d_f32, atol=1e-1, rtol=1e-1)
    assert jnp.allclose(color, c_f32, atol=1e-1, rtol=1e-1)

    print("KERNEL_OK")
</pallas_src>

<mosaic_0001>
module attributes {stable_mosaic.version = 11 : i64} {
  func.func @nerf_mlp_kernel(%arg0: i32, %arg1: memref<256x60xbf16, #tpu.memory_space<vmem>>, %arg2: memref<256x24xbf16, #tpu.memory_space<vmem>>, %arg3: memref<60x256xbf16, #tpu.memory_space<vmem>>, %arg4: memref<1x256xf32, #tpu.memory_space<vmem>>, %arg5: memref<256x256xbf16, #tpu.memory_space<vmem>>, %arg6: memref<1x256xf32, #tpu.memory_space<vmem>>, %arg7: memref<256x256xbf16, #tpu.memory_space<vmem>>, %arg8: memref<1x256xf32, #tpu.memory_space<vmem>>, %arg9: memref<256x256xbf16, #tpu.memory_space<vmem>>, %arg10: memref<1x256xf32, #tpu.memory_space<vmem>>, %arg11: memref<256x256xbf16, #tpu.memory_space<vmem>>, %arg12: memref<1x256xf32, #tpu.memory_space<vmem>>, %arg13: memref<256x256xbf16, #tpu.memory_space<vmem>>, %arg14: memref<60x256xbf16, #tpu.memory_space<vmem>>, %arg15: memref<1x256xf32, #tpu.memory_space<vmem>>, %arg16: memref<256x256xbf16, #tpu.memory_space<vmem>>, %arg17: memref<1x256xf32, #tpu.memory_space<vmem>>, %arg18: memref<256x256xbf16, #tpu.memory_space<vmem>>, %arg19: memref<1x256xf32, #tpu.memory_space<vmem>>, %arg20: memref<256x129xbf16, #tpu.memory_space<vmem>>, %arg21: memref<1x129xf32, #tpu.memory_space<vmem>>, %arg22: memref<24x128xbf16, #tpu.memory_space<vmem>>, %arg23: memref<128x128xbf16, #tpu.memory_space<vmem>>, %arg24: memref<1x128xf32, #tpu.memory_space<vmem>>, %arg25: memref<128x128xbf16, #tpu.memory_space<vmem>>, %arg26: memref<1x128xf32, #tpu.memory_space<vmem>>, %arg27: memref<128x128xbf16, #tpu.memory_space<vmem>>, %arg28: memref<1x128xf32, #tpu.memory_space<vmem>>, %arg29: memref<128x3xbf16, #tpu.memory_space<vmem>>, %arg30: memref<1x3xf32, #tpu.memory_space<vmem>>, %arg31: memref<256x4xf32, #tpu.memory_space<vmem>>) attributes {dimension_semantics = [#tpu.dimension_semantics<parallel>], iteration_bounds = array<i64: 1>, scalar_prefetch = 0 : i64, scratch_operands = 0 : i64, tpu.core_type = #tpu.core_type<tc>, window_params = [{transform_indices = @transform_0, window_bounds = array<i64: 256, 60>}, {transform_indices = @transform_1, window_bounds = array<i64: 256, 24>}, {pipeline_mode = #tpu.pipeline_mode<synchronous>, transform_indices = @transform_2, window_bounds = array<i64: 60, 256>}, {pipeline_mode = #tpu.pipeline_mode<synchronous>, transform_indices = @transform_3, window_bounds = array<i64: 1, 256>}, {pipeline_mode = #tpu.pipeline_mode<synchronous>, transform_indices = @transform_4, window_bounds = array<i64: 256, 256>}, {pipeline_mode = #tpu.pipeline_mode<synchronous>, transform_indices = @transform_5, window_bounds = array<i64: 1, 256>}, {pipeline_mode = #tpu.pipeline_mode<synchronous>, transform_indices = @transform_6, window_bounds = array<i64: 256, 256>}, {pipeline_mode = #tpu.pipeline_mode<synchronous>, transform_indices = @transform_7, window_bounds = array<i64: 1, 256>}, {pipeline_mode = #tpu.pipeline_mode<synchronous>, transform_indices = @transform_8, window_bounds = array<i64: 256, 256>}, {pipeline_mode = #tpu.pipeline_mode<synchronous>, transform_indices = @transform_9, window_bounds = array<i64: 1, 256>}, {pipeline_mode = #tpu.pipeline_mode<synchronous>, transform_indices = @transform_10, window_bounds = array<i64: 256, 256>}, {pipeline_mode = #tpu.pipeline_mode<synchronous>, transform_indices = @transform_11, window_bounds = array<i64: 1, 256>}, {pipeline_mode = #tpu.pipeline_mode<synchronous>, transform_indices = @transform_12, window_bounds = array<i64: 256, 256>}, {pipeline_mode = #tpu.pipeline_mode<synchronous>, transform_indices = @transform_13, window_bounds = array<i64: 60, 256>}, {pipeline_mode = #tpu.pipeline_mode<synchronous>, transform_indices = @transform_14, window_bounds = array<i64: 1, 256>}, {pipeline_mode = #tpu.pipeline_mode<synchronous>, transform_indices = @transform_15, window_bounds = array<i64: 256, 256>}, {pipeline_mode = #tpu.pipeline_mode<synchronous>, transform_indices = @transform_16, window_bounds = array<i64: 1, 256>}, {pipeline_mode = #tpu.pipeline_mode<synchronous>, transform_indices = @transform_17, window_bounds = array<i64: 256, 256>}, {pipeline_mode = #tpu.pipeline_mode<synchronous>, transform_indices = @transform_18, window_bounds = array<i64: 1, 256>}, {pipeline_mode = #tpu.pipeline_mode<synchronous>, transform_indices = @transform_19, window_bounds = array<i64: 256, 129>}, {pipeline_mode = #tpu.pipeline_mode<synchronous>, transform_indices = @transform_20, window_bounds = array<i64: 1, 129>}, {pipeline_mode = #tpu.pipeline_mode<synchronous>, transform_indices = @transform_21, window_bounds = array<i64: 24, 128>}, {pipeline_mode = #tpu.pipeline_mode<synchronous>, transform_indices = @transform_22, window_bounds = array<i64: 128, 128>}, {pipeline_mode = #tpu.pipeline_mode<synchronous>, transform_indices = @transform_23, window_bounds = array<i64: 1, 128>}, {pipeline_mode = #tpu.pipeline_mode<synchronous>, transform_indices = @transform_24, window_bounds = array<i64: 128, 128>}, {pipeline_mode = #tpu.pipeline_mode<synchronous>, transform_indices = @transform_25, window_bounds = array<i64: 1, 128>}, {pipeline_mode = #tpu.pipeline_mode<synchronous>, transform_indices = @transform_26, window_bounds = array<i64: 128, 128>}, {pipeline_mode = #tpu.pipeline_mode<synchronous>, transform_indices = @transform_27, window_bounds = array<i64: 1, 128>}, {pipeline_mode = #tpu.pipeline_mode<synchronous>, transform_indices = @transform_28, window_bounds = array<i64: 128, 3>}, {pipeline_mode = #tpu.pipeline_mode<synchronous>, transform_indices = @transform_29, window_bounds = array<i64: 1, 3>}, {transform_indices = @transform_30, window_bounds = array<i64: 256, 4>}]} {
    %c0 = arith.constant 0 : index
    %c0_0 = arith.constant 0 : index
    %0 = vector.load %arg1[%c0, %c0_0] : memref<256x60xbf16, #tpu.memory_space<vmem>>, vector<256x60xbf16>
    %c0_1 = arith.constant 0 : index
    %c0_2 = arith.constant 0 : index
    %1 = vector.load %arg2[%c0_1, %c0_2] : memref<256x24xbf16, #tpu.memory_space<vmem>>, vector<256x24xbf16>
    %c0_3 = arith.constant 0 : index
    %c0_4 = arith.constant 0 : index
    %2 = vector.load %arg3[%c0_3, %c0_4] : memref<60x256xbf16, #tpu.memory_space<vmem>>, vector<60x256xbf16>
    %cst = arith.constant dense<0.000000e+00> : vector<256x256xf32>
    %3 = tpu.matmul %0, %2, %cst {dimension_numbers = #tpu.dot_dimension_numbers<[1], [0], [0], [1], [0, 0, 1, 1], [], []>} : vector<256x60xbf16>, vector<60x256xbf16>, vector<256x256xf32> -> vector<256x256xf32>
    %c0_5 = arith.constant 0 : index
    %c0_6 = arith.constant 0 : index
    %4 = vector.load %arg4[%c0_5, %c0_6] : memref<1x256xf32, #tpu.memory_space<vmem>>, vector<1x256xf32>
    %5 = vector.broadcast %4 : vector<1x256xf32> to vector<256x256xf32>
    %6 = arith.addf %3, %5 : vector<256x256xf32>
    %cst_7 = arith.constant 0.000000e+00 : f32
    %7 = vector.broadcast %cst_7 : f32 to vector<256x256xf32>
    %8 = arith.maximumf %6, %7 : vector<256x256xf32>
    %9 = arith.truncf %8 : vector<256x256xf32> to vector<256x256xbf16>
    %c0_8 = arith.constant 0 : index
    %c0_9 = arith.constant 0 : index
    %10 = vector.load %arg5[%c0_8, %c0_9] : memref<256x256xbf16, #tpu.memory_space<vmem>>, vector<256x256xbf16>
    %cst_10 = arith.constant dense<0.000000e+00> : vector<256x256xf32>
    %11 = tpu.matmul %9, %10, %cst_10 {dimension_numbers = #tpu.dot_dimension_numbers<[1], [0], [0], [1], [0, 0, 1, 1], [], []>} : vector<256x256xbf16>, vector<256x256xbf16>, vector<256x256xf32> -> vector<256x256xf32>
    %c0_11 = arith.constant 0 : index
    %c0_12 = arith.constant 0 : index
    %12 = vector.load %arg6[%c0_11, %c0_12] : memref<1x256xf32, #tpu.memory_space<vmem>>, vector<1x256xf32>
    %13 = vector.broadcast %12 : vector<1x256xf32> to vector<256x256xf32>
    %14 = arith.addf %11, %13 : vector<256x256xf32>
    %cst_13 = arith.constant 0.000000e+00 : f32
    %15 = vector.broadcast %cst_13 : f32 to vector<256x256xf32>
    %16 = arith.maximumf %14, %15 : vector<256x256xf32>
    %17 = arith.truncf %16 : vector<256x256xf32> to vector<256x256xbf16>
    %c0_14 = arith.constant 0 : index
    %c0_15 = arith.constant 0 : index
    %18 = vector.load %arg7[%c0_14, %c0_15] : memref<256x256xbf16, #tpu.memory_space<vmem>>, vector<256x256xbf16>
    %cst_16 = arith.constant dense<0.000000e+00> : vector<256x256xf32>
    %19 = tpu.matmul %17, %18, %cst_16 {dimension_numbers = #tpu.dot_dimension_numbers<[1], [0], [0], [1], [0, 0, 1, 1], [], []>} : vector<256x256xbf16>, vector<256x256xbf16>, vector<256x256xf32> -> vector<256x256xf32>
    %c0_17 = arith.constant 0 : index
    %c0_18 = arith.constant 0 : index
    %20 = vector.load %arg8[%c0_17, %c0_18] : memref<1x256xf32, #tpu.memory_space<vmem>>, vector<1x256xf32>
    %21 = vector.broadcast %20 : vector<1x256xf32> to vector<256x256xf32>
    %22 = arith.addf %19, %21 : vector<256x256xf32>
    %cst_19 = arith.constant 0.000000e+00 : f32
    %23 = vector.broadcast %cst_19 : f32 to vector<256x256xf32>
    %24 = arith.maximumf %22, %23 : vector<256x256xf32>
    %25 = arith.truncf %24 : vector<256x256xf32> to vector<256x256xbf16>
    %c0_20 = arith.constant 0 : index
    %c0_21 = arith.constant 0 : index
    %26 = vector.load %arg9[%c0_20, %c0_21] : memref<256x256xbf16, #tpu.memory_space<vmem>>, vector<256x256xbf16>
    %cst_22 = arith.constant dense<0.000000e+00> : vector<256x256xf32>
    %27 = tpu.matmul %25, %26, %cst_22 {dimension_numbers = #tpu.dot_dimension_numbers<[1], [0], [0], [1], [0, 0, 1, 1], [], []>} : vector<256x256xbf16>, vector<256x256xbf16>, vector<256x256xf32> -> vector<256x256xf32>
    %c0_23 = arith.constant 0 : index
    %c0_24 = arith.constant 0 : index
    %28 = vector.load %arg10[%c0_23, %c0_24] : memref<1x256xf32, #tpu.memory_space<vmem>>, vector<1x256xf32>
    %29 = vector.broadcast %28 : vector<1x256xf32> to vector<256x256xf32>
    %30 = arith.addf %27, %29 : vector<256x256xf32>
    %cst_25 = arith.constant 0.000000e+00 : f32
    %31 = vector.broadcast %cst_25 : f32 to vector<256x256xf32>
    %32 = arith.maximumf %30, %31 : vector<256x256xf32>
    %33 = arith.truncf %32 : vector<256x256xf32> to vector<256x256xbf16>
    %c0_26 = arith.constant 0 : index
    %c0_27 = arith.constant 0 : index
    %34 = vector.load %arg11[%c0_26, %c0_27] : memref<256x256xbf16, #tpu.memory_space<vmem>>, vector<256x256xbf16>
    %cst_28 = arith.constant dense<0.000000e+00> : vector<256x256xf32>
    %35 = tpu.matmul %33, %34, %cst_28 {dimension_numbers = #tpu.dot_dimension_numbers<[1], [0], [0], [1], [0, 0, 1, 1], [], []>} : vector<256x256xbf16>, vector<256x256xbf16>, vector<256x256xf32> -> vector<256x256xf32>
    %c0_29 = arith.constant 0 : index
    %c0_30 = arith.constant 0 : index
    %36 = vector.load %arg12[%c0_29, %c0_30] : memref<1x256xf32, #tpu.memory_space<vmem>>, vector<1x256xf32>
    %37 = vector.broadcast %36 : vector<1x256xf32> to vector<256x256xf32>
    %38 = arith.addf %35, %37 : vector<256x256xf32>
    %cst_31 = arith.constant 0.000000e+00 : f32
    %39 = vector.broadcast %cst_31 : f32 to vector<256x256xf32>
    %40 = arith.maximumf %38, %39 : vector<256x256xf32>
    %41 = arith.truncf %40 : vector<256x256xf32> to vector<256x256xbf16>
    %c0_32 = arith.constant 0 : index
    %c0_33 = arith.constant 0 : index
    %42 = vector.load %arg13[%c0_32, %c0_33] : memref<256x256xbf16, #tpu.memory_space<vmem>>, vector<256x256xbf16>
    %cst_34 = arith.constant dense<0.000000e+00> : vector<256x256xf32>
    %43 = tpu.matmul %41, %42, %cst_34 {dimension_numbers = #tpu.dot_dimension_numbers<[1], [0], [0], [1], [0, 0, 1, 1], [], []>} : vector<256x256xbf16>, vector<256x256xbf16>, vector<256x256xf32> -> vector<256x256xf32>
    %c0_35 = arith.constant 0 : index
    %c0_36 = arith.constant 0 : index
    %44 = vector.load %arg14[%c0_35, %c0_36] : memref<60x256xbf16, #tpu.memory_space<vmem>>, vector<60x256xbf16>
    %cst_37 = arith.constant dense<0.000000e+00> : vector<256x256xf32>
    %45 = tpu.matmul %0, %44, %cst_37 {dimension_numbers = #tpu.dot_dimension_numbers<[1], [0], [0], [1], [0, 0, 1, 1], [], []>} : vector<256x60xbf16>, vector<60x256xbf16>, vector<256x256xf32> -> vector<256x256xf32>
    %46 = arith.addf %43, %45 : vector<256x256xf32>
    %c0_38 = arith.constant 0 : index
    %c0_39 = arith.constant 0 : index
    %47 = vector.load %arg15[%c0_38, %c0_39] : memref<1x256xf32, #tpu.memory_space<vmem>>, vector<1x256xf32>
    %48 = vector.broadcast %47 : vector<1x256xf32> to vector<256x256xf32>
    %49 = arith.addf %46, %48 : vector<256x256xf32>
    %cst_40 = arith.constant 0.000000e+00 : f32
    %50 = vector.broadcast %cst_40 : f32 to vector<256x256xf32>
    %51 = arith.maximumf %49, %50 : vector<256x256xf32>
    %52 = arith.truncf %51 : vector<256x256xf32> to vector<256x256xbf16>
    %c0_41 = arith.constant 0 : index
    %c0_42 = arith.constant 0 : index
    %53 = vector.load %arg16[%c0_41, %c0_42] : memref<256x256xbf16, #tpu.memory_space<vmem>>, vector<256x256xbf16>
    %cst_43 = arith.constant dense<0.000000e+00> : vector<256x256xf32>
    %54 = tpu.matmul %52, %53, %cst_43 {dimension_numbers = #tpu.dot_dimension_numbers<[1], [0], [0], [1], [0, 0, 1, 1], [], []>} : vector<256x256xbf16>, vector<256x256xbf16>, vector<256x256xf32> -> vector<256x256xf32>
    %c0_44 = arith.constant 0 : index
    %c0_45 = arith.constant 0 : index
    %55 = vector.load %arg17[%c0_44, %c0_45] : memref<1x256xf32, #tpu.memory_space<vmem>>, vector<1x256xf32>
    %56 = vector.broadcast %55 : vector<1x256xf32> to vector<256x256xf32>
    %57 = arith.addf %54, %56 : vector<256x256xf32>
    %cst_46 = arith.constant 0.000000e+00 : f32
    %58 = vector.broadcast %cst_46 : f32 to vector<256x256xf32>
    %59 = arith.maximumf %57, %58 : vector<256x256xf32>
    %60 = arith.truncf %59 : vector<256x256xf32> to vector<256x256xbf16>
    %c0_47 = arith.constant 0 : index
    %c0_48 = arith.constant 0 : index
    %61 = vector.load %arg18[%c0_47, %c0_48] : memref<256x256xbf16, #tpu.memory_space<vmem>>, vector<256x256xbf16>
    %cst_49 = arith.constant dense<0.000000e+00> : vector<256x256xf32>
    %62 = tpu.matmul %60, %61, %cst_49 {dimension_numbers = #tpu.dot_dimension_numbers<[1], [0], [0], [1], [0, 0, 1, 1], [], []>} : vector<256x256xbf16>, vector<256x256xbf16>, vector<256x256xf32> -> vector<256x256xf32>
    %c0_50 = arith.constant 0 : index
    %c0_51 = arith.constant 0 : index
    %63 = vector.load %arg19[%c0_50, %c0_51] : memref<1x256xf32, #tpu.memory_space<vmem>>, vector<1x256xf32>
    %64 = vector.broadcast %63 : vector<1x256xf32> to vector<256x256xf32>
    %65 = arith.addf %62, %64 : vector<256x256xf32>
    %cst_52 = arith.constant 0.000000e+00 : f32
    %66 = vector.broadcast %cst_52 : f32 to vector<256x256xf32>
    %67 = arith.maximumf %65, %66 : vector<256x256xf32>
    %68 = arith.truncf %67 : vector<256x256xf32> to vector<256x256xbf16>
    %c0_53 = arith.constant 0 : index
    %c0_54 = arith.constant 0 : index
    %69 = vector.load %arg20[%c0_53, %c0_54] : memref<256x129xbf16, #tpu.memory_space<vmem>>, vector<256x129xbf16>
    %cst_55 = arith.constant dense<0.000000e+00> : vector<256x129xf32>
    %70 = tpu.matmul %68, %69, %cst_55 {dimension_numbers = #tpu.dot_dimension_numbers<[1], [0], [0], [1], [0, 0, 1, 1], [], []>} : vector<256x256xbf16>, vector<256x129xbf16>, vector<256x129xf32> -> vector<256x129xf32>
    %c0_56 = arith.constant 0 : index
    %c0_57 = arith.constant 0 : index
    %71 = vector.load %arg21[%c0_56, %c0_57] : memref<1x129xf32, #tpu.memory_space<vmem>>, vector<1x129xf32>
    %72 = vector.broadcast %71 : vector<1x129xf32> to vector<256x129xf32>
    %73 = arith.addf %70, %72 : vector<256x129xf32>
    %74 = vector.extract_strided_slice %73 {offsets = [0, 128], sizes = [256, 1], strides = [1, 1]} : vector<256x129xf32> to vector<256x1xf32>
    %75 = vector.extract_strided_slice %73 {offsets = [0, 0], sizes = [256, 128], strides = [1, 1]} : vector<256x129xf32> to vector<256x128xf32>
    %c0_58 = arith.constant 0 : index
    %c0_59 = arith.constant 0 : index
    %76 = vector.load %arg22[%c0_58, %c0_59] : memref<24x128xbf16, #tpu.memory_space<vmem>>, vector<24x128xbf16>
    %cst_60 = arith.constant dense<0.000000e+00> : vector<256x128xf32>
    %77 = tpu.matmul %1, %76, %cst_60 {dimension_numbers = #tpu.dot_dimension_numbers<[1], [0], [0], [1], [0, 0, 1, 1], [], []>} : vector<256x24xbf16>, vector<24x128xbf16>, vector<256x128xf32> -> vector<256x128xf32>
    %78 = arith.addf %75, %77 : vector<256x128xf32>
    %cst_61 = arith.constant 0.000000e+00 : f32
    %79 = vector.broadcast %cst_61 : f32 to vector<256x128xf32>
    %80 = arith.maximumf %78, %79 : vector<256x128xf32>
    %81 = arith.truncf %80 : vector<256x128xf32> to vector<256x128xbf16>
    %c0_62 = arith.constant 0 : index
    %c0_63 = arith.constant 0 : index
    %82 = vector.load %arg23[%c0_62, %c0_63] : memref<128x128xbf16, #tpu.memory_space<vmem>>, vector<128x128xbf16>
    %cst_64 = arith.constant dense<0.000000e+00> : vector<256x128xf32>
    %83 = tpu.matmul %81, %82, %cst_64 {dimension_numbers = #tpu.dot_dimension_numbers<[1], [0], [0], [1], [0, 0, 1, 1], [], []>} : vector<256x128xbf16>, vector<128x128xbf16>, vector<256x128xf32> -> vector<256x128xf32>
    %c0_65 = arith.constant 0 : index
    %c0_66 = arith.constant 0 : index
    %84 = vector.load %arg24[%c0_65, %c0_66] : memref<1x128xf32, #tpu.memory_space<vmem>>, vector<1x128xf32>
    %85 = vector.broadcast %84 : vector<1x128xf32> to vector<256x128xf32>
    %86 = arith.addf %83, %85 : vector<256x128xf32>
    %cst_67 = arith.constant 0.000000e+00 : f32
    %87 = vector.broadcast %cst_67 : f32 to vector<256x128xf32>
    %88 = arith.maximumf %86, %87 : vector<256x128xf32>
    %89 = arith.truncf %88 : vector<256x128xf32> to vector<256x128xbf16>
    %c0_68 = arith.constant 0 : index
    %c0_69 = arith.constant 0 : index
    %90 = vector.load %arg25[%c0_68, %c0_69] : memref<128x128xbf16, #tpu.memory_space<vmem>>, vector<128x128xbf16>
    %cst_70 = arith.constant dense<0.000000e+00> : vector<256x128xf32>
    %91 = tpu.matmul %89, %90, %cst_70 {dimension_numbers = #tpu.dot_dimension_numbers<[1], [0], [0], [1], [0, 0, 1, 1], [], []>} : vector<256x128xbf16>, vector<128x128xbf16>, vector<256x128xf32> -> vector<256x128xf32>
    %c0_71 = arith.constant 0 : index
    %c0_72 = arith.constant 0 : index
    %92 = vector.load %arg26[%c0_71, %c0_72] : memref<1x128xf32, #tpu.memory_space<vmem>>, vector<1x128xf32>
    %93 = vector.broadcast %92 : vector<1x128xf32> to vector<256x128xf32>
    %94 = arith.addf %91, %93 : vector<256x128xf32>
    %cst_73 = arith.constant 0.000000e+00 : f32
    %95 = vector.broadcast %cst_73 : f32 to vector<256x128xf32>
    %96 = arith.maximumf %94, %95 : vector<256x128xf32>
    %97 = arith.truncf %96 : vector<256x128xf32> to vector<256x128xbf16>
    %c0_74 = arith.constant 0 : index
    %c0_75 = arith.constant 0 : index
    %98 = vector.load %arg27[%c0_74, %c0_75] : memref<128x128xbf16, #tpu.memory_space<vmem>>, vector<128x128xbf16>
    %cst_76 = arith.constant dense<0.000000e+00> : vector<256x128xf32>
    %99 = tpu.matmul %97, %98, %cst_76 {dimension_numbers = #tpu.dot_dimension_numbers<[1], [0], [0], [1], [0, 0, 1, 1], [], []>} : vector<256x128xbf16>, vector<128x128xbf16>, vector<256x128xf32> -> vector<256x128xf32>
    %c0_77 = arith.constant 0 : index
    %c0_78 = arith.constant 0 : index
    %100 = vector.load %arg28[%c0_77, %c0_78] : memref<1x128xf32, #tpu.memory_space<vmem>>, vector<1x128xf32>
    %101 = vector.broadcast %100 : vector<1x128xf32> to vector<256x128xf32>
    %102 = arith.addf %99, %101 : vector<256x128xf32>
    %cst_79 = arith.constant 0.000000e+00 : f32
    %103 = vector.broadcast %cst_79 : f32 to vector<256x128xf32>
    %104 = arith.maximumf %102, %103 : vector<256x128xf32>
    %105 = arith.truncf %104 : vector<256x128xf32> to vector<256x128xbf16>
    %c0_80 = arith.constant 0 : index
    %c0_81 = arith.constant 0 : index
    %106 = vector.load %arg29[%c0_80, %c0_81] : memref<128x3xbf16, #tpu.memory_space<vmem>>, vector<128x3xbf16>
    %cst_82 = arith.constant dense<0.000000e+00> : vector<256x3xf32>
    %107 = tpu.matmul %105, %106, %cst_82 {dimension_numbers = #tpu.dot_dimension_numbers<[1], [0], [0], [1], [0, 0, 1, 1], [], []>} : vector<256x128xbf16>, vector<128x3xbf16>, vector<256x3xf32> -> vector<256x3xf32>
    %c0_83 = arith.constant 0 : index
    %c0_84 = arith.constant 0 : index
    %108 = vector.load %arg30[%c0_83, %c0_84] : memref<1x3xf32, #tpu.memory_space<vmem>>, vector<1x3xf32>
    %109 = vector.broadcast %108 : vector<1x3xf32> to vector<256x3xf32>
    %110 = arith.addf %107, %109 : vector<256x3xf32>
    %111 = tpu.concatenate %74, %110 in 1 : vector<256x1xf32>, vector<256x3xf32> -> vector<256x4xf32>
    %cst_85 = arith.constant 0.000000e+00 : f32
    %112 = vector.broadcast %cst_85 : f32 to vector<256x4xf32>
    %113 = arith.maximumf %111, %112 : vector<256x4xf32>
    %114 = math.absf %111 : vector<256x4xf32>
    %cst_86 = arith.constant 0.000000e+00 : f32
    %115 = vector.broadcast %cst_86 : f32 to vector<256x4xf32>
    %116 = arith.subf %115, %114 : vector<256x4xf32>
    %117 = math.exp %116 : vector<256x4xf32>
    %118 = math.log1p %117 : vector<256x4xf32>
    %119 = arith.addf %113, %118 : vector<256x4xf32>
    %c0_87 = arith.constant 0 : index
    %c0_88 = arith.constant 0 : index
    %120 = vector.load %arg31[%c0_87, %c0_88] : memref<256x4xf32, #tpu.memory_space<vmem>>, vector<256x4xf32>
    tpu.vector_store %arg31[%c0_87, %c0_88], %119 {strides = array<i32>} : memref<256x4xf32, #tpu.memory_space<vmem>>, vector<256x4xf32>,
    return
  }
  func.func @transform_0(%arg0: i32) -> (i32, i32) {
    %c0_i32 = arith.constant 0 : i32
    %c0_i32_0 = arith.constant 0 : i32
    return %arg0, %c0_i32 : i32, i32
  }
  func.func @transform_1(%arg0: i32) -> (i32, i32) {
    %c0_i32 = arith.constant 0 : i32
    %c0_i32_0 = arith.constant 0 : i32
    return %arg0, %c0_i32 : i32, i32
  }
  func.func @transform_2(%arg0: i32) -> (i32, i32) {
    %c0_i32 = arith.constant 0 : i32
    %c0_i32_0 = arith.constant 0 : i32
    %c0_i32_1 = arith.constant 0 : i32
    return %c0_i32, %c0_i32_0 : i32, i32
  }
  func.func @transform_3(%arg0: i32) -> (i32, i32) {
    %c0_i32 = arith.constant 0 : i32
    %c0_i32_0 = arith.constant 0 : i32
    %c0_i32_1 = arith.constant 0 : i32
    return %c0_i32, %c0_i32_0 : i32, i32
  }
  func.func @transform_4(%arg0: i32) -> (i32, i32) {
    %c0_i32 = arith.constant 0 : i32
    %c0_i32_0 = arith.constant 0 : i32
    %c0_i32_1 = arith.constant 0 : i32
    return %c0_i32, %c0_i32_0 : i32, i32
  }
  func.func @transform_5(%arg0: i32) -> (i32, i32) {
    %c0_i32 = arith.constant 0 : i32
    %c0_i32_0 = arith.constant 0 : i32
    %c0_i32_1 = arith.constant 0 : i32
    return %c0_i32, %c0_i32_0 : i32, i32
  }
  func.func @transform_6(%arg0: i32) -> (i32, i32) {
    %c0_i32 = arith.constant 0 : i32
    %c0_i32_0 = arith.constant 0 : i32
    %c0_i32_1 = arith.constant 0 : i32
    return %c0_i32, %c0_i32_0 : i32, i32
  }
  func.func @transform_7(%arg0: i32) -> (i32, i32) {
    %c0_i32 = arith.constant 0 : i32
    %c0_i32_0 = arith.constant 0 : i32
    %c0_i32_1 = arith.constant 0 : i32
    return %c0_i32, %c0_i32_0 : i32, i32
  }
  func.func @transform_8(%arg0: i32) -> (i32, i32) {
    %c0_i32 = arith.constant 0 : i32
    %c0_i32_0 = arith.constant 0 : i32
    %c0_i32_1 = arith.constant 0 : i32
    return %c0_i32, %c0_i32_0 : i32, i32
  }
  func.func @transform_9(%arg0: i32) -> (i32, i32) {
    %c0_i32 = arith.constant 0 : i32
    %c0_i32_0 = arith.constant 0 : i32
    %c0_i32_1 = arith.constant 0 : i32
    return %c0_i32, %c0_i32_0 : i32, i32
  }
  func.func @transform_10(%arg0: i32) -> (i32, i32) {
    %c0_i32 = arith.constant 0 : i32
    %c0_i32_0 = arith.constant 0 : i32
    %c0_i32_1 = arith.constant 0 : i32
    return %c0_i32, %c0_i32_0 : i32, i32
  }
  func.func @transform_11(%arg0: i32) -> (i32, i32) {
    %c0_i32 = arith.constant 0 : i32
    %c0_i32_0 = arith.constant 0 : i32
    %c0_i32_1 = arith.constant 0 : i32
    return %c0_i32, %c0_i32_0 : i32, i32
  }
  func.func @transform_12(%arg0: i32) -> (i32, i32) {
    %c0_i32 = arith.constant 0 : i32
    %c0_i32_0 = arith.constant 0 : i32
    %c0_i32_1 = arith.constant 0 : i32
    return %c0_i32, %c0_i32_0 : i32, i32
  }
  func.func @transform_13(%arg0: i32) -> (i32, i32) {
    %c0_i32 = arith.constant 0 : i32
    %c0_i32_0 = arith.constant 0 : i32
    %c0_i32_1 = arith.constant 0 : i32
    return %c0_i32, %c0_i32_0 : i32, i32
  }
  func.func @transform_14(%arg0: i32) -> (i32, i32) {
    %c0_i32 = arith.constant 0 : i32
    %c0_i32_0 = arith.constant 0 : i32
    %c0_i32_1 = arith.constant 0 : i32
    return %c0_i32, %c0_i32_0 : i32, i32
  }
  func.func @transform_15(%arg0: i32) -> (i32, i32) {
    %c0_i32 = arith.constant 0 : i32
    %c0_i32_0 = arith.constant 0 : i32
    %c0_i32_1 = arith.constant 0 : i32
    return %c0_i32, %c0_i32_0 : i32, i32
  }
  func.func @transform_16(%arg0: i32) -> (i32, i32) {
    %c0_i32 = arith.constant 0 : i32
    %c0_i32_0 = arith.constant 0 : i32
    %c0_i32_1 = arith.constant 0 : i32
    return %c0_i32, %c0_i32_0 : i32, i32
  }
  func.func @transform_17(%arg0: i32) -> (i32, i32) {
    %c0_i32 = arith.constant 0 : i32
    %c0_i32_0 = arith.constant 0 : i32
    %c0_i32_1 = arith.constant 0 : i32
    return %c0_i32, %c0_i32_0 : i32, i32
  }
  func.func @transform_18(%arg0: i32) -> (i32, i32) {
    %c0_i32 = arith.constant 0 : i32
    %c0_i32_0 = arith.constant 0 : i32
    %c0_i32_1 = arith.constant 0 : i32
    return %c0_i32, %c0_i32_0 : i32, i32
  }
  func.func @transform_19(%arg0: i32) -> (i32, i32) {
    %c0_i32 = arith.constant 0 : i32
    %c0_i32_0 = arith.constant 0 : i32
    %c0_i32_1 = arith.constant 0 : i32
    return %c0_i32, %c0_i32_0 : i32, i32
  }
  func.func @transform_20(%arg0: i32) -> (i32, i32) {
    %c0_i32 = arith.constant 0 : i32
    %c0_i32_0 = arith.constant 0 : i32
    %c0_i32_1 = arith.constant 0 : i32
    return %c0_i32, %c0_i32_0 : i32, i32
  }
  func.func @transform_21(%arg0: i32) -> (i32, i32) {
    %c0_i32 = arith.constant 0 : i32
    %c0_i32_0 = arith.constant 0 : i32
    %c0_i32_1 = arith.constant 0 : i32
    return %c0_i32, %c0_i32_0 : i32, i32
  }
  func.func @transform_22(%arg0: i32) -> (i32, i32) {
    %c0_i32 = arith.constant 0 : i32
    %c0_i32_0 = arith.constant 0 : i32
    %c0_i32_1 = arith.constant 0 : i32
    return %c0_i32, %c0_i32_0 : i32, i32
  }
  func.func @transform_23(%arg0: i32) -> (i32, i32) {
    %c0_i32 = arith.constant 0 : i32
    %c0_i32_0 = arith.constant 0 : i32
    %c0_i32_1 = arith.constant 0 : i32
    return %c0_i32, %c0_i32_0 : i32, i32
  }
  func.func @transform_24(%arg0: i32) -> (i32, i32) {
    %c0_i32 = arith.constant 0 : i32
    %c0_i32_0 = arith.constant 0 : i32
    %c0_i32_1 = arith.constant 0 : i32
    return %c0_i32, %c0_i32_0 : i32, i32
  }
  func.func @transform_25(%arg0: i32) -> (i32, i32) {
    %c0_i32 = arith.constant 0 : i32
    %c0_i32_0 = arith.constant 0 : i32
    %c0_i32_1 = arith.constant 0 : i32
    return %c0_i32, %c0_i32_0 : i32, i32
  }
  func.func @transform_26(%arg0: i32) -> (i32, i32) {
    %c0_i32 = arith.constant 0 : i32
    %c0_i32_0 = arith.constant 0 : i32
    %c0_i32_1 = arith.constant 0 : i32
    return %c0_i32, %c0_i32_0 : i32, i32
  }
  func.func @transform_27(%arg0: i32) -> (i32, i32) {
    %c0_i32 = arith.constant 0 : i32
    %c0_i32_0 = arith.constant 0 : i32
    %c0_i32_1 = arith.constant 0 : i32
    return %c0_i32, %c0_i32_0 : i32, i32
  }
  func.func @transform_28(%arg0: i32) -> (i32, i32) {
    %c0_i32 = arith.constant 0 : i32
    %c0_i32_0 = arith.constant 0 : i32
    %c0_i32_1 = arith.constant 0 : i32
    return %c0_i32, %c0_i32_0 : i32, i32
  }
  func.func @transform_29(%arg0: i32) -> (i32, i32) {
    %c0_i32 = arith.constant 0 : i32
    %c0_i32_0 = arith.constant 0 : i32
    %c0_i32_1 = arith.constant 0 : i32
    return %c0_i32, %c0_i32_0 : i32, i32
  }
  func.func @transform_30(%arg0: i32) -> (i32, i32) {
    %c0_i32 = arith.constant 0 : i32
    %c0_i32_0 = arith.constant 0 : i32
    return %arg0, %c0_i32 : i32, i32
  }
}

</mosaic_0001>

<bundles_post_ra>
// kernel: tpu_custom_call.1
= control target key start
LH: loop header
LB: loop body
LE: loop exit
PB: predicated region body
PF: predicated region fallthrough
CT: control target
= control target key end

     0   :  { %s10193_s6 = smov 1   ;;  %s10194_s10 = smov 2   ;;  %s14910_s0 = inlined_call_operand.smem [shape: u32[31], index: -1, kind: input, shape index: {}] }
   0x1   :  { %s10245_s5 = sld [smem:[%s14910_s0]]   ;;  %s10195_s14 = smov 3  }
   0x2   :  { %s10250_s9 = sld [smem:[%s14910_s0 + %s10193_s6]]   ;;  %s10196_s18 = smov 4  }
   0x3   :  { %s10255_s13 = sld [smem:[%s14910_s0 + %s10194_s10]]   ;;  %s10197_s22 = smov 5  }
   0x4   :  { %s10260_s17 = sld [smem:[%s14910_s0 + %s10195_s14]]   ;;  %s10198_s26 = smov 6  }
   0x5   :  { %s10265_s21 = sld [smem:[%s14910_s0 + %s10196_s18]]   ;;  %s10199_s30 = smov 7  }
   0x6   :  { %s10270_s25 = sld [smem:[%s14910_s0 + %s10197_s22]]   ;;  %s10200_s4 = smov 8  }
   0x7   :  { %s10275_s29 = sld [smem:[%s14910_s0 + %s10198_s26]]   ;;  %s10201_s10 = smov 9  }
   0x8   :  { %14932 = sst [smem:[#allocation21_spill]] %s10250_s9  ;;  %s10202_s15 = smov 10  }
   0x9   :  { %s10280_s3 = sld [smem:[%s14910_s0 + %s10199_s30]]   ;;  %s10203_s20 = smov 11  }
   0xa   :  { %s10285_s8 = sld [smem:[%s14910_s0 + %s10200_s4]]   ;;  %s10204_s26 = smov 12  }
   0xb   :  { %s10290_s14 = sld [smem:[%s14910_s0 + %s10201_s10]]   ;;  %s10205_s1 = smov 13  }
   0xc   :  { %s10295_s19 = sld [smem:[%s14910_s0 + %s10202_s15]]   ;;  %s10206_s7 = smov 14  }
   0xd   :  { %s10300_s24 = sld [smem:[%s14910_s0 + %s10203_s20]]   ;;  %s10207_s15 = smov 15  }
   0xe   :  { %s10305_s30 = sld [smem:[%s14910_s0 + %s10204_s26]]   ;;  %s10208_s22 = smov 16  }
   0xf   :  { %14933 = sst [smem:[#allocation22_spill]] %s10280_s3  ;;  %s10209_s28 = smov 17  }
  0x10   :  { %14934 = sst [smem:[#allocation23_spill]] %s10285_s8 }
  0x11   :  { %14935 = sst [smem:[#allocation24_spill]] %s10290_s14 }
  0x12   :  { %s10310_s6 = sld [smem:[%s14910_s0 + %s10205_s1]]  }
  0x13   :  { %14936 = sst [smem:[#allocation25_spill]] %s10300_s24 }
  0x14   :  { %s10315_s12 = sld [smem:[%s14910_s0 + %s10206_s7]]   ;;  %s10210_s7 = smov 18  }
  0x15   :  { %s10320_s20 = sld [smem:[%s14910_s0 + %s10207_s15]]   ;;  %s10211_s15 = smov 19  }
  0x16   :  { %s10325_s27 = sld [smem:[%s14910_s0 + %s10208_s22]]   ;;  %s10212_s22 = smov 20  }
  0x17   :  { %s10330_s4 = sld [smem:[%s14910_s0 + %s10209_s28]]   ;;  %s10213_s28 = smov 21  }
  0x18   :  { %s10335_s9 = sld [smem:[%s14910_s0 + %s10210_s7]]   ;;  %s10214_s7 = smov 22  }
  0x19   :  { %s10350_s24 = sld [smem:[%s14910_s0 + %s10213_s28]]   ;;  %s10217_s28 = smov 25  }
  0x1a   :  { %14937 = sst [smem:[#allocation26_spill]] %s10315_s12 }
  0x1b   :  { %s10340_s12 = sld [smem:[%s14910_s0 + %s10211_s15]]   ;;  %s10215_s15 = smov 23  }
  0x1c   :  { %14938 = sst [smem:[#allocation27_spill]] %s10325_s27 }
  0x1d   :  { %s10345_s27 = sld [smem:[%s14910_s0 + %s10212_s22]]   ;;  %s10216_s22 = smov 24  }
  0x1e   :  { %14939 = sst [smem:[#allocation28_spill]] %s10335_s9 }
  0x1f   :  { %14942 = sst [smem:[#allocation31_spill]] %s10350_s24 }
  0x20   :  { %s10355_s9 = sld [smem:[%s14910_s0 + %s10214_s7]]   ;;  %s10218_s7 = smov 26  }
  0x21   :  { %14940 = sst [smem:[#allocation29_spill]] %s10340_s12 }
  0x22   :  { %s10360_s12 = sld [smem:[%s14910_s0 + %s10215_s15]]   ;;  %s10219_s15 = smov 27  }
  0x23   :  { %14941 = sst [smem:[#allocation30_spill]] %s10345_s27 }
  0x24   :  { %s10365_s27 = sld [smem:[%s14910_s0 + %s10216_s22]]   ;;  %s10220_s22 = smov 28  }
  0x25   :  { %s10370_s24 = sld [smem:[%s14910_s0 + %s10217_s28]]   ;;  %s10221_s28 = smov 29  }
  0x26   :  { %s10375_s14 = sld [smem:[%s14910_s0 + %s10218_s7]]   ;;  %s10222_s7 = smov 30  }
  0x27   :  { %s10385_s3 = sld [smem:[%s14910_s0 + %s10220_s22]]  }
  0x28   :  { %14943 = sst [smem:[#allocation32_spill]] %s10360_s12 }
  0x29   :  { %s10380_s12 = sld [smem:[%s14910_s0 + %s10219_s15]]  }
  0x2a   :  { %s10395_s8 = sld [smem:[%s14910_s0 + %s10222_s7]]  }
  0x2b   :  { %14944 = sst [smem:[#allocation33_spill]] %s10370_s24 }
  0x2c   :  { %s10390_s24 = sld [smem:[%s14910_s0 + %s10221_s28]]  }
  0x2d   :  { %66 = vsyncpa [#allocation3], 0 }
  0x2e   :  { %67 = vsyncpa [#allocation5], 0 }
  0x2f   :  { %68 = vsyncpa [#allocation8], 0 }
  0x30   :  { %69 = vsyncpa [#allocation11], 0 }
  0x31   :  { %70 = vsyncpa [#allocation14], 0  ;;  %s106_s15 = sshll.u32 %s10295_s19, 4  ;;  %s10223_s16 = smov [#allocation4]   ;;  %s107_s15 = int_to_ptr.hbm [resolvable:$true] %s106_s15 }
  0x32   :  { %s108_s18 = sshll.u32 %s10223_s16, 4  ;;  %s134_s22 = sshll.u32 %s10310_s6, 4  ;;  %s109_s18 = int_to_ptr.vmem [resolvable:$true] %s108_s18  ;;  %s135_s22 = int_to_ptr.hbm [resolvable:$true] %s134_s22 }
  0x33   :  { %s9967_s23 = sshra.s32 %s107_s15, 4  ;;  %s9971_s0 = scalar_lea.hbm %s10295_s19, 256  ;;  %s9968_s23 = int_to_ptr.hbm [resolvable:$true] %s9967_s23 }
  0x34   :  { %s9969_s26 = scalar_lea.hbm %s9968_s23, 256  ;;  %p9972_p1 = scmp.lt.s32.totalorder %s9968_s23, %s10295_s19 }
  0x35   :  { %p9970_p0 = scmp.ne.s32.totalorder %s9968_s23, %s9969_s26  ;;  %p9973_p2 = scmp.lt.s32.totalorder %s9971_s0, %s9969_s26 }
  0x37   :  { %p9974_p3 = por %p9973_p2, %p9972_p1 }
  0x39   :  { %p9975_p4 = pnand %p9974_p3, %p9970_p0 }
  0x3b   :  { %9978 = shalt.err (!%p9975_p4)
}
  0x3c   :  { %s10224_s28 = smov 128   ;;  %s10225_s1 = smov 8  }
  0x3d   :  { %114 = dma.hbm_to_vmem [thread:$0]  %s107_s15, 4096, %s109_s18, [#allocation5], %s10224_s28, %s10224_s28, %s10225_s1  }
  0x3e   :  { %s10226_s2 = smov [#allocation7]   ;;  %s164_s10 = sshll.u32 %s10330_s4, 4  ;;  %s10405_s10 = int_to_ptr.hbm [resolvable:$true] %s164_s10 }
  0x3f   :  { %s136_s7 = sshll.u32 %s10226_s2, 4  ;;  %s9991_s19 = sshra.s32 %s135_s22, 4  ;;  %s137_s7 = int_to_ptr.vmem [resolvable:$true] %s136_s7  ;;  %s9992_s19 = int_to_ptr.hbm [resolvable:$true] %s9991_s19 }
  0x40   :  { %s9993_s11 = scalar_lea.hbm %s9992_s19, 64  ;;  %s9995_s16 = scalar_lea.hbm %s10310_s6, 64 }
  0x41   :  { %p9994_p5 = scmp.ne.s32.totalorder %s9992_s19, %s9993_s11  ;;  %p9996_p6 = scmp.lt.s32.totalorder %s9992_s19, %s10310_s6 }
  0x42   :  { %p9997_p7 = scmp.lt.s32.totalorder %s9995_s16, %s9993_s11 }
  0x44   :  { %p9998_p8 = por %p9997_p7, %p9996_p6 }
  0x46   :  { %p9999_p9 = pnand %p9998_p8, %p9994_p5 }
  0x48   :  { %10002 = shalt.err (!%p9999_p9)
}
  0x49   :  { %142 = dma.hbm_to_vmem [thread:$0]  %s135_s22, 1024, %s137_s7, [#allocation8], %s10224_s28, %s10224_s28, %s10225_s1  }
  0x4a   :  { %s10227_s15 = smov [#allocation10]   ;;  %s200_s23 = sshll.u32 %s10365_s27, 4  ;;  %s201_s23 = int_to_ptr.hbm [resolvable:$true] %s200_s23 }
  0x4b   :  { %s166_s18 = sshll.u32 %s10227_s15, 4  ;;  %s10015_s26 = sshra.s32 %s10405_s10, 4  ;;  %s167_s18 = int_to_ptr.vmem [resolvable:$true] %s166_s18  ;;  %s10016_s26 = int_to_ptr.hbm [resolvable:$true] %s10015_s26 }
  0x4c   :  { %s10017_s0 = scalar_lea.hbm %s10016_s26, 256  ;;  %s10019_s6 = scalar_lea.hbm %s10330_s4, 256 }
  0x4d   :  { %p10018_p10 = scmp.ne.s32.totalorder %s10016_s26, %s10017_s0  ;;  %p10020_p11 = scmp.lt.s32.totalorder %s10016_s26, %s10330_s4 }
  0x4e   :  { %p10021_p12 = scmp.lt.s32.totalorder %s10019_s6, %s10017_s0 }
  0x50   :  { %p10022_p13 = por %p10021_p12, %p10020_p11 }
  0x52   :  { %p10023_p0 = pnand %p10022_p13, %p10018_p10 }
  0x54   :  { %10026 = shalt.err (!%p10023_p0)
}
  0x55   :  { %172 = dma.hbm_to_vmem [thread:$0]  %s10405_s10, 4096, %s167_s18, [#allocation11], %s10224_s28, %s10224_s28, %s10225_s1  }
  0x56   :  { %s10228_s22 = smov [#allocation13]   ;;  %s79_s7 = sshll.u32 %s10255_s13, 4  ;;  %s10421_s7 = int_to_ptr.hbm [resolvable:$true] %s79_s7 }
  0x57   :  { %s202_s2 = sshll.u32 %s10228_s22, 4  ;;  %s10039_s4 = sshra.s32 %s201_s23, 4  ;;  %s203_s2 = int_to_ptr.vmem [resolvable:$true] %s202_s2  ;;  %s10040_s4 = int_to_ptr.hbm [resolvable:$true] %s10039_s4 }
  0x58   :  { %s10041_s19 = scalar_lea.hbm %s10040_s4, 64  ;;  %s10043_s11 = scalar_lea.hbm %s10365_s27, 64 }
  0x59   :  { %p10042_p1 = scmp.ne.s32.totalorder %s10040_s4, %s10041_s19  ;;  %p10044_p2 = scmp.lt.s32.totalorder %s10040_s4, %s10365_s27 }
  0x5a   :  { %p10045_p3 = scmp.lt.s32.totalorder %s10043_s11, %s10041_s19 }
  0x5c   :  { %p10046_p4 = por %p10045_p3, %p10044_p2 }
  0x5e   :  { %p10047_p5 = pnand %p10046_p4, %p10042_p1 }
  0x60   :  { %10050 = shalt.err (!%p10047_p5)
}
  0x61   :  { %s10229_s16 = smov 64   ;;  %s10230_s10 = smov 4  }
  0x62   :  { %208 = dma.hbm_to_vmem [thread:$0]  %s201_s23, 1024, %s203_s2, [#allocation14], %s10229_s16, %s10229_s16, %s10230_s10  }
  0x63   :  { %s121_s15 = sshll.u32 %s10305_s30, 4  ;;  %s10231_s18 = smov [#allocation2]   ;;  %s10429_s15 = int_to_ptr.hbm [resolvable:$true] %s121_s15 }
  0x64   :  { %s81_s26 = sshll.u32 %s10231_s18, 4  ;;  %s10063_s27 = sshra.s32 %s10421_s7, 4  ;;  %s82_s26 = int_to_ptr.vmem [resolvable:$true] %s81_s26  ;;  %s10064_s27 = int_to_ptr.hbm [resolvable:$true] %s10063_s27 }
  0x65   :  { %s10065_s0 = scalar_lea.hbm %s10064_s27, 64  ;;  %s10067_s6 = scalar_lea.hbm %s10255_s13, 64 }
  0x66   :  { %p10066_p6 = scmp.ne.s32.totalorder %s10064_s27, %s10065_s0  ;;  %p10068_p7 = scmp.lt.s32.totalorder %s10064_s27, %s10255_s13 }
  0x67   :  { %p10069_p8 = scmp.lt.s32.totalorder %s10067_s6, %s10065_s0 }
  0x69   :  { %p10070_p9 = por %p10069_p8, %p10068_p7 }
  0x6b   :  { %p10071_p10 = pnand %p10070_p9, %p10066_p6 }
  0x6d   :  { %10074 = shalt.err (!%p10071_p10)
}
  0x6e   :  { %87 = dma.hbm_to_vmem [thread:$0]  %s10421_s7, 1024, %s82_s26, [#allocation3], %s10224_s28, %s10224_s28, %s10225_s1  }
  0x6f   :  { %s10232_s23 = smov [#allocation6]   ;;  %s149_s2 = sshll.u32 %s10320_s20, 4  ;;  %s10439_s2 = int_to_ptr.hbm [resolvable:$true] %s149_s2 }
  0x70   :  { %s123_s22 = sshll.u32 %s10232_s23, 4  ;;  %s10087_s13 = sshra.s32 %s10429_s15, 4  ;;  %s124_s22 = int_to_ptr.vmem [resolvable:$true] %s123_s22  ;;  %s10088_s13 = int_to_ptr.hbm [resolvable:$true] %s10087_s13 }
  0x71   :  { %s10089_s4 = scalar_lea.hbm %s10088_s13, 256  ;;  %s10091_s19 = scalar_lea.hbm %s10305_s30, 256 }
  0x72   :  { %p10090_p11 = scmp.ne.s32.totalorder %s10088_s13, %s10089_s4  ;;  %p10092_p12 = scmp.lt.s32.totalorder %s10088_s13, %s10305_s30 }
  0x73   :  { %p10093_p13 = scmp.lt.s32.totalorder %s10091_s19, %s10089_s4 }
  0x75   :  { %p10094_p0 = por %p10093_p13, %p10092_p12 }
  0x77   :  { %p10095_p1 = pnand %p10094_p0, %p10090_p11 }
  0x79   :  { %10098 = shalt.err (!%p10095_p1)
}
  0x7a   :  { %129 = dma.hbm_to_vmem [thread:$0]  %s10429_s15, 4096, %s124_s22, [#allocation5], %s10224_s28, %s10224_s28, %s10225_s1  }
  0x7b   :  { %s185_s7 = sshll.u32 %s10355_s9, 4  ;;  %s10233_s11 = smov [#allocation9]   ;;  %s10449_s7 = int_to_ptr.hbm [resolvable:$true] %s185_s7 }
  0x7c   :  { %s151_s18 = sshll.u32 %s10233_s11, 4  ;;  %s10111_s30 = sshra.s32 %s10439_s2, 4  ;;  %s152_s18 = int_to_ptr.vmem [resolvable:$true] %s151_s18  ;;  %s10112_s30 = int_to_ptr.hbm [resolvable:$true] %s10111_s30 }
  0x7d   :  { %s10113_s26 = scalar_lea.hbm %s10112_s30, 256  ;;  %s10115_s27 = scalar_lea.hbm %s10320_s20, 256 }
  0x7e   :  { %p10114_p2 = scmp.ne.s32.totalorder %s10112_s30, %s10113_s26  ;;  %p10116_p3 = scmp.lt.s32.totalorder %s10112_s30, %s10320_s20 }
  0x7f   :  { %p10117_p4 = scmp.lt.s32.totalorder %s10115_s27, %s10113_s26 }
  0x81   :  { %p10118_p5 = por %p10117_p4, %p10116_p3 }
  0x83   :  { %p10119_p6 = pnand %p10118_p5, %p10114_p2 }
  0x85   :  { %10122 = shalt.err (!%p10119_p6)
}
  0x86   :  { %157 = dma.hbm_to_vmem [thread:$0]  %s10439_s2, 4096, %s152_s18, [#allocation8], %s10224_s28, %s10224_s28, %s10225_s1  }
  0x87   :  { %s10234_s15 = smov [#allocation12]   ;;  %s215_s6 = sshll.u32 %s10375_s14, 4  ;;  %s216_s6 = int_to_ptr.hbm [resolvable:$true] %s215_s6 }
  0x88   :  { %s187_s0 = sshll.u32 %s10234_s15, 4  ;;  %s10135_s23 = sshra.s32 %s10449_s7, 4  ;;  %s188_s0 = int_to_ptr.vmem [resolvable:$true] %s187_s0  ;;  %s10136_s23 = int_to_ptr.hbm [resolvable:$true] %s10135_s23 }
  0x89   :  { %s10137_s20 = scalar_lea.hbm %s10136_s23, 64  ;;  %s10139_s22 = scalar_lea.hbm %s10355_s9, 64 }
  0x8a   :  { %p10138_p7 = scmp.ne.s32.totalorder %s10136_s23, %s10137_s20  ;;  %p10140_p8 = scmp.lt.s32.totalorder %s10136_s23, %s10355_s9 }
  0x8b   :  { %p10141_p9 = scmp.lt.s32.totalorder %s10139_s22, %s10137_s20 }
  0x8d   :  { %p10142_p10 = por %p10141_p9, %p10140_p8 }
  0x8f   :  { %p10143_p11 = pnand %p10142_p10, %p10138_p7 }
  0x91   :  { %10146 = shalt.err (!%p10143_p11)
}
  0x92   :  { %193 = dma.hbm_to_vmem [thread:$0]  %s10449_s7, 1024, %s188_s0, [#allocation11], %s10229_s16, %s10229_s16, %s10230_s10  }
  0x93   :  { %s10235_s28 = smov [#allocation15]   ;;  %s10159_s2 = sshra.s32 %s216_s6, 4  ;;  %s10160_s2 = int_to_ptr.hbm [resolvable:$true] %s10159_s2 }
  0x94   :  { %s217_s1 = sshll.u32 %s10235_s28, 4  ;;  %s10161_s13 = scalar_lea.hbm %s10160_s2, 64  ;;  %s218_s1 = int_to_ptr.vmem [resolvable:$true] %s217_s1 }
  0x95   :  { %p10162_p12 = scmp.ne.s32.totalorder %s10160_s2, %s10161_s13  ;;  %s10163_s9 = scalar_lea.hbm %s10375_s14, 64 }
  0x96   :  { %p10164_p13 = scmp.lt.s32.totalorder %s10160_s2, %s10375_s14  ;;  %p10165_p0 = scmp.lt.s32.totalorder %s10163_s9, %s10161_s13 }
  0x98   :  { %p10166_p1 = por %p10165_p0, %p10164_p13 }
  0x9a   :  { %p10167_p2 = pnand %p10166_p1, %p10162_p12 }
  0x9c   :  { %10170 = shalt.err (!%p10167_p2)
}
  0x9d   :  { %223 = dma.hbm_to_vmem [thread:$0]  %s216_s6, 1024, %s218_s1, [#allocation14], %s10229_s16, %s10229_s16, %s10230_s10  }
  0x9e   :  { %10183 = dma.done.wait [#allocation3], 1024  }
  0x9f   :  { %10184 = vsyncadd [#allocation3], 4294966272 }
  0xa0   :  { %10185 = dma.done.wait [#allocation5], 8192  }
  0xa1   :  { %10186 = vsyncadd [#allocation5], 4294959104 }
  0xa2   :  { %10187 = dma.done.wait [#allocation8], 5120  }
  0xa3   :  { %10188 = vsyncadd [#allocation8], 4294962176 }
  0xa4   :  { %10189 = dma.done.wait [#allocation11], 5120  }
  0xa5   :  { %10190 = vsyncadd [#allocation11], 4294962176 }
  0xa6   :  { %10191 = dma.done.wait [#allocation14], 2048  }
  0xa7   :  { %10192 = vsyncadd [#allocation14], 4294965248  ;;  %v8080_v0 = vld [vmem:[#allocation2 + $0x30] sm:$0xf]  ;;  %v9457_v1 = vld [vmem:[#allocation2 + $0x34] sm:$0x30] }
  0xa8   :  { %vm512_vm0 = vcmask 1045504   ;;  %v8081_v2 = vor.u32 %v9457_v1, %v8080_v0  ;;  %v8072_v3 = vld [vmem:[#allocation2 + $0x20] sm:$0xf]  ;;  %v9455_v4 = vld [vmem:[#allocation2 + $0x24] sm:$0xf0]  ;;  %vm463_vm1 = vcmask 490496  }
  0xa9   :  { %v8073_v6 = vor.u32 %v9455_v4, %v8072_v3  ;;  %v8064_v7 = vld [vmem:[#allocation2 + $0x10] sm:$0xf]  ;;  %v9453_v8 = vld [vmem:[#allocation2 + $0x14] sm:$0xf0]  ;;  %v9456_v9 = vld [vmem:[#allocation2 + $0x34] sm:$0xf] }
  0xaa   :  { %v514_v5 = vsel %vm512_vm0, %v8081_v2, 0  ;;  %v8082_v10 = vld [vmem:[#allocation2 + $0x38] sm:$0x30]  ;;  %v8065_v11 = vor.u32 %v9453_v8, %v8064_v7  ;;  %v8056_v12 = vld [vmem:[#allocation2] sm:$0xf]  ;;  %v10475_v20 = vld [vmem:[%s10245_s5 + $0x28] sm:$0xff] }
  0xab   :  { %523 = vmatpush.bf16.msra.mxu0 %v514_v5  ;;  %9755 = vmatpush.bf16.msra.mxu1 %v514_v5  ;;  %v9451_v13 = vld [vmem:[#allocation2 + $0x4] sm:$0xf0]  ;;  %v8085_v14 = vor.u32 %v9456_v9, %v8082_v10  ;;  %v9454_v17 = vld [vmem:[#allocation2 + $0x24] sm:$0xf]  ;;  %v8074_v18 = vld [vmem:[#allocation2 + $0x28] sm:$0xf0] }
  0xac   :  { %9756 = vmatpush.bf16.msra.mxu2 %v514_v5  ;;  %9757 = vmatpush.bf16.msra.mxu3 %v514_v5  ;;  %v8057_v15 = vor.u32 %v9451_v13, %v8056_v12  ;;  %v9418_v19 = vld [vmem:[%s10245_s5] sm:$0xff]  ;;  %v8077_v21 = vor.u32 %v9454_v17, %v8074_v18  ;;  %v9452_v22 = vld [vmem:[#allocation2 + $0x14] sm:$0xf]  ;;  %v8066_v23 = vld [vmem:[#allocation2 + $0x18] sm:$0xf0]  ;;  %s15122_s14 = sld [smem:[#allocation29_spill]] }
  0xad   :  { %v517_v16 = vsel %vm512_vm0, %v8085_v14, 0  ;;  %v8069_v24 = vor.u32 %v9452_v22, %v8066_v23  ;;  %v10481_v25 = vld [vmem:[%s10245_s5 + $0x8] sm:$0xff]  ;;  %v10484_v26 = vld [vmem:[%s10245_s5 + $0x30] sm:$0xff]  ;;  %v9450_v27 = vld [vmem:[#allocation2 + $0x4] sm:$0xf]  ;;  %s15123_s16 = sld [smem:[#allocation27_spill]] }
  0xae   :  { %v8058_v28 = vld [vmem:[#allocation2 + $0x8] sm:$0xf0]  ;;  %v10491_v30 = vld [vmem:[%s10245_s5 + $0x10] sm:$0xff]  ;;  %v10494_v31 = vld [vmem:[%s10245_s5 + $0x38] sm:$0xff]  ;;  %s15144_s10 = sld [smem:[#allocation31_spill]]  ;;  %vm6332_vm2 = vcmask 1043456  }
  0xaf   :  { %524 = vmatpush.bf16.msra.mxu0 %v8073_v6  ;;  %9758 = vmatpush.bf16.msra.mxu1 %v8073_v6  ;;  %v8061_v29 = vor.u32 %v9450_v27, %v8058_v28  ;;  %v10501_v32 = vld [vmem:[%s10245_s5 + $0x18] sm:$0xff]  ;;  %v10504_v33 = vld [vmem:[%s10245_s5 + $0x40] sm:$0xff]  ;;  %v9488_v34 = vld [vmem:[%s10265_s21 + $0xf4] sm:$0xf]  ;;  %s15145_s4 = sld [smem:[#allocation28_spill]]  ;;  %vm6283_vm3 = vcmask 195584  }
  0xb0   :  { %9759 = vmatpush.bf16.msra.mxu2 %v8073_v6  ;;  %9760 = vmatpush.bf16.msra.mxu3 %v8073_v6  ;;  %v8242_v35 = vld [vmem:[%s10265_s21 + $0xf8] sm:$0xf0]  ;;  %v10513_v37 = vld [vmem:[%s10245_s5 + $0x20] sm:$0xff]  ;;  %v10516_v38 = vld [vmem:[%s10245_s5 + $0x48] sm:$0xff]  ;;  %s15146_s19 = sld [smem:[#allocation30_spill]]  ;;  %vm7405_vm4 = vcmask 7168  }
  0xb1   :  { %v8245_v36 = vor.u32 %v9488_v34, %v8242_v35  ;;  %v10523_v39 = vld [vmem:[%s10245_s5 + $0x50] sm:$0xff]  ;;  %v9473_v41 = vld [vmem:[%s10265_s21 + $0x74] sm:$0xf0]  ;;  %v8178_v44 = vld [vmem:[%s10265_s21 + $0x78] sm:$0xf0]  ;;  %s15147_s7 = sld [smem:[#allocation21_spill]] }
  0xb2   :  { %v8176_v40 = vld [vmem:[%s10265_s21 + $0x70] sm:$0xf]  ;;  %v9472_v43 = vld [vmem:[%s10265_s21 + $0x74] sm:$0xf]  ;;  %v8168_v46 = vld [vmem:[%s10265_s21 + $0x60] sm:$0xf] }
  0xb3   :  { %525 = vmatpush.bf16.msra.mxu0 %v8065_v11  ;;  %9761 = vmatpush.bf16.msra.mxu1 %v8065_v11  ;;  %v8177_v42 = vor.u32 %v9473_v41, %v8176_v40  ;;  %v8181_v45 = vor.u32 %v9472_v43, %v8178_v44  ;;  %v9471_v47 = vld [vmem:[%s10265_s21 + $0x64] sm:$0xf0]  ;;  %v9470_v48 = vld [vmem:[%s10265_s21 + $0x64] sm:$0xf]  ;;  %v8170_v50 = vld [vmem:[%s10265_s21 + $0x68] sm:$0xf0] }
  0xb4   :  { %9762 = vmatpush.bf16.msra.mxu2 %v8065_v11  ;;  %9763 = vmatpush.bf16.msra.mxu3 %v8065_v11  ;;  %v8169_v49 = vor.u32 %v9471_v47, %v8168_v46  ;;  %v9486_v51 = vld [vmem:[%s10265_s21 + $0xe4] sm:$0xf]  ;;  %v8234_v52 = vld [vmem:[%s10265_s21 + $0xe8] sm:$0xf0]  ;;  %v8173_v53 = vor.u32 %v9470_v48, %v8170_v50  ;;  %v8160_v54 = vld [vmem:[%s10265_s21 + $0x50] sm:$0xf] }
  0xb5   :  { %v8237_v55 = vor.u32 %v9486_v51, %v8234_v52  ;;  %v9469_v56 = vld [vmem:[%s10265_s21 + $0x54] sm:$0xf0]  ;;  %v9468_v57 = vld [vmem:[%s10265_s21 + $0x54] sm:$0xf]  ;;  %v8162_v58 = vld [vmem:[%s10265_s21 + $0x58] sm:$0xf0] }
  0xb6   :  { %v8161_v59 = vor.u32 %v9469_v56, %v8160_v54  ;;  %v8165_v60 = vor.u32 %v9468_v57, %v8162_v58  ;;  %v8152_v61 = vld [vmem:[%s10265_s21 + $0x40] sm:$0xf]  ;;  %v9467_v62 = vld [vmem:[%s10265_s21 + $0x44] sm:$0xf0]  ;;  %v9466_v63 = vld [vmem:[%s10265_s21 + $0x44] sm:$0xf] }
  0xb7   :  { %526 = vmatpush.bf16.msra.mxu0 %v8057_v15  ;;  %9764 = vmatpush.bf16.msra.mxu1 %v8057_v15  ;;  %v8154_v0 = vld [vmem:[%s10265_s21 + $0x48] sm:$0xf0]  ;;  %v10547_v1 = vld [vmem:[%s10245_s5 + $0x58] sm:$0xff]  ;;  %v8153_v2 = vor.u32 %v9467_v62, %v8152_v61  ;;  %v8144_v4 = vld [vmem:[%s10265_s21 + $0x30] sm:$0xf]  ;;  %s15156_s11 = sld [smem:[#allocation32_spill]] }
  0xb8   :  { %9765 = vmatpush.bf16.msra.mxu2 %v8057_v15  ;;  %9766 = vmatpush.bf16.msra.mxu3 %v8057_v15  ;;  %v8157_v3 = vor.u32 %v9466_v63, %v8154_v0  ;;  %v9465_v5 = vld [vmem:[%s10265_s21 + $0x34] sm:$0xf0]  ;;  %v9464_v6 = vld [vmem:[%s10265_s21 + $0x34] sm:$0xf]  ;;  %v8146_v8 = vld [vmem:[%s10265_s21 + $0x38] sm:$0xf0] }
  0xb9   :  { %v8145_v7 = vor.u32 %v9465_v5, %v8144_v4  ;;  %v8149_v9 = vor.u32 %v9464_v6, %v8146_v8  ;;  %v8136_v10 = vld [vmem:[%s10265_s21 + $0x20] sm:$0xf]  ;;  %v9463_v11 = vld [vmem:[%s10265_s21 + $0x24] sm:$0xf0]  ;;  %v9462_v12 = vld [vmem:[%s10265_s21 + $0x24] sm:$0xf] }
  0xba   :  { %8086 = vmatmul.msk.bf16.vlgmr.msra.gmra.mxu0 %vm463_vm1, %v9418_v19  ;;  %8091 = vmatmul.msk.bf16.vlgmr.msra.gmra.mxu1 %vm463_vm1, %v10475_v20  ;;  %v8137_v13 = vor.u32 %v9463_v11, %v8136_v10  ;;  %v8138_v14 = vld [vmem:[%s10265_s21 + $0x28] sm:$0xf0]  ;;  %v9461_v17 = vld [vmem:[%s10265_s21 + $0x14] sm:$0xf0]  ;;  %v9460_v18 = vld [vmem:[%s10265_s21 + $0x14] sm:$0xf] }
  0xbb   :  { %612 = vmatpush.bf16.msrb.mxu1 %v517_v16  ;;  %8096 = vmatmul.msk.bf16.vlgmr.msra.gmra.mxu2 %vm463_vm1, %v10523_v39  ;;  %v8141_v15 = vor.u32 %v9462_v12, %v8138_v14  ;;  %v8128_v16 = vld [vmem:[%s10265_s21 + $0x10] sm:$0xf]  ;;  %v8120_v23 = vld [vmem:[%s10265_s21] sm:$0xf]  ;;  %v8122_v28 = vld [vmem:[%s10265_s21 + $0x8] sm:$0xf0] }
  0xbc   :  { %991 = vmatpush.bf16.msrb.mxu2 %v8177_v42  ;;  %1169 = vmatpush.bf16.msrb.mxu0 %v8181_v45  ;;  %v9484_v34 = vld [vmem:[%s10265_s21 + $0xd4] sm:$0xf]  ;;  %v8226_v35 = vld [vmem:[%s10265_s21 + $0xd8] sm:$0xf0]  ;;  %v8240_v41 = vld [vmem:[%s10265_s21 + $0xf0] sm:$0xf] }
  0xbd   :  { %v8229_v40 = vor.u32 %v9484_v34, %v8226_v35  ;;  %v9489_v42 = vld [vmem:[%s10265_s21 + $0xf4] sm:$0xf0]  ;;  %v10581_v43 = vld [vmem:[%s10260_s17] sm:$0x3]  ;;  %v10589_v47 = vld [vmem:[%s10245_s5 + $0x68] sm:$0xff]  ;;  %s14945_s17 = sld [smem:[#allocation23_spill]] }
  0xbe   :  { %v8241_v46 = vor.u32 %v9489_v42, %v8240_v41  ;;  %v8232_v48 = vld [vmem:[%s10265_s21 + $0xe0] sm:$0xf]  ;;  %v8224_v62 = vld [vmem:[%s10265_s21 + $0xd0] sm:$0xf]  ;;  %v9485_v63 = vld [vmem:[%s10265_s21 + $0xd4] sm:$0xf0] }
  0xbf   :  { %613 = vmatpush.bf16.msrb.mxu1 %v8077_v21  ;;  %v8130_v21 = vld [vmem:[%s10265_s21 + $0x18] sm:$0xf0]  ;;  %v9482_v4 = vld [vmem:[%s10265_s21 + $0xc4] sm:$0xf]  ;;  %v8218_v5 = vld [vmem:[%s10265_s21 + $0xc8] sm:$0xf0] }
  0xc0   :  { %992 = vmatpush.bf16.msrb.mxu2 %v8169_v49  ;;  %1170 = vmatpush.bf16.msrb.mxu0 %v8173_v53  ;;  %v8133_v22 = vor.u32 %v9460_v18, %v8130_v21  ;;  %v9487_v49 = vld [vmem:[%s10265_s21 + $0xe4] sm:$0xf0]  ;;  %v8221_v6 = vor.u32 %v9482_v4, %v8218_v5  ;;  %v8216_v8 = vld [vmem:[%s10265_s21 + $0xc0] sm:$0xf]  ;;  %s15161_s18 = sld [smem:[#allocation33_spill]]  ;;  %vm7918_vm6 = vcmask 31744  }
  0xc1   :  { %1080 = vmatpush.bf16.msrb.mxu3 %v8241_v46  ;;  %v8233_v51 = vor.u32 %v9487_v49, %v8232_v48  ;;  %v8200_v34 = vld [vmem:[%s10265_s21 + $0xa0] sm:$0xf]  ;;  %v9479_v35 = vld [vmem:[%s10265_s21 + $0xa4] sm:$0xf0] }
  0xc2   :  { %v8201_v41 = vor.u32 %v9479_v35, %v8200_v34 }
  0xc3   :  { %614 = vmatpush.bf16.msrb.mxu1 %v8069_v24  ;;  %v9459_v24 = vld [vmem:[%s10265_s21 + $0x4] sm:$0xf0] }
  0xc4   :  { %993 = vmatpush.bf16.msrb.mxu2 %v8161_v59  ;;  %1171 = vmatpush.bf16.msrb.mxu0 %v8165_v60  ;;  %v8121_v27 = vor.u32 %v9459_v24, %v8120_v23  ;;  %v8208_v23 = vld [vmem:[%s10265_s21 + $0xb0] sm:$0xf]  ;;  %v9481_v24 = vld [vmem:[%s10265_s21 + $0xb4] sm:$0xf0] }
  0xc5   :  { %1081 = vmatpush.bf16.msrb.mxu3 %v8233_v51 }
  0xc7   :  { %615 = vmatpush.bf16.msrb.mxu1 %v8061_v29 }
  0xc8   :  { %994 = vmatpush.bf16.msrb.mxu2 %v8153_v2  ;;  %1172 = vmatpush.bf16.msrb.mxu0 %v8157_v3  ;;  %v8225_v3 = vor.u32 %v9485_v63, %v8224_v62  ;;  %v9480_v62 = vld [vmem:[%s10265_s21 + $0xb4] sm:$0xf]  ;;  %v8210_v63 = vld [vmem:[%s10265_s21 + $0xb8] sm:$0xf0] }
  0xca   :  { %8087 = vmatmul.msk.bf16.gmra.mxu0 %vm463_vm1, %v10481_v25  ;;  %8092 = vmatmul.msk.bf16.gmra.mxu1 %vm463_vm1, %v10484_v26 }
  0xcb   :  { %1258 = vmatpush.bf16.msra.mxu1 %v8245_v36  ;;  %8097 = vmatmul.msk.bf16.gmra.mxu2 %vm463_vm1, %v10547_v1  ;;  %v10574_v36 = vld [vmem:[%s10245_s5 + $0x60] sm:$0xff] }
  0xcc   :  { %995 = vmatpush.bf16.msrb.mxu2 %v8145_v7  ;;  %1173 = vmatpush.bf16.msrb.mxu0 %v8149_v9  ;;  %v10608_v7 = vld [vmem:[%s10245_s5 + $0x70] sm:$0xff]  ;;  %v9483_v9 = vld [vmem:[%s10265_s21 + $0xc4] sm:$0xf0] }
  0xcd   :  { %8098 = vmatmul.msk.bf16.vlgmr.msra.gmra.mxu3 %vm463_vm1, %v10574_v36  ;;  %v8217_v11 = vor.u32 %v9483_v9, %v8216_v8 }
  0xce   :  { %1082 = vmatpush.bf16.msrb.mxu3 %v8225_v3  ;;  %v9475_v3 = vld [vmem:[%s10265_s21 + $0x84] sm:$0xf0] }
  0xcf   :  { %1259 = vmatpush.bf16.msra.mxu1 %v8237_v55 }
  0xd0   :  { %996 = vmatpush.bf16.msrb.mxu2 %v8137_v13  ;;  %1174 = vmatpush.bf16.msrb.mxu0 %v8141_v15 }
  0xd2   :  { %1083 = vmatpush.bf16.msrb.mxu3 %v8217_v11 }
  0xd3   :  { %1260 = vmatpush.bf16.msra.mxu1 %v8229_v40 }
  0xd4   :  { %1175 = vmatpush.bf16.msrb.mxu0 %v8133_v22 }
  0xd7   :  { %1261 = vmatpush.bf16.msra.mxu1 %v8221_v6 }
  0xda   :  { %8088 = vmatmul.msk.bf16.gmra.mxu0 %vm463_vm1, %v10491_v30  ;;  %8093 = vmatmul.msk.bf16.gmra.mxu1 %vm463_vm1, %v10494_v31 }
  0xdd   :  { %8099 = vmatmul.msk.bf16.gmra.mxu3 %vm463_vm1, %v10589_v47 }
  0xea   :  { %8089 = vmatmul.msk.bf16.gmra.mxu0 %vm463_vm1, %v10501_v32  ;;  %8094 = vmatmul.msk.bf16.gmra.mxu1 %vm463_vm1, %v10504_v33 }
  0xed   :  { %8100 = vmatmul.msk.bf16.gmra.mxu3 %vm463_vm1, %v10608_v7 }
  0xfa   :  { %8090 = vmatmul.msk.bf16.gmra.mxu0 %vm463_vm1, %v10513_v37  ;;  %8095 = vmatmul.msk.bf16.gmra.mxu1 %vm463_vm1, %v10516_v38 }
 0x10a   :  { %8102 = vmatmul.msk.bf16.vlgmr.msrb.gmra.mxu1 %vm463_vm1, %v9418_v19  ;;  %v8129_v19 = vor.u32 %v9461_v17, %v8128_v16 }
 0x10c   :  { %997 = vmatpush.bf16.msrb.mxu2 %v8129_v19 }
 0x110   :  { %998 = vmatpush.bf16.msrb.mxu2 %v8121_v27 }
 0x11a   :  { %8103 = vmatmul.msk.bf16.gmra.mxu1 %vm463_vm1, %v10481_v25  ;;  %v9458_v25 = vld [vmem:[%s10265_s21 + $0x4] sm:$0xf] }
 0x11b   :  { %v8125_v29 = vor.u32 %v9458_v25, %v8122_v28  ;;  %v8209_v28 = vor.u32 %v9481_v24, %v8208_v23 }
 0x11d   :  { %1176 = vmatpush.bf16.msrb.mxu0 %v8125_v29  ;;  %1084 = vmatpush.bf16.msrb.mxu3 %v8209_v28  ;;  %v10625_v29 = vld [vmem:[%s10245_s5 + $0x78] sm:$0xff] }
 0x11e   :  { %8101 = vmatmul.msk.bf16.gmra.mxu3 %vm463_vm1, %v10625_v29 }
 0x121   :  { %1085 = vmatpush.bf16.msrb.mxu3 %v8201_v41 }
 0x12a   :  { %8104 = vmatmul.msk.bf16.gmra.mxu1 %vm463_vm1, %v10491_v30  ;;  %v10584_v30 = vperm.slane %v10581_v43, 0 }
 0x137   :  { %v528_v44 = vpop.f32.mrf.mxu0  ;;  %v553_v45 = vpop.f32.mrf.mxu1 }
 0x138   :  { %v529_v50 = vadd.f32 %v528_v44, %v10584_v30  ;;  %v554_v52 = vadd.f32 %v553_v45, %v10584_v30 }
 0x13a   :  { %8105 = vmatmul.msk.bf16.gmra.mxu1 %vm463_vm1, %v10501_v32  ;;  %v697_v55 = vmax.f32 %v529_v50, 0.0  ;;  %v717_v57 = vmax.f32 %v554_v52, 0.0  ;;  %v8304_v52 = vld [vmem:[%s10275_s29 + $0x70] sm:$0xf] }
 0x13f   :  { %v530_v53 = vpop.f32.mrf.mxu0  ;;  %v555_v54 = vpop.f32.mrf.mxu1 }
 0x140   :  { %v531_v32 = vadd.f32 %v530_v53, %v10584_v30  ;;  %v556_v56 = vadd.f32 %v555_v54, %v10584_v30  ;;  %v9505_v53 = vld [vmem:[%s10275_s29 + $0x74] sm:$0xf0] }
 0x141   :  { %v8305_v54 = vor.u32 %v9505_v53, %v8304_v52 }
 0x142   :  { %v699_v58 = vmax.f32 %v531_v32, 0.0  ;;  %v719_v59 = vmax.f32 %v556_v56, 0.0  ;;  %v8192_v56 = vld [vmem:[%s10265_s21 + $0x90] sm:$0xf] }
 0x143   :  { %1641 = vmatpush.bf16.msra.mxu2 %v8305_v54 }
 0x144   :  { %v761_v60 = vpack.c.bf16 %v699_v58, %v697_v55  ;;  %v10599_v61 = vpack.c.bf16 %v719_v59, %v717_v57  ;;  %v9477_v57 = vld [vmem:[%s10265_s21 + $0x94] sm:$0xf0] }
 0x146   :  { %999 = vmatmul.bf16.vlgmr.msrb.gmra.mxu2 %v761_v60  ;;  %1177 = vmatmul.bf16.vlgmr.msrb.gmra.mxu0 %v761_v60  ;;  %v8193_v60 = vor.u32 %v9477_v57, %v8192_v56 }
 0x147   :  { %v533_v0 = vpop.f32.mrf.mxu0  ;;  %v558_v2 = vpop.f32.mrf.mxu1 }
 0x148   :  { %v534_v10 = vadd.f32 %v533_v0, %v10584_v30  ;;  %v559_v12 = vadd.f32 %v558_v2, %v10584_v30  ;;  %1086 = vmatpush.bf16.msrb.mxu3 %v8193_v60  ;;  %v8213_v0 = vor.u32 %v9480_v62, %v8210_v63  ;;  %v8184_v2 = vld [vmem:[%s10265_s21 + $0x80] sm:$0xf] }
 0x149   :  { %v8185_v5 = vor.u32 %v9475_v3, %v8184_v2  ;;  %v10685_v2 = vpop.f32.mrf.mxu2 }
 0x14a   :  { %8106 = vmatmul.msk.bf16.gmra.mxu1 %vm463_vm1, %v10513_v37  ;;  %v701_v14 = vmax.f32 %v534_v10, 0.0  ;;  %v721_v17 = vmax.f32 %v559_v12, 0.0 }
 0x14b   :  { %1262 = vmatpush.bf16.msra.mxu1 %v8213_v0 }
 0x14c   :  { %1087 = vmatpush.bf16.msrb.mxu3 %v8185_v5  ;;  %v8288_v5 = vld [vmem:[%s10275_s29 + $0x50] sm:$0xf] }
 0x14f   :  { %v535_v37 = vpop.f32.mrf.mxu0  ;;  %v560_v13 = vpop.f32.mrf.mxu1 }
 0x150   :  { %v536_v15 = vadd.f32 %v535_v37, %v10584_v30  ;;  %v561_v16 = vadd.f32 %v560_v13, %v10584_v30 }
 0x152   :  { %v703_v18 = vmax.f32 %v536_v15, 0.0  ;;  %v723_v19 = vmax.f32 %v561_v16, 0.0 }
 0x154   :  { %v763_v21 = vpack.c.bf16 %v703_v18, %v701_v14  ;;  %v10618_v22 = vpack.c.bf16 %v723_v19, %v721_v17  ;;  %v8368_v18 = vld [vmem:[%s10275_s29 + $0xf0] sm:$0xf]  ;;  %v9521_v19 = vld [vmem:[%s10275_s29 + $0xf4] sm:$0xf0] }
 0x156   :  { %1004 = vmatmul.bf16.gmra.mxu2 %v763_v21  ;;  %1182 = vmatmul.bf16.gmra.mxu0 %v763_v21  ;;  %v8369_v21 = vor.u32 %v9521_v19, %v8368_v18 }
 0x157   :  { %v538_v25 = vpop.f32.mrf.mxu0  ;;  %v563_v27 = vpop.f32.mrf.mxu1 }
 0x158   :  { %v539_v40 = vadd.f32 %v538_v25, %v10584_v30  ;;  %v564_v42 = vadd.f32 %v563_v27, %v10584_v30  ;;  %1730 = vmatpush.bf16.msra.mxu3 %v8369_v21 }
 0x15a   :  { %8107 = vmatmul.msk.bf16.gmra.mxu1 %vm463_vm1, %v10475_v20  ;;  %v705_v20 = vmax.f32 %v539_v40, 0.0  ;;  %v725_v49 = vmax.f32 %v564_v42, 0.0 }
 0x15f   :  { %v540_v44 = vpop.f32.mrf.mxu0  ;;  %v565_v45 = vpop.f32.mrf.mxu1 }
 0x160   :  { %v541_v46 = vadd.f32 %v540_v44, %v10584_v30  ;;  %v566_v48 = vadd.f32 %v565_v45, %v10584_v30  ;;  %v8296_v44 = vld [vmem:[%s10275_s29 + $0x60] sm:$0xf]  ;;  %v9503_v45 = vld [vmem:[%s10275_s29 + $0x64] sm:$0xf0] }
 0x162   :  { %v707_v50 = vmax.f32 %v541_v46, 0.0  ;;  %v727_v51 = vmax.f32 %v566_v48, 0.0 }
 0x164   :  { %v765_v55 = vpack.c.bf16 %v707_v50, %v705_v20  ;;  %v10637_v32 = vpack.c.bf16 %v727_v51, %v725_v49  ;;  %v10666_v49 = vperm.slane %v10581_v43, 1  ;;  %v9478_v50 = vld [vmem:[%s10265_s21 + $0xa4] sm:$0xf]  ;;  %v8202_v51 = vld [vmem:[%s10265_s21 + $0xa8] sm:$0xf0] }
 0x165   :  { %v8205_v52 = vor.u32 %v9478_v50, %v8202_v51  ;;  %v8360_v43 = vld [vmem:[%s10275_s29 + $0xe0] sm:$0xf] }
 0x166   :  { %1009 = vmatmul.bf16.gmra.mxu2 %v765_v55  ;;  %1187 = vmatmul.bf16.gmra.mxu0 %v765_v55 }
 0x167   :  { %v543_v58 = vpop.f32.mrf.mxu0  ;;  %v568_v59 = vpop.f32.mrf.mxu1  ;;  %1263 = vmatpush.bf16.msra.mxu1 %v8205_v52  ;;  %v9474_v52 = vld [vmem:[%s10265_s21 + $0x84] sm:$0xf] }
 0x168   :  { %v544_v4 = vadd.f32 %v543_v58, %v10584_v30  ;;  %v569_v6 = vadd.f32 %v568_v59, %v10584_v30  ;;  %v9519_v59 = vld [vmem:[%s10275_s29 + $0xe4] sm:$0xf0] }
 0x169   :  { %v8361_v60 = vor.u32 %v9519_v59, %v8360_v43 }
 0x16a   :  { %8108 = vmatmul.msk.bf16.gmra.mxu1 %vm463_vm1, %v10484_v26  ;;  %v709_v10 = vmax.f32 %v544_v4, 0.0  ;;  %v729_v12 = vmax.f32 %v569_v6, 0.0  ;;  %v9501_v6 = vld [vmem:[%s10275_s29 + $0x54] sm:$0xf0] }
 0x16b   :  { %1731 = vmatpush.bf16.msra.mxu3 %v8361_v60 }
 0x16f   :  { %v545_v8 = vpop.f32.mrf.mxu0  ;;  %v570_v9 = vpop.f32.mrf.mxu1 }
 0x170   :  { %v546_v11 = vadd.f32 %v545_v8, %v10584_v30  ;;  %v571_v26 = vadd.f32 %v570_v9, %v10584_v30  ;;  %v8289_v8 = vor.u32 %v9501_v6, %v8288_v5  ;;  %v9504_v9 = vld [vmem:[%s10275_s29 + $0x74] sm:$0xf] }
 0x172   :  { %v711_v37 = vmax.f32 %v546_v11, 0.0  ;;  %v731_v13 = vmax.f32 %v571_v26, 0.0  ;;  %v9476_v26 = vld [vmem:[%s10265_s21 + $0x94] sm:$0xf] }
 0x174   :  { %v767_v14 = vpack.c.bf16 %v711_v37, %v709_v10  ;;  %v10651_v15 = vpack.c.bf16 %v731_v13, %v729_v12  ;;  %v8306_v10 = vld [vmem:[%s10275_s29 + $0x78] sm:$0xf0]  ;;  %v10700_v37 = vpop.f32.mrf.mxu2 }
 0x175   :  { %v8309_v11 = vor.u32 %v9504_v9, %v8306_v10  ;;  %v8194_v12 = vld [vmem:[%s10265_s21 + $0x98] sm:$0xf0] }
 0x176   :  { %1014 = vmatmul.bf16.gmra.mxu2 %v767_v14  ;;  %1192 = vmatmul.bf16.gmra.mxu0 %v767_v14  ;;  %v8197_v13 = vor.u32 %v9476_v26, %v8194_v12 }
 0x177   :  { %v548_v16 = vpop.f32.mrf.mxu0  ;;  %v573_v17 = vpop.f32.mrf.mxu1  ;;  %1819 = vmatpush.bf16.msra.mxu0 %v8309_v11 }
 0x178   :  { %v549_v23 = vadd.f32 %v548_v16, %v10584_v30  ;;  %v574_v24 = vadd.f32 %v573_v17, %v10584_v30  ;;  %1264 = vmatpush.bf16.msra.mxu1 %v8197_v13 }
 0x17a   :  { %8109 = vmatmul.msk.bf16.gmra.mxu1 %vm463_vm1, %v10494_v31  ;;  %v713_v28 = vmax.f32 %v549_v23, 0.0  ;;  %v733_v40 = vmax.f32 %v574_v24, 0.0  ;;  %v8297_v31 = vor.u32 %v9503_v45, %v8296_v44  ;;  %v8352_v23 = vld [vmem:[%s10275_s29 + $0xd0] sm:$0xf]  ;;  %v9517_v24 = vld [vmem:[%s10275_s29 + $0xd4] sm:$0xf0] }
 0x17b   :  { %v8280_v44 = vld [vmem:[%s10275_s29 + $0x40] sm:$0xf] }
 0x17c   :  { %1642 = vmatpush.bf16.msra.mxu2 %v8297_v31  ;;  %v10706_v21 = vpop.f32.mrf.mxu2 }
 0x17f   :  { %v550_v25 = vpop.f32.mrf.mxu0  ;;  %v575_v27 = vpop.f32.mrf.mxu1 }
 0x180   :  { %v551_v34 = vadd.f32 %v550_v25, %v10584_v30  ;;  %v576_v35 = vadd.f32 %v575_v27, %v10584_v30  ;;  %1643 = vmatpush.bf16.msra.mxu2 %v8289_v8  ;;  %v8353_v25 = vor.u32 %v9517_v24, %v8352_v23  ;;  %v579_v8 = vadd.f32 %v10685_v2, %v10584_v30  ;;  %v9500_v24 = vld [vmem:[%s10275_s29 + $0x54] sm:$0xf] }
 0x182   :  { %v715_v41 = vmax.f32 %v551_v34, 0.0  ;;  %v735_v42 = vmax.f32 %v576_v35, 0.0  ;;  %1732 = vmatpush.bf16.msra.mxu3 %v8353_v25  ;;  %v8290_v25 = vld [vmem:[%s10275_s29 + $0x58] sm:$0xf0] }
 0x184   :  { %v769_v20 = vpack.c.bf16 %v715_v41, %v713_v28  ;;  %v10663_v46 = vpack.c.bf16 %v735_v42, %v733_v40  ;;  %v10716_v34 = vpop.f32.mrf.mxu2 }
 0x186   :  { %1019 = vmatmul.bf16.gmra.mxu2 %v769_v20  ;;  %1197 = vmatmul.bf16.gmra.mxu0 %v769_v20  ;;  %v9502_v20 = vld [vmem:[%s10275_s29 + $0x64] sm:$0xf] }
 0x187   :  { %v617_v48 = vpop.f32.mrf.mxu1 }
 0x188   :  { %v618_v53 = vadd.f32 %v617_v48, %v10666_v49  ;;  %v8298_v48 = vld [vmem:[%s10275_s29 + $0x68] sm:$0xf0] }
 0x189   :  { %v8301_v50 = vor.u32 %v9502_v20, %v8298_v48 }
 0x18a   :  { %8110 = vmatmul.msk.bf16.gmra.mxu1 %vm463_vm1, %v10504_v33  ;;  %v698_v56 = vmax.f32 %v618_v53, 0.0  ;;  %v8186_v53 = vld [vmem:[%s10265_s21 + $0x88] sm:$0xf0]  ;;  %s14960_s21 = sld [smem:[#allocation22_spill]] }
 0x18b   :  { %1820 = vmatpush.bf16.msra.mxu0 %v8301_v50 }
 0x18f   :  { %v619_v54 = vpop.f32.mrf.mxu1 }
 0x190   :  { %v620_v55 = vadd.f32 %v619_v54, %v10666_v49 }
 0x192   :  { %v700_v57 = vmax.f32 %v620_v55, 0.0  ;;  %v10738_v55 = vpop.f32.mrf.mxu3 }
 0x194   :  { %v10674_v58 = vpack.c.bf16 %v700_v57, %v698_v56  ;;  %v8189_v56 = vor.u32 %v9474_v52, %v8186_v53 }
 0x196   :  { %1024 = vmatmul.bf16.gmra.mxu2 %v10599_v61  ;;  %1088 = vmatmul.bf16.vlgmr.msrb.gmra.mxu3 %v10674_v58 }
 0x197   :  { %1202 = vmatmul.bf16.gmra.mxu0 %v10599_v61  ;;  %v622_v33 = vpop.f32.mrf.mxu1  ;;  %1265 = vmatpush.bf16.msra.mxu1 %v8189_v56 }
 0x198   :  { %v623_v62 = vadd.f32 %v622_v33, %v10666_v49 }
 0x19a   :  { %8111 = vmatmul.msk.bf16.gmra.mxu1 %vm463_vm1, %v10516_v38  ;;  %v702_v3 = vmax.f32 %v623_v62, 0.0 }
 0x19f   :  { %v624_v63 = vpop.f32.mrf.mxu1 }
 0x1a0   :  { %v625_v0 = vadd.f32 %v624_v63, %v10666_v49  ;;  %v10748_v63 = vpop.f32.mrf.mxu3 }
 0x1a2   :  { %v704_v61 = vmax.f32 %v625_v0, 0.0 }
 0x1a4   :  { %v10687_v4 = vpack.c.bf16 %v704_v61, %v702_v3  ;;  %v8344_v3 = vld [vmem:[%s10275_s29 + $0xc0] sm:$0xf]  ;;  %v9515_v61 = vld [vmem:[%s10275_s29 + $0xc4] sm:$0xf0] }
 0x1a5   :  { %v8345_v5 = vor.u32 %v9515_v61, %v8344_v3 }
 0x1a6   :  { %1029 = vmatmul.bf16.gmra.mxu2 %v10618_v22  ;;  %1093 = vmatmul.bf16.gmra.mxu3 %v10687_v4 }
 0x1a7   :  { %1207 = vmatmul.bf16.gmra.mxu0 %v10618_v22  ;;  %v627_v38 = vpop.f32.mrf.mxu1  ;;  %1733 = vmatpush.bf16.msra.mxu3 %v8345_v5 }
 0x1a8   :  { %v628_v14 = vadd.f32 %v627_v38, %v10666_v49  ;;  %v581_v38 = vadd.f32 %v10700_v37, %v10584_v30  ;;  %v10766_v12 = vpop.f32.mrf.mxu3 }
 0x1aa   :  { %8112 = vmatmul.msk.bf16.gmra.mxu1 %vm463_vm1, %v10523_v39  ;;  %v706_v17 = vmax.f32 %v628_v14, 0.0  ;;  %v739_v10 = vmax.f32 %v581_v38, 0.0  ;;  %v591_v38 = vadd.f32 %v10748_v63, %v10584_v30 }
 0x1af   :  { %v629_v22 = vpop.f32.mrf.mxu1 }
 0x1b0   :  { %v630_v16 = vadd.f32 %v629_v22, %v10666_v49 }
 0x1b2   :  { %v708_v18 = vmax.f32 %v630_v16, 0.0 }
 0x1b4   :  { %v10704_v19 = vpack.c.bf16 %v708_v18, %v706_v17  ;;  %v8272_v17 = vld [vmem:[%s10275_s29 + $0x30] sm:$0xf]  ;;  %v9497_v18 = vld [vmem:[%s10275_s29 + $0x34] sm:$0xf0] }
 0x1b6   :  { %1034 = vmatmul.bf16.gmra.mxu2 %v10637_v32  ;;  %1098 = vmatmul.bf16.gmra.mxu3 %v10704_v19 }
 0x1b7   :  { %1212 = vmatmul.bf16.gmra.mxu0 %v10637_v32  ;;  %v632_v39 = vpop.f32.mrf.mxu1 }
 0x1b8   :  { %v633_v27 = vadd.f32 %v632_v39, %v10666_v49  ;;  %v8273_v39 = vor.u32 %v9497_v18, %v8272_v17  ;;  %v8264_v18 = vld [vmem:[%s10275_s29 + $0x20] sm:$0xf] }
 0x1ba   :  { %8113 = vmatmul.msk.bf16.gmra.mxu1 %vm463_vm1, %v10547_v1  ;;  %v710_v40 = vmax.f32 %v633_v27, 0.0  ;;  %v9499_v1 = vld [vmem:[%s10275_s29 + $0x44] sm:$0xf0]  ;;  %v8293_v27 = vor.u32 %v9500_v24, %v8290_v25 }
 0x1bb   :  { %v8281_v45 = vor.u32 %v9499_v1, %v8280_v44  ;;  %v9520_v44 = vld [vmem:[%s10275_s29 + $0xf4] sm:$0xf]  ;;  %v8370_v1 = vld [vmem:[%s10275_s29 + $0xf8] sm:$0xf0] }
 0x1bc   :  { %1821 = vmatpush.bf16.msra.mxu0 %v8293_v27  ;;  %v9498_v27 = vld [vmem:[%s10275_s29 + $0x44] sm:$0xf] }
 0x1bd   :  { %1644 = vmatpush.bf16.msra.mxu2 %v8281_v45 }
 0x1bf   :  { %v634_v28 = vpop.f32.mrf.mxu1 }
 0x1c0   :  { %v635_v35 = vadd.f32 %v634_v28, %v10666_v49  ;;  %v10780_v28 = vpop.f32.mrf.mxu3 }
 0x1c1   :  { %1645 = vmatpush.bf16.msra.mxu2 %v8273_v39  ;;  %v9495_v39 = vld [vmem:[%s10275_s29 + $0x24] sm:$0xf0] }
 0x1c2   :  { %v712_v32 = vmax.f32 %v635_v35, 0.0  ;;  %v8265_v25 = vor.u32 %v9495_v39, %v8264_v18  ;;  %v9494_v18 = vld [vmem:[%s10275_s29 + $0x24] sm:$0xf]  ;;  %v8266_v39 = vld [vmem:[%s10275_s29 + $0x28] sm:$0xf0] }
 0x1c3   :  { %v10719_v41 = vpop.f32.mrf.mxu0 }
 0x1c4   :  { %v10721_v42 = vpack.c.bf16 %v712_v32, %v710_v40  ;;  %v584_v40 = vadd.f32 %v10706_v21, %v10584_v30  ;;  %v586_v32 = vadd.f32 %v10716_v34, %v10584_v30 }
 0x1c5   :  { %1646 = vmatpush.bf16.msra.mxu2 %v8265_v25 }
 0x1c6   :  { %1039 = vmatmul.bf16.gmra.mxu2 %v10651_v15  ;;  %1103 = vmatmul.bf16.gmra.mxu3 %v10721_v42  ;;  %v741_v20 = vmax.f32 %v584_v40, 0.0  ;;  %v743_v48 = vmax.f32 %v586_v32, 0.0  ;;  %v8282_v40 = vld [vmem:[%s10275_s29 + $0x48] sm:$0xf0] }
 0x1c7   :  { %1217 = vmatmul.bf16.gmra.mxu0 %v10651_v15  ;;  %v637_v31 = vpop.f32.mrf.mxu1  ;;  %v8285_v32 = vor.u32 %v9498_v27, %v8282_v40 }
 0x1c8   :  { %v638_v15 = vadd.f32 %v637_v31, %v10666_v49  ;;  %v8373_v31 = vor.u32 %v9520_v44, %v8370_v1  ;;  %v783_v56 = vpack.c.bf16 %v743_v48, %v741_v20  ;;  %v596_v20 = vadd.f32 %v10780_v28, %v10584_v30  ;;  %v9518_v48 = vld [vmem:[%s10275_s29 + $0xe4] sm:$0xf] }
 0x1c9   :  { %v10730_v51 = vpop.f32.mrf.mxu2  ;;  %1822 = vmatpush.bf16.msra.mxu0 %v8285_v32  ;;  %v8256_v32 = vld [vmem:[%s10275_s29 + $0x10] sm:$0xf] }
 0x1ca   :  { %8114 = vmatmul.msk.bf16.gmra.mxu1 %vm463_vm1, %v10574_v36  ;;  %v714_v59 = vmax.f32 %v638_v15, 0.0  ;;  %v10798_v15 = vpop.f32.mrf.mxu3 }
 0x1cb   :  { %v10736_v54 = vpop.f32.mrf.mxu0  ;;  %1908 = vmatpush.bf16.msrb.mxu1 %v8373_v31  ;;  %v594_v31 = vadd.f32 %v10766_v12, %v10584_v30  ;;  %v599_v25 = vadd.f32 %v10798_v15, %v10584_v30 }
 0x1cd   :  { %v753_v15 = vmax.f32 %v599_v25, 0.0 }
 0x1cf   :  { %v639_v57 = vpop.f32.mrf.mxu1 }
 0x1d0   :  { %v640_v33 = vadd.f32 %v639_v57, %v10666_v49 }
 0x1d1   :  { %v10742_v43 = vpop.f32.mrf.mxu2 }
 0x1d2   :  { %v716_v36 = vmax.f32 %v640_v33, 0.0 }
 0x1d3   :  { %v10744_v60 = vpop.f32.mrf.mxu0 }
 0x1d4   :  { %v10746_v62 = vpack.c.bf16 %v716_v36, %v714_v59  ;;  %v8336_v36 = vld [vmem:[%s10275_s29 + $0xb0] sm:$0xf] }
 0x1d6   :  { %1044 = vmatmul.bf16.gmra.mxu2 %v10663_v46  ;;  %1108 = vmatmul.bf16.gmra.mxu3 %v10746_v62 }
 0x1d7   :  { %1222 = vmatmul.bf16.gmra.mxu0 %v10663_v46  ;;  %v642_v0 = vpop.f32.mrf.mxu1  ;;  %v737_v46 = vmax.f32 %v579_v8, 0.0  ;;  %v589_v8 = vadd.f32 %v10738_v55, %v10584_v30 }
 0x1d8   :  { %v643_v11 = vadd.f32 %v642_v0, %v10666_v49  ;;  %v9513_v0 = vld [vmem:[%s10275_s29 + $0xb4] sm:$0xf0] }
 0x1d9   :  { %v10755_v6 = vpop.f32.mrf.mxu2  ;;  %v8337_v3 = vor.u32 %v9513_v0, %v8336_v36 }
 0x1da   :  { %8115 = vmatmul.msk.bf16.gmra.mxu1 %vm463_vm1, %v10589_v47  ;;  %v718_v13 = vmax.f32 %v643_v11, 0.0  ;;  %v781_v47 = vpack.c.bf16 %v739_v10, %v737_v46  ;;  %v10817_v46 = vpop.f32.mrf.mxu3 }
 0x1db   :  { %v10763_v9 = vpop.f32.mrf.mxu0  ;;  %1734 = vmatpush.bf16.msra.mxu3 %v8337_v3  ;;  %v601_v27 = vadd.f32 %v10817_v46, %v10584_v30 }
 0x1df   :  { %v644_v26 = vpop.f32.mrf.mxu1 }
 0x1e0   :  { %v645_v2 = vadd.f32 %v644_v26, %v10666_v49  ;;  %v745_v26 = vmax.f32 %v589_v8, 0.0 }
 0x1e1   :  { %v10769_v37 = vpop.f32.mrf.mxu2 }
 0x1e2   :  { %v720_v14 = vmax.f32 %v645_v2, 0.0  ;;  %v747_v2 = vmax.f32 %v591_v38, 0.0  ;;  %v9496_v38 = vld [vmem:[%s10275_s29 + $0x34] sm:$0xf] }
 0x1e3   :  { %v10771_v22 = vpop.f32.mrf.mxu0 }
 0x1e4   :  { %v10773_v16 = vpack.c.bf16 %v720_v14, %v718_v13  ;;  %v785_v17 = vpack.c.bf16 %v747_v2, %v745_v26  ;;  %v8328_v2 = vld [vmem:[%s10275_s29 + $0xa0] sm:$0xf] }
 0x1e6   :  { %1049 = vmatmul.bf16.gmra.mxu2 %v781_v47  ;;  %1113 = vmatmul.bf16.gmra.mxu3 %v10773_v16 }
 0x1e7   :  { %1227 = vmatmul.bf16.gmra.mxu0 %v781_v47  ;;  %v647_v23 = vpop.f32.mrf.mxu1 }
 0x1e8   :  { %v648_v50 = vadd.f32 %v647_v23, %v10666_v49  ;;  %v10830_v23 = vpop.f32.mrf.mxu3 }
 0x1e9   :  { %v10782_v35 = vpop.f32.mrf.mxu2  ;;  %v604_v25 = vadd.f32 %v10830_v23, %v10584_v30 }
 0x1ea   :  { %8116 = vmatmul.msk.bf16.gmra.mxu1 %vm463_vm1, %v10608_v7  ;;  %v722_v53 = vmax.f32 %v648_v50, 0.0  ;;  %v8362_v50 = vld [vmem:[%s10275_s29 + $0xe8] sm:$0xf0] }
 0x1eb   :  { %v10792_v45 = vpop.f32.mrf.mxu0 }
 0x1ef   :  { %v649_v21 = vpop.f32.mrf.mxu1 }
 0x1f0   :  { %v650_v52 = vadd.f32 %v649_v21, %v10666_v49  ;;  %v8365_v21 = vor.u32 %v9518_v48, %v8362_v50  ;;  %v8258_v50 = vld [vmem:[%s10275_s29 + $0x18] sm:$0xf0] }
 0x1f1   :  { %v10796_v34 = vpop.f32.mrf.mxu2 }
 0x1f2   :  { %v724_v7 = vmax.f32 %v650_v52, 0.0  ;;  %1909 = vmatpush.bf16.msrb.mxu1 %v8365_v21 }
 0x1f3   :  { %v10800_v57 = vpop.f32.mrf.mxu0 }
 0x1f4   :  { %v10802_v33 = vpack.c.bf16 %v724_v7, %v722_v53  ;;  %v749_v7 = vmax.f32 %v594_v31, 0.0  ;;  %v9493_v31 = vld [vmem:[%s10275_s29 + $0x14] sm:$0xf0] }
 0x1f6   :  { %1054 = vmatmul.bf16.gmra.mxu2 %v783_v56  ;;  %1118 = vmatmul.bf16.gmra.mxu3 %v10802_v33 }
 0x1f7   :  { %1232 = vmatmul.bf16.gmra.mxu0 %v783_v56  ;;  %v652_v59 = vpop.f32.mrf.mxu1 }
 0x1f8   :  { %v653_v10 = vadd.f32 %v652_v59, %v10666_v49  ;;  %v10847_v59 = vpop.f32.mrf.mxu3 }
 0x1f9   :  { %v10807_v61 = vpop.f32.mrf.mxu2 }
 0x1fa   :  { %8117 = vmatmul.msk.bf16.gmra.mxu1 %vm463_vm1, %v10625_v29  ;;  %v726_v14 = vmax.f32 %v653_v10, 0.0  ;;  %v8274_v10 = vld [vmem:[%s10275_s29 + $0x38] sm:$0xf0] }
 0x1fb   :  { %v10811_v5 = vpop.f32.mrf.mxu0 }
 0x1ff   :  { %v654_v11 = vpop.f32.mrf.mxu1 }
 0x200   :  { %v655_v29 = vadd.f32 %v654_v11, %v10666_v49  ;;  %v8277_v11 = vor.u32 %v9496_v38, %v8274_v10 }
 0x201   :  { %v10821_v13 = vpop.f32.mrf.mxu2 }
 0x202   :  { %v728_v55 = vmax.f32 %v655_v29, 0.0  ;;  %v9511_v29 = vld [vmem:[%s10275_s29 + $0xa4] sm:$0xf0]  ;;  %1823 = vmatpush.bf16.msra.mxu0 %v8277_v11  ;;  %v8250_v11 = vld [vmem:[%s10275_s29 + $0x8] sm:$0xf0] }
 0x203   :  { %v10823_v47 = vpop.f32.mrf.mxu0 }
 0x204   :  { %v10825_v63 = vpack.c.bf16 %v728_v55, %v726_v14  ;;  %v8329_v14 = vor.u32 %v9511_v29, %v8328_v2 }
 0x206   :  { %1059 = vmatmul.bf16.gmra.mxu2 %v785_v17  ;;  %1123 = vmatmul.bf16.gmra.mxu3 %v10825_v63 }
 0x207   :  { %1237 = vmatmul.bf16.gmra.mxu0 %v785_v17  ;;  %v657_v24 = vpop.f32.mrf.mxu1  ;;  %1735 = vmatpush.bf16.msra.mxu3 %v8329_v14 }
 0x208   :  { %v658_v52 = vadd.f32 %v657_v24, %v10666_v49  ;;  %v8269_v24 = vor.u32 %v9494_v18, %v8266_v39 }
 0x209   :  { %v10834_v44 = vpop.f32.mrf.mxu2 }
 0x20a   :  { %1266 = vmatmul.bf16.vlgmr.msra.gmra.mxu1 %v10674_v58  ;;  %v751_v58 = vmax.f32 %v596_v20, 0.0  ;;  %v730_v28 = vmax.f32 %v658_v52, 0.0  ;;  %1824 = vmatpush.bf16.msra.mxu0 %v8269_v24  ;;  %v9492_v20 = vld [vmem:[%s10275_s29 + $0x14] sm:$0xf] }
 0x20b   :  { %v10837_v1 = vpop.f32.mrf.mxu0  ;;  %v8261_v52 = vor.u32 %v9492_v20, %v8258_v50  ;;  %v8354_v20 = vld [vmem:[%s10275_s29 + $0xd8] sm:$0xf0] }
 0x20c   :  { %v787_v3 = vpack.c.bf16 %v751_v58, %v749_v7 }
 0x20e   :  { %1825 = vmatpush.bf16.msra.mxu0 %v8261_v52 }
 0x20f   :  { %v659_v53 = vpop.f32.mrf.mxu1 }
 0x210   :  { %v660_v56 = vadd.f32 %v659_v53, %v10666_v49  ;;  %v755_v53 = vmax.f32 %v601_v27, 0.0  ;;  %v606_v27 = vadd.f32 %v10847_v59, %v10584_v30 }
 0x211   :  { %v10849_v12 = vpop.f32.mrf.mxu2 }
 0x212   :  { %v732_v36 = vmax.f32 %v660_v56, 0.0  ;;  %v8248_v56 = vld [vmem:[%s10275_s29] sm:$0xf]  ;;  %v789_v29 = vpack.c.bf16 %v755_v53, %v753_v15 }
 0x214   :  { %v10851_v0 = vpop.f32.mrf.mxu0  ;;  %v10853_v8 = vpack.c.bf16 %v732_v36, %v730_v28  ;;  %v9491_v28 = vld [vmem:[%s10275_s29 + $0x4] sm:$0xf0]  ;;  %v9490_v36 = vld [vmem:[%s10275_s29 + $0x4] sm:$0xf] }
 0x215   :  { %v8249_v10 = vor.u32 %v9491_v28, %v8248_v56  ;;  %v10912_v28 = vld [vmem:[%s10270_s25] sm:$0x3]  ;;  %s14988_s25 = sld [smem:[#allocation24_spill]] }
 0x216   :  { %1064 = vmatmul.bf16.gmra.mxu2 %v787_v3  ;;  %1128 = vmatmul.bf16.gmra.mxu3 %v10853_v8 }
 0x217   :  { %1242 = vmatmul.bf16.gmra.mxu0 %v787_v3  ;;  %v662_v26 = vpop.f32.mrf.mxu1 }
 0x218   :  { %v663_v48 = vadd.f32 %v662_v26, %v10666_v49  ;;  %v8253_v26 = vor.u32 %v9490_v36, %v8250_v11  ;;  %v10915_v36 = vperm.slane %v10912_v28, 0 }
 0x219   :  { %v10860_v55 = vpop.f32.mrf.mxu2  ;;  %v10862_v17 = vpop.f32.mrf.mxu3 }
 0x21a   :  { %1271 = vmatmul.bf16.gmra.mxu1 %v10687_v4  ;;  %v8257_v4 = vor.u32 %v9493_v31, %v8256_v32  ;;  %v734_v3 = vmax.f32 %v663_v48, 0.0  ;;  %1826 = vmatpush.bf16.msra.mxu0 %v8253_v26  ;;  %v9516_v31 = vld [vmem:[%s10275_s29 + $0xd4] sm:$0xf] }
 0x21b   :  { %v8357_v48 = vor.u32 %v9516_v31, %v8354_v20 }
 0x21c   :  { %v10871_v40 = vpop.f32.mrf.mxu0  ;;  %1647 = vmatpush.bf16.msra.mxu2 %v8257_v4 }
 0x21d   :  { %1910 = vmatpush.bf16.msrb.mxu1 %v8357_v48 }
 0x21f   :  { %v664_v21 = vpop.f32.mrf.mxu1 }
 0x220   :  { %v665_v46 = vadd.f32 %v664_v21, %v10666_v49  ;;  %1648 = vmatpush.bf16.msra.mxu2 %v8249_v10  ;;  %v757_v21 = vmax.f32 %v604_v25, 0.0  ;;  %v1001_v25 = vadd.f32 %v10730_v51, %v10915_v36 }
 0x221   :  { %v10879_v7 = vpop.f32.mrf.mxu2  ;;  %v1091_v58 = vpop.f32.mrf.mxu3 }
 0x222   :  { %v736_v38 = vmax.f32 %v665_v46, 0.0  ;;  %v1090_v20 = vadd.f32 %v10862_v17, %v1001_v25  ;;  %v9514_v25 = vld [vmem:[%s10275_s29 + $0xc4] sm:$0xf] }
 0x224   :  { %v10885_v2 = vpop.f32.mrf.mxu0  ;;  %v10887_v14 = vpack.c.bf16 %v736_v38, %v734_v3  ;;  %v8320_v3 = vld [vmem:[%s10275_s29 + $0x90] sm:$0xf]  ;;  %v9509_v38 = vld [vmem:[%s10275_s29 + $0x94] sm:$0xf0] }
 0x225   :  { %v8321_v11 = vor.u32 %v9509_v38, %v8320_v3  ;;  %v1008_v38 = vadd.f32 %v10769_v37, %v10915_v36 }
 0x226   :  { %1069 = vmatmul.bf16.gmra.mxu2 %v789_v29  ;;  %1133 = vmatmul.bf16.gmra.mxu3 %v10887_v14 }
 0x227   :  { %1247 = vmatmul.bf16.gmra.mxu0 %v789_v29  ;;  %v667_v18 = vpop.f32.mrf.mxu1  ;;  %1736 = vmatpush.bf16.msra.mxu3 %v8321_v11 }
 0x228   :  { %v668_v4 = vadd.f32 %v667_v18, %v10666_v49  ;;  %v1003_v18 = vadd.f32 %v10742_v43, %v10915_v36  ;;  %v1347_v43 = vmax.f32 %v1090_v20, 0.0 }
 0x229   :  { %v10890_v39 = vpop.f32.mrf.mxu2  ;;  %v10892_v24 = vpop.f32.mrf.mxu3 }
 0x22a   :  { %1276 = vmatmul.bf16.gmra.mxu1 %v10704_v19  ;;  %v759_v19 = vmax.f32 %v606_v27, 0.0  ;;  %v738_v30 = vmax.f32 %v668_v4, 0.0  ;;  %v1092_v27 = vadd.f32 %v1091_v58, %v1003_v18 }
 0x22c   :  { %v10899_v32 = vpop.f32.mrf.mxu0  ;;  %v791_v46 = vpack.c.bf16 %v759_v19, %v757_v21 }
 0x22f   :  { %v669_v50 = vpop.f32.mrf.mxu1 }
 0x230   :  { %v670_v52 = vadd.f32 %v669_v50, %v10666_v49  ;;  %v1349_v50 = vmax.f32 %v1092_v27, 0.0  ;;  %v8346_v27 = vld [vmem:[%s10275_s29 + $0xc8] sm:$0xf0] }
 0x231   :  { %v10905_v23 = vpop.f32.mrf.mxu2  ;;  %v1096_v15 = vpop.f32.mrf.mxu3  ;;  %v8349_v20 = vor.u32 %v9514_v25, %v8346_v27 }
 0x232   :  { %v740_v59 = vmax.f32 %v670_v52, 0.0  ;;  %v1411_v51 = vpack.c.bf16 %v1349_v50, %v1347_v43  ;;  %v1097_v11 = vadd.f32 %v1096_v15, %v1008_v38  ;;  %v9507_v38 = vld [vmem:[%s10275_s29 + $0x84] sm:$0xf0] }
 0x233   :  { %1911 = vmatpush.bf16.msrb.mxu1 %v8349_v20  ;;  %v1013_v20 = vadd.f32 %v10796_v34, %v10915_v36 }
 0x234   :  { %v10907_v53 = vpop.f32.mrf.mxu0  ;;  %v10909_v56 = vpack.c.bf16 %v740_v59, %v738_v30  ;;  %v1353_v37 = vmax.f32 %v1097_v11, 0.0 }
 0x236   :  { %1074 = vmatmul.bf16.gmra.mxu2 %v791_v46  ;;  %1138 = vmatmul.bf16.gmra.mxu3 %v10909_v56 }
 0x237   :  { %1252 = vmatmul.bf16.gmra.mxu0 %v791_v46  ;;  %v672_v10 = vpop.f32.mrf.mxu1 }
 0x238   :  { %v673_v48 = vadd.f32 %v672_v10, %v10666_v49  ;;  %v1006_v10 = vadd.f32 %v10755_v6, %v10915_v36 }
 0x239   :  { %v10920_v26 = vpop.f32.mrf.mxu2  ;;  %v10922_v29 = vpop.f32.mrf.mxu3 }
 0x23a   :  { %1281 = vmatmul.bf16.gmra.mxu1 %v10721_v42  ;;  %v742_v30 = vmax.f32 %v673_v48, 0.0  ;;  %v1095_v48 = vadd.f32 %v10892_v24, %v1006_v10 }
 0x23c   :  { %v10929_v31 = vpop.f32.mrf.mxu0  ;;  %v1351_v15 = vmax.f32 %v1095_v48, 0.0  ;;  %v1011_v48 = vadd.f32 %v10782_v35, %v10915_v36 }
 0x23e   :  { %v1413_v24 = vpack.c.bf16 %v1353_v37, %v1351_v15  ;;  %v1100_v37 = vadd.f32 %v10922_v29, %v1011_v48  ;;  %v9537_v29 = vld [vmem:[%s14945_s17 + $0x74] sm:$0xf0] }
 0x23f   :  { %v674_v4 = vpop.f32.mrf.mxu1 }
 0x240   :  { %v675_v21 = vadd.f32 %v674_v4, %v10666_v49 }
 0x241   :  { %v10934_v19 = vpop.f32.mrf.mxu2  ;;  %v1101_v52 = vpop.f32.mrf.mxu3 }
 0x242   :  { %v744_v42 = vmax.f32 %v675_v21, 0.0 }
 0x244   :  { %v10936_v58 = vpop.f32.mrf.mxu0  ;;  %v10938_v59 = vpack.c.bf16 %v744_v42, %v742_v30 }
 0x246   :  { %1143 = vmatmul.bf16.gmra.mxu3 %v10938_v59  ;;  %1649 = vmatmul.bf16.vlgmr.msra.gmra.mxu2 %v1411_v51 }
 0x247   :  { %1827 = vmatmul.bf16.vlgmr.msra.gmra.mxu0 %v1411_v51  ;;  %v677_v17 = vpop.f32.mrf.mxu1 }
 0x248   :  { %v678_v4 = vadd.f32 %v677_v17, %v10666_v49  ;;  %v8312_v17 = vld [vmem:[%s10275_s29 + $0x80] sm:$0xf] }
 0x249   :  { %v10941_v46 = vpop.f32.mrf.mxu2  ;;  %v10943_v3 = vpop.f32.mrf.mxu3  ;;  %v8313_v11 = vor.u32 %v9507_v38, %v8312_v17 }
 0x24a   :  { %1286 = vmatmul.bf16.gmra.mxu1 %v10746_v62  ;;  %v746_v43 = vmax.f32 %v678_v4, 0.0  ;;  %v1102_v4 = vadd.f32 %v1101_v52, %v1013_v20  ;;  %v8432_v20 = vld [vmem:[%s14945_s17 + $0x70] sm:$0xf] }
 0x24b   :  { %1737 = vmatpush.bf16.msra.mxu3 %v8313_v11 }
 0x24c   :  { %v10950_v18 = vpop.f32.mrf.mxu0 }
 0x24f   :  { %v679_v50 = vpop.f32.mrf.mxu1 }
 0x250   :  { %v680_v62 = vadd.f32 %v679_v50, %v10666_v49 }
 0x251   :  { %v10957_v21 = vpop.f32.mrf.mxu2  ;;  %v1106_v6 = vpop.f32.mrf.mxu3 }
 0x252   :  { %v748_v30 = vmax.f32 %v680_v62, 0.0 }
 0x254   :  { %v10959_v42 = vpop.f32.mrf.mxu0  ;;  %v10961_v51 = vpack.c.bf16 %v748_v30, %v746_v43  ;;  %v1357_v43 = vmax.f32 %v1102_v4, 0.0 }
 0x256   :  { %1148 = vmatmul.bf16.gmra.mxu3 %v10961_v51  ;;  %1654 = vmatmul.bf16.gmra.mxu2 %v1413_v24 }
 0x257   :  { %1832 = vmatmul.bf16.gmra.mxu0 %v1413_v24  ;;  %v682_v10 = vpop.f32.mrf.mxu1 }
 0x258   :  { %v683_v62 = vadd.f32 %v682_v10, %v10666_v49  ;;  %v8433_v10 = vor.u32 %v9537_v29, %v8432_v20 }
 0x259   :  { %v10966_v25 = vpop.f32.mrf.mxu2  ;;  %v10968_v27 = vpop.f32.mrf.mxu3 }
 0x25a   :  { %1291 = vmatmul.bf16.gmra.mxu1 %v10773_v16  ;;  %v1355_v16 = vmax.f32 %v1100_v37, 0.0  ;;  %v750_v17 = vmax.f32 %v683_v62, 0.0  ;;  %2291 = vmatpush.bf16.msrb.mxu2 %v8433_v10  ;;  %v1018_v62 = vadd.f32 %v10821_v13, %v10915_v36 }
 0x25c   :  { %v10975_v50 = vpop.f32.mrf.mxu0  ;;  %v1415_v11 = vpack.c.bf16 %v1357_v43, %v1355_v16  ;;  %v1107_v43 = vadd.f32 %v1106_v6, %v1018_v62  ;;  %v9512_v16 = vld [vmem:[%s10275_s29 + $0xb4] sm:$0xf] }
 0x25d   :  { %14946 = vst [vmem:[#allocation34_spill] sm:$0xff] %v10975_v50  ;;  %v9535_v50 = vld [vmem:[%s14945_s17 + $0x64] sm:$0xf0] }
 0x25e   :  { %v1361_v13 = vmax.f32 %v1107_v43, 0.0  ;;  %v9553_v43 = vld [vmem:[%s14945_s17 + $0xf4] sm:$0xf0] }
 0x25f   :  { %v684_v15 = vpop.f32.mrf.mxu1 }
 0x260   :  { %v685_v30 = vadd.f32 %v684_v15, %v10666_v49  ;;  %v1016_v15 = vadd.f32 %v10807_v61, %v10915_v36 }
 0x261   :  { %v10980_v24 = vpop.f32.mrf.mxu2  ;;  %v1111_v34 = vpop.f32.mrf.mxu3 }
 0x262   :  { %v752_v38 = vmax.f32 %v685_v30, 0.0 }
 0x264   :  { %v10982_v35 = vpop.f32.mrf.mxu0  ;;  %v10984_v52 = vpack.c.bf16 %v752_v38, %v750_v17  ;;  %v8338_v17 = vld [vmem:[%s10275_s29 + $0xb8] sm:$0xf0] }
 0x265   :  { %14947 = vst [vmem:[#allocation35_spill] sm:$0xff] %v10982_v35  ;;  %v8341_v38 = vor.u32 %v9512_v16, %v8338_v17 }
 0x266   :  { %1153 = vmatmul.bf16.gmra.mxu3 %v10984_v52  ;;  %1659 = vmatmul.bf16.gmra.mxu2 %v1415_v11 }
 0x267   :  { %1837 = vmatmul.bf16.gmra.mxu0 %v1415_v11  ;;  %v687_v48 = vpop.f32.mrf.mxu1  ;;  %v1105_v11 = vadd.f32 %v10943_v3, %v1016_v15  ;;  %1912 = vmatpush.bf16.msrb.mxu1 %v8341_v38  ;;  %v8496_v15 = vld [vmem:[%s14945_s17 + $0xf0] sm:$0xf] }
 0x268   :  { %v688_v20 = vadd.f32 %v687_v48, %v10666_v49  ;;  %v8497_v17 = vor.u32 %v9553_v43, %v8496_v15 }
 0x269   :  { %v10989_v4 = vpop.f32.mrf.mxu2  ;;  %v10991_v37 = vpop.f32.mrf.mxu3  ;;  %v1359_v6 = vmax.f32 %v1105_v11, 0.0  ;;  %v1023_v11 = vadd.f32 %v10849_v12, %v10915_v36 }
 0x26a   :  { %1296 = vmatmul.bf16.gmra.mxu1 %v10802_v33  ;;  %v754_v62 = vmax.f32 %v688_v20, 0.0  ;;  %2380 = vmatpush.bf16.msrb.mxu3 %v8497_v17 }
 0x26b   :  { %v1417_v3 = vpack.c.bf16 %v1361_v13, %v1359_v6  ;;  %v1112_v20 = vadd.f32 %v1111_v34, %v1023_v11 }
 0x26c   :  { %v10998_v30 = vpop.f32.mrf.mxu0 }
 0x26d   :  { %14948 = vst [vmem:[#allocation36_spill] sm:$0xff] %v10998_v30 }
 0x26f   :  { %v689_v29 = vpop.f32.mrf.mxu1 }
 0x270   :  { %v690_v33 = vadd.f32 %v689_v29, %v10666_v49 }
 0x271   :  { %v11005_v10 = vpop.f32.mrf.mxu2  ;;  %v1116_v61 = vpop.f32.mrf.mxu3 }
 0x272   :  { %v756_v30 = vmax.f32 %v690_v33, 0.0 }
 0x274   :  { %v11007_v35 = vpop.f32.mrf.mxu0  ;;  %v11009_v16 = vpack.c.bf16 %v756_v30, %v754_v62  ;;  %v1021_v30 = vadd.f32 %v10834_v44, %v10915_v36 }
 0x275   :  { %14949 = vst [vmem:[#allocation37_spill] sm:$0xff] %v11007_v35 }
 0x276   :  { %1158 = vmatmul.bf16.gmra.mxu3 %v11009_v16  ;;  %1664 = vmatmul.bf16.gmra.mxu2 %v1417_v3  ;;  %v1110_v33 = vadd.f32 %v10968_v27, %v1021_v30 }
 0x277   :  { %1842 = vmatmul.bf16.gmra.mxu0 %v1417_v3  ;;  %v692_v48 = vpop.f32.mrf.mxu1  ;;  %v1365_v3 = vmax.f32 %v1112_v20, 0.0 }
 0x278   :  { %v693_v6 = vadd.f32 %v692_v48, %v10666_v49  ;;  %v1363_v43 = vmax.f32 %v1110_v33, 0.0  ;;  %v11038_v48 = vperm.slane %v10912_v28, 1  ;;  %v9510_v28 = vld [vmem:[%s10275_s29 + $0xa4] sm:$0xf] }
 0x279   :  { %v11014_v38 = vpop.f32.mrf.mxu2  ;;  %v11016_v29 = vpop.f32.mrf.mxu3 }
 0x27a   :  { %1301 = vmatmul.bf16.gmra.mxu1 %v10825_v63  ;;  %v758_v17 = vmax.f32 %v693_v6, 0.0  ;;  %v1419_v11 = vpack.c.bf16 %v1365_v3, %v1363_v43  ;;  %v1179_v33 = vadd.f32 %v10719_v41, %v11038_v48 }
 0x27c   :  { %v11023_v13 = vpop.f32.mrf.mxu0 }
 0x27d   :  { %14950 = vst [vmem:[#allocation38_spill] sm:$0xff] %v11023_v13  ;;  %v8424_v13 = vld [vmem:[%s14945_s17 + $0x60] sm:$0xf] }
 0x27e   :  { %v8425_v27 = vor.u32 %v9535_v50, %v8424_v13  ;;  %v1026_v50 = vadd.f32 %v10860_v55, %v10915_v36 }
 0x27f   :  { %v694_v62 = vpop.f32.mrf.mxu1 }
 0x280   :  { %v695_v15 = vadd.f32 %v694_v62, %v10666_v49  ;;  %2292 = vmatpush.bf16.msrb.mxu2 %v8425_v27  ;;  %v8330_v62 = vld [vmem:[%s10275_s29 + $0xa8] sm:$0xf0]  ;;  %v1115_v43 = vadd.f32 %v10991_v37, %v1026_v50 }
 0x281   :  { %v11028_v12 = vpop.f32.mrf.mxu2  ;;  %v1121_v63 = vpop.f32.mrf.mxu3  ;;  %v8333_v3 = vor.u32 %v9510_v28, %v8330_v62 }
 0x282   :  { %v760_v35 = vmax.f32 %v695_v15, 0.0  ;;  %v1181_v15 = vadd.f32 %v10736_v54, %v11038_v48 }
 0x283   :  { %1913 = vmatpush.bf16.msrb.mxu1 %v8333_v3  ;;  %v1033_v3 = vadd.f32 %v10905_v23, %v10915_v36 }
 0x284   :  { %v11030_v44 = vpop.f32.mrf.mxu0  ;;  %v11032_v34 = vpack.c.bf16 %v760_v35, %v758_v17  ;;  %v1028_v35 = vadd.f32 %v10879_v7, %v10915_v36 }
 0x286   :  { %1163 = vmatmul.bf16.gmra.mxu3 %v11032_v34  ;;  %1669 = vmatmul.bf16.gmra.mxu2 %v1419_v11  ;;  %v1117_v13 = vadd.f32 %v1116_v61, %v1028_v35  ;;  %v1367_v61 = vmax.f32 %v1115_v43, 0.0  ;;  %v1031_v43 = vadd.f32 %v10890_v39, %v10915_v36 }
 0x287   :  { %1847 = vmatmul.bf16.gmra.mxu0 %v1419_v11  ;;  %v1267_v49 = vpop.f32.mrf.mxu1 }
 0x288   :  { %v1268_v7 = vadd.f32 %v1267_v49, %v1179_v33  ;;  %v1369_v41 = vmax.f32 %v1117_v13, 0.0  ;;  %v8488_v49 = vld [vmem:[%s14945_s17 + $0xe0] sm:$0xf]  ;;  %v9551_v33 = vld [vmem:[%s14945_s17 + $0xe4] sm:$0xf0] }
 0x289   :  { %v11040_v30 = vpop.f32.mrf.mxu2  ;;  %v11042_v20 = vpop.f32.mrf.mxu3  ;;  %v8489_v50 = vor.u32 %v9551_v33, %v8488_v49 }
 0x28a   :  { %1306 = vmatmul.bf16.gmra.mxu1 %v10853_v8  ;;  %v1348_v27 = vmax.f32 %v1268_v7, 0.0  ;;  %v1421_v54 = vpack.c.bf16 %v1369_v41, %v1367_v61  ;;  %v1122_v7 = vadd.f32 %v1121_v63, %v1033_v3  ;;  %v1186_v41 = vadd.f32 %v10763_v9, %v11038_v48  ;;  %v8416_v9 = vld [vmem:[%s14945_s17 + $0x50] sm:$0xf]  ;;  %v9533_v3 = vld [vmem:[%s14945_s17 + $0x54] sm:$0xf0] }
 0x28b   :  { %2381 = vmatpush.bf16.msrb.mxu3 %v8489_v50 }
 0x28c   :  { %v11051_v6 = vpop.f32.mrf.mxu0 }
 0x28d   :  { %14951 = vst [vmem:[#allocation39_spill] sm:$0xff] %v11051_v6 }
 0x28f   :  { %v1269_v17 = vpop.f32.mrf.mxu1 }
 0x290   :  { %v1270_v8 = vadd.f32 %v1269_v17, %v1181_v15  ;;  %v1184_v15 = vadd.f32 %v10744_v60, %v11038_v48 }
 0x291   :  { %v11058_v11 = vpop.f32.mrf.mxu2  ;;  %v1126_v55 = vpop.f32.mrf.mxu3 }
 0x292   :  { %v1350_v35 = vmax.f32 %v1270_v8, 0.0  ;;  %v1120_v8 = vadd.f32 %v11016_v29, %v1031_v43  ;;  %v8417_v29 = vor.u32 %v9533_v3, %v8416_v9  ;;  %v8434_v43 = vld [vmem:[%s14945_s17 + $0x78] sm:$0xf0]  ;;  %v1191_v9 = vadd.f32 %v10792_v45, %v11038_v48 }
 0x294   :  { %v11060_v6 = vpack.c.bf16 %v1350_v35, %v1348_v27  ;;  %v11062_v28 = vpop.f32.mrf.mxu0  ;;  %v1371_v39 = vmax.f32 %v1120_v8, 0.0  ;;  %2293 = vmatpush.bf16.msrb.mxu2 %v8417_v29 }
 0x296   :  { %1674 = vmatmul.bf16.gmra.mxu2 %v1421_v54  ;;  %1738 = vmatmul.bf16.vlgmr.msra.gmra.mxu3 %v11060_v6 }
 0x297   :  { %1852 = vmatmul.bf16.gmra.mxu0 %v1421_v54  ;;  %v1272_v37 = vpop.f32.mrf.mxu1 }
 0x298   :  { %v1273_v23 = vadd.f32 %v1272_v37, %v1184_v15  ;;  %v9536_v15 = vld [vmem:[%s14945_s17 + $0x74] sm:$0xf] }
 0x299   :  { %v11067_v13 = vpop.f32.mrf.mxu2  ;;  %v11069_v62 = vpop.f32.mrf.mxu3 }
 0x29a   :  { %1311 = vmatmul.bf16.gmra.mxu1 %v10887_v14  ;;  %v1373_v14 = vmax.f32 %v1122_v7, 0.0  ;;  %v1352_v63 = vmax.f32 %v1273_v23, 0.0  ;;  %v8437_v7 = vor.u32 %v9536_v15, %v8434_v43  ;;  %v1038_v23 = vadd.f32 %v10934_v19, %v10915_v36 }
 0x29c   :  { %v11078_v17 = vpop.f32.mrf.mxu0  ;;  %v1423_v33 = vpack.c.bf16 %v1373_v14, %v1371_v39  ;;  %2469 = vmatpush.bf16.msrb.mxu0 %v8437_v7  ;;  %v1036_v14 = vadd.f32 %v10920_v26, %v10915_v36 }
 0x29e   :  { %v1125_v19 = vadd.f32 %v11042_v20, %v1036_v14  ;;  %v8480_v20 = vld [vmem:[%s14945_s17 + $0xd0] sm:$0xf] }
 0x29f   :  { %v1274_v61 = vpop.f32.mrf.mxu1 }
 0x2a0   :  { %v1275_v27 = vadd.f32 %v1274_v61, %v1186_v41  ;;  %v1189_v61 = vadd.f32 %v10771_v22, %v11038_v48 }
 0x2a1   :  { %v11083_v35 = vpop.f32.mrf.mxu2  ;;  %v1131_v60 = vpop.f32.mrf.mxu3 }
 0x2a2   :  { %v1354_v54 = vmax.f32 %v1275_v27, 0.0  ;;  %v1127_v27 = vadd.f32 %v1126_v55, %v1038_v23  ;;  %v1375_v55 = vmax.f32 %v1125_v19, 0.0  ;;  %v1041_v19 = vadd.f32 %v10941_v46, %v10915_v36 }
 0x2a4   :  { %v11085_v49 = vpop.f32.mrf.mxu0  ;;  %v11087_v50 = vpack.c.bf16 %v1354_v54, %v1352_v63  ;;  %v9508_v63 = vld [vmem:[%s10275_s29 + $0x94] sm:$0xf]  ;;  %v8322_v54 = vld [vmem:[%s10275_s29 + $0x98] sm:$0xf0]  ;;  %v1377_v22 = vmax.f32 %v1127_v27, 0.0 }
 0x2a6   :  { %1679 = vmatmul.bf16.gmra.mxu2 %v1423_v33  ;;  %1743 = vmatmul.bf16.gmra.mxu3 %v11087_v50 }
 0x2a7   :  { %1857 = vmatmul.bf16.gmra.mxu0 %v1423_v33  ;;  %v1277_v37 = vpop.f32.mrf.mxu1  ;;  %v8325_v33 = vor.u32 %v9508_v63, %v8322_v54  ;;  %v1425_v63 = vpack.c.bf16 %v1377_v22, %v1375_v55  ;;  %v1196_v22 = vadd.f32 %v10811_v5, %v11038_v48  ;;  %v8408_v5 = vld [vmem:[%s14945_s17 + $0x40] sm:$0xf] }
 0x2a8   :  { %v1278_v3 = vadd.f32 %v1277_v37, %v1189_v61  ;;  %v9549_v37 = vld [vmem:[%s14945_s17 + $0xd4] sm:$0xf0] }
 0x2a9   :  { %v11094_v41 = vpop.f32.mrf.mxu2  ;;  %v11096_v8 = vpop.f32.mrf.mxu3  ;;  %1914 = vmatpush.bf16.msrb.mxu1 %v8325_v33  ;;  %v8481_v61 = vor.u32 %v9549_v37, %v8480_v20  ;;  %v1043_v33 = vadd.f32 %v10957_v21, %v10915_v36 }
 0x2aa   :  { %1316 = vmatmul.bf16.gmra.mxu1 %v10909_v56  ;;  %v1356_v43 = vmax.f32 %v1278_v3, 0.0 }
 0x2ab   :  { %2382 = vmatpush.bf16.msrb.mxu3 %v8481_v61  ;;  %v1132_v3 = vadd.f32 %v1131_v60, %v1043_v33  ;;  %v9531_v33 = vld [vmem:[%s14945_s17 + $0x44] sm:$0xf0] }
 0x2ac   :  { %v11105_v39 = vpop.f32.mrf.mxu0 }
 0x2af   :  { %v1279_v56 = vpop.f32.mrf.mxu1 }
 0x2b0   :  { %v1280_v29 = vadd.f32 %v1279_v56, %v1191_v9  ;;  %v1194_v9 = vadd.f32 %v10800_v57, %v11038_v48 }
 0x2b1   :  { %v11112_v15 = vpop.f32.mrf.mxu2  ;;  %v1136_v26 = vpop.f32.mrf.mxu3 }
 0x2b2   :  { %v1358_v7 = vmax.f32 %v1280_v29, 0.0  ;;  %v1130_v29 = vadd.f32 %v11069_v62, %v1041_v19  ;;  %v8409_v62 = vor.u32 %v9531_v33, %v8408_v5  ;;  %v8426_v19 = vld [vmem:[%s14945_s17 + $0x68] sm:$0xf0]  ;;  %v1201_v5 = vadd.f32 %v10837_v1, %v11038_v48 }
 0x2b4   :  { %v11114_v23 = vpop.f32.mrf.mxu0  ;;  %v11116_v54 = vpack.c.bf16 %v1358_v7, %v1356_v43  ;;  %v1379_v46 = vmax.f32 %v1130_v29, 0.0  ;;  %2294 = vmatpush.bf16.msrb.mxu2 %v8409_v62 }
 0x2b6   :  { %1684 = vmatmul.bf16.gmra.mxu2 %v1425_v63  ;;  %1748 = vmatmul.bf16.gmra.mxu3 %v11116_v54 }
 0x2b7   :  { %1862 = vmatmul.bf16.gmra.mxu0 %v1425_v63  ;;  %v1282_v45 = vpop.f32.mrf.mxu1 }
 0x2b8   :  { %v1283_v21 = vadd.f32 %v1282_v45, %v1194_v9  ;;  %v9534_v9 = vld [vmem:[%s14945_s17 + $0x64] sm:$0xf] }
 0x2b9   :  { %v11121_v14 = vpop.f32.mrf.mxu2  ;;  %v11123_v27 = vpop.f32.mrf.mxu3 }
 0x2ba   :  { %1321 = vmatmul.bf16.gmra.mxu1 %v10938_v59  ;;  %v1381_v59 = vmax.f32 %v1132_v3, 0.0  ;;  %v1360_v60 = vmax.f32 %v1283_v21, 0.0  ;;  %v8429_v3 = vor.u32 %v9534_v9, %v8426_v19  ;;  %v1048_v21 = vadd.f32 %v10980_v24, %v10915_v36 }
 0x2bc   :  { %v11132_v56 = vpop.f32.mrf.mxu0  ;;  %v1427_v37 = vpack.c.bf16 %v1381_v59, %v1379_v46  ;;  %2470 = vmatpush.bf16.msrb.mxu0 %v8429_v3  ;;  %v1046_v59 = vadd.f32 %v10966_v25, %v10915_v36 }
 0x2be   :  { %v1135_v24 = vadd.f32 %v11096_v8, %v1046_v59  ;;  %v8472_v8 = vld [vmem:[%s14945_s17 + $0xc0] sm:$0xf] }
 0x2bf   :  { %v1284_v55 = vpop.f32.mrf.mxu1 }
 0x2c0   :  { %v1285_v43 = vadd.f32 %v1284_v55, %v1196_v22  ;;  %v1199_v55 = vadd.f32 %v10823_v47, %v11038_v48 }
 0x2c1   :  { %v11137_v7 = vpop.f32.mrf.mxu2  ;;  %v1141_v57 = vpop.f32.mrf.mxu3 }
 0x2c2   :  { %v1362_v63 = vmax.f32 %v1285_v43, 0.0  ;;  %v1137_v43 = vadd.f32 %v1136_v26, %v1048_v21  ;;  %v1383_v26 = vmax.f32 %v1135_v24, 0.0  ;;  %v1051_v24 = vadd.f32 %v10989_v4, %v10915_v36 }
 0x2c4   :  { %v11139_v20 = vpop.f32.mrf.mxu0  ;;  %v11141_v61 = vpack.c.bf16 %v1362_v63, %v1360_v60  ;;  %v9506_v60 = vld [vmem:[%s10275_s29 + $0x84] sm:$0xf]  ;;  %v8314_v63 = vld [vmem:[%s10275_s29 + $0x88] sm:$0xf0]  ;;  %v1385_v47 = vmax.f32 %v1137_v43, 0.0  ;;  %s15012_s29 = sld [smem:[#allocation25_spill]] }
 0x2c6   :  { %1689 = vmatmul.bf16.gmra.mxu2 %v1427_v37  ;;  %1753 = vmatmul.bf16.gmra.mxu3 %v11141_v61 }
 0x2c7   :  { %1867 = vmatmul.bf16.gmra.mxu0 %v1427_v37  ;;  %v1287_v45 = vpop.f32.mrf.mxu1  ;;  %v8317_v37 = vor.u32 %v9506_v60, %v8314_v63  ;;  %v1429_v60 = vpack.c.bf16 %v1385_v47, %v1383_v26  ;;  %v1206_v47 = vadd.f32 %v10871_v40, %v11038_v48  ;;  %v8400_v40 = vld [vmem:[%s14945_s17 + $0x30] sm:$0xf] }
 0x2c8   :  { %v1288_v33 = vadd.f32 %v1287_v45, %v1199_v55  ;;  %v9547_v45 = vld [vmem:[%s14945_s17 + $0xc4] sm:$0xf0] }
 0x2c9   :  { %v11148_v22 = vpop.f32.mrf.mxu3  ;;  %v11150_v29 = vpop.f32.mrf.mxu2  ;;  %1915 = vmatpush.bf16.msrb.mxu1 %v8317_v37  ;;  %v8473_v55 = vor.u32 %v9547_v45, %v8472_v8  ;;  %v1053_v37 = vadd.f32 %v11005_v10, %v10915_v36 }
 0x2ca   :  { %1326 = vmatmul.bf16.gmra.mxu1 %v10961_v51  ;;  %v1364_v19 = vmax.f32 %v1288_v33, 0.0 }
 0x2cb   :  { %2383 = vmatpush.bf16.msrb.mxu3 %v8473_v55  ;;  %v1142_v33 = vadd.f32 %v1141_v57, %v1053_v37  ;;  %v9529_v37 = vld [vmem:[%s14945_s17 + $0x34] sm:$0xf0] }
 0x2cc   :  { %v11159_v46 = vpop.f32.mrf.mxu0 }
 0x2cf   :  { %v1289_v51 = vpop.f32.mrf.mxu1 }
 0x2d0   :  { %v1290_v62 = vadd.f32 %v1289_v51, %v1201_v5  ;;  %v1204_v5 = vadd.f32 %v10851_v0, %v11038_v48 }
 0x2d1   :  { %v1146_v9 = vpop.f32.mrf.mxu3  ;;  %v11166_v25 = vpop.f32.mrf.mxu2 }
 0x2d2   :  { %v1366_v3 = vmax.f32 %v1290_v62, 0.0  ;;  %v1140_v62 = vadd.f32 %v11123_v27, %v1051_v24  ;;  %v8401_v27 = vor.u32 %v9529_v37, %v8400_v40  ;;  %v8418_v24 = vld [vmem:[%s14945_s17 + $0x58] sm:$0xf0]  ;;  %v1211_v40 = vadd.f32 %v10899_v32, %v11038_v48 }
 0x2d4   :  { %v11168_v21 = vpop.f32.mrf.mxu0  ;;  %v11170_v63 = vpack.c.bf16 %v1366_v3, %v1364_v19  ;;  %v1387_v4 = vmax.f32 %v1140_v62, 0.0  ;;  %2295 = vmatpush.bf16.msrb.mxu2 %v8401_v27 }
 0x2d6   :  { %1694 = vmatmul.bf16.gmra.mxu2 %v1429_v60  ;;  %1758 = vmatmul.bf16.gmra.mxu3 %v11170_v63 }
 0x2d7   :  { %1872 = vmatmul.bf16.gmra.mxu0 %v1429_v60  ;;  %v1292_v1 = vpop.f32.mrf.mxu1 }
 0x2d8   :  { %v1293_v10 = vadd.f32 %v1292_v1, %v1204_v5  ;;  %v9532_v5 = vld [vmem:[%s14945_s17 + $0x54] sm:$0xf] }
 0x2d9   :  { %v11175_v59 = vpop.f32.mrf.mxu3  ;;  %v11177_v43 = vpop.f32.mrf.mxu2 }
 0x2da   :  { %1331 = vmatmul.bf16.gmra.mxu1 %v10984_v52  ;;  %v1389_v52 = vmax.f32 %v1142_v33, 0.0  ;;  %v1368_v57 = vmax.f32 %v1293_v10, 0.0  ;;  %v8421_v33 = vor.u32 %v9532_v5, %v8418_v24  ;;  %v1058_v10 = vadd.f32 %v11028_v12, %v10915_v36 }
 0x2dc   :  { %v11186_v51 = vpop.f32.mrf.mxu0  ;;  %v1431_v45 = vpack.c.bf16 %v1389_v52, %v1387_v4  ;;  %2471 = vmatpush.bf16.msrb.mxu0 %v8421_v33  ;;  %v1056_v52 = vadd.f32 %v11014_v38, %v10915_v36 }
 0x2de   :  { %v1145_v12 = vadd.f32 %v11148_v22, %v1056_v52  ;;  %v8464_v22 = vld [vmem:[%s14945_s17 + $0xb0] sm:$0xf] }
 0x2df   :  { %v1294_v26 = vpop.f32.mrf.mxu1 }
 0x2e0   :  { %v1295_v19 = vadd.f32 %v1294_v26, %v1206_v47  ;;  %v1209_v26 = vadd.f32 %v10885_v2, %v11038_v48 }
 0x2e1   :  { %v1151_v3 = vpop.f32.mrf.mxu3  ;;  %v11191_v0 = vpop.f32.mrf.mxu2 }
 0x2e2   :  { %v1370_v60 = vmax.f32 %v1295_v19, 0.0  ;;  %v1147_v19 = vadd.f32 %v1146_v9, %v1058_v10  ;;  %v1391_v9 = vmax.f32 %v1145_v12, 0.0  ;;  %v1061_v12 = vadd.f32 %v11040_v30, %v10915_v36 }
 0x2e4   :  { %v11193_v8 = vpop.f32.mrf.mxu0  ;;  %v11195_v55 = vpack.c.bf16 %v1370_v60, %v1368_v57  ;;  %v9552_v57 = vld [vmem:[%s14945_s17 + $0xf4] sm:$0xf]  ;;  %v8498_v60 = vld [vmem:[%s14945_s17 + $0xf8] sm:$0xf0]  ;;  %v1393_v2 = vmax.f32 %v1147_v19, 0.0 }
 0x2e6   :  { %1699 = vmatmul.bf16.gmra.mxu2 %v1431_v45  ;;  %1763 = vmatmul.bf16.gmra.mxu3 %v11195_v55 }
 0x2e7   :  { %1877 = vmatmul.bf16.gmra.mxu0 %v1431_v45  ;;  %v1297_v1 = vpop.f32.mrf.mxu1  ;;  %v8501_v45 = vor.u32 %v9552_v57, %v8498_v60  ;;  %v1433_v57 = vpack.c.bf16 %v1393_v2, %v1391_v9  ;;  %v1216_v2 = vadd.f32 %v10929_v31, %v11038_v48 }
 0x2e8   :  { %v1298_v37 = vadd.f32 %v1297_v1, %v1209_v26  ;;  %v9545_v1 = vld [vmem:[%s14945_s17 + $0xb4] sm:$0xf0] }
 0x2e9   :  { %v11202_v47 = vpop.f32.mrf.mxu3  ;;  %v11204_v62 = vpop.f32.mrf.mxu2  ;;  %2558 = vmatpush.bf16.msra.mxu1 %v8501_v45  ;;  %v8465_v26 = vor.u32 %v9545_v1, %v8464_v22  ;;  %v1063_v45 = vadd.f32 %v11058_v11, %v10915_v36 }
 0x2ea   :  { %1336 = vmatmul.bf16.gmra.mxu1 %v11009_v16  ;;  %v1372_v24 = vmax.f32 %v1298_v37, 0.0 }
 0x2eb   :  { %2384 = vmatpush.bf16.msrb.mxu3 %v8465_v26  ;;  %v1152_v37 = vadd.f32 %v1151_v3, %v1063_v45 }
 0x2ec   :  { %v11213_v4 = vpop.f32.mrf.mxu0 }
 0x2ef   :  { %v1299_v16 = vpop.f32.mrf.mxu1 }
 0x2f0   :  { %v1300_v27 = vadd.f32 %v1299_v16, %v1211_v40  ;;  %v1214_v40 = vadd.f32 %v10907_v53, %v11038_v48 }
 0x2f1   :  { %v1156_v5 = vpop.f32.mrf.mxu3  ;;  %v11220_v38 = vpop.f32.mrf.mxu2 }
 0x2f2   :  { %v1374_v33 = vmax.f32 %v1300_v27, 0.0  ;;  %v1150_v27 = vadd.f32 %v11175_v59, %v1061_v12  ;;  %v8392_v59 = vld [vmem:[%s14945_s17 + $0x20] sm:$0xf]  ;;  %v8410_v12 = vld [vmem:[%s14945_s17 + $0x48] sm:$0xf0] }
 0x2f4   :  { %v11222_v10 = vpop.f32.mrf.mxu0  ;;  %v11224_v60 = vpack.c.bf16 %v1374_v33, %v1372_v24  ;;  %v1395_v30 = vmax.f32 %v1150_v27, 0.0 }
 0x2f6   :  { %1704 = vmatmul.bf16.gmra.mxu2 %v1433_v57  ;;  %1768 = vmatmul.bf16.gmra.mxu3 %v11224_v60 }
 0x2f7   :  { %1882 = vmatmul.bf16.gmra.mxu0 %v1433_v57  ;;  %v1302_v32 = vpop.f32.mrf.mxu1 }
 0x2f8   :  { %v1303_v11 = vadd.f32 %v1302_v32, %v1214_v40  ;;  %v9527_v32 = vld [vmem:[%s14945_s17 + $0x24] sm:$0xf0]  ;;  %v9530_v40 = vld [vmem:[%s14945_s17 + $0x44] sm:$0xf] }
 0x2f9   :  { %v11229_v52 = vpop.f32.mrf.mxu3  ;;  %v11231_v19 = vpop.f32.mrf.mxu2  ;;  %v8393_v45 = vor.u32 %v9527_v32, %v8392_v59  ;;  %v1221_v59 = vadd.f32 %v10950_v18, %v11038_v48 }
 0x2fa   :  { %1341 = vmatmul.bf16.gmra.mxu1 %v11032_v34  ;;  %v1397_v34 = vmax.f32 %v1152_v37, 0.0  ;;  %v1376_v3 = vmax.f32 %v1303_v11, 0.0  ;;  %v8413_v37 = vor.u32 %v9530_v40, %v8410_v12  ;;  %v1068_v11 = vadd.f32 %v11083_v35, %v10915_v36 }
 0x2fb   :  { %2296 = vmatpush.bf16.msrb.mxu2 %v8393_v45 }
 0x2fc   :  { %v11240_v16 = vpop.f32.mrf.mxu0  ;;  %v1435_v31 = vpack.c.bf16 %v1397_v34, %v1395_v30  ;;  %2472 = vmatpush.bf16.msrb.mxu0 %v8413_v37  ;;  %v1066_v34 = vadd.f32 %v11067_v13, %v10915_v36 }
 0x2fd   :  { %14952 = vst [vmem:[#allocation40_spill] sm:$0xff] %v11240_v16 }
 0x2ff   :  { %v1304_v9 = vpop.f32.mrf.mxu1 }
 0x300   :  { %v1305_v24 = vadd.f32 %v1304_v9, %v1216_v2  ;;  %v1219_v9 = vadd.f32 %v10936_v58, %v11038_v48 }
 0x301   :  { %v11245_v33 = vpop.f32.mrf.mxu3  ;;  %v11247_v53 = vpop.f32.mrf.mxu2 }
 0x302   :  { %v1378_v57 = vmax.f32 %v1305_v24, 0.0  ;;  %v1157_v24 = vadd.f32 %v1156_v5, %v1068_v11 }
 0x304   :  { %v11249_v22 = vpop.f32.mrf.mxu0  ;;  %v11251_v1 = vpack.c.bf16 %v1378_v57, %v1376_v3  ;;  %v9550_v3 = vld [vmem:[%s14945_s17 + $0xe4] sm:$0xf]  ;;  %v8490_v57 = vld [vmem:[%s14945_s17 + $0xe8] sm:$0xf0]  ;;  %v1401_v58 = vmax.f32 %v1157_v24, 0.0 }
 0x305   :  { %14953 = vst [vmem:[#allocation41_spill] sm:$0xff] %v11249_v22 }
 0x306   :  { %1709 = vmatmul.bf16.gmra.mxu2 %v1435_v31  ;;  %1773 = vmatmul.bf16.gmra.mxu3 %v11251_v1 }
 0x307   :  { %1887 = vmatmul.bf16.gmra.mxu0 %v1435_v31  ;;  %v1307_v26 = vpop.f32.mrf.mxu1  ;;  %v8493_v31 = vor.u32 %v9550_v3, %v8490_v57  ;;  %v8456_v3 = vld [vmem:[%s14945_s17 + $0xa0] sm:$0xf]  ;;  %v9543_v57 = vld [vmem:[%s14945_s17 + $0xa4] sm:$0xf0] }
 0x308   :  { %v1308_v35 = vadd.f32 %v1307_v26, %v1219_v9  ;;  %v9528_v26 = vld [vmem:[%s14945_s17 + $0x34] sm:$0xf]  ;;  %v8402_v9 = vld [vmem:[%s14945_s17 + $0x38] sm:$0xf0] }
 0x309   :  { %v11258_v2 = vpop.f32.mrf.mxu3  ;;  %v11260_v27 = vpop.f32.mrf.mxu2  ;;  %2559 = vmatpush.bf16.msra.mxu1 %v8493_v31  ;;  %v8457_v31 = vor.u32 %v9543_v57, %v8456_v3 }
 0x30a   :  { %1916 = vmatmul.bf16.vlgmr.msrb.gmra.mxu1 %v11060_v6  ;;  %v1155_v6 = vadd.f32 %v11202_v47, %v1066_v34  ;;  %v1380_v12 = vmax.f32 %v1308_v35, 0.0  ;;  %v8405_v34 = vor.u32 %v9528_v26, %v8402_v9  ;;  %v9526_v35 = vld [vmem:[%s14945_s17 + $0x24] sm:$0xf]  ;;  %v8384_v26 = vld [vmem:[%s14945_s17 + $0x10] sm:$0xf] }
 0x30b   :  { %2385 = vmatpush.bf16.msrb.mxu3 %v8457_v31  ;;  %v9525_v9 = vld [vmem:[%s14945_s17 + $0x14] sm:$0xf0]  ;;  %v8386_v31 = vld [vmem:[%s14945_s17 + $0x18] sm:$0xf0] }
 0x30c   :  { %v11269_v30 = vpop.f32.mrf.mxu0  ;;  %v1399_v40 = vmax.f32 %v1155_v6, 0.0  ;;  %2473 = vmatpush.bf16.msrb.mxu0 %v8405_v34  ;;  %v8385_v57 = vor.u32 %v9525_v9, %v8384_v26 }
 0x30d   :  { %14954 = vst [vmem:[#allocation42_spill] sm:$0xff] %v11269_v30  ;;  %v9522_v30 = vld [vmem:[%s14945_s17 + $0x4] sm:$0xf] }
 0x30e   :  { %v1437_v18 = vpack.c.bf16 %v1401_v58, %v1399_v40  ;;  %v1073_v58 = vadd.f32 %v11112_v15, %v10915_v36  ;;  %v1224_v40 = vadd.f32 %v10959_v42, %v11038_v48  ;;  %v9524_v15 = vld [vmem:[%s14945_s17 + $0x14] sm:$0xf]  ;;  %2297 = vmatpush.bf16.msrb.mxu2 %v8385_v57  ;;  %v8482_v57 = vld [vmem:[%s14945_s17 + $0xd8] sm:$0xf0] }
 0x30f   :  { %v1309_v32 = vpop.f32.mrf.mxu1 }
 0x310   :  { %v1310_v45 = vadd.f32 %v1309_v32, %v1221_v59  ;;  %v8394_v32 = vld [vmem:[%s14945_s17 + $0x28] sm:$0xf0] }
 0x311   :  { %v11276_v13 = vpop.f32.mrf.mxu3  ;;  %v11278_v5 = vpop.f32.mrf.mxu2 }
 0x312   :  { %v1382_v37 = vmax.f32 %v1310_v45, 0.0  ;;  %v8397_v45 = vor.u32 %v9526_v35, %v8394_v32 }
 0x314   :  { %v11280_v11 = vpop.f32.mrf.mxu0  ;;  %v11282_v47 = vpack.c.bf16 %v1382_v37, %v1380_v12  ;;  %v1071_v12 = vadd.f32 %v11094_v41, %v10915_v36  ;;  %v1162_v37 = vadd.f32 %v11245_v33, %v1073_v58  ;;  %2474 = vmatpush.bf16.msrb.mxu0 %v8397_v45  ;;  %v8389_v33 = vor.u32 %v9524_v15, %v8386_v31 }
 0x315   :  { %14955 = vst [vmem:[#allocation43_spill] sm:$0xff] %v11280_v11  ;;  %v9523_v11 = vld [vmem:[%s14945_s17 + $0x4] sm:$0xf0] }
 0x316   :  { %1714 = vmatmul.bf16.gmra.mxu2 %v1437_v18  ;;  %1778 = vmatmul.bf16.gmra.mxu3 %v11282_v47  ;;  %v1160_v3 = vadd.f32 %v11229_v52, %v1071_v12  ;;  %v1405_v35 = vmax.f32 %v1162_v37, 0.0 }
 0x317   :  { %1892 = vmatmul.bf16.gmra.mxu0 %v1437_v18  ;;  %v1312_v24 = vpop.f32.mrf.mxu1 }
 0x318   :  { %v1313_v42 = vadd.f32 %v1312_v24, %v1224_v40  ;;  %2475 = vmatpush.bf16.msrb.mxu0 %v8389_v33  ;;  %v1403_v22 = vmax.f32 %v1160_v3, 0.0  ;;  %v8378_v24 = vld [vmem:[%s14945_s17 + $0x8] sm:$0xf0] }
 0x319   :  { %v11289_v59 = vpop.f32.mrf.mxu2  ;;  %v11291_v6 = vpop.f32.mrf.mxu3  ;;  %v8381_v40 = vor.u32 %v9522_v30, %v8378_v24  ;;  %v1078_v30 = vadd.f32 %v11137_v7, %v10915_v36 }
 0x31a   :  { %1921 = vmatmul.bf16.gmra.mxu1 %v11087_v50  ;;  %v14957_v50 = vld [vmem:[#allocation34_spill] sm:$0xff]  ;;  %v1439_v26 = vpack.c.bf16 %v1405_v35, %v1403_v22 }
 0x31b   :  { %v1226_v34 = vadd.f32 %v14957_v50, %v11038_v48  ;;  %v1384_v50 = vmax.f32 %v1313_v42, 0.0  ;;  %v9548_v42 = vld [vmem:[%s14945_s17 + $0xd4] sm:$0xf] }
 0x31c   :  { %v11303_v18 = vpop.f32.mrf.mxu0  ;;  %2476 = vmatpush.bf16.msrb.mxu0 %v8381_v40  ;;  %v8485_v31 = vor.u32 %v9548_v42, %v8482_v57 }
 0x31d   :  { %14956 = vst [vmem:[#allocation44_spill] sm:$0xff] %v11303_v18  ;;  %v8376_v18 = vld [vmem:[%s14945_s17] sm:$0xf] }
 0x31e   :  { %v8377_v52 = vor.u32 %v9523_v11, %v8376_v18  ;;  %v1076_v11 = vadd.f32 %v11121_v14, %v10915_v36  ;;  %v1167_v18 = vadd.f32 %v11276_v13, %v1078_v30  ;;  %2560 = vmatpush.bf16.msra.mxu1 %v8485_v31 }
 0x31f   :  { %v1314_v41 = vpop.f32.mrf.mxu1 }
 0x320   :  { %v1315_v32 = vadd.f32 %v1314_v41, %v1226_v34  ;;  %2298 = vmatpush.bf16.msrb.mxu2 %v8377_v52  ;;  %v14959_v41 = vld [vmem:[#allocation36_spill] sm:$0xff]  ;;  %v1165_v7 = vadd.f32 %v11258_v2, %v1076_v11 }
 0x321   :  { %v11312_v58 = vpop.f32.mrf.mxu2  ;;  %v1741_v45 = vpop.f32.mrf.mxu3  ;;  %v1231_v33 = vadd.f32 %v14959_v41, %v11038_v48  ;;  %v8448_v2 = vld [vmem:[%s14945_s17 + $0x90] sm:$0xf]  ;;  %v14961_v41 = vld [vmem:[#allocation37_spill] sm:$0xff] }
 0x322   :  { %v1386_v16 = vmax.f32 %v1315_v32, 0.0  ;;  %v1409_v32 = vmax.f32 %v1167_v18, 0.0 }
 0x324   :  { %v11318_v12 = vpop.f32.mrf.mxu0  ;;  %v11320_v37 = vpack.c.bf16 %v1386_v16, %v1384_v50  ;;  %v14958_v16 = vld [vmem:[#allocation35_spill] sm:$0xff]  ;;  %v1407_v50 = vmax.f32 %v1165_v7, 0.0 }
 0x325   :  { %v1229_v22 = vadd.f32 %v14958_v16, %v11038_v48  ;;  %v11352_v16 = vld [vmem:[%s14960_s21] sm:$0x3] }
 0x326   :  { %1719 = vmatmul.bf16.gmra.mxu2 %v1439_v26  ;;  %1783 = vmatmul.bf16.gmra.mxu3 %v11320_v37  ;;  %v11355_v18 = vperm.slane %v11352_v16, 0 }
 0x327   :  { %1897 = vmatmul.bf16.gmra.mxu0 %v1439_v26  ;;  %v1317_v9 = vpop.f32.mrf.mxu1  ;;  %v1441_v26 = vpack.c.bf16 %v1409_v32, %v1407_v50  ;;  %v14962_v32 = vld [vmem:[#allocation38_spill] sm:$0xff] }
 0x328   :  { %v1653_v31 = vadd.f32 %v11166_v25, %v11355_v18  ;;  %v1651_v7 = vadd.f32 %v11150_v29, %v11355_v18 }
 0x329   :  { %v11323_v15 = vpop.f32.mrf.mxu2  ;;  %v11325_v34 = vpop.f32.mrf.mxu3 }
 0x32a   :  { %1926 = vmatmul.bf16.gmra.mxu1 %v11116_v54  ;;  %v1318_v54 = vadd.f32 %v1317_v9, %v1229_v22  ;;  %v9541_v9 = vld [vmem:[%s14945_s17 + $0x94] sm:$0xf0]  ;;  %v1740_v50 = vadd.f32 %v11291_v6, %v1651_v7  ;;  %v1658_v7 = vadd.f32 %v11191_v0, %v11355_v18 }
 0x32b   :  { %v8449_v11 = vor.u32 %v9541_v9, %v8448_v2 }
 0x32c   :  { %v11335_v3 = vpop.f32.mrf.mxu0  ;;  %v1388_v52 = vmax.f32 %v1318_v54, 0.0  ;;  %v1742_v54 = vadd.f32 %v1741_v45, %v1653_v31  ;;  %v1997_v9 = vmax.f32 %v1740_v50, 0.0 }
 0x32d   :  { %2386 = vmatpush.bf16.msrb.mxu3 %v8449_v11 }
 0x32f   :  { %v1319_v35 = vpop.f32.mrf.mxu1 }
 0x330   :  { %v1320_v36 = vadd.f32 %v1319_v35, %v1231_v33  ;;  %v1234_v33 = vadd.f32 %v14961_v41, %v11038_v48 }
 0x331   :  { %v11342_v14 = vpop.f32.mrf.mxu2  ;;  %v1746_v13 = vpop.f32.mrf.mxu3 }
 0x332   :  { %v1390_v24 = vmax.f32 %v1320_v36, 0.0  ;;  %v1236_v36 = vadd.f32 %v14962_v32, %v11038_v48  ;;  %v1656_v32 = vadd.f32 %v11177_v43, %v11355_v18 }
 0x334   :  { %v11344_v40 = vpop.f32.mrf.mxu0  ;;  %v11346_v30 = vpack.c.bf16 %v1390_v24, %v1388_v52 }
 0x336   :  { %1724 = vmatmul.bf16.gmra.mxu2 %v1441_v26  ;;  %1788 = vmatmul.bf16.gmra.mxu3 %v11346_v30 }
 0x337   :  { %1902 = vmatmul.bf16.gmra.mxu0 %v1441_v26  ;;  %v1322_v22 = vpop.f32.mrf.mxu1  ;;  %v1999_v26 = vmax.f32 %v1742_v54, 0.0  ;;  %v1239_v54 = vadd.f32 %v11030_v44, %v11038_v48 }
 0x338   :  { %v1323_v52 = vadd.f32 %v1322_v22, %v1234_v33 }
 0x339   :  { %v11357_v42 = vpop.f32.mrf.mxu2  ;;  %v11359_v57 = vpop.f32.mrf.mxu3  ;;  %v2061_v29 = vpack.c.bf16 %v1999_v26, %v1997_v9 }
 0x33a   :  { %1931 = vmatmul.bf16.gmra.mxu1 %v11141_v61  ;;  %v1392_v11 = vmax.f32 %v1323_v52, 0.0  ;;  %v9546_v52 = vld [vmem:[%s14945_s17 + $0xc4] sm:$0xf] }
 0x33c   :  { %v11368_v35 = vpop.f32.mrf.mxu0 }
 0x33f   :  { %v1324_v24 = vpop.f32.mrf.mxu1 }
 0x340   :  { %v1325_v25 = vadd.f32 %v1324_v24, %v1236_v36  ;;  %v1747_v36 = vadd.f32 %v1746_v13, %v1658_v7  ;;  %v8474_v24 = vld [vmem:[%s14945_s17 + $0xc8] sm:$0xf0] }
 0x341   :  { %v11373_v2 = vpop.f32.mrf.mxu2  ;;  %v1751_v61 = vpop.f32.mrf.mxu3  ;;  %v8477_v26 = vor.u32 %v9546_v52, %v8474_v24 }
 0x342   :  { %v1394_v41 = vmax.f32 %v1325_v25, 0.0  ;;  %v14965_v25 = vld [vmem:[#allocation39_spill] sm:$0xff]  ;;  %v2003_v44 = vmax.f32 %v1747_v36, 0.0 }
 0x343   :  { %v1241_v9 = vadd.f32 %v14965_v25, %v11038_v48  ;;  %2561 = vmatpush.bf16.msra.mxu1 %v8477_v26  ;;  %v1663_v25 = vadd.f32 %v11220_v38, %v11355_v18 }
 0x344   :  { %v11375_v45 = vpop.f32.mrf.mxu0  ;;  %v11377_v31 = vpack.c.bf16 %v1394_v41, %v1392_v11  ;;  %v1745_v11 = vadd.f32 %v11325_v34, %v1656_v32  ;;  %v8440_v34 = vld [vmem:[%s14945_s17 + $0x80] sm:$0xf] }
 0x345   :  { %14963 = vst [vmem:[#allocation34_spill] sm:$0xff] %v11375_v45 }
 0x346   :  { %1793 = vmatmul.bf16.gmra.mxu3 %v11377_v31  ;;  %2299 = vmatmul.bf16.vlgmr.msrb.gmra.mxu2 %v2061_v29  ;;  %v2001_v13 = vmax.f32 %v1745_v11, 0.0  ;;  %v1752_v11 = vadd.f32 %v1751_v61, %v1663_v25  ;;  %v8560_v25 = vld [vmem:[#allocation4 + $0x70] sm:$0xf] }
 0x347   :  { %2477 = vmatmul.bf16.vlgmr.msrb.gmra.mxu0 %v2061_v29  ;;  %v1327_v6 = vpop.f32.mrf.mxu1 }
 0x348   :  { %v1328_v0 = vadd.f32 %v1327_v6, %v1239_v54  ;;  %v2063_v24 = vpack.c.bf16 %v2003_v44, %v2001_v13  ;;  %v9539_v6 = vld [vmem:[%s14945_s17 + $0x84] sm:$0xf0] }
 0x349   :  { %v11380_v22 = vpop.f32.mrf.mxu2  ;;  %v11382_v33 = vpop.f32.mrf.mxu3  ;;  %v8441_v32 = vor.u32 %v9539_v6, %v8440_v34 }
 0x34a   :  { %1936 = vmatmul.bf16.gmra.mxu1 %v11170_v63  ;;  %v1396_v7 = vmax.f32 %v1328_v0, 0.0 }
 0x34b   :  { %2387 = vmatpush.bf16.msrb.mxu3 %v8441_v32 }
 0x34c   :  { %v11391_v50 = vpop.f32.mrf.mxu0 }
 0x34d   :  { %14964 = vst [vmem:[#allocation35_spill] sm:$0xff] %v11391_v50 }
 0x34f   :  { %v1329_v63 = vpop.f32.mrf.mxu1 }
 0x350   :  { %v1330_v41 = vadd.f32 %v1329_v63, %v1241_v9  ;;  %v1661_v9 = vadd.f32 %v11204_v62, %v11355_v18  ;;  %v1246_v63 = vadd.f32 %v11078_v17, %v11038_v48  ;;  %v9569_v17 = vld [vmem:[#allocation4 + $0x74] sm:$0xf0] }
 0x351   :  { %v11398_v29 = vpop.f32.mrf.mxu2  ;;  %v1756_v43 = vpop.f32.mrf.mxu3 }
 0x352   :  { %v1398_v50 = vmax.f32 %v1330_v41, 0.0  ;;  %v1750_v44 = vadd.f32 %v11359_v57, %v1661_v9  ;;  %v8561_v57 = vor.u32 %v9569_v17, %v8560_v25 }
 0x354   :  { %v11400_v45 = vpop.f32.mrf.mxu0  ;;  %v11402_v52 = vpack.c.bf16 %v1398_v50, %v1396_v7  ;;  %v1244_v50 = vadd.f32 %v11062_v28, %v11038_v48  ;;  %v2007_v7 = vmax.f32 %v1752_v11, 0.0  ;;  %v2005_v34 = vmax.f32 %v1750_v44, 0.0  ;;  %2941 = vmatpush.bf16.msra.mxu2 %v8561_v57 }
 0x355   :  { %v1668_v11 = vadd.f32 %v11247_v53, %v11355_v18  ;;  %v1666_v44 = vadd.f32 %v11231_v19, %v11355_v18 }
 0x356   :  { %1798 = vmatmul.bf16.gmra.mxu3 %v11402_v52  ;;  %2304 = vmatmul.bf16.gmra.mxu2 %v2063_v24  ;;  %v2065_v61 = vpack.c.bf16 %v2007_v7, %v2005_v34  ;;  %v9544_v7 = vld [vmem:[%s14945_s17 + $0xb4] sm:$0xf] }
 0x357   :  { %2482 = vmatmul.bf16.gmra.mxu0 %v2063_v24  ;;  %v1332_v54 = vpop.f32.mrf.mxu1 }
 0x358   :  { %v1333_v41 = vadd.f32 %v1332_v54, %v1244_v50 }
 0x359   :  { %v11407_v36 = vpop.f32.mrf.mxu2  ;;  %v11409_v26 = vpop.f32.mrf.mxu3 }
 0x35a   :  { %1941 = vmatmul.bf16.gmra.mxu1 %v11195_v55  ;;  %v1400_v28 = vmax.f32 %v1333_v41, 0.0  ;;  %v1757_v41 = vadd.f32 %v1756_v43, %v1668_v11 }
 0x35c   :  { %v11418_v0 = vpop.f32.mrf.mxu0 }
 0x35f   :  { %v1334_v13 = vpop.f32.mrf.mxu1 }
 0x360   :  { %v1335_v38 = vadd.f32 %v1334_v13, %v1246_v63  ;;  %v1249_v63 = vadd.f32 %v11085_v49, %v11038_v48 }
 0x361   :  { %v11423_v24 = vpop.f32.mrf.mxu2  ;;  %v1761_v55 = vpop.f32.mrf.mxu3 }
 0x362   :  { %v1402_v6 = vmax.f32 %v1335_v38, 0.0  ;;  %v8466_v38 = vld [vmem:[%s14945_s17 + $0xb8] sm:$0xf0] }
 0x363   :  { %v8469_v34 = vor.u32 %v9544_v7, %v8466_v38  ;;  %v1673_v38 = vadd.f32 %v11278_v5, %v11355_v18 }
 0x364   :  { %v11425_v32 = vpop.f32.mrf.mxu0  ;;  %v11427_v62 = vpack.c.bf16 %v1402_v6, %v1400_v28  ;;  %v1251_v28 = vadd.f32 %v11105_v39, %v11038_v48  ;;  %v1755_v6 = vadd.f32 %v11382_v33, %v1666_v44  ;;  %v8624_v33 = vld [vmem:[#allocation4 + $0xf0] sm:$0xf] }
 0x365   :  { %2562 = vmatpush.bf16.msra.mxu1 %v8469_v34  ;;  %v1254_v34 = vadd.f32 %v11114_v23, %v11038_v48 }
 0x366   :  { %1803 = vmatmul.bf16.gmra.mxu3 %v11427_v62  ;;  %2309 = vmatmul.bf16.gmra.mxu2 %v2065_v61  ;;  %v2009_v19 = vmax.f32 %v1755_v6, 0.0  ;;  %v1762_v6 = vadd.f32 %v1761_v55, %v1673_v38  ;;  %v9567_v38 = vld [vmem:[#allocation4 + $0x64] sm:$0xf0] }
 0x367   :  { %2487 = vmatmul.bf16.gmra.mxu0 %v2065_v61  ;;  %v1337_v54 = vpop.f32.mrf.mxu1 }
 0x368   :  { %v1338_v53 = vadd.f32 %v1337_v54, %v1249_v63  ;;  %v9585_v54 = vld [vmem:[#allocation4 + $0xf4] sm:$0xf0]  ;;  %v2015_v5 = vmax.f32 %v1762_v6, 0.0 }
 0x369   :  { %v11430_v50 = vpop.f32.mrf.mxu2  ;;  %v11432_v9 = vpop.f32.mrf.mxu3  ;;  %v8625_v63 = vor.u32 %v9585_v54, %v8624_v33 }
 0x36a   :  { %1946 = vmatmul.bf16.gmra.mxu1 %v11224_v60  ;;  %v2011_v60 = vmax.f32 %v1757_v41, 0.0  ;;  %v1404_v43 = vmax.f32 %v1338_v53, 0.0 }
 0x36b   :  { %3030 = vmatpush.bf16.msra.mxu3 %v8625_v63  ;;  %v8552_v63 = vld [vmem:[#allocation4 + $0x60] sm:$0xf] }
 0x36c   :  { %v11441_v13 = vpop.f32.mrf.mxu0  ;;  %v2067_v7 = vpack.c.bf16 %v2011_v60, %v2009_v19 }
 0x36d   :  { %14966 = vst [vmem:[#allocation36_spill] sm:$0xff] %v11441_v13 }
 0x36f   :  { %v1339_v61 = vpop.f32.mrf.mxu1 }
 0x370   :  { %v1340_v25 = vadd.f32 %v1339_v61, %v1251_v28  ;;  %v1671_v28 = vadd.f32 %v11260_v27, %v11355_v18  ;;  %v1256_v61 = vadd.f32 %v11132_v56, %v11038_v48  ;;  %v8553_v48 = vor.u32 %v9567_v38, %v8552_v63 }
 0x371   :  { %v11448_v49 = vpop.f32.mrf.mxu2  ;;  %v1766_v17 = vpop.f32.mrf.mxu3 }
 0x372   :  { %v1406_v57 = vmax.f32 %v1340_v25, 0.0  ;;  %v1760_v60 = vadd.f32 %v11409_v26, %v1671_v28  ;;  %v11479_v26 = vperm.slane %v11352_v16, 1  ;;  %2942 = vmatpush.bf16.msra.mxu2 %v8553_v48  ;;  %v1678_v28 = vadd.f32 %v11312_v58, %v11355_v18  ;;  %v9542_v16 = vld [vmem:[%s14945_s17 + $0xa4] sm:$0xf] }
 0x374   :  { %v11450_v11 = vpop.f32.mrf.mxu0  ;;  %v11452_v13 = vpack.c.bf16 %v1406_v57, %v1404_v43  ;;  %v1829_v6 = vadd.f32 %v11139_v20, %v11479_v26 }
 0x376   :  { %1808 = vmatmul.bf16.gmra.mxu3 %v11452_v13  ;;  %2314 = vmatmul.bf16.gmra.mxu2 %v2067_v7 }
 0x377   :  { %2492 = vmatmul.bf16.gmra.mxu0 %v2067_v7  ;;  %v1342_v39 = vpop.f32.mrf.mxu1  ;;  %v2013_v7 = vmax.f32 %v1760_v60, 0.0  ;;  %v1767_v60 = vadd.f32 %v1766_v17, %v1678_v28 }
 0x378   :  { %v1343_v25 = vadd.f32 %v1342_v39, %v1254_v34 }
 0x379   :  { %v11455_v44 = vpop.f32.mrf.mxu2  ;;  %v11457_v41 = vpop.f32.mrf.mxu3  ;;  %v2069_v55 = vpack.c.bf16 %v2015_v5, %v2013_v7 }
 0x37a   :  { %1951 = vmatmul.bf16.gmra.mxu1 %v11251_v1  ;;  %v1408_v23 = vmax.f32 %v1343_v25, 0.0 }
 0x37c   :  { %v11466_v53 = vpop.f32.mrf.mxu0 }
 0x37f   :  { %v1344_v19 = vpop.f32.mrf.mxu1 }
 0x380   :  { %v1345_v43 = vadd.f32 %v1344_v19, %v1256_v61  ;;  %v1676_v61 = vadd.f32 %v11289_v59, %v11355_v18  ;;  %v8458_v19 = vld [vmem:[%s14945_s17 + $0xa8] sm:$0xf0] }
 0x381   :  { %v11471_v1 = vpop.f32.mrf.mxu2  ;;  %v1771_v57 = vpop.f32.mrf.mxu3  ;;  %v8461_v5 = vor.u32 %v9542_v16, %v8458_v19  ;;  %v1683_v16 = vadd.f32 %v11342_v14, %v11355_v18  ;;  %v1834_v19 = vadd.f32 %v11168_v21, %v11479_v26 }
 0x382   :  { %v1410_v33 = vmax.f32 %v1345_v43, 0.0  ;;  %v1831_v43 = vadd.f32 %v11159_v46, %v11479_v26  ;;  %v1765_v7 = vadd.f32 %v11432_v9, %v1676_v61  ;;  %v8616_v9 = vld [vmem:[#allocation4 + $0xe0] sm:$0xf] }
 0x383   :  { %2563 = vmatpush.bf16.msra.mxu1 %v8461_v5  ;;  %v1681_v5 = vadd.f32 %v11323_v15, %v11355_v18 }
 0x384   :  { %v11473_v54 = vpop.f32.mrf.mxu0  ;;  %v11475_v27 = vpack.c.bf16 %v1410_v33, %v1408_v23  ;;  %v2017_v59 = vmax.f32 %v1765_v7, 0.0 }
 0x386   :  { %1813 = vmatmul.bf16.gmra.mxu3 %v11475_v27  ;;  %2319 = vmatmul.bf16.gmra.mxu2 %v2069_v55 }
 0x387   :  { %2497 = vmatmul.bf16.gmra.mxu0 %v2069_v55  ;;  %v1917_v56 = vpop.f32.mrf.mxu1 }
 0x388   :  { %v1918_v58 = vadd.f32 %v1917_v56, %v1829_v6  ;;  %v9583_v56 = vld [vmem:[#allocation4 + $0xe4] sm:$0xf0] }
 0x389   :  { %v11481_v39 = vpop.f32.mrf.mxu2  ;;  %v11483_v34 = vpop.f32.mrf.mxu3  ;;  %v8617_v6 = vor.u32 %v9583_v56, %v8616_v9  ;;  %v8544_v56 = vld [vmem:[#allocation4 + $0x50] sm:$0xf] }
 0x38a   :  { %1956 = vmatmul.bf16.gmra.mxu1 %v11282_v47  ;;  %v2019_v47 = vmax.f32 %v1767_v60, 0.0  ;;  %v1998_v17 = vmax.f32 %v1918_v58, 0.0  ;;  %v1836_v58 = vadd.f32 %v11186_v51, %v11479_v26 }
 0x38b   :  { %3031 = vmatpush.bf16.msra.mxu3 %v8617_v6  ;;  %v9565_v6 = vld [vmem:[#allocation4 + $0x54] sm:$0xf0] }
 0x38c   :  { %v11492_v25 = vpop.f32.mrf.mxu0  ;;  %v2071_v28 = vpack.c.bf16 %v2019_v47, %v2017_v59  ;;  %v8545_v51 = vor.u32 %v9565_v6, %v8544_v56 }
 0x38e   :  { %2943 = vmatpush.bf16.msra.mxu2 %v8545_v51 }
 0x38f   :  { %v1919_v23 = vpop.f32.mrf.mxu1 }
 0x390   :  { %v1920_v33 = vadd.f32 %v1919_v23, %v1831_v43  ;;  %v1772_v43 = vadd.f32 %v1771_v57, %v1683_v16  ;;  %v1770_v23 = vadd.f32 %v11457_v41, %v1681_v5  ;;  %v8562_v16 = vld [vmem:[#allocation4 + $0x78] sm:$0xf0] }
 0x391   :  { %v11499_v20 = vpop.f32.mrf.mxu2  ;;  %v1776_v55 = vpop.f32.mrf.mxu3 }
 0x392   :  { %v2000_v63 = vmax.f32 %v1920_v33, 0.0  ;;  %v2023_v14 = vmax.f32 %v1772_v43, 0.0 }
 0x394   :  { %v11501_v38 = vpack.c.bf16 %v2000_v63, %v1998_v17  ;;  %v11503_v48 = vpop.f32.mrf.mxu0  ;;  %v2021_v63 = vmax.f32 %v1770_v23, 0.0  ;;  %v1839_v23 = vadd.f32 %v11193_v8, %v11479_v26 }
 0x396   :  { %2324 = vmatmul.bf16.gmra.mxu2 %v2071_v28  ;;  %2388 = vmatmul.bf16.vlgmr.msrb.gmra.mxu3 %v11501_v38  ;;  %v2073_v15 = vpack.c.bf16 %v2023_v14, %v2021_v63  ;;  %v8450_v63 = vld [vmem:[%s14945_s17 + $0x98] sm:$0xf0] }
 0x397   :  { %2502 = vmatmul.bf16.gmra.mxu0 %v2071_v28  ;;  %v1922_v46 = vpop.f32.mrf.mxu1 }
 0x398   :  { %v1923_v47 = vadd.f32 %v1922_v46, %v1834_v19  ;;  %v9568_v46 = vld [vmem:[#allocation4 + $0x74] sm:$0xf] }
 0x399   :  { %v11506_v61 = vpop.f32.mrf.mxu2  ;;  %v11508_v60 = vpop.f32.mrf.mxu3  ;;  %v11529_v19 = vor.u32 %v9568_v46, %v8562_v16 }
 0x39a   :  { %1961 = vmatmul.bf16.gmra.mxu1 %v11320_v37  ;;  %v2002_v21 = vmax.f32 %v1923_v47, 0.0  ;;  %v1686_v47 = vadd.f32 %v11357_v42, %v11355_v18 }
 0x39b   :  { %3119 = vmatpush.bf16.msra.mxu0 %v11529_v19 }
 0x39c   :  { %v11517_v7 = vpop.f32.mrf.mxu0 }
 0x39f   :  { %v1924_v33 = vpop.f32.mrf.mxu1 }
 0x3a0   :  { %v1925_v59 = vadd.f32 %v1924_v33, %v1836_v58  ;;  %v1688_v58 = vadd.f32 %v11373_v2, %v11355_v18  ;;  %v1775_v2 = vadd.f32 %v11483_v34, %v1686_v47  ;;  %v8608_v34 = vld [vmem:[#allocation4 + $0xd0] sm:$0xf] }
 0x3a1   :  { %v11522_v37 = vpop.f32.mrf.mxu2  ;;  %v1781_v17 = vpop.f32.mrf.mxu3 }
 0x3a2   :  { %v2004_v28 = vmax.f32 %v1925_v59, 0.0  ;;  %v1777_v33 = vadd.f32 %v1776_v55, %v1688_v58  ;;  %v9540_v59 = vld [vmem:[%s14945_s17 + $0x94] sm:$0xf]  ;;  %v2025_v42 = vmax.f32 %v1775_v2, 0.0 }
 0x3a4   :  { %v11524_v9 = vpop.f32.mrf.mxu0  ;;  %v11526_v57 = vpack.c.bf16 %v2004_v28, %v2002_v21  ;;  %v8453_v21 = vor.u32 %v9540_v59, %v8450_v63  ;;  %v1841_v28 = vadd.f32 %v11213_v4, %v11479_v26  ;;  %v2027_v56 = vmax.f32 %v1777_v33, 0.0 }
 0x3a5   :  { %v1693_v63 = vadd.f32 %v11398_v29, %v11355_v18 }
 0x3a6   :  { %2329 = vmatmul.bf16.gmra.mxu2 %v2073_v15  ;;  %2393 = vmatmul.bf16.gmra.mxu3 %v11526_v57  ;;  %v2075_v58 = vpack.c.bf16 %v2027_v56, %v2025_v42 }
 0x3a7   :  { %2507 = vmatmul.bf16.gmra.mxu0 %v2073_v15  ;;  %v1927_v41 = vpop.f32.mrf.mxu1  ;;  %2564 = vmatpush.bf16.msra.mxu1 %v8453_v21  ;;  %v1844_v21 = vadd.f32 %v11222_v10, %v11479_v26  ;;  %v1782_v2 = vadd.f32 %v1781_v17, %v1693_v63  ;;  %v8536_v63 = vld [vmem:[#allocation4 + $0x40] sm:$0xf] }
 0x3a9   :  { %v11531_v5 = vpop.f32.mrf.mxu2  ;;  %v11533_v43 = vpop.f32.mrf.mxu3  ;;  %v2031_v29 = vmax.f32 %v1782_v2, 0.0 }
 0x3aa   :  { %1966 = vmatmul.bf16.gmra.mxu1 %v11346_v30  ;;  %v1928_v30 = vadd.f32 %v1927_v41, %v1839_v23  ;;  %v9581_v41 = vld [vmem:[#allocation4 + $0xd4] sm:$0xf0] }
 0x3ab   :  { %v8609_v23 = vor.u32 %v9581_v41, %v8608_v34 }
 0x3ac   :  { %v11543_v14 = vpop.f32.mrf.mxu0  ;;  %v2006_v55 = vmax.f32 %v1928_v30, 0.0 }
 0x3ad   :  { %3032 = vmatpush.bf16.msra.mxu3 %v8609_v23 }
 0x3af   :  { %v1929_v15 = vpop.f32.mrf.mxu1 }
 0x3b0   :  { %v1930_v6 = vadd.f32 %v1929_v15, %v1841_v28  ;;  %v1691_v28 = vadd.f32 %v11380_v22, %v11355_v18  ;;  %v14969_v15 = vld [vmem:[#allocation40_spill] sm:$0xff] }
 0x3b1   :  { %v11550_v8 = vpop.f32.mrf.mxu2  ;;  %v1786_v51 = vpop.f32.mrf.mxu3  ;;  %v1846_v56 = vadd.f32 %v14969_v15, %v11479_v26 }
 0x3b2   :  { %v2008_v46 = vmax.f32 %v1930_v6, 0.0  ;;  %v1780_v6 = vadd.f32 %v11508_v60, %v1691_v28  ;;  %v8554_v28 = vld [vmem:[#allocation4 + $0x68] sm:$0xf0] }
 0x3b4   :  { %v11552_v16 = vpop.f32.mrf.mxu0  ;;  %v11554_v59 = vpack.c.bf16 %v2008_v46, %v2006_v55  ;;  %v2029_v34 = vmax.f32 %v1780_v6, 0.0  ;;  %v1698_v6 = vadd.f32 %v11423_v24, %v11355_v18 }
 0x3b5   :  { %14967 = vst [vmem:[#allocation37_spill] sm:$0xff] %v11552_v16 }
 0x3b6   :  { %2334 = vmatmul.bf16.gmra.mxu2 %v2075_v58  ;;  %2398 = vmatmul.bf16.gmra.mxu3 %v11554_v59  ;;  %v2077_v22 = vpack.c.bf16 %v2031_v29, %v2029_v34  ;;  %v1787_v29 = vadd.f32 %v1786_v51, %v1698_v6  ;;  %v9538_v34 = vld [vmem:[%s14945_s17 + $0x84] sm:$0xf] }
 0x3b7   :  { %2512 = vmatmul.bf16.gmra.mxu0 %v2075_v58  ;;  %v1932_v4 = vpop.f32.mrf.mxu1 }
 0x3b8   :  { %v1933_v42 = vadd.f32 %v1932_v4, %v1844_v21  ;;  %v9566_v21 = vld [vmem:[#allocation4 + $0x64] sm:$0xf] }
 0x3b9   :  { %v11557_v47 = vpop.f32.mrf.mxu2  ;;  %v11559_v33 = vpop.f32.mrf.mxu3  ;;  %v11580_v2 = vor.u32 %v9566_v21, %v8554_v28  ;;  %v2035_v21 = vmax.f32 %v1787_v29, 0.0 }
 0x3ba   :  { %1971 = vmatmul.bf16.gmra.mxu1 %v11377_v31  ;;  %v2010_v10 = vmax.f32 %v1933_v42, 0.0 }
 0x3bb   :  { %3120 = vmatpush.bf16.msra.mxu0 %v11580_v2 }
 0x3bc   :  { %v11568_v30 = vpop.f32.mrf.mxu0 }
 0x3bd   :  { %14968 = vst [vmem:[#allocation38_spill] sm:$0xff] %v11568_v30  ;;  %v9563_v30 = vld [vmem:[#allocation4 + $0x44] sm:$0xf0] }
 0x3be   :  { %v8537_v60 = vor.u32 %v9563_v30, %v8536_v63  ;;  %v14971_v30 = vld [vmem:[#allocation41_spill] sm:$0xff] }
 0x3bf   :  { %v1934_v55 = vpop.f32.mrf.mxu1  ;;  %v1849_v42 = vadd.f32 %v14971_v30, %v11479_v26 }
 0x3c0   :  { %v1935_v46 = vadd.f32 %v1934_v55, %v1846_v56  ;;  %2944 = vmatpush.bf16.msra.mxu2 %v8537_v60  ;;  %v1696_v55 = vadd.f32 %v11407_v36, %v11355_v18 }
 0x3c1   :  { %v11573_v31 = vpop.f32.mrf.mxu2  ;;  %v1791_v58 = vpop.f32.mrf.mxu3 }
 0x3c2   :  { %v2012_v41 = vmax.f32 %v1935_v46, 0.0  ;;  %v1785_v24 = vadd.f32 %v11533_v43, %v1696_v55 }
 0x3c4   :  { %v11575_v23 = vpop.f32.mrf.mxu0  ;;  %v11577_v17 = vpack.c.bf16 %v2012_v41, %v2010_v10  ;;  %v8442_v10 = vld [vmem:[%s14945_s17 + $0x88] sm:$0xf0]  ;;  %v2033_v36 = vmax.f32 %v1785_v24, 0.0 }
 0x3c5   :  { %14970 = vst [vmem:[#allocation39_spill] sm:$0xff] %v11575_v23  ;;  %v8445_v41 = vor.u32 %v9538_v34, %v8442_v10 }
 0x3c6   :  { %2339 = vmatmul.bf16.gmra.mxu2 %v2077_v22  ;;  %2403 = vmatmul.bf16.gmra.mxu3 %v11577_v17  ;;  %v2079_v16 = vpack.c.bf16 %v2035_v21, %v2033_v36 }
 0x3c7   :  { %2517 = vmatmul.bf16.gmra.mxu0 %v2077_v22  ;;  %v1937_v4 = vpop.f32.mrf.mxu1  ;;  %v14973_v22 = vld [vmem:[#allocation42_spill] sm:$0xff]  ;;  %2565 = vmatpush.bf16.msra.mxu1 %v8445_v41  ;;  %v1703_v41 = vadd.f32 %v11448_v49, %v11355_v18 }
 0x3c8   :  { %v1851_v63 = vadd.f32 %v14973_v22, %v11479_v26  ;;  %v14975_v22 = vld [vmem:[#allocation43_spill] sm:$0xff] }
 0x3c9   :  { %v11582_v15 = vpop.f32.mrf.mxu3  ;;  %v11584_v56 = vpop.f32.mrf.mxu2  ;;  %v1792_v24 = vadd.f32 %v1791_v58, %v1703_v41  ;;  %v8528_v41 = vld [vmem:[#allocation4 + $0x30] sm:$0xf] }
 0x3ca   :  { %1976 = vmatmul.bf16.gmra.mxu1 %v11402_v52  ;;  %v1938_v52 = vadd.f32 %v1937_v4, %v1849_v42  ;;  %v8600_v4 = vld [vmem:[#allocation4 + $0xc0] sm:$0xf]  ;;  %v9579_v42 = vld [vmem:[#allocation4 + $0xc4] sm:$0xf0] }
 0x3cb   :  { %v8601_v55 = vor.u32 %v9579_v42, %v8600_v4  ;;  %v2039_v49 = vmax.f32 %v1792_v24, 0.0 }
 0x3cc   :  { %v11594_v46 = vpop.f32.mrf.mxu0  ;;  %v2014_v51 = vmax.f32 %v1938_v52, 0.0 }
 0x3cd   :  { %14972 = vst [vmem:[#allocation40_spill] sm:$0xff] %v11594_v46  ;;  %3033 = vmatpush.bf16.msra.mxu3 %v8601_v55 }
 0x3cf   :  { %v1939_v60 = vpop.f32.mrf.mxu1 }
 0x3d0   :  { %v1940_v28 = vadd.f32 %v1939_v60, %v1851_v63  ;;  %v1854_v63 = vadd.f32 %v14975_v22, %v11479_v26  ;;  %v14977_v60 = vld [vmem:[#allocation44_spill] sm:$0xff] }
 0x3d1   :  { %v1796_v30 = vpop.f32.mrf.mxu3  ;;  %v11601_v23 = vpop.f32.mrf.mxu2  ;;  %v1856_v21 = vadd.f32 %v14977_v60, %v11479_v26 }
 0x3d2   :  { %v2016_v6 = vmax.f32 %v1940_v28, 0.0 }
 0x3d4   :  { %v11603_v46 = vpop.f32.mrf.mxu0  ;;  %v11605_v34 = vpack.c.bf16 %v2016_v6, %v2014_v51 }
 0x3d5   :  { %14974 = vst [vmem:[#allocation41_spill] sm:$0xff] %v11603_v46 }
 0x3d6   :  { %2344 = vmatmul.bf16.gmra.mxu2 %v2079_v16  ;;  %2408 = vmatmul.bf16.gmra.mxu3 %v11605_v34 }
 0x3d7   :  { %2522 = vmatmul.bf16.gmra.mxu0 %v2079_v16  ;;  %v1942_v43 = vpop.f32.mrf.mxu1  ;;  %v1701_v16 = vadd.f32 %v11430_v50, %v11355_v18 }
 0x3d8   :  { %v1943_v36 = vadd.f32 %v1942_v43, %v1854_v63  ;;  %v9564_v63 = vld [vmem:[#allocation4 + $0x54] sm:$0xf] }
 0x3d9   :  { %v11608_v29 = vpop.f32.mrf.mxu3  ;;  %v11610_v10 = vpop.f32.mrf.mxu2  ;;  %v1790_v28 = vadd.f32 %v11559_v33, %v1701_v16  ;;  %v8546_v16 = vld [vmem:[#allocation4 + $0x58] sm:$0xf0] }
 0x3da   :  { %1981 = vmatmul.bf16.gmra.mxu1 %v11427_v62  ;;  %v2018_v55 = vmax.f32 %v1943_v36, 0.0  ;;  %v11631_v24 = vor.u32 %v9564_v63, %v8546_v16  ;;  %v1706_v36 = vadd.f32 %v11455_v44, %v11355_v18 }
 0x3db   :  { %v2037_v42 = vmax.f32 %v1790_v28, 0.0  ;;  %v1708_v28 = vadd.f32 %v11471_v1, %v11355_v18 }
 0x3dc   :  { %v11619_v52 = vpop.f32.mrf.mxu0  ;;  %3121 = vmatpush.bf16.msra.mxu0 %v11631_v24 }
 0x3dd   :  { %14976 = vst [vmem:[#allocation42_spill] sm:$0xff] %v11619_v52  ;;  %v2081_v50 = vpack.c.bf16 %v2039_v49, %v2037_v42  ;;  %v9561_v52 = vld [vmem:[#allocation4 + $0x34] sm:$0xf0]  ;;  %v1795_v42 = vadd.f32 %v11582_v15, %v1706_v36  ;;  %v8592_v15 = vld [vmem:[#allocation4 + $0xb0] sm:$0xf] }
 0x3de   :  { %v8529_v33 = vor.u32 %v9561_v52, %v8528_v41  ;;  %v1859_v52 = vadd.f32 %v11318_v12, %v11479_v26 }
 0x3df   :  { %v1944_v51 = vpop.f32.mrf.mxu1 }
 0x3e0   :  { %v1945_v6 = vadd.f32 %v1944_v51, %v1856_v21  ;;  %2945 = vmatpush.bf16.msra.mxu2 %v8529_v33  ;;  %v1797_v51 = vadd.f32 %v1796_v30, %v1708_v28  ;;  %v2041_v33 = vmax.f32 %v1795_v42, 0.0  ;;  %v1711_v42 = vadd.f32 %v11481_v39, %v11355_v18 }
 0x3e1   :  { %v1801_v62 = vpop.f32.mrf.mxu3  ;;  %v11624_v4 = vpop.f32.mrf.mxu2 }
 0x3e2   :  { %v2020_v22 = vmax.f32 %v1945_v6, 0.0  ;;  %v1861_v6 = vadd.f32 %v11335_v3, %v11479_v26 }
 0x3e4   :  { %v11626_v46 = vpop.f32.mrf.mxu0  ;;  %v11628_v58 = vpack.c.bf16 %v2020_v22, %v2018_v55  ;;  %v2043_v22 = vmax.f32 %v1797_v51, 0.0  ;;  %v1713_v51 = vadd.f32 %v11499_v20, %v11355_v18 }
 0x3e6   :  { %2349 = vmatmul.bf16.gmra.mxu2 %v2081_v50  ;;  %2413 = vmatmul.bf16.gmra.mxu3 %v11628_v58  ;;  %v2083_v44 = vpack.c.bf16 %v2043_v22, %v2041_v33  ;;  %v1866_v22 = vadd.f32 %v11368_v35, %v11479_v26  ;;  %v8520_v35 = vld [vmem:[#allocation4 + $0x20] sm:$0xf] }
 0x3e7   :  { %2527 = vmatmul.bf16.gmra.mxu0 %v2081_v50  ;;  %v1947_v43 = vpop.f32.mrf.mxu1 }
 0x3e8   :  { %v1948_v55 = vadd.f32 %v1947_v43, %v1859_v52  ;;  %v9577_v43 = vld [vmem:[#allocation4 + $0xb4] sm:$0xf0] }
 0x3e9   :  { %v11633_v60 = vpop.f32.mrf.mxu3  ;;  %v11635_v21 = vpop.f32.mrf.mxu2  ;;  %v8593_v28 = vor.u32 %v9577_v43, %v8592_v15 }
 0x3ea   :  { %1986 = vmatmul.bf16.gmra.mxu1 %v11452_v13  ;;  %v2022_v12 = vmax.f32 %v1948_v55, 0.0  ;;  %v1802_v55 = vadd.f32 %v1801_v62, %v1713_v51 }
 0x3eb   :  { %3034 = vmatpush.bf16.msra.mxu3 %v8593_v28 }
 0x3ec   :  { %v11645_v49 = vpop.f32.mrf.mxu0  ;;  %v2047_v20 = vmax.f32 %v1802_v55, 0.0 }
 0x3ed   :  { %14978 = vst [vmem:[#allocation43_spill] sm:$0xff] %v11645_v49 }
 0x3ef   :  { %v1949_v1 = vpop.f32.mrf.mxu1 }
 0x3f0   :  { %v1950_v13 = vadd.f32 %v1949_v1, %v1861_v6  ;;  %v1864_v6 = vadd.f32 %v11344_v40, %v11479_v26 }
 0x3f1   :  { %v1806_v50 = vpop.f32.mrf.mxu3  ;;  %v11650_v41 = vpop.f32.mrf.mxu2 }
 0x3f2   :  { %v2024_v63 = vmax.f32 %v1950_v13, 0.0  ;;  %v1800_v13 = vadd.f32 %v11608_v29, %v1711_v42  ;;  %v9559_v29 = vld [vmem:[#allocation4 + $0x24] sm:$0xf0]  ;;  %v8538_v42 = vld [vmem:[#allocation4 + $0x48] sm:$0xf0] }
 0x3f3   :  { %v8521_v51 = vor.u32 %v9559_v29, %v8520_v35  ;;  %v14984_v29 = vld [vmem:[#allocation35_spill] sm:$0xff] }
 0x3f4   :  { %v11652_v16 = vpop.f32.mrf.mxu0  ;;  %v11654_v30 = vpack.c.bf16 %v2024_v63, %v2022_v12  ;;  %v2045_v40 = vmax.f32 %v1800_v13, 0.0 }
 0x3f5   :  { %14979 = vst [vmem:[#allocation44_spill] sm:$0xff] %v11652_v16  ;;  %2946 = vmatpush.bf16.msra.mxu2 %v8521_v51  ;;  %v9555_v16 = vld [vmem:[#allocation4 + $0x4] sm:$0xf0] }
 0x3f6   :  { %2354 = vmatmul.bf16.gmra.mxu2 %v2083_v44  ;;  %2418 = vmatmul.bf16.gmra.mxu3 %v11654_v30  ;;  %v2085_v62 = vpack.c.bf16 %v2047_v20, %v2045_v40  ;;  %v8626_v20 = vld [vmem:[#allocation4 + $0xf8] sm:$0xf0]  ;;  %v14982_v40 = vld [vmem:[#allocation34_spill] sm:$0xff] }
 0x3f7   :  { %2532 = vmatmul.bf16.gmra.mxu0 %v2083_v44  ;;  %v1952_v3 = vpop.f32.mrf.mxu1 }
 0x3f8   :  { %v1953_v33 = vadd.f32 %v1952_v3, %v1864_v6  ;;  %v9562_v6 = vld [vmem:[#allocation4 + $0x44] sm:$0xf] }
 0x3f9   :  { %v11657_v52 = vpop.f32.mrf.mxu3  ;;  %v11659_v36 = vpop.f32.mrf.mxu2  ;;  %v11682_v55 = vor.u32 %v9562_v6, %v8538_v42 }
 0x3fa   :  { %1991 = vmatmul.bf16.gmra.mxu1 %v11475_v27  ;;  %v2026_v15 = vmax.f32 %v1953_v33, 0.0  ;;  %v1718_v33 = vadd.f32 %v11522_v37, %v11355_v18  ;;  %v1871_v37 = vadd.f32 %v14984_v29, %v11479_v26  ;;  %v8530_v29 = vld [vmem:[#allocation4 + $0x38] sm:$0xf0] }
 0x3fb   :  { %3122 = vmatpush.bf16.msra.mxu0 %v11682_v55 }
 0x3fc   :  { %v11668_v1 = vpop.f32.mrf.mxu0 }
 0x3fd   :  { %14980 = vst [vmem:[#allocation45_spill] sm:$0xff] %v11668_v1 }
 0x3ff   :  { %v1954_v12 = vpop.f32.mrf.mxu1 }
 0x400   :  { %v1955_v63 = vadd.f32 %v1954_v12, %v1866_v22  ;;  %v9584_v12 = vld [vmem:[#allocation4 + $0xf4] sm:$0xf] }
 0x401   :  { %v11673_v27 = vpop.f32.mrf.mxu3  ;;  %v11675_v44 = vpop.f32.mrf.mxu2 }
 0x402   :  { %v2028_v43 = vmax.f32 %v1955_v63, 0.0  ;;  %v8629_v63 = vor.u32 %v9584_v12, %v8626_v20 }
 0x404   :  { %v11677_v39 = vpop.f32.mrf.mxu0  ;;  %v11679_v28 = vpack.c.bf16 %v2028_v43, %v2026_v15  ;;  %v1869_v15 = vadd.f32 %v14982_v40, %v11479_v26  ;;  %v1716_v43 = vadd.f32 %v11506_v61, %v11355_v18  ;;  %3208 = vmatpush.bf16.msrb.mxu1 %v8629_v63 }
 0x405   :  { %14981 = vst [vmem:[#allocation46_spill] sm:$0xff] %v11677_v39 }
 0x406   :  { %2359 = vmatmul.bf16.gmra.mxu2 %v2085_v62  ;;  %2423 = vmatmul.bf16.gmra.mxu3 %v11679_v28 }
 0x407   :  { %2537 = vmatmul.bf16.gmra.mxu0 %v2085_v62  ;;  %v1957_v3 = vpop.f32.mrf.mxu1  ;;  %v1807_v62 = vadd.f32 %v1806_v50, %v1718_v33 }
 0x408   :  { %v1958_v51 = vadd.f32 %v1957_v3, %v1869_v15  ;;  %v8584_v15 = vld [vmem:[#allocation4 + $0xa0] sm:$0xf] }
 0x409   :  { %v11684_v22 = vpop.f32.mrf.mxu3  ;;  %v11686_v13 = vpop.f32.mrf.mxu2  ;;  %v2051_v42 = vmax.f32 %v1807_v62, 0.0 }
 0x40a   :  { %2566 = vmatmul.bf16.vlgmr.msra.gmra.mxu1 %v11501_v38  ;;  %v1805_v38 = vadd.f32 %v11633_v60, %v1716_v43  ;;  %v2030_v1 = vmax.f32 %v1958_v51, 0.0  ;;  %v9575_v43 = vld [vmem:[#allocation4 + $0xa4] sm:$0xf0]  ;;  %v1723_v51 = vadd.f32 %v11550_v8, %v11355_v18  ;;  %v9556_v8 = vld [vmem:[#allocation4 + $0x14] sm:$0xf] }
 0x40b   :  { %v8585_v62 = vor.u32 %v9575_v43, %v8584_v15 }
 0x40c   :  { %v11696_v35 = vpop.f32.mrf.mxu0  ;;  %v2049_v40 = vmax.f32 %v1805_v38, 0.0  ;;  %v8522_v38 = vld [vmem:[#allocation4 + $0x28] sm:$0xf0] }
 0x40d   :  { %14983 = vst [vmem:[#allocation34_spill] sm:$0xff] %v11696_v35  ;;  %v9560_v35 = vld [vmem:[#allocation4 + $0x34] sm:$0xf]  ;;  %3035 = vmatpush.bf16.msra.mxu3 %v8585_v62 }
 0x40e   :  { %v2087_v33 = vpack.c.bf16 %v2051_v42, %v2049_v40  ;;  %v11710_v60 = vor.u32 %v9560_v35, %v8530_v29  ;;  %v1721_v42 = vadd.f32 %v11531_v5, %v11355_v18  ;;  %v1812_v40 = vadd.f32 %v11673_v27, %v1723_v51  ;;  %v9557_v29 = vld [vmem:[#allocation4 + $0x14] sm:$0xf0] }
 0x40f   :  { %v1959_v6 = vpop.f32.mrf.mxu1 }
 0x410   :  { %v1960_v39 = vadd.f32 %v1959_v6, %v1871_v37  ;;  %3123 = vmatpush.bf16.msra.mxu0 %v11710_v60  ;;  %v1874_v6 = vadd.f32 %v11400_v45, %v11479_v26  ;;  %v1810_v15 = vadd.f32 %v11657_v52, %v1721_v42  ;;  %v8514_v45 = vld [vmem:[#allocation4 + $0x18] sm:$0xf0]  ;;  %v2055_v5 = vmax.f32 %v1812_v40, 0.0  ;;  %v8506_v42 = vld [vmem:[#allocation4 + $0x8] sm:$0xf0] }
 0x411   :  { %v11701_v12 = vpop.f32.mrf.mxu3  ;;  %v11703_v20 = vpop.f32.mrf.mxu2 }
 0x412   :  { %v2032_v61 = vmax.f32 %v1960_v39, 0.0  ;;  %v2053_v49 = vmax.f32 %v1810_v15, 0.0 }
 0x414   :  { %v11705_v50 = vpop.f32.mrf.mxu0  ;;  %v11707_v63 = vpack.c.bf16 %v2032_v61, %v2030_v1  ;;  %v9558_v1 = vld [vmem:[#allocation4 + $0x24] sm:$0xf]  ;;  %v2089_v40 = vpack.c.bf16 %v2055_v5, %v2053_v49  ;;  %v1728_v49 = vadd.f32 %v11573_v31, %v11355_v18  ;;  %v14987_v31 = vld [vmem:[#allocation36_spill] sm:$0xff] }
 0x415   :  { %14985 = vst [vmem:[#allocation35_spill] sm:$0xff] %v11705_v50  ;;  %v11720_v35 = vor.u32 %v9558_v1, %v8522_v38  ;;  %v11733_v38 = vor.u32 %v9556_v8, %v8514_v45  ;;  %v8504_v50 = vld [vmem:[#allocation4] sm:$0xf]  ;;  %v1726_v45 = vadd.f32 %v11557_v47, %v11355_v18 }
 0x416   :  { %2364 = vmatmul.bf16.gmra.mxu2 %v2087_v33  ;;  %2428 = vmatmul.bf16.gmra.mxu3 %v11707_v63 }
 0x417   :  { %2542 = vmatmul.bf16.gmra.mxu0 %v2087_v33  ;;  %v1962_v3 = vpop.f32.mrf.mxu1  ;;  %v8512_v33 = vld [vmem:[#allocation4 + $0x10] sm:$0xf] }
 0x418   :  { %3124 = vmatpush.bf16.msra.mxu0 %v11720_v35  ;;  %v1963_v43 = vadd.f32 %v1962_v3, %v1874_v6  ;;  %v8513_v62 = vor.u32 %v9557_v29, %v8512_v33  ;;  %v8505_v6 = vor.u32 %v9555_v16, %v8504_v50  ;;  %v9582_v50 = vld [vmem:[#allocation4 + $0xe4] sm:$0xf] }
 0x419   :  { %v11713_v39 = vpop.f32.mrf.mxu2  ;;  %v11715_v37 = vpop.f32.mrf.mxu3 }
 0x41a   :  { %2571 = vmatmul.bf16.gmra.mxu1 %v11526_v57  ;;  %v1876_v57 = vadd.f32 %v11418_v0, %v11479_v26  ;;  %2947 = vmatpush.bf16.msra.mxu2 %v8513_v62  ;;  %v9554_v0 = vld [vmem:[#allocation4 + $0x4] sm:$0xf]  ;;  %v2034_v52 = vmax.f32 %v1963_v43, 0.0  ;;  %v8618_v43 = vld [vmem:[#allocation4 + $0xe8] sm:$0xf0] }
 0x41b   :  { %v11740_v33 = vor.u32 %v9554_v0, %v8506_v42  ;;  %v8621_v62 = vor.u32 %v9582_v50, %v8618_v43 }
 0x41c   :  { %v11727_v61 = vpop.f32.mrf.mxu0  ;;  %3125 = vmatpush.bf16.msra.mxu0 %v11733_v38 }
 0x41d   :  { %14986 = vst [vmem:[#allocation47_spill] sm:$0xff] %v11727_v61  ;;  %3209 = vmatpush.bf16.msrb.mxu1 %v8621_v62 }
 0x41e   :  { %2948 = vmatpush.bf16.msra.mxu2 %v8505_v6 }
 0x41f   :  { %v1964_v1 = vpop.f32.mrf.mxu1 }
 0x420   :  { %v1965_v27 = vadd.f32 %v1964_v1, %v1876_v57  ;;  %3126 = vmatpush.bf16.msra.mxu0 %v11740_v33  ;;  %v1817_v1 = vadd.f32 %v11701_v12, %v1728_v49  ;;  %v11778_v49 = vld [vmem:[%s14988_s25] sm:$0x3] }
 0x421   :  { %v11735_v51 = vpop.f32.mrf.mxu2  ;;  %v11737_v61 = vpop.f32.mrf.mxu3  ;;  %v11781_v43 = vperm.slane %v11778_v49, 0 }
 0x422   :  { %v2036_v3 = vmax.f32 %v1965_v27, 0.0  ;;  %9767 = vmatpush.bf16.msrb.mxu2 %v11529_v19  ;;  %v1879_v19 = vadd.f32 %v11425_v32, %v11479_v26 }
 0x424   :  { %v11742_v29 = vpop.f32.mrf.mxu0  ;;  %v11744_v8 = vpack.c.bf16 %v2036_v3, %v2034_v52  ;;  %v2059_v52 = vmax.f32 %v1817_v1, 0.0  ;;  %v2301_v1 = vadd.f32 %v11584_v56, %v11781_v43 }
 0x426   :  { %2369 = vmatmul.bf16.gmra.mxu2 %v2089_v40  ;;  %2433 = vmatmul.bf16.gmra.mxu3 %v11744_v8 }
 0x427   :  { %2547 = vmatmul.bf16.gmra.mxu0 %v2089_v40  ;;  %v1967_v57 = vpop.f32.mrf.mxu1  ;;  %9768 = vmatpush.bf16.msrb.mxu2 %v11580_v2  ;;  %v1881_v2 = vadd.f32 %v14987_v31, %v11479_v26 }
 0x428   :  { %v1968_v27 = vadd.f32 %v1967_v57, %v1879_v19  ;;  %v9573_v57 = vld [vmem:[#allocation4 + $0x94] sm:$0xf0] }
 0x429   :  { %v11749_v15 = vpop.f32.mrf.mxu2  ;;  %v11751_v16 = vpop.f32.mrf.mxu3 }
 0x42a   :  { %2576 = vmatmul.bf16.gmra.mxu1 %v11554_v59  ;;  %v1815_v59 = vadd.f32 %v11684_v22, %v1726_v45  ;;  %v2038_v12 = vmax.f32 %v1968_v27, 0.0  ;;  %v8576_v22 = vld [vmem:[#allocation4 + $0x90] sm:$0xf]  ;;  %v1884_v45 = vadd.f32 %v11450_v11, %v11479_v26 }
 0x42b   :  { %9769 = vmatpush.bf16.msrb.mxu2 %v11631_v24 }
 0x42c   :  { %v11762_v5 = vpop.f32.mrf.mxu0  ;;  %v2057_v47 = vmax.f32 %v1815_v59, 0.0  ;;  %v2390_v59 = vadd.f32 %v11715_v37, %v2301_v1  ;;  %v1891_v1 = vadd.f32 %v11492_v25, %v11479_v26  ;;  %v8568_v25 = vld [vmem:[#allocation4 + $0x80] sm:$0xf] }
 0x42e   :  { %v2091_v24 = vpack.c.bf16 %v2059_v52, %v2057_v47  ;;  %v2647_v56 = vmax.f32 %v2390_v59, 0.0 }
 0x42f   :  { %v1969_v0 = vpop.f32.mrf.mxu1  ;;  %9770 = vmatpush.bf16.msrb.mxu2 %v11682_v55  ;;  %v8577_v55 = vor.u32 %v9573_v57, %v8576_v22  ;;  %v8610_v22 = vld [vmem:[#allocation4 + $0xd8] sm:$0xf0] }
 0x430   :  { %v1970_v32 = vadd.f32 %v1969_v0, %v1881_v2 }
 0x431   :  { %v11768_v3 = vpop.f32.mrf.mxu2  ;;  %v2396_v18 = vpop.f32.mrf.mxu3  ;;  %3036 = vmatpush.bf16.msra.mxu3 %v8577_v55  ;;  %v2306_v55 = vadd.f32 %v11610_v10, %v11781_v43 }
 0x432   :  { %v2040_v6 = vmax.f32 %v1970_v32, 0.0 }
 0x433   :  { %9771 = vmatpush.bf16.msrb.mxu2 %v11710_v60  ;;  %v2303_v60 = vadd.f32 %v11601_v23, %v11781_v43 }
 0x434   :  { %v11771_v42 = vpop.f32.mrf.mxu0  ;;  %v11773_v40 = vpack.c.bf16 %v2040_v6, %v2038_v12 }
 0x435   :  { %v2392_v31 = vadd.f32 %v11737_v61, %v2303_v60 }
 0x436   :  { %2374 = vmatmul.bf16.gmra.mxu2 %v2091_v24  ;;  %2438 = vmatmul.bf16.gmra.mxu3 %v11773_v40 }
 0x437   :  { %2552 = vmatmul.bf16.gmra.mxu0 %v2091_v24  ;;  %v1972_v50 = vpop.f32.mrf.mxu1  ;;  %9772 = vmatpush.bf16.msrb.mxu2 %v11720_v35  ;;  %v1886_v35 = vadd.f32 %v11466_v53, %v11479_v26  ;;  %v9580_v24 = vld [vmem:[#allocation4 + $0xd4] sm:$0xf] }
 0x438   :  { %v1973_v23 = vadd.f32 %v1972_v50, %v1884_v45  ;;  %v8613_v57 = vor.u32 %v9580_v24, %v8610_v22  ;;  %v1889_v50 = vadd.f32 %v11473_v54, %v11479_v26  ;;  %v1894_v24 = vadd.f32 %v11503_v48, %v11479_v26 }
 0x439   :  { %v11783_v62 = vpop.f32.mrf.mxu2  ;;  %v11785_v19 = vpop.f32.mrf.mxu3  ;;  %v2311_v22 = vadd.f32 %v11635_v21, %v11781_v43 }
 0x43a   :  { %2581 = vmatmul.bf16.gmra.mxu1 %v11577_v17  ;;  %v2649_v17 = vmax.f32 %v2392_v31, 0.0  ;;  %v2042_v61 = vmax.f32 %v1973_v23, 0.0 }
 0x43b   :  { %9773 = vmatpush.bf16.msrb.mxu2 %v11733_v38  ;;  %3210 = vmatpush.bf16.msrb.mxu1 %v8613_v57 }
 0x43c   :  { %v11796_v2 = vpop.f32.mrf.mxu0  ;;  %v2711_v47 = vpack.c.bf16 %v2649_v17, %v2647_v56 }
 0x43f   :  { %v1974_v27 = vpop.f32.mrf.mxu1  ;;  %9774 = vmatpush.bf16.msrb.mxu2 %v11740_v33  ;;  %v2308_v33 = vadd.f32 %v11624_v4, %v11781_v43  ;;  %v2395_v4 = vadd.f32 %v11751_v16, %v2306_v55  ;;  %v9571_v16 = vld [vmem:[#allocation4 + $0x84] sm:$0xf0]  ;;  %v1896_v55 = vadd.f32 %v11517_v7, %v11479_v26 }
 0x440   :  { %v1975_v0 = vadd.f32 %v1974_v27, %v1886_v35 }
 0x441   :  { %v11802_v52 = vpop.f32.mrf.mxu2  ;;  %v2401_v11 = vpop.f32.mrf.mxu3  ;;  %v2397_v60 = vadd.f32 %v2396_v18, %v2308_v33  ;;  %v2651_v54 = vmax.f32 %v2395_v4, 0.0  ;;  %v2313_v33 = vadd.f32 %v11650_v41, %v11781_v43 }
 0x442   :  { %v2044_v32 = vmax.f32 %v1975_v0, 0.0 }
 0x443   :  { %v2653_v35 = vmax.f32 %v2397_v60, 0.0  ;;  %v2402_v57 = vadd.f32 %v2401_v11, %v2313_v33  ;;  %v2400_v60 = vadd.f32 %v11785_v19, %v2311_v22  ;;  %v1901_v22 = vadd.f32 %v11543_v14, %v11479_v26 }
 0x444   :  { %v11805_v12 = vpop.f32.mrf.mxu0  ;;  %v11807_v38 = vpack.c.bf16 %v2044_v32, %v2042_v61  ;;  %v8569_v32 = vor.u32 %v9571_v16, %v8568_v25  ;;  %v8602_v25 = vld [vmem:[#allocation4 + $0xc8] sm:$0xf0] }
 0x445   :  { %v2713_v56 = vpack.c.bf16 %v2653_v35, %v2651_v54  ;;  %v2655_v35 = vmax.f32 %v2400_v60, 0.0 }
 0x446   :  { %2443 = vmatmul.bf16.gmra.mxu3 %v11807_v38  ;;  %2949 = vmatmul.bf16.vlgmr.msra.gmra.mxu2 %v2711_v47 }
 0x447   :  { %3127 = vmatmul.bf16.vlgmr.msra.gmra.mxu0 %v2711_v47  ;;  %v1977_v53 = vpop.f32.mrf.mxu1  ;;  %3037 = vmatpush.bf16.msra.mxu3 %v8569_v32  ;;  %v2316_v32 = vadd.f32 %v11659_v36, %v11781_v43 }
 0x448   :  { %v1978_v31 = vadd.f32 %v1977_v53, %v1889_v50 }
 0x449   :  { %v11810_v37 = vpop.f32.mrf.mxu2  ;;  %v11812_v6 = vpop.f32.mrf.mxu3 }
 0x44a   :  { %2586 = vmatmul.bf16.gmra.mxu1 %v11605_v34  ;;  %v2046_v17 = vmax.f32 %v1978_v31, 0.0  ;;  %v2657_v31 = vmax.f32 %v2402_v57, 0.0 }
 0x44c   :  { %v11821_v45 = vpop.f32.mrf.mxu0  ;;  %v2715_v11 = vpack.c.bf16 %v2657_v31, %v2655_v35 }
 0x44f   :  { %v1979_v34 = vpop.f32.mrf.mxu1 }
 0x450   :  { %v1980_v59 = vadd.f32 %v1979_v34, %v1891_v1 }
 0x451   :  { %v11826_v23 = vpop.f32.mrf.mxu2  ;;  %v2406_v27 = vpop.f32.mrf.mxu3 }
 0x452   :  { %v2048_v0 = vmax.f32 %v1980_v59, 0.0 }
 0x454   :  { %v11828_v10 = vpop.f32.mrf.mxu0  ;;  %v11830_v18 = vpack.c.bf16 %v2048_v0, %v2046_v17  ;;  %v2318_v0 = vadd.f32 %v11675_v44, %v11781_v43  ;;  %v2405_v44 = vadd.f32 %v11812_v6, %v2316_v32  ;;  %v9624_v6 = vld [vmem:[#allocation7 + $0x34] sm:$0xf] }
 0x456   :  { %2448 = vmatmul.bf16.gmra.mxu3 %v11830_v18  ;;  %2954 = vmatmul.bf16.gmra.mxu2 %v2713_v56  ;;  %v2407_v33 = vadd.f32 %v2406_v27, %v2318_v0  ;;  %v2323_v0 = vadd.f32 %v11703_v20, %v11781_v43 }
 0x457   :  { %3132 = vmatmul.bf16.gmra.mxu0 %v2713_v56  ;;  %v1982_v61 = vpop.f32.mrf.mxu1  ;;  %v9578_v56 = vld [vmem:[#allocation4 + $0xc4] sm:$0xf] }
 0x458   :  { %v1983_v1 = vadd.f32 %v1982_v61, %v1894_v24  ;;  %v8605_v16 = vor.u32 %v9578_v56, %v8602_v25  ;;  %v1899_v61 = vadd.f32 %v11524_v9, %v11479_v26  ;;  %v2659_v9 = vmax.f32 %v2405_v44, 0.0  ;;  %v14989_v25 = vld [vmem:[#allocation37_spill] sm:$0xff] }
 0x459   :  { %v11833_v47 = vpop.f32.mrf.mxu2  ;;  %v11835_v53 = vpop.f32.mrf.mxu3 }
 0x45a   :  { %2591 = vmatmul.bf16.gmra.mxu1 %v11628_v58  ;;  %v2050_v48 = vmax.f32 %v1983_v1, 0.0 }
 0x45b   :  { %3211 = vmatpush.bf16.msrb.mxu1 %v8605_v16  ;;  %v1904_v16 = vadd.f32 %v14989_v25, %v11479_v26 }
 0x45c   :  { %v11844_v50 = vpop.f32.mrf.mxu0 }
 0x45f   :  { %v1984_v4 = vpop.f32.mrf.mxu1 }
 0x460   :  { %v1985_v41 = vadd.f32 %v1984_v4, %v1896_v55  ;;  %v2661_v55 = vmax.f32 %v2407_v33, 0.0 }
 0x461   :  { %v11849_v34 = vpop.f32.mrf.mxu2  ;;  %v2411_v58 = vpop.f32.mrf.mxu3 }
 0x462   :  { %v2052_v59 = vmax.f32 %v1985_v41, 0.0  ;;  %v2717_v35 = vpack.c.bf16 %v2661_v55, %v2659_v9  ;;  %v2412_v32 = vadd.f32 %v2411_v58, %v2323_v0  ;;  %v9576_v0 = vld [vmem:[#allocation4 + $0xb4] sm:$0xf] }
 0x464   :  { %v11851_v54 = vpop.f32.mrf.mxu0  ;;  %v11853_v21 = vpack.c.bf16 %v2052_v59, %v2050_v48  ;;  %v8658_v48 = vld [vmem:[#allocation7 + $0x38] sm:$0x30] }
 0x465   :  { %v8661_v59 = vor.u32 %v9624_v6, %v8658_v48 }
 0x466   :  { %2453 = vmatmul.bf16.gmra.mxu3 %v11853_v21  ;;  %2959 = vmatmul.bf16.gmra.mxu2 %v2715_v11 }
 0x467   :  { %3137 = vmatmul.bf16.gmra.mxu0 %v2715_v11  ;;  %v1987_v7 = vpop.f32.mrf.mxu1  ;;  %v3475_v56 = vsel %vm512_vm0, %v8661_v59, 0  ;;  %v2328_v59 = vadd.f32 %v11735_v51, %v11781_v43 }
 0x468   :  { %v1988_v57 = vadd.f32 %v1987_v7, %v1899_v61  ;;  %3570 = vmatpush.bf16.msrb.mxu3 %v3475_v56  ;;  %v2321_v61 = vadd.f32 %v11686_v13, %v11781_v43  ;;  %v8594_v56 = vld [vmem:[#allocation4 + $0xb8] sm:$0xf0] }
 0x469   :  { %v11856_v19 = vpop.f32.mrf.mxu2  ;;  %v11858_v17 = vpop.f32.mrf.mxu3  ;;  %v8597_v25 = vor.u32 %v9576_v0, %v8594_v56  ;;  %v2333_v56 = vadd.f32 %v11768_v3, %v11781_v43 }
 0x46a   :  { %2596 = vmatmul.bf16.gmra.mxu1 %v11654_v30  ;;  %v2054_v31 = vmax.f32 %v1988_v57, 0.0  ;;  %v2410_v57 = vadd.f32 %v11835_v53, %v2321_v61  ;;  %v11904_v53 = vperm.slane %v11778_v49, 1 }
 0x46b   :  { %3212 = vmatpush.bf16.msrb.mxu1 %v8597_v25  ;;  %v14993_v25 = vld [vmem:[#allocation41_spill] sm:$0xff] }
 0x46c   :  { %v11867_v24 = vpop.f32.mrf.mxu0 }
 0x46f   :  { %v1989_v30 = vpop.f32.mrf.mxu1 }
 0x470   :  { %v1990_v60 = vadd.f32 %v1989_v30, %v1901_v22  ;;  %v14990_v22 = vld [vmem:[#allocation38_spill] sm:$0xff] }
 0x471   :  { %v11872_v1 = vpop.f32.mrf.mxu2  ;;  %v2416_v4 = vpop.f32.mrf.mxu3  ;;  %v1906_v44 = vadd.f32 %v14990_v22, %v11479_v26 }
 0x472   :  { %v2056_v41 = vmax.f32 %v1990_v60, 0.0  ;;  %v2417_v49 = vadd.f32 %v2416_v4, %v2328_v59 }
 0x474   :  { %v11874_v36 = vpop.f32.mrf.mxu0  ;;  %v11876_v27 = vpack.c.bf16 %v2056_v41, %v2054_v31  ;;  %v2663_v31 = vmax.f32 %v2410_v57, 0.0 }
 0x476   :  { %2458 = vmatmul.bf16.gmra.mxu3 %v11876_v27  ;;  %2964 = vmatmul.bf16.gmra.mxu2 %v2717_v35 }
 0x477   :  { %3142 = vmatmul.bf16.gmra.mxu0 %v2717_v35  ;;  %v1992_v14 = vpop.f32.mrf.mxu1 }
 0x478   :  { %v1993_v20 = vadd.f32 %v1992_v14, %v1904_v16  ;;  %v14991_v16 = vld [vmem:[#allocation39_spill] sm:$0xff] }
 0x479   :  { %v11879_v11 = vpop.f32.mrf.mxu2  ;;  %v11881_v7 = vpop.f32.mrf.mxu3  ;;  %v2479_v61 = vadd.f32 %v14991_v16, %v11904_v53  ;;  %v2484_v16 = vadd.f32 %v14993_v25, %v11904_v53 }
 0x47a   :  { %2601 = vmatmul.bf16.gmra.mxu1 %v11679_v28  ;;  %v2665_v28 = vmax.f32 %v2412_v32, 0.0  ;;  %v2058_v41 = vmax.f32 %v1993_v20, 0.0  ;;  %v2326_v32 = vadd.f32 %v11713_v39, %v11781_v43 }
 0x47c   :  { %v11891_v33 = vpop.f32.mrf.mxu0  ;;  %v2719_v58 = vpack.c.bf16 %v2665_v28, %v2663_v31  ;;  %v2415_v51 = vadd.f32 %v11858_v17, %v2326_v32 }
 0x47f   :  { %v1994_v30 = vpop.f32.mrf.mxu1 }
 0x480   :  { %v1995_v55 = vadd.f32 %v1994_v30, %v1906_v44  ;;  %v14992_v44 = vld [vmem:[#allocation40_spill] sm:$0xff]  ;;  %v2669_v30 = vmax.f32 %v2417_v49, 0.0 }
 0x481   :  { %v11896_v60 = vpop.f32.mrf.mxu2  ;;  %v2421_v9 = vpop.f32.mrf.mxu3  ;;  %v2481_v57 = vadd.f32 %v14992_v44, %v11904_v53  ;;  %v14994_v44 = vld [vmem:[#allocation42_spill] sm:$0xff] }
 0x482   :  { %v2060_v35 = vmax.f32 %v1995_v55, 0.0  ;;  %v2422_v32 = vadd.f32 %v2421_v9, %v2333_v56  ;;  %v9601_v56 = vld [vmem:[#allocation6 + $0x74] sm:$0xf0] }
 0x484   :  { %v11898_v6 = vpop.f32.mrf.mxu0  ;;  %v11900_v13 = vpack.c.bf16 %v2060_v35, %v2058_v41  ;;  %v2667_v41 = vmax.f32 %v2415_v51, 0.0 }
 0x486   :  { %2463 = vmatmul.bf16.gmra.mxu3 %v11900_v13  ;;  %2969 = vmatmul.bf16.gmra.mxu2 %v2719_v58  ;;  %v2721_v59 = vpack.c.bf16 %v2669_v30, %v2667_v41  ;;  %v2673_v30 = vmax.f32 %v2422_v32, 0.0  ;;  %v2338_v32 = vadd.f32 %v11802_v52, %v11781_v43 }
 0x487   :  { %3147 = vmatmul.bf16.gmra.mxu0 %v2719_v58  ;;  %v2567_v26 = vpop.f32.mrf.mxu1 }
 0x488   :  { %v2568_v20 = vadd.f32 %v2567_v26, %v2479_v61  ;;  %v2331_v61 = vadd.f32 %v11749_v15, %v11781_v43 }
 0x489   :  { %v11906_v14 = vpop.f32.mrf.mxu2  ;;  %v11908_v48 = vpop.f32.mrf.mxu3 }
 0x48a   :  { %2606 = vmatmul.bf16.gmra.mxu1 %v11707_v63  ;;  %v2648_v35 = vmax.f32 %v2568_v20, 0.0  ;;  %v2420_v51 = vadd.f32 %v11881_v7, %v2331_v61 }
 0x48c   :  { %v11917_v22 = vpop.f32.mrf.mxu0  ;;  %v2671_v41 = vmax.f32 %v2420_v51, 0.0 }
 0x48e   :  { %v2723_v15 = vpack.c.bf16 %v2673_v30, %v2671_v41  ;;  %v14997_v41 = vld [vmem:[#allocation43_spill] sm:$0xff] }
 0x48f   :  { %v2569_v63 = vpop.f32.mrf.mxu1 }
 0x490   :  { %v2570_v28 = vadd.f32 %v2569_v63, %v2481_v57  ;;  %v2486_v57 = vadd.f32 %v14994_v44, %v11904_v53  ;;  %v9574_v44 = vld [vmem:[#allocation4 + $0xa4] sm:$0xf] }
 0x491   :  { %v11922_v55 = vpop.f32.mrf.mxu2  ;;  %v2426_v31 = vpop.f32.mrf.mxu3 }
 0x492   :  { %v2650_v58 = vmax.f32 %v2570_v28, 0.0  ;;  %v2427_v30 = vadd.f32 %v2426_v31, %v2338_v32 }
 0x494   :  { %v11924_v39 = vpack.c.bf16 %v2650_v58, %v2648_v35  ;;  %v11926_v4 = vpop.f32.mrf.mxu0 }
 0x496   :  { %2974 = vmatmul.bf16.gmra.mxu2 %v2721_v59  ;;  %3038 = vmatmul.bf16.vlgmr.msra.gmra.mxu3 %v11924_v39 }
 0x497   :  { %3152 = vmatmul.bf16.gmra.mxu0 %v2721_v59  ;;  %v2572_v17 = vpop.f32.mrf.mxu1 }
 0x498   :  { %v2573_v20 = vadd.f32 %v2572_v17, %v2484_v16  ;;  %v8752_v17 = vld [vmem:[#allocation6 + $0x70] sm:$0xf] }
 0x499   :  { %v11929_v26 = vpop.f32.mrf.mxu2  ;;  %v11931_v0 = vpop.f32.mrf.mxu3  ;;  %v8753_v25 = vor.u32 %v9601_v56, %v8752_v17 }
 0x49a   :  { %2611 = vmatmul.bf16.gmra.mxu1 %v11744_v8  ;;  %v2652_v35 = vmax.f32 %v2573_v20, 0.0  ;;  %v2489_v20 = vadd.f32 %v11626_v46, %v11904_v53 }
 0x49b   :  { %3815 = vmatpush.bf16.msrb.mxu0 %v8753_v25 }
 0x49c   :  { %v11940_v49 = vpop.f32.mrf.mxu0 }
 0x49f   :  { %v2574_v63 = vpop.f32.mrf.mxu1 }
 0x4a0   :  { %v2575_v3 = vadd.f32 %v2574_v63, %v2486_v57  ;;  %v8586_v57 = vld [vmem:[#allocation4 + $0xa8] sm:$0xf0]  ;;  %v2336_v63 = vadd.f32 %v11783_v62, %v11781_v43 }
 0x4a1   :  { %v11945_v28 = vpop.f32.mrf.mxu2  ;;  %v2431_v8 = vpop.f32.mrf.mxu3  ;;  %v8589_v51 = vor.u32 %v9574_v44, %v8586_v57 }
 0x4a2   :  { %v2654_v58 = vmax.f32 %v2575_v3, 0.0  ;;  %v2425_v52 = vadd.f32 %v11908_v48, %v2336_v63 }
 0x4a3   :  { %3213 = vmatpush.bf16.msrb.mxu1 %v8589_v51  ;;  %v8650_v51 = vld [vmem:[#allocation7 + $0x28] sm:$0xf0] }
 0x4a4   :  { %v11947_v59 = vpop.f32.mrf.mxu0  ;;  %v11949_v9 = vpack.c.bf16 %v2654_v58, %v2652_v35  ;;  %v2491_v35 = vadd.f32 %v14997_v41, %v11904_v53  ;;  %v2675_v46 = vmax.f32 %v2425_v52, 0.0  ;;  %v2343_v41 = vadd.f32 %v11826_v23, %v11781_v43 }
 0x4a5   :  { %14995 = vst [vmem:[#allocation36_spill] sm:$0xff] %v11947_v59  ;;  %v9570_v59 = vld [vmem:[#allocation4 + $0x84] sm:$0xf] }
 0x4a6   :  { %2979 = vmatmul.bf16.gmra.mxu2 %v2723_v15  ;;  %3043 = vmatmul.bf16.gmra.mxu3 %v11949_v9 }
 0x4a7   :  { %3157 = vmatmul.bf16.gmra.mxu0 %v2723_v15  ;;  %v2577_v7 = vpop.f32.mrf.mxu1  ;;  %v2677_v15 = vmax.f32 %v2427_v30, 0.0 }
 0x4a9   :  { %v11952_v16 = vpop.f32.mrf.mxu2  ;;  %v11954_v61 = vpop.f32.mrf.mxu3  ;;  %v2725_v31 = vpack.c.bf16 %v2677_v15, %v2675_v46 }
 0x4aa   :  { %2616 = vmatmul.bf16.gmra.mxu1 %v11773_v40  ;;  %v2578_v40 = vadd.f32 %v2577_v7, %v2489_v20  ;;  %v9622_v7 = vld [vmem:[#allocation7 + $0x24] sm:$0xf] }
 0x4ab   :  { %v8653_v20 = vor.u32 %v9622_v7, %v8650_v51 }
 0x4ac   :  { %v11963_v3 = vpop.f32.mrf.mxu0  ;;  %v2656_v44 = vmax.f32 %v2578_v40, 0.0  ;;  %v2341_v40 = vadd.f32 %v11810_v37, %v11781_v43 }
 0x4ad   :  { %14996 = vst [vmem:[#allocation37_spill] sm:$0xff] %v11963_v3  ;;  %3571 = vmatpush.bf16.msrb.mxu3 %v8653_v20 }
 0x4af   :  { %v2579_v58 = vpop.f32.mrf.mxu1 }
 0x4b0   :  { %v2580_v17 = vadd.f32 %v2579_v58, %v2491_v35  ;;  %v14999_v35 = vld [vmem:[#allocation44_spill] sm:$0xff]  ;;  %v2432_v58 = vadd.f32 %v2431_v8, %v2343_v41  ;;  %v8744_v41 = vld [vmem:[#allocation6 + $0x60] sm:$0xf] }
 0x4b1   :  { %v11968_v56 = vpop.f32.mrf.mxu2  ;;  %v2436_v25 = vpop.f32.mrf.mxu3  ;;  %v2494_v52 = vadd.f32 %v14999_v35, %v11904_v53 }
 0x4b2   :  { %v2658_v57 = vmax.f32 %v2580_v17, 0.0  ;;  %v15001_v17 = vld [vmem:[#allocation45_spill] sm:$0xff]  ;;  %v2681_v23 = vmax.f32 %v2432_v58, 0.0  ;;  %v2348_v58 = vadd.f32 %v11849_v34, %v11781_v43 }
 0x4b3   :  { %v2496_v46 = vadd.f32 %v15001_v17, %v11904_v53  ;;  %v8578_v17 = vld [vmem:[#allocation4 + $0x98] sm:$0xf0] }
 0x4b4   :  { %v11970_v62 = vpop.f32.mrf.mxu0  ;;  %v11972_v32 = vpack.c.bf16 %v2658_v57, %v2656_v44  ;;  %v2430_v44 = vadd.f32 %v11931_v0, %v2341_v40 }
 0x4b5   :  { %14998 = vst [vmem:[#allocation38_spill] sm:$0xff] %v11970_v62 }
 0x4b6   :  { %2984 = vmatmul.bf16.gmra.mxu2 %v2725_v31  ;;  %3048 = vmatmul.bf16.gmra.mxu3 %v11972_v32  ;;  %v2679_v20 = vmax.f32 %v2430_v44, 0.0  ;;  %v15003_v44 = vld [vmem:[#allocation46_spill] sm:$0xff] }
 0x4b7   :  { %3162 = vmatmul.bf16.gmra.mxu0 %v2725_v31  ;;  %v2582_v48 = vpop.f32.mrf.mxu1 }
 0x4b8   :  { %v2583_v57 = vadd.f32 %v2582_v48, %v2494_v52  ;;  %v2727_v37 = vpack.c.bf16 %v2681_v23, %v2679_v20 }
 0x4b9   :  { %v11975_v63 = vpop.f32.mrf.mxu2  ;;  %v11977_v30 = vpop.f32.mrf.mxu3 }
 0x4ba   :  { %2621 = vmatmul.bf16.gmra.mxu1 %v11807_v38  ;;  %v2660_v35 = vmax.f32 %v2583_v57, 0.0  ;;  %v2499_v57 = vadd.f32 %v15003_v44, %v11904_v53 }
 0x4bc   :  { %v11986_v15 = vpop.f32.mrf.mxu0 }
 0x4bd   :  { %15000 = vst [vmem:[#allocation39_spill] sm:$0xff] %v11986_v15  ;;  %v9599_v15 = vld [vmem:[#allocation6 + $0x64] sm:$0xf0] }
 0x4be   :  { %v8745_v0 = vor.u32 %v9599_v15, %v8744_v41  ;;  %v2346_v15 = vadd.f32 %v11833_v47, %v11781_v43 }
 0x4bf   :  { %v2584_v31 = vpop.f32.mrf.mxu1 }
 0x4c0   :  { %v2585_v7 = vadd.f32 %v2584_v31, %v2496_v46  ;;  %3816 = vmatpush.bf16.msrb.mxu0 %v8745_v0  ;;  %v2437_v31 = vadd.f32 %v2436_v25, %v2348_v58  ;;  %v2435_v34 = vadd.f32 %v11954_v61, %v2346_v15  ;;  %v15007_v15 = vld [vmem:[#allocation35_spill] sm:$0xff] }
 0x4c1   :  { %v11991_v38 = vpop.f32.mrf.mxu2  ;;  %v2441_v51 = vpop.f32.mrf.mxu3 }
 0x4c2   :  { %v2662_v62 = vmax.f32 %v2585_v7, 0.0  ;;  %v15005_v7 = vld [vmem:[#allocation34_spill] sm:$0xff] }
 0x4c3   :  { %v2501_v20 = vadd.f32 %v15005_v7, %v11904_v53 }
 0x4c4   :  { %v11993_v3 = vpop.f32.mrf.mxu0  ;;  %v11995_v8 = vpack.c.bf16 %v2662_v62, %v2660_v35  ;;  %v9572_v62 = vld [vmem:[#allocation4 + $0x94] sm:$0xf] }
 0x4c5   :  { %15002 = vst [vmem:[#allocation40_spill] sm:$0xff] %v11993_v3  ;;  %v8581_v46 = vor.u32 %v9572_v62, %v8578_v17  ;;  %v2683_v17 = vmax.f32 %v2435_v34, 0.0  ;;  %v15009_v34 = vld [vmem:[#allocation47_spill] sm:$0xff] }
 0x4c6   :  { %2989 = vmatmul.bf16.gmra.mxu2 %v2727_v37  ;;  %3053 = vmatmul.bf16.gmra.mxu3 %v11995_v8 }
 0x4c7   :  { %3167 = vmatmul.bf16.gmra.mxu0 %v2727_v37  ;;  %v2587_v48 = vpop.f32.mrf.mxu1  ;;  %3214 = vmatpush.bf16.msrb.mxu1 %v8581_v46  ;;  %v2685_v37 = vmax.f32 %v2437_v31, 0.0  ;;  %v2504_v31 = vadd.f32 %v15007_v15, %v11904_v53 }
 0x4c8   :  { %v2588_v35 = vadd.f32 %v2587_v48, %v2499_v57  ;;  %v2353_v57 = vadd.f32 %v11872_v1, %v11781_v43 }
 0x4c9   :  { %v11998_v52 = vpop.f32.mrf.mxu3  ;;  %v12000_v40 = vpop.f32.mrf.mxu2  ;;  %v2729_v25 = vpack.c.bf16 %v2685_v37, %v2683_v17 }
 0x4ca   :  { %2626 = vmatmul.bf16.gmra.mxu1 %v11830_v18  ;;  %v2664_v44 = vmax.f32 %v2588_v35, 0.0  ;;  %v2442_v7 = vadd.f32 %v2441_v51, %v2353_v57  ;;  %v2506_v35 = vadd.f32 %v15009_v34, %v11904_v53  ;;  %v8736_v57 = vld [vmem:[#allocation6 + $0x50] sm:$0xf] }
 0x4cc   :  { %v12009_v23 = vpop.f32.mrf.mxu0  ;;  %v2689_v17 = vmax.f32 %v2442_v7, 0.0 }
 0x4cd   :  { %15004 = vst [vmem:[#allocation41_spill] sm:$0xff] %v12009_v23 }
 0x4cf   :  { %v2589_v18 = vpop.f32.mrf.mxu1 }
 0x4d0   :  { %v2590_v41 = vadd.f32 %v2589_v18, %v2501_v20 }
 0x4d1   :  { %v2446_v0 = vpop.f32.mrf.mxu3  ;;  %v12014_v62 = vpop.f32.mrf.mxu2 }
 0x4d2   :  { %v2666_v3 = vmax.f32 %v2590_v41, 0.0 }
 0x4d4   :  { %v12016_v47 = vpop.f32.mrf.mxu0  ;;  %v12018_v58 = vpack.c.bf16 %v2666_v3, %v2664_v44  ;;  %v2351_v3 = vadd.f32 %v11856_v19, %v11781_v43 }
 0x4d5   :  { %15006 = vst [vmem:[#allocation42_spill] sm:$0xff] %v12016_v47 }
 0x4d6   :  { %2994 = vmatmul.bf16.gmra.mxu2 %v2729_v25  ;;  %3058 = vmatmul.bf16.gmra.mxu3 %v12018_v58  ;;  %v2440_v18 = vadd.f32 %v11977_v30, %v2351_v3  ;;  %v8570_v30 = vld [vmem:[#allocation4 + $0x88] sm:$0xf0] }
 0x4d7   :  { %3172 = vmatmul.bf16.gmra.mxu0 %v2729_v25  ;;  %v2592_v61 = vpop.f32.mrf.mxu1 }
 0x4d8   :  { %v2593_v37 = vadd.f32 %v2592_v61, %v2504_v31  ;;  %v2687_v25 = vmax.f32 %v2440_v18, 0.0  ;;  %v8573_v61 = vor.u32 %v9570_v59, %v8570_v30  ;;  %v8642_v30 = vld [vmem:[#allocation7 + $0x18] sm:$0xf0] }
 0x4d9   :  { %v12021_v48 = vpop.f32.mrf.mxu3  ;;  %v12023_v46 = vpop.f32.mrf.mxu2 }
 0x4da   :  { %2631 = vmatmul.bf16.gmra.mxu1 %v11853_v21  ;;  %v2668_v15 = vmax.f32 %v2593_v37, 0.0  ;;  %v2731_v19 = vpack.c.bf16 %v2689_v17, %v2687_v25  ;;  %v2511_v37 = vadd.f32 %v11762_v5, %v11904_v53 }
 0x4db   :  { %3215 = vmatpush.bf16.msrb.mxu1 %v8573_v61 }
 0x4dc   :  { %v12032_v20 = vpop.f32.mrf.mxu0 }
 0x4dd   :  { %15008 = vst [vmem:[#allocation43_spill] sm:$0xff] %v12032_v20  ;;  %v9597_v20 = vld [vmem:[#allocation6 + $0x54] sm:$0xf0] }
 0x4de   :  { %v8737_v34 = vor.u32 %v9597_v20, %v8736_v57  ;;  %v2509_v20 = vadd.f32 %v11742_v29, %v11904_v53 }
 0x4df   :  { %v2594_v41 = vpop.f32.mrf.mxu1 }
 0x4e0   :  { %v2595_v1 = vadd.f32 %v2594_v41, %v2506_v35  ;;  %3817 = vmatpush.bf16.msrb.mxu0 %v8737_v34  ;;  %v2356_v35 = vadd.f32 %v11879_v11, %v11781_v43 }
 0x4e1   :  { %v2451_v44 = vpop.f32.mrf.mxu3  ;;  %v12037_v21 = vpop.f32.mrf.mxu2 }
 0x4e2   :  { %v2670_v47 = vmax.f32 %v2595_v1, 0.0  ;;  %v2445_v41 = vadd.f32 %v11998_v52, %v2356_v35  ;;  %v9620_v52 = vld [vmem:[#allocation7 + $0x14] sm:$0xf]  ;;  %v2514_v35 = vadd.f32 %v11771_v42, %v11904_v53  ;;  %v8728_v42 = vld [vmem:[#allocation6 + $0x40] sm:$0xf] }
 0x4e3   :  { %v8645_v61 = vor.u32 %v9620_v52, %v8642_v30 }
 0x4e4   :  { %v12039_v23 = vpop.f32.mrf.mxu0  ;;  %v12041_v51 = vpack.c.bf16 %v2670_v47, %v2668_v15  ;;  %v2358_v47 = vadd.f32 %v11896_v60, %v11781_v43 }
 0x4e5   :  { %3572 = vmatpush.bf16.msrb.mxu3 %v8645_v61 }
 0x4e6   :  { %2999 = vmatmul.bf16.gmra.mxu2 %v2731_v19  ;;  %3063 = vmatmul.bf16.gmra.mxu3 %v12041_v51  ;;  %v2447_v59 = vadd.f32 %v2446_v0, %v2358_v47 }
 0x4e7   :  { %3177 = vmatmul.bf16.gmra.mxu0 %v2731_v19  ;;  %v2597_v31 = vpop.f32.mrf.mxu1  ;;  %v2691_v19 = vmax.f32 %v2445_v41, 0.0 }
 0x4e8   :  { %v2598_v17 = vadd.f32 %v2597_v31, %v2509_v20  ;;  %v2693_v25 = vmax.f32 %v2447_v59, 0.0  ;;  %v2363_v20 = vadd.f32 %v11922_v55, %v11781_v43  ;;  %v2361_v59 = vadd.f32 %v11906_v14, %v11781_v43 }
 0x4e9   :  { %v12044_v3 = vpop.f32.mrf.mxu3  ;;  %v12046_v7 = vpop.f32.mrf.mxu2 }
 0x4ea   :  { %2636 = vmatmul.bf16.gmra.mxu1 %v11876_v27  ;;  %v2672_v29 = vmax.f32 %v2598_v17, 0.0  ;;  %v2733_v11 = vpack.c.bf16 %v2693_v25, %v2691_v19  ;;  %v2516_v17 = vadd.f32 %v11796_v2, %v11904_v53 }
 0x4ec   :  { %v12055_v18 = vpop.f32.mrf.mxu0 }
 0x4ef   :  { %v2599_v1 = vpop.f32.mrf.mxu1 }
 0x4f0   :  { %v2600_v60 = vadd.f32 %v2599_v1, %v2511_v37  ;;  %v2452_v37 = vadd.f32 %v2451_v44, %v2363_v20  ;;  %v2450_v1 = vadd.f32 %v12021_v48, %v2361_v59  ;;  %v8720_v48 = vld [vmem:[#allocation6 + $0x30] sm:$0xf] }
 0x4f1   :  { %v2456_v15 = vpop.f32.mrf.mxu3  ;;  %v12060_v27 = vpop.f32.mrf.mxu2 }
 0x4f2   :  { %v2674_v57 = vmax.f32 %v2600_v60, 0.0  ;;  %v2697_v55 = vmax.f32 %v2452_v37, 0.0 }
 0x4f4   :  { %v12062_v34 = vpop.f32.mrf.mxu0  ;;  %v12064_v0 = vpack.c.bf16 %v2674_v57, %v2672_v29  ;;  %v9595_v57 = vld [vmem:[#allocation6 + $0x44] sm:$0xf0] }
 0x4f5   :  { %v8729_v52 = vor.u32 %v9595_v57, %v8728_v42  ;;  %v2519_v57 = vadd.f32 %v11805_v12, %v11904_v53 }
 0x4f6   :  { %3004 = vmatmul.bf16.gmra.mxu2 %v2733_v11  ;;  %3068 = vmatmul.bf16.gmra.mxu3 %v12064_v0 }
 0x4f7   :  { %3182 = vmatmul.bf16.gmra.mxu0 %v2733_v11  ;;  %v2602_v5 = vpop.f32.mrf.mxu1  ;;  %v2695_v11 = vmax.f32 %v2450_v1, 0.0  ;;  %v9591_v1 = vld [vmem:[#allocation6 + $0x24] sm:$0xf0] }
 0x4f8   :  { %v2603_v25 = vadd.f32 %v2602_v5, %v2514_v35  ;;  %3818 = vmatpush.bf16.msrb.mxu0 %v8729_v52  ;;  %v9593_v5 = vld [vmem:[#allocation6 + $0x34] sm:$0xf0]  ;;  %v8704_v52 = vld [vmem:[#allocation6 + $0x10] sm:$0xf] }
 0x4f9   :  { %v12067_v31 = vpop.f32.mrf.mxu3  ;;  %v12069_v47 = vpop.f32.mrf.mxu2  ;;  %v2735_v61 = vpack.c.bf16 %v2697_v55, %v2695_v11  ;;  %v8721_v20 = vor.u32 %v9593_v5, %v8720_v48  ;;  %v9617_v55 = vld [vmem:[#allocation6 + $0xf4] sm:$0xf0]  ;;  %v2366_v11 = vadd.f32 %v11929_v26, %v11781_v43 }
 0x4fa   :  { %2641 = vmatmul.bf16.gmra.mxu1 %v11900_v13  ;;  %v2676_v14 = vmax.f32 %v2603_v25, 0.0  ;;  %v2368_v25 = vadd.f32 %v11945_v28, %v11781_v43 }
 0x4fb   :  { %v2455_v28 = vadd.f32 %v12044_v3, %v2366_v11  ;;  %v2373_v11 = vadd.f32 %v11968_v56, %v11781_v43 }
 0x4fc   :  { %v12078_v41 = vpop.f32.mrf.mxu0  ;;  %3819 = vmatpush.bf16.msrb.mxu0 %v8721_v20 }
 0x4ff   :  { %v2604_v60 = vpop.f32.mrf.mxu1 }
 0x500   :  { %v2605_v19 = vadd.f32 %v2604_v60, %v2516_v17  ;;  %v8712_v17 = vld [vmem:[#allocation6 + $0x20] sm:$0xf]  ;;  %v8816_v60 = vld [vmem:[#allocation6 + $0xf0] sm:$0xf] }
 0x501   :  { %v12083_v13 = vpop.f32.mrf.mxu3  ;;  %v12085_v29 = vpop.f32.mrf.mxu2  ;;  %v8817_v42 = vor.u32 %v9617_v55, %v8816_v60  ;;  %v2699_v60 = vmax.f32 %v2455_v28, 0.0  ;;  %v2526_v28 = vadd.f32 %v11844_v50, %v11904_v53  ;;  %v9625_v50 = vld [vmem:[#allocation7 + $0x34] sm:$0x30] }
 0x502   :  { %v2678_v44 = vmax.f32 %v2605_v19, 0.0  ;;  %v8713_v19 = vor.u32 %v9591_v1, %v8712_v17 }
 0x503   :  { %3904 = vmatpush.bf16.msra.mxu1 %v8817_v42 }
 0x504   :  { %v12087_v30 = vpop.f32.mrf.mxu0  ;;  %v12089_v2 = vpack.c.bf16 %v2678_v44, %v2676_v14  ;;  %v2457_v14 = vadd.f32 %v2456_v15, %v2368_v25  ;;  %3820 = vmatpush.bf16.msrb.mxu0 %v8713_v19  ;;  %v8696_v15 = vld [vmem:[#allocation6] sm:$0xf]  ;;  %v9587_v25 = vld [vmem:[#allocation6 + $0x4] sm:$0xf0] }
 0x505   :  { %15010 = vst [vmem:[#allocation44_spill] sm:$0xff] %v12087_v30  ;;  %v8697_v42 = vor.u32 %v9587_v25, %v8696_v15 }
 0x506   :  { %3009 = vmatmul.bf16.gmra.mxu2 %v2735_v61  ;;  %3073 = vmatmul.bf16.gmra.mxu3 %v12089_v2  ;;  %v2701_v17 = vmax.f32 %v2457_v14, 0.0  ;;  %v2524_v14 = vadd.f32 %v11828_v10, %v11904_v53 }
 0x507   :  { %3187 = vmatmul.bf16.gmra.mxu0 %v2735_v61  ;;  %v2607_v35 = vpop.f32.mrf.mxu1  ;;  %v9589_v61 = vld [vmem:[#allocation6 + $0x14] sm:$0xf0] }
 0x508   :  { %v2608_v48 = vadd.f32 %v2607_v35, %v2519_v57  ;;  %v8705_v5 = vor.u32 %v9589_v61, %v8704_v52  ;;  %v2371_v52 = vadd.f32 %v11952_v16, %v11781_v43  ;;  %v2462_v61 = vadd.f32 %v12083_v13, %v2373_v11 }
 0x509   :  { %v12092_v59 = vpop.f32.mrf.mxu3  ;;  %v12094_v37 = vpop.f32.mrf.mxu2 }
 0x50a   :  { %3216 = vmatmul.bf16.vlgmr.msrb.gmra.mxu1 %v11924_v39  ;;  %v2521_v39 = vadd.f32 %v11821_v45, %v11904_v53  ;;  %3821 = vmatpush.bf16.msrb.mxu0 %v8705_v5  ;;  %v2680_v55 = vmax.f32 %v2608_v48, 0.0  ;;  %v2737_v45 = vpack.c.bf16 %v2701_v17, %v2699_v60  ;;  %v2460_v48 = vadd.f32 %v12067_v31, %v2371_v52  ;;  %v8648_v52 = vld [vmem:[#allocation7 + $0x20] sm:$0xf] }
 0x50b   :  { %v2705_v56 = vmax.f32 %v2462_v61, 0.0  ;;  %v9623_v61 = vld [vmem:[#allocation7 + $0x24] sm:$0xf0] }
 0x50c   :  { %v12103_v44 = vpop.f32.mrf.mxu0 }
 0x50d   :  { %15011 = vst [vmem:[#allocation45_spill] sm:$0xff] %v12103_v44 }
 0x50e   :  { %3822 = vmatpush.bf16.msrb.mxu0 %v8697_v42 }
 0x50f   :  { %v2609_v20 = vpop.f32.mrf.mxu1 }
 0x510   :  { %v2610_v12 = vadd.f32 %v2609_v20, %v2521_v39 }
 0x511   :  { %v2466_v1 = vpop.f32.mrf.mxu3  ;;  %v12108_v26 = vpop.f32.mrf.mxu2 }
 0x512   :  { %v2682_v19 = vmax.f32 %v2610_v12, 0.0  ;;  %v2703_v12 = vmax.f32 %v2460_v48, 0.0  ;;  %v8808_v48 = vld [vmem:[#allocation6 + $0xe0] sm:$0xf] }
 0x514   :  { %v12110_v44 = vpop.f32.mrf.mxu0  ;;  %v12112_v30 = vpack.c.bf16 %v2682_v19, %v2680_v55  ;;  %v2739_v13 = vpack.c.bf16 %v2705_v56, %v2703_v12  ;;  %v8656_v55 = vld [vmem:[#allocation7 + $0x30] sm:$0xf]  ;;  %v2529_v12 = vadd.f32 %v11851_v54, %v11904_v53 }
 0x515   :  { %v8657_v19 = vor.u32 %v9625_v50, %v8656_v55  ;;  %v8640_v55 = vld [vmem:[#allocation7 + $0x10] sm:$0xf]  ;;  %v9621_v50 = vld [vmem:[#allocation7 + $0x14] sm:$0xf0] }
 0x516   :  { %3014 = vmatmul.bf16.gmra.mxu2 %v2737_v45  ;;  %3078 = vmatmul.bf16.gmra.mxu3 %v12112_v30 }
 0x517   :  { %3192 = vmatmul.bf16.gmra.mxu0 %v2737_v45  ;;  %v2612_v3 = vpop.f32.mrf.mxu1  ;;  %v3472_v42 = vsel %vm512_vm0, %v8657_v19, 0  ;;  %v12139_v45 = vld [vmem:[%s15012_s29] sm:$0x3] }
 0x518   :  { %v2613_v5 = vadd.f32 %v2612_v3, %v2524_v14  ;;  %3481 = vmatpush.bf16.msra.mxu2 %v3472_v42  ;;  %v12142_v3 = vperm.slane %v12139_v45, 0  ;;  %v8641_v42 = vor.u32 %v9621_v50, %v8640_v55 }
 0x519   :  { %v12115_v35 = vpop.f32.mrf.mxu2  ;;  %v3039_v57 = vpop.f32.mrf.mxu3 }
 0x51a   :  { %3221 = vmatmul.bf16.gmra.mxu1 %v11949_v9  ;;  %v2684_v15 = vmax.f32 %v2613_v5, 0.0  ;;  %v9615_v5 = vld [vmem:[#allocation6 + $0xe4] sm:$0xf0]  ;;  %v2953_v56 = vadd.f32 %v12014_v62, %v12142_v3  ;;  %v2531_v62 = vadd.f32 %v11867_v24, %v11904_v53  ;;  %v2958_v50 = vadd.f32 %v12037_v21, %v12142_v3 }
 0x51c   :  { %v12125_v39 = vpop.f32.mrf.mxu0 }
 0x51f   :  { %v2614_v20 = vpop.f32.mrf.mxu1 }
 0x520   :  { %v2615_v17 = vadd.f32 %v2614_v20, %v2526_v28  ;;  %v2378_v28 = vadd.f32 %v11991_v38, %v11781_v43  ;;  %v8649_v20 = vor.u32 %v9623_v61, %v8648_v52 }
 0x521   :  { %v12130_v9 = vpop.f32.mrf.mxu2  ;;  %v3041_v10 = vpop.f32.mrf.mxu3 }
 0x522   :  { %v2686_v16 = vmax.f32 %v2615_v17, 0.0  ;;  %v8809_v17 = vor.u32 %v9615_v5, %v8808_v48  ;;  %3482 = vmatpush.bf16.msra.mxu2 %v8649_v20  ;;  %v3042_v38 = vadd.f32 %v3041_v10, %v2953_v56  ;;  %v8632_v10 = vld [vmem:[#allocation7] sm:$0xf]  ;;  %v9619_v48 = vld [vmem:[#allocation7 + $0x4] sm:$0xf0] }
 0x524   :  { %v12132_v25 = vpop.f32.mrf.mxu0  ;;  %v12134_v60 = vpack.c.bf16 %v2686_v16, %v2684_v15  ;;  %v2376_v15 = vadd.f32 %v11975_v63, %v11781_v43  ;;  %v2467_v16 = vadd.f32 %v2466_v1, %v2378_v28  ;;  %3905 = vmatpush.bf16.msra.mxu1 %v8809_v17  ;;  %v3299_v61 = vmax.f32 %v3042_v38, 0.0 }
 0x525   :  { %v8633_v17 = vor.u32 %v9619_v48, %v8632_v10 }
 0x526   :  { %3019 = vmatmul.bf16.gmra.mxu2 %v2739_v13  ;;  %3083 = vmatmul.bf16.gmra.mxu3 %v12134_v60  ;;  %v2465_v19 = vadd.f32 %v12092_v59, %v2376_v15  ;;  %v2709_v63 = vmax.f32 %v2467_v16, 0.0  ;;  %v8634_v15 = vld [vmem:[#allocation7 + $0x8] sm:$0xf0] }
 0x527   :  { %3197 = vmatmul.bf16.gmra.mxu0 %v2739_v13  ;;  %v2617_v31 = vpop.f32.mrf.mxu1  ;;  %3483 = vmatpush.bf16.msra.mxu2 %v8641_v42 }
 0x528   :  { %v2618_v54 = vadd.f32 %v2617_v31, %v2529_v12  ;;  %v2707_v5 = vmax.f32 %v2465_v19, 0.0  ;;  %v9618_v12 = vld [vmem:[#allocation7 + $0x4] sm:$0xf] }
 0x529   :  { %v12144_v11 = vpop.f32.mrf.mxu2  ;;  %v3044_v14 = vpop.f32.mrf.mxu3 }
 0x52a   :  { %3226 = vmatmul.bf16.gmra.mxu1 %v11972_v32  ;;  %v2951_v32 = vadd.f32 %v12000_v40, %v12142_v3  ;;  %v2688_v20 = vmax.f32 %v2618_v54, 0.0  ;;  %v2741_v59 = vpack.c.bf16 %v2709_v63, %v2707_v5  ;;  %v2956_v54 = vadd.f32 %v12023_v46, %v12142_v3 }
 0x52b   :  { %3484 = vmatpush.bf16.msra.mxu2 %v8633_v17  ;;  %v8800_v17 = vld [vmem:[#allocation6 + $0xd0] sm:$0xf] }
 0x52c   :  { %v12155_v13 = vpop.f32.mrf.mxu0  ;;  %v3040_v52 = vadd.f32 %v3039_v57, %v2951_v32  ;;  %v8637_v32 = vor.u32 %v9618_v12, %v8634_v15  ;;  %v3045_v63 = vadd.f32 %v3044_v14, %v2956_v54  ;;  %v2963_v12 = vadd.f32 %v12060_v27, %v12142_v3 }
 0x52d   :  { %15013 = vst [vmem:[#allocation46_spill] sm:$0xff] %v12155_v13 }
 0x52e   :  { %v3297_v24 = vmax.f32 %v3040_v52, 0.0  ;;  %3573 = vmatpush.bf16.msrb.mxu3 %v8637_v32  ;;  %v2536_v52 = vadd.f32 %v11891_v33, %v11904_v53 }
 0x52f   :  { %v2619_v43 = vpop.f32.mrf.mxu1 }
 0x530   :  { %v2620_v1 = vadd.f32 %v2619_v43, %v2531_v62  ;;  %v12168_v57 = vpack.c.bf16 %v3299_v61, %v3297_v24  ;;  %v2534_v62 = vadd.f32 %v11874_v36, %v11904_v53  ;;  %v3301_v36 = vmax.f32 %v3045_v63, 0.0  ;;  %v9613_v24 = vld [vmem:[#allocation6 + $0xd4] sm:$0xf0] }
 0x531   :  { %v12162_v28 = vpop.f32.mrf.mxu2  ;;  %v3046_v40 = vpop.f32.mrf.mxu3  ;;  %v8801_v15 = vor.u32 %v9613_v24, %v8800_v17  ;;  %v2966_v24 = vadd.f32 %v12069_v47, %v12142_v3 }
 0x532   :  { %v2690_v56 = vmax.f32 %v2620_v1, 0.0  ;;  %15014 = vst [vmem:[#allocation34_spill] sm:$0xff] %v12168_v57  ;;  %v3047_v42 = vadd.f32 %v3046_v40, %v2958_v50 }
 0x533   :  { %3906 = vmatpush.bf16.msra.mxu1 %v8801_v15  ;;  %v2546_v15 = vadd.f32 %v11940_v49, %v11904_v53  ;;  %v12246_v49 = vld [vmem:[%s10245_s5 + $0x8] sm:$0xff] }
 0x534   :  { %v12164_v13 = vpop.f32.mrf.mxu0  ;;  %v12166_v31 = vpack.c.bf16 %v2690_v56, %v2688_v20 }
 0x536   :  { %3024 = vmatmul.bf16.gmra.mxu2 %v2741_v59  ;;  %3088 = vmatmul.bf16.gmra.mxu3 %v12166_v31 }
 0x537   :  { %3823 = vmatmul.bf16.vlgmr.msrb.gmra.mxu0 %v12168_v57  ;;  %v2622_v16 = vpop.f32.mrf.mxu1 }
 0x538   :  { %v2623_v43 = vadd.f32 %v2622_v16, %v2534_v62  ;;  %v2539_v16 = vadd.f32 %v11898_v6, %v11904_v53 }
 0x539   :  { %v12172_v38 = vpop.f32.mrf.mxu2  ;;  %v3049_v55 = vpop.f32.mrf.mxu3 }
 0x53a   :  { %3231 = vmatmul.bf16.gmra.mxu1 %v11995_v8  ;;  %v3303_v8 = vmax.f32 %v3047_v42, 0.0  ;;  %v2692_v48 = vmax.f32 %v2623_v43, 0.0 }
 0x53c   :  { %v12179_v19 = vpop.f32.mrf.mxu0  ;;  %v12191_v46 = vpack.c.bf16 %v3303_v8, %v3301_v36  ;;  %v2968_v36 = vadd.f32 %v12085_v29, %v12142_v3 }
 0x53e   :  { %15015 = vst [vmem:[#allocation35_spill] sm:$0xff] %v12191_v46 }
 0x53f   :  { %v2624_v1 = vpop.f32.mrf.mxu1 }
 0x540   :  { %v2625_v61 = vadd.f32 %v2624_v1, %v2536_v52 }
 0x541   :  { %v12185_v10 = vpop.f32.mrf.mxu2  ;;  %v3051_v21 = vpop.f32.mrf.mxu3 }
 0x542   :  { %v2694_v5 = vmax.f32 %v2625_v61, 0.0  ;;  %v3052_v50 = vadd.f32 %v3051_v21, %v2963_v12 }
 0x544   :  { %v12187_v20 = vpop.f32.mrf.mxu0  ;;  %v12189_v56 = vpack.c.bf16 %v2694_v5, %v2692_v48  ;;  %v3307_v27 = vmax.f32 %v3052_v50, 0.0 }
 0x546   :  { %3093 = vmatmul.bf16.gmra.mxu3 %v12189_v56  ;;  %3202 = vmatmul.bf16.vlgmr.msrb.gmra.mxu2 %v2741_v59  ;;  %v2961_v59 = vadd.f32 %v12046_v7, %v12142_v3 }
 0x547   :  { %3828 = vmatmul.bf16.gmra.mxu0 %v12191_v46  ;;  %v2627_v33 = vpop.f32.mrf.mxu1 }
 0x548   :  { %v2628_v62 = vadd.f32 %v2627_v33, %v2539_v16  ;;  %v3050_v54 = vadd.f32 %v3049_v55, %v2961_v59  ;;  %v2544_v33 = vadd.f32 %v11926_v4, %v11904_v53 }
 0x549   :  { %v12195_v14 = vpop.f32.mrf.mxu2  ;;  %v3054_v40 = vpop.f32.mrf.mxu3 }
 0x54a   :  { %3236 = vmatmul.bf16.gmra.mxu1 %v12018_v58  ;;  %v2541_v58 = vadd.f32 %v11917_v22, %v11904_v53  ;;  %v2696_v6 = vmax.f32 %v2628_v62, 0.0  ;;  %v3305_v61 = vmax.f32 %v3050_v54, 0.0  ;;  %v12218_v22 = vld [vmem:[%s10245_s5] sm:$0xff]  ;;  %v3055_v59 = vadd.f32 %v3054_v40, %v2966_v24 }
 0x54c   :  { %v12202_v32 = vpop.f32.mrf.mxu0  ;;  %v12214_v21 = vpack.c.bf16 %v3307_v27, %v3305_v61  ;;  %v9611_v61 = vld [vmem:[#allocation6 + $0xc4] sm:$0xf0] }
 0x54e   :  { %15016 = vst [vmem:[#allocation47_spill] sm:$0xff] %v12214_v21 }
 0x54f   :  { %v2629_v42 = vpop.f32.mrf.mxu1 }
 0x550   :  { %v2630_v52 = vadd.f32 %v2629_v42, %v2541_v58  ;;  %v3309_v42 = vmax.f32 %v3055_v59, 0.0  ;;  %v15019_v59 = vld [vmem:[#allocation37_spill] sm:$0xff] }
 0x551   :  { %v12208_v43 = vpop.f32.mrf.mxu2  ;;  %v3056_v63 = vpop.f32.mrf.mxu3 }
 0x552   :  { %v2698_v1 = vmax.f32 %v2630_v52, 0.0  ;;  %v3057_v12 = vadd.f32 %v3056_v63, %v2968_v36 }
 0x554   :  { %v12210_v8 = vpop.f32.mrf.mxu0  ;;  %v12212_v7 = vpack.c.bf16 %v2698_v1, %v2696_v6  ;;  %v3311_v58 = vmax.f32 %v3057_v12, 0.0  ;;  %v8792_v1 = vld [vmem:[#allocation6 + $0xc0] sm:$0xf] }
 0x555   :  { %v8793_v36 = vor.u32 %v9611_v61, %v8792_v1 }
 0x556   :  { %3098 = vmatmul.bf16.gmra.mxu3 %v12212_v7  ;;  %8662 = vmatmul.msk.bf16.vlgmr.msra.gmra.mxu2 %vm463_vm1, %v12218_v22  ;;  %v12242_v47 = vpack.c.bf16 %v3311_v58, %v3309_v42 }
 0x557   :  { %3833 = vmatmul.bf16.gmra.mxu0 %v12214_v21  ;;  %v2632_v55 = vpop.f32.mrf.mxu1  ;;  %3907 = vmatpush.bf16.msra.mxu1 %v8793_v36  ;;  %v8754_v36 = vld [vmem:[#allocation6 + $0x78] sm:$0xf0] }
 0x558   :  { %v2633_v16 = vadd.f32 %v2632_v55, %v2544_v33  ;;  %15017 = vst [vmem:[#allocation48_spill] sm:$0xff] %v12242_v47  ;;  %v2973_v55 = vadd.f32 %v12108_v26, %v12142_v3  ;;  %v15018_v33 = vld [vmem:[#allocation36_spill] sm:$0xff] }
 0x559   :  { %v12223_v48 = vpop.f32.mrf.mxu2  ;;  %v3059_v5 = vpop.f32.mrf.mxu3  ;;  %v2549_v24 = vadd.f32 %v15018_v33, %v11904_v53 }
 0x55a   :  { %3241 = vmatmul.bf16.gmra.mxu1 %v12041_v51  ;;  %v2700_v54 = vmax.f32 %v2633_v16, 0.0 }
 0x55c   :  { %v12230_v17 = vpop.f32.mrf.mxu0 }
 0x55f   :  { %v2634_v50 = vpop.f32.mrf.mxu1 }
 0x560   :  { %v2635_v51 = vadd.f32 %v2634_v50, %v2546_v15  ;;  %v2971_v15 = vadd.f32 %v12094_v37, %v12142_v3  ;;  %v2551_v50 = vadd.f32 %v15019_v59, %v11904_v53 }
 0x561   :  { %v12236_v62 = vpop.f32.mrf.mxu2  ;;  %v3061_v29 = vpop.f32.mrf.mxu3 }
 0x562   :  { %v2702_v4 = vmax.f32 %v2635_v51, 0.0  ;;  %v3062_v16 = vadd.f32 %v3061_v29, %v2973_v55  ;;  %v3060_v51 = vadd.f32 %v3059_v5, %v2971_v15  ;;  %v9600_v55 = vld [vmem:[#allocation6 + $0x74] sm:$0xf] }
 0x563   :  { %v12274_v5 = vld [vmem:[%s10245_s5 + $0x10] sm:$0xff] }
 0x564   :  { %v12238_v52 = vpop.f32.mrf.mxu0  ;;  %v12240_v27 = vpack.c.bf16 %v2702_v4, %v2700_v54  ;;  %v3315_v26 = vmax.f32 %v3062_v16, 0.0  ;;  %v3313_v33 = vmax.f32 %v3060_v51, 0.0  ;;  %v9616_v15 = vld [vmem:[#allocation6 + $0xf4] sm:$0xf]  ;;  %v8818_v16 = vld [vmem:[#allocation6 + $0xf8] sm:$0xf0]  ;;  %v2978_v51 = vadd.f32 %v12130_v9, %v12142_v3 }
 0x565   :  { %v8821_v59 = vor.u32 %v9616_v15, %v8818_v16 }
 0x566   :  { %3103 = vmatmul.bf16.gmra.mxu3 %v12240_v27  ;;  %8663 = vmatmul.msk.bf16.gmra.mxu2 %vm463_vm1, %v12246_v49  ;;  %v12270_v29 = vpack.c.bf16 %v3315_v26, %v3313_v33  ;;  %v15022_v33 = vld [vmem:[#allocation39_spill] sm:$0xff] }
 0x567   :  { %3838 = vmatmul.bf16.gmra.mxu0 %v12242_v47  ;;  %v2637_v40 = vpop.f32.mrf.mxu1  ;;  %4082 = vmatpush.bf16.msra.mxu3 %v8821_v59 }
 0x568   :  { %15020 = vst [vmem:[#allocation36_spill] sm:$0xff] %v12270_v29 }
 0x569   :  { %v12251_v63 = vpop.f32.mrf.mxu2  ;;  %v3064_v6 = vpop.f32.mrf.mxu3 }
 0x56a   :  { %3246 = vmatmul.bf16.gmra.mxu1 %v12064_v0  ;;  %v2638_v0 = vadd.f32 %v2637_v40, %v2549_v24  ;;  %v8757_v40 = vor.u32 %v9600_v55, %v8754_v36  ;;  %v2556_v55 = vadd.f32 %v15022_v33, %v11904_v53 }
 0x56c   :  { %v12258_v12 = vpop.f32.mrf.mxu0  ;;  %v2704_v1 = vmax.f32 %v2638_v0, 0.0  ;;  %3993 = vmatpush.bf16.msrb.mxu2 %v8757_v40 }
 0x56f   :  { %v2639_v58 = vpop.f32.mrf.mxu1 }
 0x570   :  { %v2640_v54 = vadd.f32 %v2639_v58, %v2551_v50  ;;  %v15021_v58 = vld [vmem:[#allocation38_spill] sm:$0xff] }
 0x571   :  { %v12264_v4 = vpop.f32.mrf.mxu2  ;;  %v3066_v42 = vpop.f32.mrf.mxu3 }
 0x572   :  { %v2706_v61 = vmax.f32 %v2640_v54, 0.0  ;;  %v2554_v54 = vadd.f32 %v15021_v58, %v11904_v53  ;;  %v12295_v58 = vperm.slane %v12139_v45, 1 }
 0x574   :  { %v12266_v47 = vpop.f32.mrf.mxu0  ;;  %v12268_v37 = vpack.c.bf16 %v2706_v61, %v2704_v1  ;;  %v2976_v1 = vadd.f32 %v12115_v35, %v12142_v3  ;;  %v3067_v61 = vadd.f32 %v3066_v42, %v2978_v51  ;;  %v12307_v51 = vld [vmem:[%s10245_s5 + $0x18] sm:$0xff] }
 0x576   :  { %3108 = vmatmul.bf16.gmra.mxu3 %v12268_v37  ;;  %8664 = vmatmul.msk.bf16.gmra.mxu2 %vm463_vm1, %v12274_v5  ;;  %v3065_v40 = vadd.f32 %v3064_v6, %v2976_v1  ;;  %v3319_v16 = vmax.f32 %v3067_v61, 0.0  ;;  %v15024_v6 = vld [vmem:[#allocation40_spill] sm:$0xff]  ;;  %v2983_v61 = vadd.f32 %v12162_v28, %v12142_v3 }
 0x577   :  { %3843 = vmatmul.bf16.gmra.mxu0 %v12270_v29  ;;  %v2642_v24 = vpop.f32.mrf.mxu1 }
 0x578   :  { %v2643_v36 = vadd.f32 %v2642_v24, %v2554_v54  ;;  %v3317_v46 = vmax.f32 %v3065_v40, 0.0  ;;  %v3129_v24 = vadd.f32 %v15024_v6, %v12295_v58 }
 0x579   :  { %v12279_v50 = vpop.f32.mrf.mxu2  ;;  %v3069_v0 = vpop.f32.mrf.mxu3 }
 0x57a   :  { %3251 = vmatmul.bf16.gmra.mxu1 %v12089_v2  ;;  %v2708_v29 = vmax.f32 %v2643_v36, 0.0  ;;  %v12301_v53 = vpack.c.bf16 %v3319_v16, %v3317_v46  ;;  %v8784_v46 = vld [vmem:[#allocation6 + $0xb0] sm:$0xf]  ;;  %v2981_v36 = vadd.f32 %v12144_v11, %v12142_v3  ;;  %v9598_v11 = vld [vmem:[#allocation6 + $0x64] sm:$0xf] }
 0x57c   :  { %v12286_v26 = vpop.f32.mrf.mxu0  ;;  %15023 = vst [vmem:[#allocation37_spill] sm:$0xff] %v12301_v53  ;;  %v3070_v16 = vadd.f32 %v3069_v0, %v2981_v36  ;;  %v15028_v0 = vld [vmem:[#allocation42_spill] sm:$0xff] }
 0x57d   :  { %v3134_v36 = vadd.f32 %v15028_v0, %v12295_v58  ;;  %v15030_v0 = vld [vmem:[#allocation43_spill] sm:$0xff] }
 0x57f   :  { %v2644_v2 = vpop.f32.mrf.mxu1 }
 0x580   :  { %v2645_v15 = vadd.f32 %v2644_v2, %v2556_v55  ;;  %v15026_v2 = vld [vmem:[#allocation41_spill] sm:$0xff] }
 0x581   :  { %v12292_v59 = vpop.f32.mrf.mxu2  ;;  %v3071_v9 = vpop.f32.mrf.mxu3 }
 0x582   :  { %v2710_v21 = vmax.f32 %v2645_v15, 0.0  ;;  %v3072_v40 = vadd.f32 %v3071_v9, %v2983_v61  ;;  %v3131_v15 = vadd.f32 %v15026_v2, %v12295_v58  ;;  %v8746_v9 = vld [vmem:[#allocation6 + $0x68] sm:$0xf0]  ;;  %v12334_v2 = vld [vmem:[%s10245_s5 + $0x20] sm:$0xff] }
 0x584   :  { %v12297_v35 = vpop.f32.mrf.mxu0  ;;  %v12299_v42 = vpack.c.bf16 %v2710_v21, %v2708_v29  ;;  %v9609_v29 = vld [vmem:[#allocation6 + $0xb4] sm:$0xf0] }
 0x585   :  { %v8785_v33 = vor.u32 %v9609_v29, %v8784_v46  ;;  %v3321_v29 = vmax.f32 %v3070_v16, 0.0  ;;  %v8880_v16 = vld [vmem:[#allocation9 + $0x70] sm:$0xf] }
 0x586   :  { %3113 = vmatmul.bf16.gmra.mxu3 %v12299_v42  ;;  %8665 = vmatmul.msk.bf16.gmra.mxu2 %vm463_vm1, %v12307_v51 }
 0x587   :  { %3848 = vmatmul.bf16.gmra.mxu0 %v12301_v53  ;;  %v3217_v45 = vpop.f32.mrf.mxu1  ;;  %3908 = vmatpush.bf16.msra.mxu1 %v8785_v33  ;;  %v8749_v33 = vor.u32 %v9598_v11, %v8746_v9  ;;  %v2986_v9 = vadd.f32 %v12172_v38, %v12142_v3 }
 0x588   :  { %v3218_v54 = vadd.f32 %v3217_v45, %v3129_v24  ;;  %v3323_v24 = vmax.f32 %v3072_v40, 0.0  ;;  %v9614_v40 = vld [vmem:[#allocation6 + $0xe4] sm:$0xf] }
 0x589   :  { %v12312_v1 = vpop.f32.mrf.mxu2  ;;  %v3074_v21 = vpop.f32.mrf.mxu3  ;;  %3994 = vmatpush.bf16.msrb.mxu2 %v8749_v33 }
 0x58a   :  { %3256 = vmatmul.bf16.gmra.mxu1 %v12112_v30  ;;  %v3298_v28 = vmax.f32 %v3218_v54, 0.0  ;;  %v12329_v61 = vpack.c.bf16 %v3323_v24, %v3321_v29  ;;  %v9641_v24 = vld [vmem:[#allocation9 + $0x74] sm:$0xf0] }
 0x58b   :  { %v8881_v29 = vor.u32 %v9641_v24, %v8880_v16 }
 0x58c   :  { %v12317_v55 = vpop.f32.mrf.mxu0  ;;  %15027 = vst [vmem:[#allocation39_spill] sm:$0xff] %v12329_v61 }
 0x58d   :  { %15025 = vst [vmem:[#allocation38_spill] sm:$0xff] %v12317_v55  ;;  %4535 = vmatpush.bf16.msra.mxu0 %v8881_v29 }
 0x58f   :  { %v3219_v6 = vpop.f32.mrf.mxu1 }
 0x590   :  { %v3220_v30 = vadd.f32 %v3219_v6, %v3131_v15  ;;  %v8810_v15 = vld [vmem:[#allocation6 + $0xe8] sm:$0xf0] }
 0x591   :  { %v12323_v45 = vpop.f32.mrf.mxu2  ;;  %v3076_v53 = vpop.f32.mrf.mxu3 }
 0x592   :  { %v3300_v46 = vmax.f32 %v3220_v30, 0.0  ;;  %v8813_v30 = vor.u32 %v9614_v40, %v8810_v15 }
 0x594   :  { %v12325_v57 = vpack.c.bf16 %v3300_v46, %v3298_v28  ;;  %v12327_v55 = vpop.f32.mrf.mxu0  ;;  %4083 = vmatpush.bf16.msra.mxu3 %v8813_v30 }
 0x596   :  { %8666 = vmatmul.msk.bf16.gmra.mxu2 %vm463_vm1, %v12334_v2  ;;  %8678 = vmatmul.msk.bf16.vlgmr.msrb.gmra.mxu3 %vm463_vm1, %v12218_v22  ;;  %v2988_v22 = vadd.f32 %v12185_v10, %v12142_v3 }
 0x597   :  { %3853 = vmatmul.bf16.gmra.mxu0 %v12329_v61  ;;  %v3222_v54 = vpop.f32.mrf.mxu1 }
 0x598   :  { %v3223_v6 = vadd.f32 %v3222_v54, %v3134_v36  ;;  %v3077_v33 = vadd.f32 %v3076_v53, %v2988_v22  ;;  %v3136_v36 = vadd.f32 %v15030_v0, %v12295_v58  ;;  %v3075_v54 = vadd.f32 %v3074_v21, %v2986_v9  ;;  %v12363_v22 = vld [vmem:[%s10245_s5 + $0x28] sm:$0xff]  ;;  %v8776_v0 = vld [vmem:[#allocation6 + $0xa0] sm:$0xf] }
 0x599   :  { %v12341_v28 = vpop.f32.mrf.mxu2  ;;  %v3079_v46 = vpop.f32.mrf.mxu3  ;;  %v3139_v53 = vadd.f32 %v12039_v23, %v12295_v58  ;;  %v2993_v23 = vadd.f32 %v12208_v43, %v12142_v3 }
 0x59a   :  { %3261 = vmatmul.bf16.gmra.mxu1 %v12134_v60  ;;  %v3327_v16 = vmax.f32 %v3077_v33, 0.0  ;;  %v3302_v24 = vmax.f32 %v3223_v6, 0.0  ;;  %v3325_v29 = vmax.f32 %v3075_v54, 0.0 }
 0x59c   :  { %v12346_v11 = vpop.f32.mrf.mxu0  ;;  %v12358_v38 = vpack.c.bf16 %v3327_v16, %v3325_v29  ;;  %v3141_v16 = vadd.f32 %v12055_v18, %v12295_v58 }
 0x59d   :  { %15029 = vst [vmem:[#allocation40_spill] sm:$0xff] %v12346_v11 }
 0x59e   :  { %15032 = vst [vmem:[#allocation42_spill] sm:$0xff] %v12358_v38 }
 0x59f   :  { %v3224_v40 = vpop.f32.mrf.mxu1 }
 0x5a0   :  { %v3225_v15 = vadd.f32 %v3224_v40, %v3136_v36  ;;  %v9607_v36 = vld [vmem:[#allocation6 + $0xa4] sm:$0xf0] }
 0x5a1   :  { %v12352_v60 = vpop.f32.mrf.mxu2  ;;  %v3081_v30 = vpop.f32.mrf.mxu3  ;;  %v8777_v54 = vor.u32 %v9607_v36, %v8776_v0 }
 0x5a2   :  { %v3304_v10 = vmax.f32 %v3225_v15, 0.0  ;;  %v3082_v15 = vadd.f32 %v3081_v30, %v2993_v23 }
 0x5a3   :  { %3909 = vmatpush.bf16.msra.mxu1 %v8777_v54  ;;  %v12392_v54 = vld [vmem:[%s10245_s5 + $0x30] sm:$0xff] }
 0x5a4   :  { %v12354_v61 = vpop.f32.mrf.mxu0  ;;  %v12356_v11 = vpack.c.bf16 %v3304_v10, %v3302_v24  ;;  %v3331_v29 = vmax.f32 %v3082_v15, 0.0  ;;  %v8802_v15 = vld [vmem:[#allocation6 + $0xd8] sm:$0xf0] }
 0x5a5   :  { %15031 = vst [vmem:[#allocation41_spill] sm:$0xff] %v12354_v61  ;;  %v9594_v61 = vld [vmem:[#allocation6 + $0x44] sm:$0xf] }
 0x5a6   :  { %8667 = vmatmul.msk.bf16.gmra.mxu2 %vm463_vm1, %v12363_v22  ;;  %8679 = vmatmul.msk.bf16.gmra.mxu3 %vm463_vm1, %v12246_v49  ;;  %v2991_v49 = vadd.f32 %v12195_v14, %v12142_v3  ;;  %v8738_v14 = vld [vmem:[#allocation6 + $0x58] sm:$0xf0] }
 0x5a7   :  { %3858 = vmatmul.bf16.gmra.mxu0 %v12358_v38  ;;  %v3227_v21 = vpop.f32.mrf.mxu1 }
 0x5a8   :  { %v3228_v6 = vadd.f32 %v3227_v21, %v3139_v53  ;;  %v3080_v24 = vadd.f32 %v3079_v46, %v2991_v49  ;;  %v3144_v46 = vadd.f32 %v12062_v34, %v12295_v58  ;;  %v9612_v49 = vld [vmem:[#allocation6 + $0xd4] sm:$0xf] }
 0x5a9   :  { %v12370_v9 = vpop.f32.mrf.mxu2  ;;  %v3084_v33 = vpop.f32.mrf.mxu3 }
 0x5aa   :  { %3266 = vmatmul.bf16.gmra.mxu1 %v12166_v31  ;;  %v3306_v43 = vmax.f32 %v3228_v6, 0.0  ;;  %v3329_v36 = vmax.f32 %v3080_v24, 0.0 }
 0x5ac   :  { %v12375_v40 = vpop.f32.mrf.mxu0  ;;  %v12387_v23 = vpack.c.bf16 %v3331_v29, %v3329_v36 }
 0x5ad   :  { %15033 = vst [vmem:[#allocation43_spill] sm:$0xff] %v12375_v40  ;;  %v9596_v40 = vld [vmem:[#allocation6 + $0x54] sm:$0xf] }
 0x5ae   :  { %15034 = vst [vmem:[#allocation49_spill] sm:$0xff] %v12387_v23  ;;  %v8741_v18 = vor.u32 %v9596_v40, %v8738_v14  ;;  %v8805_v40 = vor.u32 %v9612_v49, %v8802_v15  ;;  %v3146_v14 = vadd.f32 %v12078_v41, %v12295_v58  ;;  %v12421_v41 = vld [vmem:[%s10245_s5 + $0x38] sm:$0xff] }
 0x5af   :  { %v3229_v10 = vpop.f32.mrf.mxu1 }
 0x5b0   :  { %v3230_v31 = vadd.f32 %v3229_v10, %v3141_v16  ;;  %3995 = vmatpush.bf16.msrb.mxu2 %v8741_v18  ;;  %v8872_v16 = vld [vmem:[#allocation9 + $0x60] sm:$0xf]  ;;  %v9639_v10 = vld [vmem:[#allocation9 + $0x64] sm:$0xf0]  ;;  %4084 = vmatpush.bf16.msra.mxu3 %v8805_v40 }
 0x5b1   :  { %v12381_v53 = vpop.f32.mrf.mxu2  ;;  %v3086_v21 = vpop.f32.mrf.mxu3  ;;  %v8873_v29 = vor.u32 %v9639_v10, %v8872_v16 }
 0x5b2   :  { %v3308_v0 = vmax.f32 %v3230_v31, 0.0 }
 0x5b3   :  { %4536 = vmatpush.bf16.msra.mxu0 %v8873_v29 }
 0x5b4   :  { %v12383_v38 = vpop.f32.mrf.mxu0  ;;  %v12385_v30 = vpack.c.bf16 %v3308_v0, %v3306_v43  ;;  %v2996_v0 = vadd.f32 %v12223_v48, %v12142_v3 }
 0x5b6   :  { %8668 = vmatmul.msk.bf16.gmra.mxu2 %vm463_vm1, %v12392_v54  ;;  %8680 = vmatmul.msk.bf16.gmra.mxu3 %vm463_vm1, %v12274_v5  ;;  %v2998_v5 = vadd.f32 %v12236_v62, %v12142_v3  ;;  %v3085_v18 = vadd.f32 %v3084_v33, %v2996_v0 }
 0x5b7   :  { %3863 = vmatmul.bf16.gmra.mxu0 %v12387_v23  ;;  %v3232_v6 = vpop.f32.mrf.mxu1 }
 0x5b8   :  { %v3233_v24 = vadd.f32 %v3232_v6, %v3144_v46  ;;  %v3087_v36 = vadd.f32 %v3086_v21, %v2998_v5  ;;  %v3333_v40 = vmax.f32 %v3085_v18, 0.0  ;;  %v15036_v21 = vld [vmem:[#allocation44_spill] sm:$0xff]  ;;  %v9605_v18 = vld [vmem:[#allocation6 + $0x94] sm:$0xf0] }
 0x5b9   :  { %v12399_v31 = vpop.f32.mrf.mxu2  ;;  %v3089_v34 = vpop.f32.mrf.mxu3  ;;  %v3149_v5 = vadd.f32 %v15036_v21, %v12295_v58 }
 0x5ba   :  { %3271 = vmatmul.bf16.gmra.mxu1 %v12189_v56  ;;  %v3335_v49 = vmax.f32 %v3087_v36, 0.0  ;;  %v3310_v16 = vmax.f32 %v3233_v24, 0.0 }
 0x5bc   :  { %v12404_v43 = vpop.f32.mrf.mxu0  ;;  %v12416_v48 = vpack.c.bf16 %v3335_v49, %v3333_v40 }
 0x5be   :  { %15035 = vst [vmem:[#allocation50_spill] sm:$0xff] %v12416_v48 }
 0x5bf   :  { %v3234_v46 = vpop.f32.mrf.mxu1 }
 0x5c0   :  { %v3235_v6 = vadd.f32 %v3234_v46, %v3146_v14  ;;  %v8768_v14 = vld [vmem:[#allocation6 + $0x90] sm:$0xf]  ;;  %v3003_v46 = vadd.f32 %v12264_v4, %v12142_v3 }
 0x5c1   :  { %v12410_v56 = vpop.f32.mrf.mxu2  ;;  %v3091_v15 = vpop.f32.mrf.mxu3 }
 0x5c2   :  { %v3312_v62 = vmax.f32 %v3235_v6, 0.0  ;;  %v8769_v6 = vor.u32 %v9605_v18, %v8768_v14 }
 0x5c4   :  { %v12412_v10 = vpop.f32.mrf.mxu0  ;;  %v12414_v29 = vpack.c.bf16 %v3312_v62, %v3310_v16  ;;  %v3092_v16 = vadd.f32 %v3091_v15, %v3003_v46  ;;  %3910 = vmatpush.bf16.msra.mxu1 %v8769_v6  ;;  %v15038_v62 = vld [vmem:[#allocation45_spill] sm:$0xff] }
 0x5c5   :  { %v3151_v40 = vadd.f32 %v15038_v62, %v12295_v58  ;;  %v8794_v62 = vld [vmem:[#allocation6 + $0xc8] sm:$0xf0] }
 0x5c6   :  { %8669 = vmatmul.msk.bf16.gmra.mxu2 %vm463_vm1, %v12421_v41  ;;  %8681 = vmatmul.msk.bf16.gmra.mxu3 %vm463_vm1, %v12307_v51  ;;  %v3001_v51 = vadd.f32 %v12251_v63, %v12142_v3  ;;  %v8730_v63 = vld [vmem:[#allocation6 + $0x48] sm:$0xf0] }
 0x5c7   :  { %3868 = vmatmul.bf16.gmra.mxu0 %v12416_v48  ;;  %v3237_v33 = vpop.f32.mrf.mxu1  ;;  %v8733_v6 = vor.u32 %v9594_v61, %v8730_v63 }
 0x5c8   :  { %v3238_v24 = vadd.f32 %v3237_v33, %v3149_v5  ;;  %v3090_v21 = vadd.f32 %v3089_v34, %v3001_v51  ;;  %v3339_v33 = vmax.f32 %v3092_v16, 0.0  ;;  %v3154_v34 = vadd.f32 %v12110_v44, %v12295_v58  ;;  %v12450_v51 = vld [vmem:[%s10245_s5 + $0x40] sm:$0xff] }
 0x5c9   :  { %v3094_v0 = vpop.f32.mrf.mxu3  ;;  %v12428_v36 = vpop.f32.mrf.mxu2  ;;  %3996 = vmatpush.bf16.msrb.mxu2 %v8733_v6  ;;  %v9610_v16 = vld [vmem:[#allocation6 + $0xc4] sm:$0xf]  ;;  %v3156_v6 = vadd.f32 %v12125_v39, %v12295_v58  ;;  %v8760_v39 = vld [vmem:[#allocation6 + $0x80] sm:$0xf] }
 0x5ca   :  { %15037 = vst [vmem:[#allocation44_spill] sm:$0xff] %v12428_v36  ;;  %3276 = vmatmul.bf16.gmra.mxu1 %v12212_v7  ;;  %v3314_v4 = vmax.f32 %v3238_v24, 0.0  ;;  %v3337_v18 = vmax.f32 %v3090_v21, 0.0  ;;  %v8797_v61 = vor.u32 %v9610_v16, %v8794_v62 }
 0x5cc   :  { %v12433_v49 = vpop.f32.mrf.mxu0  ;;  %v12445_v46 = vpack.c.bf16 %v3339_v33, %v3337_v18  ;;  %4085 = vmatpush.bf16.msra.mxu3 %v8797_v61  ;;  %v3006_v18 = vadd.f32 %v12279_v50, %v12142_v3 }
 0x5cf   :  { %v3239_v5 = vpop.f32.mrf.mxu1 }
 0x5d0   :  { %v3240_v7 = vadd.f32 %v3239_v5, %v3151_v40  ;;  %v8864_v40 = vld [vmem:[#allocation9 + $0x50] sm:$0xf]  ;;  %v9637_v5 = vld [vmem:[#allocation9 + $0x54] sm:$0xf0] }
 0x5d1   :  { %v3096_v48 = vpop.f32.mrf.mxu3  ;;  %v12439_v23 = vpop.f32.mrf.mxu2  ;;  %v8865_v33 = vor.u32 %v9637_v5, %v8864_v40 }
 0x5d2   :  { %v3316_v14 = vmax.f32 %v3240_v7, 0.0 }
 0x5d3   :  { %4537 = vmatpush.bf16.msra.mxu0 %v8865_v33  ;;  %v3159_v33 = vadd.f32 %v12132_v25, %v12295_v58  ;;  %v3013_v25 = vadd.f32 %v12323_v45, %v12142_v3 }
 0x5d4   :  { %v12441_v36 = vpop.f32.mrf.mxu0  ;;  %v12443_v15 = vpack.c.bf16 %v3316_v14, %v3314_v4 }
 0x5d6   :  { %8670 = vmatmul.msk.bf16.gmra.mxu2 %vm463_vm1, %v12450_v51  ;;  %8682 = vmatmul.msk.bf16.gmra.mxu3 %vm463_vm1, %v12334_v2  ;;  %v3008_v2 = vadd.f32 %v12292_v59, %v12142_v3 }
 0x5d7   :  { %3873 = vmatmul.bf16.gmra.mxu0 %v12445_v46  ;;  %v3242_v24 = vpop.f32.mrf.mxu1 }
 0x5d8   :  { %v3243_v21 = vadd.f32 %v3242_v24, %v3154_v34  ;;  %v3097_v63 = vadd.f32 %v3096_v48, %v3008_v2  ;;  %v3095_v34 = vadd.f32 %v3094_v0, %v3006_v18  ;;  %v9603_v0 = vld [vmem:[#allocation6 + $0x84] sm:$0xf0] }
 0x5d9   :  { %v3099_v7 = vpop.f32.mrf.mxu3  ;;  %v3486_v44 = vpop.f32.mrf.mxu2  ;;  %v12481_v2 = vld [vmem:[%s10245_s5 + $0x48] sm:$0xff] }
 0x5da   :  { %v12458_v4 = vadd.f32 %v12383_v38, %v3486_v44  ;;  %3281 = vmatmul.bf16.gmra.mxu1 %v12240_v27  ;;  %v3343_v16 = vmax.f32 %v3097_v63, 0.0  ;;  %v3318_v40 = vmax.f32 %v3243_v21, 0.0  ;;  %v3341_v5 = vmax.f32 %v3095_v34, 0.0 }
 0x5dc   :  { %v12463_v14 = vpop.f32.mrf.mxu0  ;;  %v12476_v48 = vpack.c.bf16 %v3343_v16, %v3341_v5  ;;  %v15039_v16 = vld [vmem:[#allocation46_spill] sm:$0xff] }
 0x5df   :  { %v3244_v38 = vpop.f32.mrf.mxu1 }
 0x5e0   :  { %v3245_v24 = vadd.f32 %v3244_v38, %v3156_v6 }
 0x5e1   :  { %v3101_v27 = vpop.f32.mrf.mxu3  ;;  %v3488_v62 = vpop.f32.mrf.mxu2 }
 0x5e2   :  { %v3320_v61 = vmax.f32 %v3245_v24, 0.0  ;;  %v12470_v59 = vadd.f32 %v12404_v43, %v3488_v62  ;;  %v8761_v43 = vor.u32 %v9603_v0, %v8760_v39  ;;  %v3102_v24 = vadd.f32 %v3101_v27, %v3013_v25  ;;  %v8722_v27 = vld [vmem:[#allocation6 + $0x38] sm:$0xf0] }
 0x5e3   :  { %v3161_v62 = vadd.f32 %v15039_v16, %v12295_v58  ;;  %v8786_v16 = vld [vmem:[#allocation6 + $0xb8] sm:$0xf0] }
 0x5e4   :  { %v12472_v44 = vpop.f32.mrf.mxu0  ;;  %v12474_v50 = vpack.c.bf16 %v3320_v61, %v3318_v40  ;;  %3911 = vmatpush.bf16.msra.mxu1 %v8761_v43 }
 0x5e6   :  { %8671 = vmatmul.msk.bf16.gmra.mxu2 %vm463_vm1, %v12481_v2  ;;  %8683 = vmatmul.msk.bf16.gmra.mxu3 %vm463_vm1, %v12363_v22  ;;  %v3011_v22 = vadd.f32 %v12312_v1, %v12142_v3  ;;  %v9592_v1 = vld [vmem:[#allocation6 + $0x34] sm:$0xf] }
 0x5e7   :  { %3878 = vmatmul.bf16.gmra.mxu0 %v12476_v48  ;;  %v3247_v21 = vpop.f32.mrf.mxu1 }
 0x5e8   :  { %v3248_v18 = vadd.f32 %v3247_v21, %v3159_v33  ;;  %v3100_v40 = vadd.f32 %v3099_v7, %v3011_v22  ;;  %v8725_v7 = vor.u32 %v9592_v1, %v8722_v27  ;;  %v3164_v22 = vadd.f32 %v12164_v13, %v12295_v58 }
 0x5e9   :  { %v3104_v63 = vpop.f32.mrf.mxu3  ;;  %v3491_v6 = vpop.f32.mrf.mxu2  ;;  %v3166_v27 = vadd.f32 %v12179_v19, %v12295_v58  ;;  %v3169_v19 = vadd.f32 %v12187_v20, %v12295_v58  ;;  %v8944_v20 = vld [vmem:[#allocation9 + $0xf0] sm:$0xf] }
 0x5ea   :  { %v12489_v34 = vadd.f32 %v12412_v10, %v3491_v6  ;;  %3286 = vmatmul.bf16.gmra.mxu1 %v12268_v37  ;;  %v3347_v10 = vmax.f32 %v3102_v24, 0.0  ;;  %v3322_v37 = vmax.f32 %v3248_v18, 0.0  ;;  %v3345_v43 = vmax.f32 %v3100_v40, 0.0  ;;  %v12512_v24 = vld [vmem:[%s10245_s5 + $0x50] sm:$0xff]  ;;  %3997 = vmatpush.bf16.msrb.mxu2 %v8725_v7 }
 0x5eb   :  { %v9608_v18 = vld [vmem:[#allocation6 + $0xb4] sm:$0xf] }
 0x5ec   :  { %v12494_v38 = vpop.f32.mrf.mxu0  ;;  %v12507_v25 = vpack.c.bf16 %v3347_v10, %v3345_v43  ;;  %v3016_v43 = vadd.f32 %v12341_v28, %v12142_v3 }
 0x5ee   :  { %v3105_v7 = vadd.f32 %v3104_v63, %v3016_v43  ;;  %v12543_v63 = vld [vmem:[%s10245_s5 + $0x58] sm:$0xff] }
 0x5ef   :  { %v3249_v61 = vpop.f32.mrf.mxu1  ;;  %v9657_v43 = vld [vmem:[#allocation9 + $0xf4] sm:$0xf0] }
 0x5f0   :  { %v3250_v5 = vadd.f32 %v3249_v61, %v3161_v62  ;;  %v8856_v62 = vld [vmem:[#allocation9 + $0x40] sm:$0xf]  ;;  %v8789_v61 = vor.u32 %v9608_v18, %v8786_v16 }
 0x5f1   :  { %v3106_v39 = vpop.f32.mrf.mxu3  ;;  %v3493_v0 = vpop.f32.mrf.mxu2 }
 0x5f2   :  { %v3324_v33 = vmax.f32 %v3250_v5, 0.0  ;;  %v12501_v45 = vadd.f32 %v12433_v49, %v3493_v0  ;;  %v9635_v5 = vld [vmem:[#allocation9 + $0x44] sm:$0xf0]  ;;  %4086 = vmatpush.bf16.msra.mxu3 %v8789_v61  ;;  %v3349_v61 = vmax.f32 %v3105_v7, 0.0 }
 0x5f3   :  { %v8857_v0 = vor.u32 %v9635_v5, %v8856_v62 }
 0x5f4   :  { %v12503_v21 = vpop.f32.mrf.mxu0  ;;  %v12505_v6 = vpack.c.bf16 %v3324_v33, %v3322_v37 }
 0x5f5   :  { %4538 = vmatpush.bf16.msra.mxu0 %v8857_v0 }
 0x5f6   :  { %8672 = vmatmul.msk.bf16.gmra.mxu2 %vm463_vm1, %v12512_v24  ;;  %8684 = vmatmul.msk.bf16.gmra.mxu3 %vm463_vm1, %v12392_v54  ;;  %v3018_v54 = vadd.f32 %v12352_v60, %v12142_v3 }
 0x5f7   :  { %3883 = vmatmul.bf16.gmra.mxu0 %v12507_v25  ;;  %v3252_v49 = vpop.f32.mrf.mxu1 }
 0x5f8   :  { %v3253_v40 = vadd.f32 %v3252_v49, %v3164_v22  ;;  %v3107_v1 = vadd.f32 %v3106_v39, %v3018_v54 }
 0x5f9   :  { %v3109_v10 = vpop.f32.mrf.mxu3  ;;  %v3496_v13 = vpop.f32.mrf.mxu2 }
 0x5fa   :  { %v12520_v37 = vadd.f32 %v12441_v36, %v3496_v13  ;;  %3291 = vmatmul.bf16.gmra.mxu1 %v12299_v42  ;;  %v3351_v49 = vmax.f32 %v3107_v1, 0.0  ;;  %v3326_v16 = vmax.f32 %v3253_v40, 0.0  ;;  %v3023_v1 = vadd.f32 %v12381_v53, %v12142_v3 }
 0x5fc   :  { %v12525_v33 = vpop.f32.mrf.mxu0  ;;  %v12538_v39 = vpack.c.bf16 %v3351_v49, %v3349_v61 }
 0x5fe   :  { %15040 = vst [vmem:[#allocation45_spill] sm:$0xff] %v12538_v39 }
 0x5ff   :  { %v3254_v36 = vpop.f32.mrf.mxu1 }
 0x600   :  { %v3255_v22 = vadd.f32 %v3254_v36, %v3166_v27  ;;  %v8945_v27 = vor.u32 %v9657_v43, %v8944_v20 }
 0x601   :  { %v3111_v42 = vpop.f32.mrf.mxu3  ;;  %v3498_v18 = vpop.f32.mrf.mxu2 }
 0x602   :  { %v3328_v62 = vmax.f32 %v3255_v22, 0.0  ;;  %v12532_v60 = vadd.f32 %v12463_v14, %v3498_v18  ;;  %v3112_v36 = vadd.f32 %v3111_v42, %v3023_v1  ;;  %4624 = vmatpush.bf16.msrb.mxu1 %v8945_v27  ;;  %v3171_v22 = vadd.f32 %v12202_v32, %v12295_v58  ;;  %v8714_v42 = vld [vmem:[#allocation6 + $0x28] sm:$0xf0]  ;;  %v12574_v27 = vld [vmem:[%s10245_s5 + $0x60] sm:$0xff] }
 0x603   :  { %v3174_v1 = vadd.f32 %v12210_v8, %v12295_v58 }
 0x604   :  { %v12534_v5 = vpop.f32.mrf.mxu0  ;;  %v12536_v28 = vpack.c.bf16 %v3328_v62, %v3326_v16  ;;  %v3355_v16 = vmax.f32 %v3112_v36, 0.0 }
 0x606   :  { %8673 = vmatmul.msk.bf16.gmra.mxu2 %vm463_vm1, %v12543_v63  ;;  %8685 = vmatmul.msk.bf16.gmra.mxu3 %vm463_vm1, %v12421_v41  ;;  %v3021_v41 = vadd.f32 %v12370_v9, %v12142_v3  ;;  %v9590_v9 = vld [vmem:[#allocation6 + $0x24] sm:$0xf] }
 0x607   :  { %3888 = vmatmul.bf16.gmra.mxu0 %v12538_v39  ;;  %v3257_v14 = vpop.f32.mrf.mxu1 }
 0x608   :  { %v3258_v40 = vadd.f32 %v3257_v14, %v3169_v19 }
 0x609   :  { %v3114_v13 = vpop.f32.mrf.mxu3  ;;  %v3501_v0 = vpop.f32.mrf.mxu2 }
 0x60a   :  { %v12551_v54 = vadd.f32 %v12472_v44, %v3501_v0  ;;  %3912 = vmatmul.bf16.vlgmr.msra.gmra.mxu1 %v12325_v57  ;;  %v3110_v44 = vadd.f32 %v3109_v10, %v3021_v41  ;;  %v3330_v19 = vmax.f32 %v3258_v40, 0.0  ;;  %v8717_v10 = vor.u32 %v9590_v9, %v8714_v42  ;;  %v8778_v40 = vld [vmem:[#allocation6 + $0xa8] sm:$0xf0]  ;;  %v8848_v41 = vld [vmem:[#allocation9 + $0x30] sm:$0xf] }
 0x60c   :  { %v12556_v7 = vpop.f32.mrf.mxu0  ;;  %v3353_v0 = vmax.f32 %v3110_v44, 0.0  ;;  %3998 = vmatpush.bf16.msrb.mxu2 %v8717_v10  ;;  %v9633_v44 = vld [vmem:[#allocation9 + $0x34] sm:$0xf0] }
 0x60e   :  { %v12569_v32 = vpack.c.bf16 %v3355_v16, %v3353_v0  ;;  %v3176_v0 = vadd.f32 %v12230_v17, %v12295_v58  ;;  %v3179_v17 = vadd.f32 %v12238_v52, %v12295_v58  ;;  %v8936_v52 = vld [vmem:[#allocation9 + $0xe0] sm:$0xf] }
 0x60f   :  { %v3259_v49 = vpop.f32.mrf.mxu1 }
 0x610   :  { %v3260_v18 = vadd.f32 %v3259_v49, %v3171_v22  ;;  %15041 = vst [vmem:[#allocation46_spill] sm:$0xff] %v12569_v32 }
 0x611   :  { %v3116_v62 = vpop.f32.mrf.mxu3  ;;  %v3503_v61 = vpop.f32.mrf.mxu2 }
 0x612   :  { %v3332_v53 = vmax.f32 %v3260_v18, 0.0  ;;  %v12563_v14 = vadd.f32 %v12494_v38, %v3503_v61  ;;  %v9606_v38 = vld [vmem:[#allocation6 + $0xa4] sm:$0xf]  ;;  %v8849_v18 = vor.u32 %v9633_v44, %v8848_v41 }
 0x613   :  { %v8781_v22 = vor.u32 %v9606_v38, %v8778_v40 }
 0x614   :  { %v12565_v20 = vpop.f32.mrf.mxu0  ;;  %v12567_v43 = vpack.c.bf16 %v3332_v53, %v3330_v19  ;;  %4539 = vmatpush.bf16.msra.mxu0 %v8849_v18  ;;  %v3026_v19 = vadd.f32 %v12399_v31, %v12142_v3  ;;  %v12606_v31 = vld [vmem:[%s10245_s5 + $0x68] sm:$0xff] }
 0x615   :  { %4087 = vmatpush.bf16.msra.mxu3 %v8781_v22 }
 0x616   :  { %8674 = vmatmul.msk.bf16.gmra.mxu2 %vm463_vm1, %v12574_v27  ;;  %8686 = vmatmul.msk.bf16.gmra.mxu3 %vm463_vm1, %v12450_v51  ;;  %v3028_v51 = vadd.f32 %v12410_v56, %v12142_v3  ;;  %v3115_v42 = vadd.f32 %v3114_v13, %v3026_v19 }
 0x617   :  { %3893 = vmatmul.bf16.gmra.mxu0 %v12569_v32  ;;  %v3262_v36 = vpop.f32.mrf.mxu1  ;;  %v9629_v32 = vld [vmem:[#allocation9 + $0x14] sm:$0xf0] }
 0x618   :  { %v3263_v49 = vadd.f32 %v3262_v36, %v3174_v1  ;;  %v3117_v53 = vadd.f32 %v3116_v62, %v3028_v51  ;;  %v3357_v36 = vmax.f32 %v3115_v42, 0.0  ;;  %v9655_v51 = vld [vmem:[#allocation9 + $0xe4] sm:$0xf0] }
 0x619   :  { %v3506_v8 = vpop.f32.mrf.mxu2  ;;  %v12581_v16 = vpop.f32.mrf.mxu3  ;;  %v8937_v19 = vor.u32 %v9655_v51, %v8936_v52  ;;  %v12634_v51 = vld [vmem:[%s10245_s5 + $0x70] sm:$0xff] }
 0x61a   :  { %v12584_v61 = vadd.f32 %v12503_v21, %v3506_v8  ;;  %3917 = vmatmul.bf16.gmra.mxu1 %v12356_v11  ;;  %v3359_v1 = vmax.f32 %v3117_v53, 0.0  ;;  %v3334_v41 = vmax.f32 %v3263_v49, 0.0  ;;  %v9588_v53 = vld [vmem:[#allocation6 + $0x14] sm:$0xf] }
 0x61b   :  { %4625 = vmatpush.bf16.msrb.mxu1 %v8937_v19  ;;  %v9604_v19 = vld [vmem:[#allocation6 + $0x94] sm:$0xf] }
 0x61c   :  { %v12593_v9 = vpop.f32.mrf.mxu0  ;;  %v12601_v3 = vpack.c.bf16 %v3359_v1, %v3357_v36 }
 0x61e   :  { %15043 = vst [vmem:[#allocation52_spill] sm:$0xff] %v12601_v3 }
 0x61f   :  { %v3264_v10 = vpop.f32.mrf.mxu1 }
 0x620   :  { %v3265_v21 = vadd.f32 %v3264_v10, %v3176_v0  ;;  %v3181_v0 = vadd.f32 %v12258_v12, %v12295_v58  ;;  %v3184_v12 = vadd.f32 %v12266_v47, %v12295_v58 }
 0x621   :  { %v12595_v38 = vpop.f32.mrf.mxu2  ;;  %v12597_v40 = vpop.f32.mrf.mxu3 }
 0x622   :  { %15042 = vst [vmem:[#allocation51_spill] sm:$0xff] %v12597_v40  ;;  %v3336_v56 = vmax.f32 %v3265_v21, 0.0 }
 0x624   :  { %v12599_v22 = vpack.c.bf16 %v3336_v56, %v3334_v41  ;;  %v12613_v62 = vpop.f32.mrf.mxu0  ;;  %v9586_v41 = vld [vmem:[#allocation6 + $0x4] sm:$0xf]  ;;  %v8698_v56 = vld [vmem:[#allocation6 + $0x8] sm:$0xf0] }
 0x626   :  { %8675 = vmatmul.msk.bf16.gmra.mxu2 %vm463_vm1, %v12606_v31  ;;  %8687 = vmatmul.msk.bf16.gmra.mxu3 %vm463_vm1, %v12481_v2  ;;  %v8706_v2 = vld [vmem:[#allocation6 + $0x18] sm:$0xf0] }
 0x627   :  { %3898 = vmatmul.bf16.gmra.mxu0 %v12601_v3  ;;  %v3267_v13 = vpop.f32.mrf.mxu1  ;;  %v8709_v42 = vor.u32 %v9588_v53, %v8706_v2  ;;  %v8840_v53 = vld [vmem:[#allocation9 + $0x20] sm:$0xf] }
 0x628   :  { %v3268_v44 = vadd.f32 %v3267_v13, %v3179_v17 }
 0x629   :  { %v3511_v49 = vpop.f32.mrf.mxu2  ;;  %v12615_v18 = vpop.f32.mrf.mxu3  ;;  %3999 = vmatpush.bf16.msrb.mxu2 %v8709_v42  ;;  %v9631_v42 = vld [vmem:[#allocation9 + $0x24] sm:$0xf0] }
 0x62a   :  { %15044 = vst [vmem:[#allocation53_spill] sm:$0xff] %v12615_v18  ;;  %v12618_v8 = vadd.f32 %v12534_v5, %v3511_v49  ;;  %3922 = vmatmul.bf16.gmra.mxu1 %v12385_v30  ;;  %v3338_v36 = vmax.f32 %v3268_v44, 0.0  ;;  %v8701_v49 = vor.u32 %v9586_v41, %v8698_v56  ;;  %v8770_v44 = vld [vmem:[#allocation6 + $0x98] sm:$0xf0] }
 0x62c   :  { %v12627_v17 = vpop.f32.mrf.mxu0 }
 0x62d   :  { %4000 = vmatpush.bf16.msrb.mxu2 %v8701_v49 }
 0x62f   :  { %v3269_v10 = vpop.f32.mrf.mxu1 }
 0x630   :  { %v3270_v21 = vadd.f32 %v3269_v10, %v3181_v0  ;;  %v8773_v0 = vor.u32 %v9604_v19, %v8770_v44 }
 0x631   :  { %v12623_v1 = vpop.f32.mrf.mxu2  ;;  %v12625_v5 = vpop.f32.mrf.mxu3 }
 0x632   :  { %15045 = vst [vmem:[#allocation54_spill] sm:$0xff] %v12625_v5  ;;  %v3340_v13 = vmax.f32 %v3270_v21, 0.0  ;;  %v8841_v21 = vor.u32 %v9631_v42, %v8840_v53  ;;  %4088 = vmatpush.bf16.msra.mxu3 %v8773_v0  ;;  %v12659_v42 = vld [vmem:[%s10245_s5 + $0x78] sm:$0xff]  ;;  %s15066_s5 = sld [smem:[#allocation26_spill]] }
 0x634   :  { %v12629_v52 = vpack.c.bf16 %v3340_v13, %v3338_v36  ;;  %4540 = vmatpush.bf16.msra.mxu0 %v8841_v21  ;;  %v3186_v36 = vadd.f32 %v12286_v26, %v12295_v58 }
 0x636   :  { %8676 = vmatmul.msk.bf16.gmra.mxu2 %vm463_vm1, %v12634_v51  ;;  %8688 = vmatmul.msk.bf16.gmra.mxu3 %vm463_vm1, %v12512_v24  ;;  %v3864_v24 = vpop.f32.mrf.mxu0 }
 0x637   :  { %v3272_v2 = vpop.f32.mrf.mxu1 }
 0x638   :  { %v3273_v10 = vadd.f32 %v3272_v2, %v3184_v12 }
 0x639   :  { %v3516_v41 = vpop.f32.mrf.mxu2  ;;  %v12640_v56 = vpop.f32.mrf.mxu3 }
 0x63a   :  { %15046 = vst [vmem:[#allocation55_spill] sm:$0xff] %v12640_v56  ;;  %v12643_v47 = vadd.f32 %v12565_v20, %v3516_v41  ;;  %3927 = vmatmul.bf16.gmra.mxu1 %v12414_v29  ;;  %v3342_v44 = vmax.f32 %v3273_v10, 0.0  ;;  %v3189_v20 = vadd.f32 %v12297_v35, %v12295_v58  ;;  %v8928_v35 = vld [vmem:[#allocation9 + $0xd0] sm:$0xf] }
 0x63e   :  { %v12656_v0 = vpop.f32.mrf.mxu0 }
 0x63f   :  { %v3274_v13 = vpop.f32.mrf.mxu1 }
 0x640   :  { %v3275_v49 = vadd.f32 %v3274_v13, %v3186_v36  ;;  %v9653_v13 = vld [vmem:[#allocation9 + $0xd4] sm:$0xf0] }
 0x641   :  { %v12648_v19 = vpop.f32.mrf.mxu2  ;;  %v12650_v12 = vpop.f32.mrf.mxu3 }
 0x642   :  { %15047 = vst [vmem:[#allocation56_spill] sm:$0xff] %v12650_v12  ;;  %v3344_v53 = vmax.f32 %v3275_v49, 0.0  ;;  %v8929_v49 = vor.u32 %v9653_v13, %v8928_v35  ;;  %v15051_v35 = vld [vmem:[#allocation34_spill] sm:$0xff] }
 0x643   :  { %v9602_v13 = vld [vmem:[#allocation6 + $0x84] sm:$0xf] }
 0x644   :  { %v12652_v2 = vpack.c.bf16 %v3344_v53, %v3342_v44  ;;  %4626 = vmatpush.bf16.msrb.mxu1 %v8929_v49  ;;  %v15049_v44 = vld [vmem:[#allocation38_spill] sm:$0xff]  ;;  %v8762_v49 = vld [vmem:[#allocation6 + $0x88] sm:$0xf0] }
 0x645   :  { %v3191_v53 = vadd.f32 %v15049_v44, %v12295_v58  ;;  %v8832_v44 = vld [vmem:[#allocation9 + $0x10] sm:$0xf] }
 0x646   :  { %8677 = vmatmul.msk.bf16.gmra.mxu2 %vm463_vm1, %v12659_v42  ;;  %8689 = vmatmul.msk.bf16.gmra.mxu3 %vm463_vm1, %v12543_v63  ;;  %v3869_v12 = vpop.f32.mrf.mxu0 }
 0x647   :  { %v3277_v26 = vpop.f32.mrf.mxu1 }
 0x648   :  { %v3278_v21 = vadd.f32 %v3277_v26, %v3189_v20 }
 0x649   :  { %v3521_v41 = vpop.f32.mrf.mxu2  ;;  %v12665_v10 = vpop.f32.mrf.mxu3 }
 0x64a   :  { %15048 = vst [vmem:[#allocation57_spill] sm:$0xff] %v12665_v10  ;;  %v12668_v36 = vadd.f32 %v12613_v62, %v3521_v41  ;;  %3932 = vmatmul.bf16.gmra.mxu1 %v12443_v15  ;;  %v3346_v26 = vmax.f32 %v3278_v21, 0.0  ;;  %v3194_v41 = vadd.f32 %v12327_v55, %v12295_v58 }
 0x64f   :  { %v3279_v3 = vpop.f32.mrf.mxu1 }
 0x650   :  { %v3280_v63 = vadd.f32 %v3279_v3, %v3191_v53  ;;  %v8765_v53 = vor.u32 %v9602_v13, %v8762_v49 }
 0x651   :  { %v12673_v56 = vpop.f32.mrf.mxu2  ;;  %v12675_v20 = vpop.f32.mrf.mxu3 }
 0x652   :  { %15050 = vst [vmem:[#allocation38_spill] sm:$0xff] %v12675_v20  ;;  %v3348_v10 = vmax.f32 %v3280_v63, 0.0  ;;  %v8833_v20 = vor.u32 %v9629_v32, %v8832_v44  ;;  %4089 = vmatpush.bf16.msra.mxu3 %v8765_v53 }
 0x654   :  { %v12677_v62 = vpack.c.bf16 %v3348_v10, %v3346_v26  ;;  %v12686_v10 = vpop.f32.mrf.mxu0  ;;  %4541 = vmatpush.bf16.msra.mxu0 %v8833_v20  ;;  %v15057_v20 = vld [vmem:[#allocation35_spill] sm:$0xff] }
 0x655   :  { %15053 = vst [vmem:[#allocation58_spill] sm:$0xff] %v12686_v10 }
 0x656   :  { %8690 = vmatmul.msk.bf16.gmra.mxu3 %vm463_vm1, %v12574_v27  ;;  %4001 = vmatmul.bf16.vlgmr.msrb.gmra.mxu2 %v15051_v35  ;;  %v15054_v27 = vld [vmem:[#allocation40_spill] sm:$0xff] }
 0x657   :  { %v3282_v3 = vpop.f32.mrf.mxu1  ;;  %v3196_v26 = vadd.f32 %v15054_v27, %v12295_v58 }
 0x658   :  { %v3283_v5 = vadd.f32 %v3282_v3, %v3194_v41 }
 0x659   :  { %v3526_v21 = vpop.f32.mrf.mxu2  ;;  %v12684_v63 = vpop.f32.mrf.mxu3 }
 0x65a   :  { %15052 = vst [vmem:[#allocation34_spill] sm:$0xff] %v12684_v63  ;;  %v12688_v55 = vadd.f32 %v3864_v24, %v3526_v21  ;;  %3937 = vmatmul.bf16.gmra.mxu1 %v12474_v50  ;;  %v3350_v32 = vmax.f32 %v3283_v5, 0.0  ;;  %v15056_v24 = vld [vmem:[#allocation41_spill] sm:$0xff]  ;;  %v9651_v5 = vld [vmem:[#allocation9 + $0xc4] sm:$0xf0] }
 0x65b   :  { %v3199_v53 = vadd.f32 %v15056_v24, %v12295_v58 }
 0x65c   :  { %v3874_v44 = vpop.f32.mrf.mxu0 }
 0x65f   :  { %v3284_v35 = vpop.f32.mrf.mxu1 }
 0x660   :  { %v3285_v18 = vadd.f32 %v3284_v35, %v3196_v26 }
 0x661   :  { %v12693_v13 = vpop.f32.mrf.mxu2  ;;  %v12695_v41 = vpop.f32.mrf.mxu3 }
 0x662   :  { %15055 = vst [vmem:[#allocation40_spill] sm:$0xff] %v12695_v41  ;;  %v3352_v49 = vmax.f32 %v3285_v18, 0.0  ;;  %v8920_v18 = vld [vmem:[#allocation9 + $0xc0] sm:$0xf] }
 0x664   :  { %v12697_v3 = vpack.c.bf16 %v3352_v49, %v3350_v32  ;;  %v8921_v32 = vor.u32 %v9651_v5, %v8920_v18  ;;  %v15059_v49 = vld [vmem:[#allocation43_spill] sm:$0xff]  ;;  %v12711_v41 = vpop.f32.mrf.mxu0  ;;  %v15063_v18 = vld [vmem:[#allocation44_spill] sm:$0xff] }
 0x665   :  { %v3201_v24 = vadd.f32 %v15059_v49, %v12295_v58  ;;  %15060 = vst [vmem:[#allocation35_spill] sm:$0xff] %v12711_v41  ;;  %v3204_v5 = vadd.f32 %v15063_v18, %v12295_v58  ;;  %v15064_v49 = vld [vmem:[#allocation47_spill] sm:$0xff] }
 0x666   :  { %8691 = vmatmul.msk.bf16.gmra.mxu3 %vm463_vm1, %v12606_v31  ;;  %4006 = vmatmul.bf16.gmra.mxu2 %v15057_v20 }
 0x667   :  { %v3287_v21 = vpop.f32.mrf.mxu1  ;;  %4627 = vmatpush.bf16.msrb.mxu1 %v8921_v32  ;;  %v9640_v32 = vld [vmem:[#allocation9 + $0x74] sm:$0xf] }
 0x668   :  { %v3288_v27 = vadd.f32 %v3287_v21, %v3199_v53 }
 0x669   :  { %v3531_v26 = vpop.f32.mrf.mxu2  ;;  %v12704_v35 = vpop.f32.mrf.mxu3 }
 0x66a   :  { %15058 = vst [vmem:[#allocation41_spill] sm:$0xff] %v12704_v35  ;;  %v12706_v63 = vadd.f32 %v3869_v12, %v3531_v26  ;;  %3942 = vmatmul.bf16.gmra.mxu1 %v12505_v6  ;;  %v3354_v21 = vmax.f32 %v3288_v27, 0.0  ;;  %v8824_v26 = vld [vmem:[#allocation9] sm:$0xf]  ;;  %v9627_v35 = vld [vmem:[#allocation9 + $0x4] sm:$0xf0] }
 0x66b   :  { %v8825_v40 = vor.u32 %v9627_v35, %v8824_v26  ;;  %v3206_v26 = vadd.f32 %v12439_v23, %v12295_v58  ;;  %v12743_v58 = vld [vmem:[%s15066_s5] sm:$0x3] }
 0x66c   :  { %v3879_v27 = vpop.f32.mrf.mxu0 }
 0x66d   :  { %4542 = vmatpush.bf16.msra.mxu0 %v8825_v40 }
 0x66f   :  { %v3289_v31 = vpop.f32.mrf.mxu1 }
 0x670   :  { %v3290_v20 = vadd.f32 %v3289_v31, %v3201_v24  ;;  %v8882_v24 = vld [vmem:[#allocation9 + $0x78] sm:$0xf0] }
 0x671   :  { %v12713_v39 = vpop.f32.mrf.mxu2  ;;  %v12715_v53 = vpop.f32.mrf.mxu3 }
 0x672   :  { %15061 = vst [vmem:[#allocation43_spill] sm:$0xff] %v12713_v39  ;;  %v3356_v12 = vmax.f32 %v3290_v20, 0.0 }
 0x673   :  { %15062 = vst [vmem:[#allocation59_spill] sm:$0xff] %v12715_v53  ;;  %v8885_v53 = vor.u32 %v9640_v32, %v8882_v24  ;;  %v15069_v24 = vld [vmem:[#allocation48_spill] sm:$0xff] }
 0x674   :  { %v12717_v10 = vpack.c.bf16 %v3356_v12, %v3354_v21  ;;  %v9656_v21 = vld [vmem:[#allocation9 + $0xf4] sm:$0xf]  ;;  %v12735_v32 = vpop.f32.mrf.mxu0 }
 0x675   :  { %4713 = vmatpush.bf16.msra.mxu2 %v8885_v53  ;;  %15068 = vst [vmem:[#allocation60_spill] sm:$0xff] %v12735_v32  ;;  %v15073_v32 = vld [vmem:[#allocation36_spill] sm:$0xff] }
 0x676   :  { %8692 = vmatmul.msk.bf16.gmra.mxu3 %vm463_vm1, %v12634_v51  ;;  %4011 = vmatmul.bf16.gmra.mxu2 %v15064_v49  ;;  %v8946_v51 = vld [vmem:[#allocation9 + $0xf8] sm:$0xf0] }
 0x677   :  { %v3292_v31 = vpop.f32.mrf.mxu1  ;;  %v8949_v12 = vor.u32 %v9656_v21, %v8946_v51 }
 0x678   :  { %v3293_v20 = vadd.f32 %v3292_v31, %v3204_v5 }
 0x679   :  { %v3536_v41 = vpop.f32.mrf.mxu2  ;;  %v12724_v39 = vpop.f32.mrf.mxu3  ;;  %4802 = vmatpush.bf16.msrb.mxu3 %v8949_v12 }
 0x67a   :  { %15065 = vst [vmem:[#allocation44_spill] sm:$0xff] %v12724_v39  ;;  %v12726_v35 = vadd.f32 %v3874_v44, %v3536_v41  ;;  %3947 = vmatmul.bf16.gmra.mxu1 %v12536_v28  ;;  %v3358_v41 = vmax.f32 %v3293_v20, 0.0 }
 0x67c   :  { %v3884_v12 = vpop.f32.mrf.mxu0 }
 0x67f   :  { %v3294_v18 = vpop.f32.mrf.mxu1 }
 0x680   :  { %v3295_v40 = vadd.f32 %v3294_v18, %v3206_v26  ;;  %v12752_v26 = vperm.slane %v12743_v58, 0  ;;  %v8912_v18 = vld [vmem:[#allocation9 + $0xb0] sm:$0xf] }
 0x681   :  { %v12731_v49 = vpop.f32.mrf.mxu2  ;;  %v12733_v5 = vpop.f32.mrf.mxu3 }
 0x682   :  { %15067 = vst [vmem:[#allocation47_spill] sm:$0xff] %v12733_v5  ;;  %v3360_v44 = vmax.f32 %v3295_v40, 0.0 }
 0x684   :  { %v12737_v53 = vpack.c.bf16 %v3360_v44, %v3358_v41 }
 0x686   :  { %8693 = vmatmul.msk.bf16.gmra.mxu3 %vm463_vm1, %v12659_v42  ;;  %4016 = vmatmul.bf16.gmra.mxu2 %v15069_v24  ;;  %v9649_v42 = vld [vmem:[#allocation9 + $0xb4] sm:$0xf0] }
 0x687   :  { %v3913_v31 = vpop.f32.mrf.mxu1  ;;  %v8913_v40 = vor.u32 %v9649_v42, %v8912_v18  ;;  %v9638_v18 = vld [vmem:[#allocation9 + $0x64] sm:$0xf]  ;;  %v9008_v42 = vld [vmem:[#allocation10 + $0x70] sm:$0xf] }
 0x688   :  { %v3914_v20 = vadd.f32 %v3913_v31, %v12458_v4  ;;  %v12761_v31 = vpop.f32.mrf.mxu0 }
 0x689   :  { %v3541_v23 = vpop.f32.mrf.mxu2  ;;  %v12745_v21 = vpop.f32.mrf.mxu3  ;;  %4628 = vmatpush.bf16.msrb.mxu1 %v8913_v40  ;;  %15072 = vst [vmem:[#allocation62_spill] sm:$0xff] %v12761_v31 }
 0x68a   :  { %15070 = vst [vmem:[#allocation48_spill] sm:$0xff] %v12745_v21  ;;  %v12747_v51 = vadd.f32 %v3879_v27, %v3541_v23  ;;  %3952 = vmatmul.bf16.gmra.mxu1 %v12567_v43  ;;  %v4177_v44 = vadd.f32 %v12752_v26, %v3914_v20  ;;  %v8874_v20 = vld [vmem:[#allocation9 + $0x68] sm:$0xf0] }
 0x68b   :  { %v8877_v40 = vor.u32 %v9638_v18, %v8874_v20 }
 0x68c   :  { %v4241_v5 = vmax.f32 %v4177_v44, 0.0 }
 0x68d   :  { %4714 = vmatpush.bf16.msra.mxu2 %v8877_v40 }
 0x68f   :  { %v3915_v41 = vpop.f32.mrf.mxu1 }
 0x690   :  { %v3916_v24 = vadd.f32 %v3915_v41, %v12470_v59  ;;  %v9673_v41 = vld [vmem:[#allocation10 + $0x74] sm:$0xf0]  ;;  %v3889_v18 = vpop.f32.mrf.mxu0 }
 0x691   :  { %v12756_v21 = vpop.f32.mrf.mxu2  ;;  %v12758_v27 = vpop.f32.mrf.mxu3 }
 0x692   :  { %15071 = vst [vmem:[#allocation61_spill] sm:$0xff] %v12758_v27  ;;  %v4179_v23 = vadd.f32 %v12752_v26, %v3916_v24  ;;  %v9009_v27 = vor.u32 %v9673_v41, %v9008_v42 }
 0x694   :  { %v4243_v4 = vmax.f32 %v4179_v23, 0.0  ;;  %5185 = vmatpush.bf16.msrb.mxu0 %v9009_v27 }
 0x696   :  { %v12763_v39 = vpack.c.bf16 %v4243_v4, %v4241_v5  ;;  %4021 = vmatmul.bf16.gmra.mxu2 %v15073_v32  ;;  %4090 = vmatmul.bf16.vlgmr.msra.gmra.mxu3 %v12325_v57  ;;  %v9654_v5 = vld [vmem:[#allocation9 + $0xe4] sm:$0xf]  ;;  %v8938_v32 = vld [vmem:[#allocation9 + $0xe8] sm:$0xf0] }
 0x697   :  { %v3918_v59 = vpop.f32.mrf.mxu1  ;;  %v8941_v4 = vor.u32 %v9654_v5, %v8938_v32 }
 0x698   :  { %4543 = vmatmul.bf16.vlgmr.msra.gmra.mxu0 %v12763_v39  ;;  %v3919_v57 = vadd.f32 %v3918_v59, %v12489_v34 }
 0x699   :  { %v3546_v24 = vpop.f32.mrf.mxu2  ;;  %v12768_v44 = vpop.f32.mrf.mxu3  ;;  %4803 = vmatpush.bf16.msrb.mxu3 %v8941_v4  ;;  %v8904_v4 = vld [vmem:[#allocation9 + $0xa0] sm:$0xf] }
 0x69a   :  { %15074 = vst [vmem:[#allocation36_spill] sm:$0xff] %v12768_v44  ;;  %v12770_v23 = vadd.f32 %v3884_v12, %v3546_v24  ;;  %3957 = vmatmul.bf16.gmra.mxu1 %v12599_v22  ;;  %v4181_v20 = vadd.f32 %v12752_v26, %v3919_v57  ;;  %v15076_v44 = vld [vmem:[#allocation37_spill] sm:$0xff] }
 0x69c   :  { %v4245_v24 = vmax.f32 %v4181_v20, 0.0 }
 0x69f   :  { %v3920_v31 = vpop.f32.mrf.mxu1 }
 0x6a0   :  { %v3921_v42 = vadd.f32 %v3920_v31, %v12501_v45  ;;  %v12788_v45 = vpop.f32.mrf.mxu0 }
 0x6a1   :  { %v12776_v41 = vpop.f32.mrf.mxu2  ;;  %v12778_v40 = vpop.f32.mrf.mxu3 }
 0x6a2   :  { %15075 = vst [vmem:[#allocation63_spill] sm:$0xff] %v12778_v40  ;;  %v4183_v12 = vadd.f32 %v12752_v26, %v3921_v42 }
 0x6a4   :  { %v4247_v27 = vmax.f32 %v4183_v12, 0.0 }
 0x6a6   :  { %4026 = vmatmul.bf16.gmra.mxu2 %v15076_v44  ;;  %4095 = vmatmul.bf16.gmra.mxu3 %v12356_v11  ;;  %v12783_v34 = vpack.c.bf16 %v4247_v27, %v4245_v24  ;;  %v9647_v44 = vld [vmem:[#allocation9 + $0xa4] sm:$0xf0] }
 0x6a7   :  { %v3923_v59 = vpop.f32.mrf.mxu1  ;;  %v8905_v20 = vor.u32 %v9647_v44, %v8904_v4  ;;  %v8866_v4 = vld [vmem:[#allocation9 + $0x58] sm:$0xf0] }
 0x6a8   :  { %15077 = vst [vmem:[#allocation37_spill] sm:$0xff] %v12783_v34  ;;  %4548 = vmatmul.bf16.gmra.mxu0 %v12783_v34  ;;  %v3924_v32 = vadd.f32 %v3923_v59, %v12520_v37  ;;  %v15080_v34 = vld [vmem:[#allocation39_spill] sm:$0xff]  ;;  %v9636_v59 = vld [vmem:[#allocation9 + $0x54] sm:$0xf] }
 0x6a9   :  { %v3551_v57 = vpop.f32.mrf.mxu2  ;;  %v12786_v5 = vpop.f32.mrf.mxu3  ;;  %4629 = vmatpush.bf16.msrb.mxu1 %v8905_v20  ;;  %v9671_v20 = vld [vmem:[#allocation10 + $0x64] sm:$0xf0] }
 0x6aa   :  { %15078 = vst [vmem:[#allocation64_spill] sm:$0xff] %v12786_v5  ;;  %v12790_v31 = vadd.f32 %v3889_v18, %v3551_v57  ;;  %3962 = vmatmul.bf16.gmra.mxu1 %v12629_v52  ;;  %v4185_v42 = vadd.f32 %v12752_v26, %v3924_v32  ;;  %v3894_v57 = vpop.f32.mrf.mxu0  ;;  %v9000_v32 = vld [vmem:[#allocation10 + $0x60] sm:$0xf] }
 0x6ac   :  { %v4249_v5 = vmax.f32 %v4185_v42, 0.0 }
 0x6af   :  { %v3925_v11 = vpop.f32.mrf.mxu1 }
 0x6b0   :  { %v3926_v12 = vadd.f32 %v3925_v11, %v12532_v60  ;;  %v8869_v60 = vor.u32 %v9636_v59, %v8866_v4  ;;  %v9001_v11 = vor.u32 %v9671_v20, %v9000_v32 }
 0x6b1   :  { %v12796_v24 = vpop.f32.mrf.mxu2  ;;  %v12798_v27 = vpop.f32.mrf.mxu3 }
 0x6b2   :  { %15079 = vst [vmem:[#allocation65_spill] sm:$0xff] %v12798_v27  ;;  %v4187_v18 = vadd.f32 %v12752_v26, %v3926_v12  ;;  %4715 = vmatpush.bf16.msra.mxu2 %v8869_v60  ;;  %5186 = vmatpush.bf16.msrb.mxu0 %v9001_v11 }
 0x6b4   :  { %v4251_v40 = vmax.f32 %v4187_v18, 0.0  ;;  %v12812_v18 = vpop.f32.mrf.mxu0 }
 0x6b6   :  { %4031 = vmatmul.bf16.gmra.mxu2 %v15080_v34  ;;  %4100 = vmatmul.bf16.gmra.mxu3 %v12385_v30  ;;  %v12803_v37 = vpack.c.bf16 %v4251_v40, %v4249_v5  ;;  %v9652_v40 = vld [vmem:[#allocation9 + $0xd4] sm:$0xf]  ;;  %v8930_v34 = vld [vmem:[#allocation9 + $0xd8] sm:$0xf0] }
 0x6b7   :  { %v3928_v44 = vpop.f32.mrf.mxu1  ;;  %v8933_v5 = vor.u32 %v9652_v40, %v8930_v34 }
 0x6b8   :  { %4553 = vmatmul.bf16.gmra.mxu0 %v12803_v37  ;;  %v3929_v30 = vadd.f32 %v3928_v44, %v12551_v54  ;;  %v15083_v54 = vld [vmem:[#allocation42_spill] sm:$0xff] }
 0x6b9   :  { %v3556_v27 = vpop.f32.mrf.mxu2  ;;  %v12806_v12 = vpop.f32.mrf.mxu3  ;;  %4804 = vmatpush.bf16.msrb.mxu3 %v8933_v5 }
 0x6ba   :  { %15081 = vst [vmem:[#allocation39_spill] sm:$0xff] %v12806_v12  ;;  %v12808_v42 = vadd.f32 %v3894_v57, %v3556_v27  ;;  %3967 = vmatmul.bf16.gmra.mxu1 %v12652_v2  ;;  %v4189_v4 = vadd.f32 %v12752_v26, %v3929_v30 }
 0x6bc   :  { %v4253_v60 = vmax.f32 %v4189_v4, 0.0  ;;  %v3899_v34 = vpop.f32.mrf.mxu0  ;;  %v8896_v4 = vld [vmem:[#allocation9 + $0x90] sm:$0xf] }
 0x6bf   :  { %v3930_v59 = vpop.f32.mrf.mxu1 }
 0x6c0   :  { %v3931_v32 = vadd.f32 %v3930_v59, %v12563_v14 }
 0x6c1   :  { %v12816_v20 = vpop.f32.mrf.mxu2  ;;  %v12818_v27 = vpop.f32.mrf.mxu3 }
 0x6c2   :  { %15082 = vst [vmem:[#allocation66_spill] sm:$0xff] %v12818_v27  ;;  %v4191_v57 = vadd.f32 %v12752_v26, %v3931_v32  ;;  %v9645_v32 = vld [vmem:[#allocation9 + $0x94] sm:$0xf0] }
 0x6c4   :  { %v4255_v11 = vmax.f32 %v4191_v57, 0.0  ;;  %v8897_v57 = vor.u32 %v9645_v32, %v8896_v4  ;;  %v8992_v4 = vld [vmem:[#allocation10 + $0x50] sm:$0xf] }
 0x6c6   :  { %4036 = vmatmul.bf16.gmra.mxu2 %v15083_v54  ;;  %4105 = vmatmul.bf16.gmra.mxu3 %v12414_v29  ;;  %v12823_v44 = vpack.c.bf16 %v4255_v11, %v4253_v60  ;;  %v3847_v29 = vadd.f32 %v12525_v33, %v12595_v38  ;;  %v9634_v33 = vld [vmem:[#allocation9 + $0x44] sm:$0xf]  ;;  %v8858_v38 = vld [vmem:[#allocation9 + $0x48] sm:$0xf0] }
 0x6c7   :  { %v3933_v40 = vpop.f32.mrf.mxu1  ;;  %4630 = vmatpush.bf16.msrb.mxu1 %v8897_v57  ;;  %v9669_v57 = vld [vmem:[#allocation10 + $0x54] sm:$0xf0] }
 0x6c8   :  { %4558 = vmatmul.bf16.gmra.mxu0 %v12823_v44  ;;  %v3934_v59 = vadd.f32 %v3933_v40, %v12584_v61  ;;  %v15085_v61 = vld [vmem:[#allocation49_spill] sm:$0xff] }
 0x6c9   :  { %v3561_v30 = vpop.f32.mrf.mxu2  ;;  %v12826_v14 = vpop.f32.mrf.mxu3 }
 0x6ca   :  { %15084 = vst [vmem:[#allocation42_spill] sm:$0xff] %v12826_v14  ;;  %v12828_v5 = vadd.f32 %v3899_v34, %v3561_v30  ;;  %3972 = vmatmul.bf16.gmra.mxu1 %v12677_v62  ;;  %v4193_v11 = vadd.f32 %v12752_v26, %v3934_v59  ;;  %v8861_v59 = vor.u32 %v9634_v33, %v8858_v38 }
 0x6cc   :  { %v4257_v30 = vmax.f32 %v4193_v11, 0.0  ;;  %4716 = vmatpush.bf16.msra.mxu2 %v8861_v59  ;;  %v8922_v11 = vld [vmem:[#allocation9 + $0xc8] sm:$0xf0] }
 0x6cf   :  { %v3935_v60 = vpop.f32.mrf.mxu1 }
 0x6d0   :  { %v3936_v54 = vadd.f32 %v3935_v60, %v3847_v29  ;;  %v8993_v29 = vor.u32 %v9669_v57, %v8992_v4 }
 0x6d1   :  { %v12835_v27 = vpop.f32.mrf.mxu2  ;;  %v12837_v14 = vpop.f32.mrf.mxu3 }
 0x6d2   :  { %v4195_v34 = vadd.f32 %v12752_v26, %v3936_v54  ;;  %5187 = vmatpush.bf16.msrb.mxu0 %v8993_v29 }
 0x6d4   :  { %v4259_v12 = vmax.f32 %v4195_v34, 0.0 }
 0x6d6   :  { %4041 = vmatmul.bf16.gmra.mxu2 %v15085_v61  ;;  %4110 = vmatmul.bf16.gmra.mxu3 %v12443_v15  ;;  %v12842_v40 = vpack.c.bf16 %v4259_v12, %v4257_v30  ;;  %v9650_v12 = vld [vmem:[#allocation9 + $0xc4] sm:$0xf]  ;;  %v3852_v30 = vadd.f32 %v12556_v7, %v12623_v1 }
 0x6d7   :  { %v3938_v32 = vpop.f32.mrf.mxu1  ;;  %v8925_v34 = vor.u32 %v9650_v12, %v8922_v11  ;;  %v8888_v11 = vld [vmem:[#allocation9 + $0x80] sm:$0xf] }
 0x6d8   :  { %4563 = vmatmul.bf16.gmra.mxu0 %v12842_v40  ;;  %v3939_v15 = vadd.f32 %v3938_v32, %v12618_v8  ;;  %v15088_v8 = vld [vmem:[#allocation50_spill] sm:$0xff] }
 0x6d9   :  { %v12845_v60 = vpop.f32.mrf.mxu3  ;;  %v12847_v54 = vpop.f32.mrf.mxu2  ;;  %4805 = vmatpush.bf16.msrb.mxu3 %v8925_v34  ;;  %v9643_v34 = vld [vmem:[#allocation9 + $0x84] sm:$0xf0] }
 0x6da   :  { %15086 = vst [vmem:[#allocation49_spill] sm:$0xff] %v12845_v60  ;;  %3977 = vmatmul.bf16.gmra.mxu1 %v12697_v3  ;;  %v4197_v33 = vadd.f32 %v12752_v26, %v3939_v15 }
 0x6dc   :  { %v4261_v29 = vmax.f32 %v4197_v33, 0.0 }
 0x6df   :  { %v3940_v61 = vpop.f32.mrf.mxu1 }
 0x6e0   :  { %v3941_v38 = vadd.f32 %v3940_v61, %v3852_v30  ;;  %v8889_v30 = vor.u32 %v9643_v34, %v8888_v11  ;;  %v3857_v61 = vadd.f32 %v12593_v9, %v12648_v19  ;;  %v9632_v9 = vld [vmem:[#allocation9 + $0x34] sm:$0xf]  ;;  %v8850_v19 = vld [vmem:[#allocation9 + $0x38] sm:$0xf0]  ;;  %v9667_v34 = vld [vmem:[#allocation10 + $0x44] sm:$0xf0] }
 0x6e1   :  { %v12854_v4 = vpop.f32.mrf.mxu3  ;;  %v12856_v57 = vpop.f32.mrf.mxu2 }
 0x6e2   :  { %15087 = vst [vmem:[#allocation67_spill] sm:$0xff] %v12854_v4  ;;  %v4199_v59 = vadd.f32 %v12752_v26, %v3941_v38  ;;  %4631 = vmatpush.bf16.msrb.mxu1 %v8889_v30  ;;  %v9626_v4 = vld [vmem:[#allocation9 + $0x4] sm:$0xf] }
 0x6e4   :  { %v4263_v60 = vmax.f32 %v4199_v59, 0.0 }
 0x6e6   :  { %4046 = vmatmul.bf16.gmra.mxu2 %v15088_v8  ;;  %4115 = vmatmul.bf16.gmra.mxu3 %v12474_v50  ;;  %v12861_v32 = vpack.c.bf16 %v4263_v60, %v4261_v29 }
 0x6e7   :  { %v3943_v7 = vpop.f32.mrf.mxu1 }
 0x6e8   :  { %4568 = vmatmul.bf16.gmra.mxu0 %v12861_v32  ;;  %v3944_v12 = vadd.f32 %v3943_v7, %v12643_v47  ;;  %v8984_v7 = vld [vmem:[#allocation10 + $0x40] sm:$0xf] }
 0x6e9   :  { %v12864_v1 = vpop.f32.mrf.mxu3  ;;  %v12866_v15 = vpop.f32.mrf.mxu2  ;;  %v8985_v30 = vor.u32 %v9667_v34, %v8984_v7 }
 0x6ea   :  { %15089 = vst [vmem:[#allocation50_spill] sm:$0xff] %v12864_v1  ;;  %3982 = vmatmul.bf16.gmra.mxu1 %v12717_v10  ;;  %v4201_v60 = vadd.f32 %v12752_v26, %v3944_v12  ;;  %v8853_v12 = vor.u32 %v9632_v9, %v8850_v19 }
 0x6eb   :  { %5188 = vmatpush.bf16.msrb.mxu0 %v8985_v30 }
 0x6ec   :  { %v4265_v8 = vmax.f32 %v4201_v60, 0.0  ;;  %4717 = vmatpush.bf16.msra.mxu2 %v8853_v12 }
 0x6ef   :  { %v3945_v50 = vpop.f32.mrf.mxu1 }
 0x6f0   :  { %v3946_v33 = vadd.f32 %v3945_v50, %v3857_v61 }
 0x6f1   :  { %v12873_v38 = vpop.f32.mrf.mxu3  ;;  %v12875_v59 = vpop.f32.mrf.mxu2 }
 0x6f2   :  { %15090 = vst [vmem:[#allocation68_spill] sm:$0xff] %v12873_v38  ;;  %v4203_v29 = vadd.f32 %v12752_v26, %v3946_v33  ;;  %v3862_v33 = vadd.f32 %v12627_v17, %v12673_v56  ;;  %v15103_v38 = vld [vmem:[#allocation54_spill] sm:$0xff] }
 0x6f4   :  { %v4267_v1 = vmax.f32 %v4203_v29, 0.0 }
 0x6f6   :  { %4051 = vmatmul.bf16.gmra.mxu2 %v12445_v46  ;;  %4120 = vmatmul.bf16.gmra.mxu3 %v12505_v6  ;;  %v12880_v47 = vpack.c.bf16 %v4267_v1, %v4265_v8  ;;  %v9648_v6 = vld [vmem:[#allocation9 + $0xb4] sm:$0xf]  ;;  %v8914_v1 = vld [vmem:[#allocation9 + $0xb8] sm:$0xf0] }
 0x6f7   :  { %v3948_v11 = vpop.f32.mrf.mxu1  ;;  %v8917_v60 = vor.u32 %v9648_v6, %v8914_v1  ;;  %v12907_v6 = vpop.f32.mrf.mxu0  ;;  %v3867_v1 = vadd.f32 %v12656_v0, %v12693_v13  ;;  %v9630_v13 = vld [vmem:[#allocation9 + $0x24] sm:$0xf] }
 0x6f8   :  { %4573 = vmatmul.bf16.gmra.mxu0 %v12880_v47  ;;  %v3949_v46 = vadd.f32 %v3948_v11, %v12668_v36 }
 0x6f9   :  { %v12883_v61 = vpop.f32.mrf.mxu3  ;;  %v12885_v50 = vpop.f32.mrf.mxu2  ;;  %4806 = vmatpush.bf16.msrb.mxu3 %v8917_v60  ;;  %v9072_v60 = vld [vmem:[#allocation10 + $0xf0] sm:$0xf] }
 0x6fa   :  { %15091 = vst [vmem:[#allocation69_spill] sm:$0xff] %v12883_v61  ;;  %3987 = vmatmul.bf16.gmra.mxu1 %v12737_v53  ;;  %v4205_v8 = vadd.f32 %v12752_v26, %v3949_v46 }
 0x6fc   :  { %v4269_v34 = vmax.f32 %v4205_v8, 0.0 }
 0x6ff   :  { %v3950_v29 = vpop.f32.mrf.mxu1 }
 0x700   :  { %v3951_v9 = vadd.f32 %v3950_v29, %v3862_v33 }
 0x701   :  { %v12892_v19 = vpop.f32.mrf.mxu3  ;;  %v12894_v7 = vpop.f32.mrf.mxu2 }
 0x702   :  { %15092 = vst [vmem:[#allocation70_spill] sm:$0xff] %v12892_v19  ;;  %v4207_v12 = vadd.f32 %v12752_v26, %v3951_v9 }
 0x704   :  { %v4271_v30 = vmax.f32 %v4207_v12, 0.0 }
 0x706   :  { %4056 = vmatmul.bf16.gmra.mxu2 %v12476_v48  ;;  %4125 = vmatmul.bf16.gmra.mxu3 %v12536_v28  ;;  %v12899_v36 = vpack.c.bf16 %v4271_v30, %v4269_v34  ;;  %v9689_v48 = vld [vmem:[#allocation10 + $0xf4] sm:$0xf0] }
 0x707   :  { %v3953_v17 = vpop.f32.mrf.mxu1  ;;  %v9073_v28 = vor.u32 %v9689_v48, %v9072_v60 }
 0x708   :  { %4578 = vmatmul.bf16.gmra.mxu0 %v12899_v36  ;;  %v3954_v46 = vadd.f32 %v3953_v17, %v12688_v55 }
 0x709   :  { %v12902_v56 = vpop.f32.mrf.mxu3  ;;  %v12904_v11 = vpop.f32.mrf.mxu2  ;;  %5274 = vmatpush.bf16.msra.mxu1 %v9073_v28 }
 0x70a   :  { %15093 = vst [vmem:[#allocation71_spill] sm:$0xff] %v12902_v56  ;;  %v4209_v29 = vadd.f32 %v12752_v26, %v3954_v46  ;;  %v8842_v46 = vld [vmem:[#allocation9 + $0x28] sm:$0xf0] }
 0x70b   :  { %v8845_v48 = vor.u32 %v9630_v13, %v8842_v46  ;;  %v15096_v13 = vld [vmem:[#allocation43_spill] sm:$0xff]  ;;  %v15097_v46 = vld [vmem:[#allocation58_spill] sm:$0xff] }
 0x70c   :  { %v4273_v55 = vmax.f32 %v4209_v29, 0.0  ;;  %v3872_v56 = vadd.f32 %v15097_v46, %v15096_v13 }
 0x70d   :  { %4718 = vmatpush.bf16.msra.mxu2 %v8845_v48  ;;  %v15098_v48 = vld [vmem:[#allocation51_spill] sm:$0xff] }
 0x70f   :  { %v3955_v33 = vpop.f32.mrf.mxu1 }
 0x710   :  { %v3956_v8 = vadd.f32 %v3955_v33, %v3867_v1  ;;  %v8976_v1 = vld [vmem:[#allocation10 + $0x30] sm:$0xf]  ;;  %v9665_v33 = vld [vmem:[#allocation10 + $0x34] sm:$0xf0] }
 0x711   :  { %v12912_v9 = vpop.f32.mrf.mxu3  ;;  %v12914_v12 = vpop.f32.mrf.mxu2  ;;  %v8977_v28 = vor.u32 %v9665_v33, %v8976_v1  ;;  %v12934_v1 = vperm.slane %v12743_v58, 1 }
 0x712   :  { %15094 = vst [vmem:[#allocation72_spill] sm:$0xff] %v12912_v9  ;;  %v4211_v34 = vadd.f32 %v12752_v26, %v3956_v8 }
 0x713   :  { %5189 = vmatpush.bf16.msrb.mxu0 %v8977_v28  ;;  %v4005_v28 = vadd.f32 %v12856_v57, %v15098_v48  ;;  %v15099_v57 = vld [vmem:[#allocation45_spill] sm:$0xff] }
 0x714   :  { %v4275_v30 = vmax.f32 %v4211_v34, 0.0  ;;  %v9646_v34 = vld [vmem:[#allocation9 + $0xa4] sm:$0xf] }
 0x715   :  { %v12917_v17 = vpop.f32.mrf.mxu0 }
 0x716   :  { %4061 = vmatmul.bf16.gmra.mxu2 %v12507_v25  ;;  %4130 = vmatmul.bf16.gmra.mxu3 %v12567_v43  ;;  %v12921_v0 = vpack.c.bf16 %v4275_v30, %v4273_v55  ;;  %v4003_v25 = vadd.f32 %v12847_v54, %v12581_v16  ;;  %v8906_v55 = vld [vmem:[#allocation9 + $0xa8] sm:$0xf0] }
 0x717   :  { %v3958_v60 = vpop.f32.mrf.mxu1  ;;  %v8909_v9 = vor.u32 %v9646_v34, %v8906_v55 }
 0x718   :  { %15095 = vst [vmem:[#allocation73_spill] sm:$0xff] %v12921_v0  ;;  %4583 = vmatmul.bf16.gmra.mxu0 %v12921_v0  ;;  %v3959_v43 = vadd.f32 %v3958_v60, %v12706_v63  ;;  %v8826_v0 = vld [vmem:[#allocation9 + $0x8] sm:$0xf0] }
 0x719   :  { %v12924_v8 = vpop.f32.mrf.mxu2  ;;  %v4091_v29 = vpop.f32.mrf.mxu3  ;;  %4807 = vmatpush.bf16.msrb.mxu3 %v8909_v9 }
 0x71a   :  { %v4092_v19 = vadd.f32 %v4091_v29, %v4003_v25  ;;  %v4213_v16 = vadd.f32 %v12752_v26, %v3959_v43 }
 0x71c   :  { %v4178_v34 = vadd.f32 %v12934_v1, %v4092_v19  ;;  %v4277_v29 = vmax.f32 %v4213_v16, 0.0 }
 0x71d   :  { %v12929_v30 = vpop.f32.mrf.mxu0 }
 0x71e   :  { %v4242_v9 = vmax.f32 %v4178_v34, 0.0  ;;  %v8834_v34 = vld [vmem:[#allocation9 + $0x18] sm:$0xf0] }
 0x71f   :  { %v3960_v33 = vpop.f32.mrf.mxu1 }
 0x720   :  { %v3961_v63 = vadd.f32 %v3960_v33, %v3872_v56 }
 0x721   :  { %v12939_v54 = vpop.f32.mrf.mxu2  ;;  %v4093_v60 = vpop.f32.mrf.mxu3 }
 0x722   :  { %v4215_v55 = vadd.f32 %v12752_v26, %v3961_v63  ;;  %v4094_v13 = vadd.f32 %v4093_v60, %v4005_v28  ;;  %v15101_v28 = vld [vmem:[#allocation53_spill] sm:$0xff] }
 0x723   :  { %v4008_v16 = vadd.f32 %v12866_v15, %v15101_v28 }
 0x724   :  { %v4279_v25 = vmax.f32 %v4215_v55, 0.0  ;;  %v4180_v58 = vadd.f32 %v12934_v1, %v4094_v13  ;;  %v15102_v55 = vld [vmem:[#allocation35_spill] sm:$0xff] }
 0x725   :  { %v12944_v46 = vpop.f32.mrf.mxu0 }
 0x726   :  { %v4244_v61 = vmax.f32 %v4180_v58, 0.0  ;;  %4066 = vmatmul.bf16.gmra.mxu2 %v15099_v57  ;;  %4135 = vmatmul.bf16.gmra.mxu3 %v12599_v22  ;;  %v12948_v56 = vpack.c.bf16 %v4279_v25, %v4277_v29  ;;  %v9628_v22 = vld [vmem:[#allocation9 + $0x14] sm:$0xf]  ;;  %v9064_v29 = vld [vmem:[#allocation10 + $0xe0] sm:$0xf] }
 0x727   :  { %v3963_v43 = vpop.f32.mrf.mxu1  ;;  %v9687_v25 = vld [vmem:[#allocation10 + $0xe4] sm:$0xf0]  ;;  %v8837_v58 = vor.u32 %v9628_v22, %v8834_v34  ;;  %v8829_v22 = vor.u32 %v9626_v4, %v8826_v0 }
 0x728   :  { %15100 = vst [vmem:[#allocation43_spill] sm:$0xff] %v12948_v56  ;;  %v12950_v33 = vpack.c.bf16 %v4244_v61, %v4242_v9  ;;  %4588 = vmatmul.bf16.gmra.mxu0 %v12948_v56  ;;  %v3964_v63 = vadd.f32 %v3963_v43, %v12726_v35  ;;  %v3877_v61 = vadd.f32 %v15102_v55, %v12731_v49 }
 0x729   :  { %v12953_v19 = vpop.f32.mrf.mxu2  ;;  %v4096_v48 = vpop.f32.mrf.mxu3  ;;  %v9065_v57 = vor.u32 %v9687_v25, %v9064_v29  ;;  %v4010_v56 = vadd.f32 %v12875_v59, %v15103_v38  ;;  %4719 = vmatpush.bf16.msra.mxu2 %v8837_v58  ;;  %v15104_v29 = vld [vmem:[#allocation46_spill] sm:$0xff]  ;;  %v9663_v58 = vld [vmem:[#allocation10 + $0x24] sm:$0xf0] }
 0x72a   :  { %4632 = vmatmul.bf16.vlgmr.msrb.gmra.mxu1 %v12950_v33  ;;  %v4097_v13 = vadd.f32 %v4096_v48, %v4008_v16  ;;  %v4217_v15 = vadd.f32 %v12752_v26, %v3964_v63 }
 0x72b   :  { %5275 = vmatpush.bf16.msra.mxu1 %v9065_v57 }
 0x72c   :  { %v4182_v49 = vadd.f32 %v12934_v1, %v4097_v13  ;;  %v4281_v34 = vmax.f32 %v4217_v15, 0.0  ;;  %v8968_v13 = vld [vmem:[#allocation10 + $0x20] sm:$0xf]  ;;  %v15105_v15 = vld [vmem:[#allocation55_spill] sm:$0xff] }
 0x72d   :  { %v12959_v60 = vpop.f32.mrf.mxu0  ;;  %4720 = vmatpush.bf16.msra.mxu2 %v8829_v22  ;;  %v15106_v22 = vld [vmem:[#allocation60_spill] sm:$0xff] }
 0x72e   :  { %v4246_v63 = vmax.f32 %v4182_v49, 0.0  ;;  %v8898_v49 = vld [vmem:[#allocation9 + $0x98] sm:$0xf0] }
 0x72f   :  { %v3965_v9 = vpop.f32.mrf.mxu1 }
 0x730   :  { %v3966_v28 = vadd.f32 %v3965_v9, %v3877_v61 }
 0x731   :  { %v12966_v35 = vpop.f32.mrf.mxu2  ;;  %v4098_v43 = vpop.f32.mrf.mxu3 }
 0x732   :  { %v4219_v48 = vadd.f32 %v12752_v26, %v3966_v28  ;;  %v4099_v16 = vadd.f32 %v4098_v43, %v4010_v56  ;;  %v8969_v56 = vor.u32 %v9663_v58, %v8968_v13  ;;  %v4013_v28 = vadd.f32 %v12885_v50, %v15105_v15  ;;  %v9644_v43 = vld [vmem:[#allocation9 + $0x94] sm:$0xf] }
 0x734   :  { %v4283_v55 = vmax.f32 %v4219_v48, 0.0  ;;  %v4184_v38 = vadd.f32 %v12934_v1, %v4099_v16  ;;  %5190 = vmatpush.bf16.msrb.mxu0 %v8969_v56  ;;  %v8901_v16 = vor.u32 %v9644_v43, %v8898_v49 }
 0x735   :  { %v12971_v59 = vpop.f32.mrf.mxu0 }
 0x736   :  { %v4248_v61 = vmax.f32 %v4184_v38, 0.0  ;;  %4071 = vmatmul.bf16.gmra.mxu2 %v15104_v29  ;;  %4140 = vmatmul.bf16.gmra.mxu3 %v12629_v52  ;;  %v12975_v25 = vpack.c.bf16 %v4283_v55, %v4281_v34  ;;  %v3882_v34 = vadd.f32 %v15106_v22, %v12756_v21 }
 0x737   :  { %v3968_v9 = vpop.f32.mrf.mxu1  ;;  %4808 = vmatpush.bf16.msrb.mxu3 %v8901_v16 }
 0x738   :  { %4593 = vmatmul.bf16.gmra.mxu0 %v12975_v25  ;;  %v12978_v4 = vpack.c.bf16 %v4248_v61, %v4246_v63  ;;  %v3969_v52 = vadd.f32 %v3968_v9, %v12747_v51  ;;  %v15107_v63 = vld [vmem:[#allocation56_spill] sm:$0xff] }
 0x739   :  { %v12980_v0 = vpop.f32.mrf.mxu2  ;;  %v4101_v57 = vpop.f32.mrf.mxu3  ;;  %v4015_v61 = vadd.f32 %v12894_v7, %v15107_v63  ;;  %v15108_v7 = vld [vmem:[#allocation52_spill] sm:$0xff] }
 0x73a   :  { %4637 = vmatmul.bf16.gmra.mxu1 %v12978_v4  ;;  %v4102_v55 = vadd.f32 %v4101_v57, %v4013_v28  ;;  %v4221_v29 = vadd.f32 %v12752_v26, %v3969_v52 }
 0x73c   :  { %v4186_v58 = vadd.f32 %v12934_v1, %v4102_v55  ;;  %v4285_v15 = vmax.f32 %v4221_v29, 0.0 }
 0x73d   :  { %v12986_v48 = vpop.f32.mrf.mxu0 }
 0x73e   :  { %v4250_v28 = vmax.f32 %v4186_v58, 0.0  ;;  %v9056_v58 = vld [vmem:[#allocation10 + $0xd0] sm:$0xf] }
 0x73f   :  { %v3970_v38 = vpop.f32.mrf.mxu1 }
 0x740   :  { %v3971_v13 = vadd.f32 %v3970_v38, %v3882_v34  ;;  %v15109_v38 = vld [vmem:[#allocation57_spill] sm:$0xff] }
 0x741   :  { %v12993_v50 = vpop.f32.mrf.mxu2  ;;  %v4103_v51 = vpop.f32.mrf.mxu3  ;;  %v4018_v63 = vadd.f32 %v12904_v11, %v15109_v38 }
 0x742   :  { %v4223_v9 = vadd.f32 %v12752_v26, %v3971_v13  ;;  %v4104_v56 = vadd.f32 %v4103_v51, %v4015_v61 }
 0x744   :  { %v4287_v43 = vmax.f32 %v4223_v9, 0.0  ;;  %v4188_v21 = vadd.f32 %v12934_v1, %v4104_v56  ;;  %v9685_v9 = vld [vmem:[#allocation10 + $0xd4] sm:$0xf0] }
 0x745   :  { %v12998_v57 = vpop.f32.mrf.mxu0 }
 0x746   :  { %v4252_v49 = vmax.f32 %v4188_v21, 0.0  ;;  %4076 = vmatmul.bf16.gmra.mxu2 %v15108_v7  ;;  %4145 = vmatmul.bf16.gmra.mxu3 %v12652_v2  ;;  %v13002_v52 = vpack.c.bf16 %v4287_v43, %v4285_v15  ;;  %v15110_v2 = vld [vmem:[#allocation62_spill] sm:$0xff]  ;;  %v9057_v15 = vor.u32 %v9685_v9, %v9056_v58  ;;  %v9661_v9 = vld [vmem:[#allocation10 + $0x14] sm:$0xf0] }
 0x747   :  { %v3973_v16 = vpop.f32.mrf.mxu1  ;;  %v3887_v13 = vadd.f32 %v15110_v2, %v12776_v41  ;;  %v15111_v43 = vld [vmem:[#allocation38_spill] sm:$0xff] }
 0x748   :  { %4598 = vmatmul.bf16.gmra.mxu0 %v13002_v52  ;;  %v13005_v22 = vpack.c.bf16 %v4252_v49, %v4250_v28  ;;  %v3974_v61 = vadd.f32 %v3973_v16, %v12770_v23  ;;  %v4020_v21 = vadd.f32 %v12914_v12, %v15111_v43  ;;  %5276 = vmatpush.bf16.msra.mxu1 %v9057_v15 }
 0x749   :  { %v13007_v34 = vpop.f32.mrf.mxu2  ;;  %v4106_v55 = vpop.f32.mrf.mxu3 }
 0x74a   :  { %4642 = vmatmul.bf16.gmra.mxu1 %v13005_v22  ;;  %v4107_v51 = vadd.f32 %v4106_v55, %v4018_v63  ;;  %v4225_v28 = vadd.f32 %v12752_v26, %v3974_v61 }
 0x74c   :  { %v4190_v23 = vadd.f32 %v12934_v1, %v4107_v51  ;;  %v4289_v55 = vmax.f32 %v4225_v28, 0.0  ;;  %v15112_v28 = vld [vmem:[#allocation34_spill] sm:$0xff] }
 0x74d   :  { %v13013_v29 = vpop.f32.mrf.mxu0 }
 0x74e   :  { %v4254_v58 = vmax.f32 %v4190_v23, 0.0 }
 0x74f   :  { %v3975_v56 = vpop.f32.mrf.mxu1 }
 0x750   :  { %v3976_v49 = vadd.f32 %v3975_v56, %v3887_v13  ;;  %v8960_v13 = vld [vmem:[#allocation10 + $0x10] sm:$0xf] }
 0x751   :  { %v13020_v7 = vpop.f32.mrf.mxu2  ;;  %v4108_v11 = vpop.f32.mrf.mxu3  ;;  %v8961_v56 = vor.u32 %v9661_v9, %v8960_v13 }
 0x752   :  { %v4227_v16 = vadd.f32 %v12752_v26, %v3976_v49  ;;  %v4109_v41 = vadd.f32 %v4108_v11, %v4020_v21  ;;  %v9642_v49 = vld [vmem:[#allocation9 + $0x84] sm:$0xf]  ;;  %v8890_v11 = vld [vmem:[#allocation9 + $0x88] sm:$0xf0] }
 0x753   :  { %5191 = vmatpush.bf16.msrb.mxu0 %v8961_v56 }
 0x754   :  { %v4291_v38 = vmax.f32 %v4227_v16, 0.0  ;;  %v4192_v63 = vadd.f32 %v12934_v1, %v4109_v41  ;;  %v8893_v16 = vor.u32 %v9642_v49, %v8890_v11  ;;  %v3892_v41 = vadd.f32 %v12788_v45, %v12796_v24 }
 0x755   :  { %v13025_v2 = vpop.f32.mrf.mxu0 }
 0x756   :  { %v4256_v12 = vmax.f32 %v4192_v63, 0.0  ;;  %4150 = vmatmul.bf16.gmra.mxu3 %v12677_v62  ;;  %4721 = vmatmul.bf16.vlgmr.msra.gmra.mxu2 %v12763_v39  ;;  %v13029_v61 = vpack.c.bf16 %v4291_v38, %v4289_v55  ;;  %v4023_v62 = vadd.f32 %v12924_v8, %v15112_v28  ;;  %v15113_v63 = vld [vmem:[#allocation40_spill] sm:$0xff] }
 0x757   :  { %v3978_v51 = vpop.f32.mrf.mxu1  ;;  %4809 = vmatpush.bf16.msrb.mxu3 %v8893_v16 }
 0x758   :  { %4603 = vmatmul.bf16.gmra.mxu0 %v13029_v61  ;;  %v13032_v15 = vpack.c.bf16 %v4256_v12, %v4254_v58  ;;  %v3979_v39 = vadd.f32 %v3978_v51, %v12790_v31  ;;  %v4025_v58 = vadd.f32 %v12939_v54, %v15113_v63  ;;  %v15114_v54 = vld [vmem:[#allocation37_spill] sm:$0xff] }
 0x759   :  { %v13034_v43 = vpop.f32.mrf.mxu2  ;;  %v4111_v21 = vpop.f32.mrf.mxu3 }
 0x75a   :  { %4647 = vmatmul.bf16.gmra.mxu1 %v13032_v15  ;;  %v4112_v55 = vadd.f32 %v4111_v21, %v4023_v62  ;;  %v4229_v12 = vadd.f32 %v12752_v26, %v3979_v39 }
 0x75c   :  { %v4194_v9 = vadd.f32 %v12934_v1, %v4112_v55  ;;  %v4293_v28 = vmax.f32 %v4229_v12, 0.0  ;;  %v3897_v12 = vadd.f32 %v12812_v18, %v12816_v20 }
 0x75d   :  { %v13040_v23 = vpop.f32.mrf.mxu0 }
 0x75e   :  { %v4258_v21 = vmax.f32 %v4194_v9, 0.0  ;;  %v9683_v9 = vld [vmem:[#allocation10 + $0xc4] sm:$0xf0] }
 0x75f   :  { %v3980_v38 = vpop.f32.mrf.mxu1 }
 0x760   :  { %v3981_v13 = vadd.f32 %v3980_v38, %v3892_v41  ;;  %v15115_v38 = vld [vmem:[#allocation41_spill] sm:$0xff] }
 0x761   :  { %v13047_v8 = vpop.f32.mrf.mxu2  ;;  %v4113_v31 = vpop.f32.mrf.mxu3  ;;  %v4028_v63 = vadd.f32 %v12953_v19, %v15115_v38 }
 0x762   :  { %v4231_v51 = vadd.f32 %v12752_v26, %v3981_v13  ;;  %v4114_v56 = vadd.f32 %v4113_v31, %v4025_v58  ;;  %v9048_v31 = vld [vmem:[#allocation10 + $0xc0] sm:$0xf] }
 0x764   :  { %v4295_v49 = vmax.f32 %v4231_v51, 0.0  ;;  %v4196_v45 = vadd.f32 %v12934_v1, %v4114_v56  ;;  %v9049_v56 = vor.u32 %v9683_v9, %v9048_v31  ;;  %v9659_v31 = vld [vmem:[#allocation10 + $0x4] sm:$0xf0] }
 0x765   :  { %v13052_v24 = vpop.f32.mrf.mxu0 }
 0x766   :  { %v4260_v62 = vmax.f32 %v4196_v45, 0.0  ;;  %4155 = vmatmul.bf16.gmra.mxu3 %v12697_v3  ;;  %4726 = vmatmul.bf16.gmra.mxu2 %v15114_v54  ;;  %v13056_v39 = vpack.c.bf16 %v4295_v49, %v4293_v28  ;;  %v15116_v28 = vld [vmem:[#allocation59_spill] sm:$0xff] }
 0x767   :  { %v3983_v11 = vpop.f32.mrf.mxu1  ;;  %v4030_v49 = vadd.f32 %v12966_v35, %v15116_v28  ;;  %5277 = vmatpush.bf16.msra.mxu1 %v9049_v56 }
 0x768   :  { %4608 = vmatmul.bf16.gmra.mxu0 %v13056_v39  ;;  %v13059_v16 = vpack.c.bf16 %v4260_v62, %v4258_v21  ;;  %v3984_v58 = vadd.f32 %v3983_v11, %v12808_v42 }
 0x769   :  { %v13061_v41 = vpop.f32.mrf.mxu2  ;;  %v4116_v55 = vpop.f32.mrf.mxu3 }
 0x76a   :  { %4652 = vmatmul.bf16.gmra.mxu1 %v13059_v16  ;;  %v4117_v13 = vadd.f32 %v4116_v55, %v4028_v63  ;;  %v4233_v45 = vadd.f32 %v12752_v26, %v3984_v58 }
 0x76c   :  { %v4198_v42 = vadd.f32 %v12934_v1, %v4117_v13  ;;  %v4297_v20 = vmax.f32 %v4233_v45, 0.0 }
 0x76d   :  { %v13067_v3 = vpop.f32.mrf.mxu0 }
 0x76e   :  { %v4262_v63 = vmax.f32 %v4198_v42, 0.0 }
 0x76f   :  { %v3985_v51 = vpop.f32.mrf.mxu1 }
 0x770   :  { %v3986_v21 = vadd.f32 %v3985_v51, %v3897_v12  ;;  %v8952_v12 = vld [vmem:[#allocation10] sm:$0xf] }
 0x771   :  { %v13074_v62 = vpop.f32.mrf.mxu2  ;;  %v4118_v19 = vpop.f32.mrf.mxu3  ;;  %v8953_v9 = vor.u32 %v9659_v31, %v8952_v12 }
 0x772   :  { %v4235_v54 = vadd.f32 %v12752_v26, %v3986_v21  ;;  %v4119_v18 = vadd.f32 %v4118_v19, %v4030_v49  ;;  %v15117_v49 = vld [vmem:[#allocation44_spill] sm:$0xff]  ;;  %v3902_v21 = vadd.f32 %v12907_v6, %v12835_v27 }
 0x773   :  { %5192 = vmatpush.bf16.msrb.mxu0 %v8953_v9 }
 0x774   :  { %v4299_v11 = vmax.f32 %v4235_v54, 0.0  ;;  %v4200_v55 = vadd.f32 %v12934_v1, %v4119_v18  ;;  %v15118_v54 = vld [vmem:[#allocation47_spill] sm:$0xff] }
 0x775   :  { %v13079_v38 = vpop.f32.mrf.mxu0  ;;  %v4035_v18 = vadd.f32 %v12993_v50, %v15118_v54  ;;  %v9672_v54 = vld [vmem:[#allocation10 + $0x74] sm:$0xf] }
 0x776   :  { %v4264_v35 = vmax.f32 %v4200_v55, 0.0  ;;  %4160 = vmatmul.bf16.gmra.mxu3 %v12717_v10  ;;  %4731 = vmatmul.bf16.gmra.mxu2 %v12803_v37  ;;  %v13083_v58 = vpack.c.bf16 %v4299_v11, %v4297_v20  ;;  %v4033_v10 = vadd.f32 %v12980_v0, %v15117_v49 }
 0x777   :  { %v3988_v13 = vpop.f32.mrf.mxu1 }
 0x778   :  { %4613 = vmatmul.bf16.gmra.mxu0 %v13083_v58  ;;  %v13086_v51 = vpack.c.bf16 %v4264_v35, %v4262_v63  ;;  %v3989_v37 = vadd.f32 %v3988_v13, %v12828_v5 }
 0x779   :  { %v13088_v56 = vpop.f32.mrf.mxu2  ;;  %v4121_v28 = vpop.f32.mrf.mxu3 }
 0x77a   :  { %4657 = vmatmul.bf16.gmra.mxu1 %v13086_v51  ;;  %v4122_v19 = vadd.f32 %v4121_v28, %v4033_v10  ;;  %v4237_v20 = vadd.f32 %v12752_v26, %v3989_v37  ;;  %v15120_v10 = vld [vmem:[#allocation48_spill] sm:$0xff] }
 0x77b   :  { %v4038_v37 = vadd.f32 %v13007_v34, %v15120_v10 }
 0x77c   :  { %v4202_v0 = vadd.f32 %v12934_v1, %v4122_v19  ;;  %v4301_v12 = vmax.f32 %v4237_v20, 0.0  ;;  %v15121_v20 = vld [vmem:[#allocation61_spill] sm:$0xff] }
 0x77d   :  { %v13094_v45 = vpop.f32.mrf.mxu0 }
 0x77e   :  { %v4266_v13 = vmax.f32 %v4202_v0, 0.0 }
 0x77f   :  { %v3990_v42 = vpop.f32.mrf.mxu1 }
 0x780   :  { %v3991_v11 = vadd.f32 %v3990_v42, %v3902_v21  ;;  %v9681_v42 = vld [vmem:[#allocation10 + $0xb4] sm:$0xf0] }
 0x781   :  { %v13101_v55 = vpop.f32.mrf.mxu2  ;;  %v4123_v63 = vpop.f32.mrf.mxu3 }
 0x782   :  { %v4239_v5 = vadd.f32 %v12752_v26, %v3991_v11  ;;  %v4124_v35 = vadd.f32 %v4123_v63, %v4035_v18  ;;  %v9010_v18 = vld [vmem:[#allocation10 + $0x78] sm:$0xf0]  ;;  %v4040_v11 = vadd.f32 %v13020_v7, %v15121_v20  ;;  %v9136_v7 = vld [vmem:[%s15122_s14 + $0x70] sm:$0xf] }
 0x783   :  { %v9013_v63 = vor.u32 %v9672_v54, %v9010_v18  ;;  %v15124_v54 = vld [vmem:[#allocation36_spill] sm:$0xff] }
 0x784   :  { %v4303_v31 = vmax.f32 %v4239_v5, 0.0  ;;  %v4204_v27 = vadd.f32 %v12934_v1, %v4124_v35  ;;  %v4043_v18 = vadd.f32 %v13034_v43, %v15124_v54 }
 0x785   :  { %v13106_v6 = vpop.f32.mrf.mxu0  ;;  %5363 = vmatpush.bf16.msrb.mxu2 %v9013_v63 }
 0x786   :  { %v4268_v9 = vmax.f32 %v4204_v27, 0.0  ;;  %4165 = vmatmul.bf16.gmra.mxu3 %v12737_v53  ;;  %4736 = vmatmul.bf16.gmra.mxu2 %v12823_v44  ;;  %v13110_v50 = vpack.c.bf16 %v4303_v31, %v4301_v12  ;;  %v9040_v53 = vld [vmem:[#allocation10 + $0xb0] sm:$0xf]  ;;  %v9688_v31 = vld [vmem:[#allocation10 + $0xf4] sm:$0xf] }
 0x787   :  { %v9041_v44 = vor.u32 %v9681_v42, %v9040_v53  ;;  %v9074_v27 = vld [vmem:[#allocation10 + $0xf8] sm:$0xf0] }
 0x788   :  { %15119 = vst [vmem:[#allocation58_spill] sm:$0xff] %v13110_v50  ;;  %4618 = vmatmul.bf16.gmra.mxu0 %v13110_v50  ;;  %v13113_v28 = vpack.c.bf16 %v4268_v9, %v4266_v13  ;;  %v9077_v13 = vor.u32 %v9688_v31, %v9074_v27  ;;  %v13150_v31 = vld [vmem:[%s15123_s16] sm:$0x3] }
 0x789   :  { %v13115_v26 = vpop.f32.mrf.mxu2  ;;  %v4126_v49 = vpop.f32.mrf.mxu3  ;;  %5278 = vmatpush.bf16.msra.mxu1 %v9041_v44 }
 0x78a   :  { %4662 = vmatmul.bf16.gmra.mxu1 %v13113_v28  ;;  %v4127_v19 = vadd.f32 %v4126_v49, %v4038_v37  ;;  %5452 = vmatpush.bf16.msra.mxu3 %v9077_v13  ;;  %v9705_v37 = vld [vmem:[%s15122_s14 + $0x74] sm:$0xf0] }
 0x78b   :  { %v9137_v53 = vor.u32 %v9705_v37, %v9136_v7 }
 0x78c   :  { %v4206_v34 = vadd.f32 %v12934_v1, %v4127_v19 }
 0x78d   :  { %v13120_v21 = vpop.f32.mrf.mxu0  ;;  %5835 = vmatpush.bf16.msra.mxu0 %v9137_v53 }
 0x78e   :  { %v4270_v9 = vmax.f32 %v4206_v34, 0.0 }
 0x791   :  { %v13124_v0 = vpop.f32.mrf.mxu2  ;;  %v4128_v5 = vpop.f32.mrf.mxu3 }
 0x792   :  { %v4129_v35 = vadd.f32 %v4128_v5, %v4040_v11 }
 0x794   :  { %v4208_v12 = vadd.f32 %v12934_v1, %v4129_v35 }
 0x795   :  { %v13128_v10 = vpop.f32.mrf.mxu0 }
 0x796   :  { %v4272_v49 = vmax.f32 %v4208_v12, 0.0  ;;  %4741 = vmatmul.bf16.gmra.mxu2 %v12842_v40  ;;  %4810 = vmatmul.bf16.vlgmr.msrb.gmra.mxu3 %v12950_v33  ;;  %v15125_v40 = vld [vmem:[#allocation63_spill] sm:$0xff] }
 0x797   :  { %v4045_v33 = vadd.f32 %v13047_v8, %v15125_v40  ;;  %v13155_v8 = vperm.slane %v13150_v31, 0  ;;  %v9679_v40 = vld [vmem:[#allocation10 + $0xa4] sm:$0xf0] }
 0x798   :  { %v13134_v19 = vpack.c.bf16 %v4272_v49, %v4270_v9 }
 0x799   :  { %v13136_v42 = vpop.f32.mrf.mxu2  ;;  %v4131_v44 = vpop.f32.mrf.mxu3  ;;  %v4545_v53 = vadd.f32 %v12917_v17, %v13155_v8 }
 0x79a   :  { %4667 = vmatmul.bf16.gmra.mxu1 %v13134_v19  ;;  %v4132_v20 = vadd.f32 %v4131_v44, %v4043_v18  ;;  %v15127_v44 = vld [vmem:[#allocation64_spill] sm:$0xff] }
 0x79c   :  { %v4210_v34 = vadd.f32 %v12934_v1, %v4132_v20  ;;  %v9032_v20 = vld [vmem:[#allocation10 + $0xa0] sm:$0xf] }
 0x79d   :  { %v13143_v11 = vpop.f32.mrf.mxu0 }
 0x79e   :  { %v4274_v27 = vmax.f32 %v4210_v34, 0.0  ;;  %v9670_v34 = vld [vmem:[#allocation10 + $0x64] sm:$0xf] }
 0x7a1   :  { %v13145_v63 = vpop.f32.mrf.mxu2  ;;  %v4133_v5 = vpop.f32.mrf.mxu3 }
 0x7a2   :  { %v4134_v35 = vadd.f32 %v4133_v5, %v4045_v33  ;;  %v9033_v5 = vor.u32 %v9679_v40, %v9032_v20 }
 0x7a4   :  { %v4212_v12 = vadd.f32 %v12934_v1, %v4134_v35  ;;  %v9002_v35 = vld [vmem:[#allocation10 + $0x68] sm:$0xf0]  ;;  %5279 = vmatpush.bf16.msra.mxu1 %v9033_v5 }
 0x7a5   :  { %v13161_v37 = vpop.f32.mrf.mxu0  ;;  %v9005_v50 = vor.u32 %v9670_v34, %v9002_v35 }
 0x7a6   :  { %v4276_v13 = vmax.f32 %v4212_v12, 0.0  ;;  %4746 = vmatmul.bf16.gmra.mxu2 %v12861_v32  ;;  %4815 = vmatmul.bf16.gmra.mxu3 %v12978_v4  ;;  %15126 = vst [vmem:[#allocation51_spill] sm:$0xff] %v13161_v37  ;;  %v4048_v32 = vadd.f32 %v13061_v41, %v15127_v44  ;;  %v4547_v4 = vadd.f32 %v12929_v30, %v13155_v8  ;;  %v15128_v12 = vld [vmem:[#allocation65_spill] sm:$0xff]  ;;  %v9066_v44 = vld [vmem:[#allocation10 + $0xe8] sm:$0xf0] }
 0x7a7   :  { %v4633_v43 = vpop.f32.mrf.mxu1  ;;  %5364 = vmatpush.bf16.msrb.mxu2 %v9005_v50  ;;  %v9128_v50 = vld [vmem:[%s15122_s14 + $0x60] sm:$0xf] }
 0x7a8   :  { %v13157_v9 = vpack.c.bf16 %v4276_v13, %v4274_v27  ;;  %v4634_v54 = vadd.f32 %v4633_v43, %v4545_v53  ;;  %v4050_v27 = vadd.f32 %v13074_v62, %v15128_v12  ;;  %v9686_v53 = vld [vmem:[#allocation10 + $0xe4] sm:$0xf]  ;;  %v4550_v12 = vadd.f32 %v12944_v46, %v13155_v8 }
 0x7a9   :  { %v13159_v49 = vpop.f32.mrf.mxu2  ;;  %v4136_v7 = vpop.f32.mrf.mxu3 }
 0x7aa   :  { %4672 = vmatmul.bf16.gmra.mxu1 %v13157_v9  ;;  %v4137_v18 = vadd.f32 %v4136_v7, %v4048_v32  ;;  %v4891_v41 = vmax.f32 %v4634_v54, 0.0  ;;  %v9069_v32 = vor.u32 %v9686_v53, %v9066_v44  ;;  %v9703_v54 = vld [vmem:[%s15122_s14 + $0x64] sm:$0xf0] }
 0x7ab   :  { %v9129_v5 = vor.u32 %v9703_v54, %v9128_v50 }
 0x7ac   :  { %v4214_v30 = vadd.f32 %v12934_v1, %v4137_v18  ;;  %5453 = vmatpush.bf16.msra.mxu3 %v9069_v32 }
 0x7ad   :  { %v13175_v20 = vpop.f32.mrf.mxu0  ;;  %5836 = vmatpush.bf16.msra.mxu0 %v9129_v5 }
 0x7ae   :  { %v4278_v40 = vmax.f32 %v4214_v30, 0.0 }
 0x7af   :  { %v4635_v33 = vpop.f32.mrf.mxu1 }
 0x7b0   :  { %v4636_v13 = vadd.f32 %v4635_v33, %v4547_v4 }
 0x7b1   :  { %v13172_v17 = vpop.f32.mrf.mxu2  ;;  %v4138_v37 = vpop.f32.mrf.mxu3 }
 0x7b2   :  { %v4893_v43 = vmax.f32 %v4636_v13, 0.0  ;;  %v4139_v7 = vadd.f32 %v4138_v37, %v4050_v27  ;;  %v4552_v27 = vadd.f32 %v12959_v60, %v13155_v8 }
 0x7b4   :  { %v13177_v62 = vpack.c.bf16 %v4893_v43, %v4891_v41  ;;  %v4216_v4 = vadd.f32 %v12934_v1, %v4139_v7  ;;  %v15130_v7 = vld [vmem:[#allocation66_spill] sm:$0xff] }
 0x7b5   :  { %v13196_v13 = vpop.f32.mrf.mxu0  ;;  %v4055_v53 = vadd.f32 %v13101_v55, %v15130_v7  ;;  %v9677_v7 = vld [vmem:[#allocation10 + $0x94] sm:$0xf0] }
 0x7b6   :  { %v4280_v33 = vmax.f32 %v4216_v4, 0.0  ;;  %4751 = vmatmul.bf16.gmra.mxu2 %v12880_v47  ;;  %4820 = vmatmul.bf16.gmra.mxu3 %v13005_v22  ;;  %v15129_v47 = vld [vmem:[#allocation39_spill] sm:$0xff] }
 0x7b7   :  { %5193 = vmatmul.bf16.vlgmr.msrb.gmra.mxu0 %v13177_v62  ;;  %v4638_v37 = vpop.f32.mrf.mxu1  ;;  %v4053_v22 = vadd.f32 %v13088_v56, %v15129_v47 }
 0x7b8   :  { %v13185_v18 = vpack.c.bf16 %v4280_v33, %v4278_v40  ;;  %v4639_v41 = vadd.f32 %v4638_v37, %v4550_v12 }
 0x7b9   :  { %v13187_v34 = vpop.f32.mrf.mxu2  ;;  %v4141_v35 = vpop.f32.mrf.mxu3 }
 0x7ba   :  { %4677 = vmatmul.bf16.gmra.mxu1 %v13185_v18  ;;  %v4142_v30 = vadd.f32 %v4141_v35, %v4053_v22  ;;  %v4895_v40 = vmax.f32 %v4639_v41, 0.0  ;;  %v4555_v22 = vadd.f32 %v12971_v59, %v13155_v8 }
 0x7bc   :  { %v4218_v46 = vadd.f32 %v12934_v1, %v4142_v30 }
 0x7bd   :  { %v13209_v5 = vpop.f32.mrf.mxu0 }
 0x7be   :  { %v4282_v54 = vmax.f32 %v4218_v46, 0.0  ;;  %v4060_v46 = vadd.f32 %v13124_v0, %v12837_v14 }
 0x7bf   :  { %v4640_v43 = vpop.f32.mrf.mxu1 }
 0x7c0   :  { %v4641_v44 = vadd.f32 %v4640_v43, %v4552_v27  ;;  %v15131_v27 = vld [vmem:[#allocation42_spill] sm:$0xff]  ;;  %v9024_v43 = vld [vmem:[#allocation10 + $0x90] sm:$0xf] }
 0x7c1   :  { %v13200_v32 = vpop.f32.mrf.mxu2  ;;  %v4143_v4 = vpop.f32.mrf.mxu3 }
 0x7c2   :  { %v4897_v33 = vmax.f32 %v4641_v44, 0.0  ;;  %v4144_v56 = vadd.f32 %v4143_v4, %v4055_v53  ;;  %v9025_v44 = vor.u32 %v9677_v7, %v9024_v43  ;;  %v9668_v4 = vld [vmem:[#allocation10 + $0x54] sm:$0xf]  ;;  %v15132_v43 = vld [vmem:[#allocation73_spill] sm:$0xff] }
 0x7c3   :  { %v9701_v7 = vld [vmem:[%s15122_s14 + $0x54] sm:$0xf0] }
 0x7c4   :  { %v4220_v50 = vadd.f32 %v12934_v1, %v4144_v56  ;;  %v13204_v60 = vpack.c.bf16 %v4897_v33, %v4895_v40  ;;  %v8994_v40 = vld [vmem:[#allocation10 + $0x58] sm:$0xf0]  ;;  %5280 = vmatpush.bf16.msra.mxu1 %v9025_v44 }
 0x7c5   :  { %v8997_v56 = vor.u32 %v9668_v4, %v8994_v40 }
 0x7c6   :  { %v4284_v37 = vmax.f32 %v4220_v50, 0.0  ;;  %4756 = vmatmul.bf16.gmra.mxu2 %v12899_v36  ;;  %4825 = vmatmul.bf16.gmra.mxu3 %v13032_v15  ;;  %v4058_v36 = vadd.f32 %v13115_v26, %v15131_v27  ;;  %v4557_v15 = vadd.f32 %v12986_v48, %v13155_v8  ;;  %v13226_v26 = vpop.f32.mrf.mxu0 }
 0x7c7   :  { %5198 = vmatmul.bf16.gmra.mxu0 %v13204_v60  ;;  %v4643_v55 = vpop.f32.mrf.mxu1  ;;  %5365 = vmatpush.bf16.msrb.mxu2 %v8997_v56 }
 0x7c8   :  { %v13211_v35 = vpack.c.bf16 %v4284_v37, %v4282_v54  ;;  %v4644_v41 = vadd.f32 %v4643_v55, %v4555_v22  ;;  %v9058_v22 = vld [vmem:[#allocation10 + $0xd8] sm:$0xf0] }
 0x7c9   :  { %v13213_v12 = vpop.f32.mrf.mxu2  ;;  %v4146_v47 = vpop.f32.mrf.mxu3 }
 0x7ca   :  { %4682 = vmatmul.bf16.gmra.mxu1 %v13211_v35  ;;  %v4147_v30 = vadd.f32 %v4146_v47, %v4058_v36  ;;  %v4899_v48 = vmax.f32 %v4644_v41, 0.0  ;;  %v9684_v47 = vld [vmem:[#allocation10 + $0xd4] sm:$0xf] }
 0x7cb   :  { %v9061_v27 = vor.u32 %v9684_v47, %v9058_v22 }
 0x7cc   :  { %v4222_v54 = vadd.f32 %v12934_v1, %v4147_v30  ;;  %v9120_v30 = vld [vmem:[%s15122_s14 + $0x50] sm:$0xf] }
 0x7cd   :  { %5454 = vmatpush.bf16.msra.mxu3 %v9061_v27  ;;  %v9121_v44 = vor.u32 %v9701_v7, %v9120_v30 }
 0x7ce   :  { %v4286_v36 = vmax.f32 %v4222_v54, 0.0  ;;  %v13246_v56 = vpop.f32.mrf.mxu0 }
 0x7cf   :  { %v4645_v53 = vpop.f32.mrf.mxu1  ;;  %5837 = vmatpush.bf16.msra.mxu0 %v9121_v44  ;;  %v15135_v44 = vld [vmem:[#allocation43_spill] sm:$0xff] }
 0x7d0   :  { %v4646_v33 = vadd.f32 %v4645_v53, %v4557_v15 }
 0x7d1   :  { %v13224_v59 = vpop.f32.mrf.mxu2  ;;  %v4148_v50 = vpop.f32.mrf.mxu3 }
 0x7d2   :  { %v4901_v37 = vmax.f32 %v4646_v33, 0.0  ;;  %v4149_v55 = vadd.f32 %v4148_v50, %v4060_v46  ;;  %v4560_v46 = vadd.f32 %v12998_v57, %v13155_v8  ;;  %v15133_v33 = vld [vmem:[#allocation49_spill] sm:$0xff]  ;;  %v4562_v50 = vadd.f32 %v13013_v29, %v13155_v8 }
 0x7d4   :  { %v4224_v14 = vadd.f32 %v12934_v1, %v4149_v55  ;;  %v13230_v0 = vpack.c.bf16 %v4901_v37, %v4899_v48  ;;  %v15134_v55 = vld [vmem:[#allocation67_spill] sm:$0xff] }
 0x7d5   :  { %v4065_v47 = vadd.f32 %v13145_v63, %v15134_v55  ;;  %v9016_v55 = vld [vmem:[#allocation10 + $0x80] sm:$0xf] }
 0x7d6   :  { %v4288_v15 = vmax.f32 %v4224_v14, 0.0  ;;  %4761 = vmatmul.bf16.gmra.mxu2 %v15132_v43  ;;  %4830 = vmatmul.bf16.gmra.mxu3 %v13059_v16  ;;  %v4063_v16 = vadd.f32 %v13136_v42, %v15133_v33  ;;  %v13258_v29 = vpop.f32.mrf.mxu0 }
 0x7d7   :  { %5203 = vmatmul.bf16.gmra.mxu0 %v13230_v0  ;;  %v4648_v41 = vpop.f32.mrf.mxu1 }
 0x7d8   :  { %v13237_v53 = vpack.c.bf16 %v4288_v15, %v4286_v36  ;;  %v4649_v48 = vadd.f32 %v4648_v41, %v4560_v46 }
 0x7d9   :  { %v4151_v4 = vpop.f32.mrf.mxu3  ;;  %v13239_v40 = vpop.f32.mrf.mxu2 }
 0x7da   :  { %4687 = vmatmul.bf16.gmra.mxu1 %v13237_v53  ;;  %v4152_v54 = vadd.f32 %v4151_v4, %v4063_v16  ;;  %v4903_v36 = vmax.f32 %v4649_v48, 0.0  ;;  %v4565_v16 = vadd.f32 %v13025_v2, %v13155_v8 }
 0x7dc   :  { %v4226_v57 = vadd.f32 %v12934_v1, %v4152_v54  ;;  %v4567_v54 = vadd.f32 %v13040_v23, %v13155_v8 }
 0x7de   :  { %v4290_v41 = vmax.f32 %v4226_v57, 0.0  ;;  %v8986_v57 = vld [vmem:[#allocation10 + $0x48] sm:$0xf0] }
 0x7df   :  { %v4650_v37 = vpop.f32.mrf.mxu1 }
 0x7e0   :  { %v4651_v22 = vadd.f32 %v4650_v37, %v4562_v50  ;;  %v15136_v50 = vld [vmem:[#allocation50_spill] sm:$0xff] }
 0x7e1   :  { %v4153_v27 = vpop.f32.mrf.mxu3  ;;  %v13252_v14 = vpop.f32.mrf.mxu2  ;;  %v4068_v48 = vadd.f32 %v13159_v49, %v15136_v50  ;;  %v9050_v50 = vld [vmem:[#allocation10 + $0xc8] sm:$0xf0] }
 0x7e2   :  { %v4905_v15 = vmax.f32 %v4651_v22, 0.0  ;;  %v4154_v42 = vadd.f32 %v4153_v27, %v4065_v47  ;;  %v9675_v47 = vld [vmem:[#allocation10 + $0x84] sm:$0xf0] }
 0x7e3   :  { %v9017_v27 = vor.u32 %v9675_v47, %v9016_v55 }
 0x7e4   :  { %v4228_v43 = vadd.f32 %v12934_v1, %v4154_v42  ;;  %v13256_v30 = vpack.c.bf16 %v4905_v15, %v4903_v36  ;;  %v9666_v36 = vld [vmem:[#allocation10 + $0x44] sm:$0xf]  ;;  %v15137_v15 = vld [vmem:[#allocation68_spill] sm:$0xff] }
 0x7e5   :  { %v4070_v42 = vadd.f32 %v13172_v17, %v15137_v15  ;;  %5281 = vmatpush.bf16.msra.mxu1 %v9017_v27 }
 0x7e6   :  { %v4292_v7 = vmax.f32 %v4228_v43, 0.0  ;;  %4766 = vmatmul.bf16.gmra.mxu2 %v15135_v44  ;;  %4835 = vmatmul.bf16.gmra.mxu3 %v13086_v51  ;;  %v13276_v43 = vpop.f32.mrf.mxu0 }
 0x7e7   :  { %5208 = vmatmul.bf16.gmra.mxu0 %v13256_v30  ;;  %v4653_v63 = vpop.f32.mrf.mxu1 }
 0x7e8   :  { %v13263_v4 = vpack.c.bf16 %v4292_v7, %v4290_v41  ;;  %v4654_v51 = vadd.f32 %v4653_v63, %v4565_v16  ;;  %v8989_v41 = vor.u32 %v9666_v36, %v8986_v57  ;;  %v9682_v16 = vld [vmem:[#allocation10 + $0xc4] sm:$0xf] }
 0x7e9   :  { %v4156_v46 = vpop.f32.mrf.mxu3  ;;  %v13265_v33 = vpop.f32.mrf.mxu2 }
 0x7ea   :  { %4692 = vmatmul.bf16.gmra.mxu1 %v13263_v4  ;;  %v4157_v37 = vadd.f32 %v4156_v46, %v4068_v48  ;;  %v4907_v23 = vmax.f32 %v4654_v51, 0.0  ;;  %5366 = vmatpush.bf16.msrb.mxu2 %v8989_v41  ;;  %v9053_v48 = vor.u32 %v9682_v16, %v9050_v50  ;;  %v4572_v41 = vadd.f32 %v13067_v3, %v13155_v8 }
 0x7ec   :  { %v4230_v44 = vadd.f32 %v12934_v1, %v4157_v37  ;;  %5455 = vmatpush.bf16.msra.mxu3 %v9053_v48  ;;  %v9112_v37 = vld [vmem:[%s15122_s14 + $0x40] sm:$0xf] }
 0x7ef   :  { %v4655_v22 = vpop.f32.mrf.mxu1 }
 0x7f0   :  { %v4656_v2 = vadd.f32 %v4655_v22, %v4567_v54  ;;  %v4294_v54 = vmax.f32 %v4230_v44, 0.0  ;;  %v9699_v22 = vld [vmem:[%s15122_s14 + $0x44] sm:$0xf0] }
 0x7f1   :  { %v4158_v7 = vpop.f32.mrf.mxu3  ;;  %v13278_v49 = vpop.f32.mrf.mxu2  ;;  %v9113_v36 = vor.u32 %v9699_v22, %v9112_v37 }
 0x7f2   :  { %v4909_v63 = vmax.f32 %v4656_v2, 0.0  ;;  %v4159_v46 = vadd.f32 %v4158_v7, %v4070_v42  ;;  %v13293_v42 = vpop.f32.mrf.mxu0 }
 0x7f3   :  { %5838 = vmatpush.bf16.msra.mxu0 %v9113_v36 }
 0x7f4   :  { %v4232_v17 = vadd.f32 %v12934_v1, %v4159_v46  ;;  %v13282_v55 = vpack.c.bf16 %v4909_v63, %v4907_v23  ;;  %v15139_v63 = vld [vmem:[#allocation70_spill] sm:$0xff] }
 0x7f5   :  { %v4075_v46 = vadd.f32 %v13200_v32, %v15139_v63 }
 0x7f6   :  { %v4296_v47 = vmax.f32 %v4232_v17, 0.0  ;;  %4771 = vmatmul.bf16.gmra.mxu2 %v12975_v25  ;;  %4840 = vmatmul.bf16.gmra.mxu3 %v13113_v28  ;;  %v4570_v25 = vadd.f32 %v13052_v24, %v13155_v8  ;;  %v15138_v28 = vld [vmem:[#allocation69_spill] sm:$0xff] }
 0x7f7   :  { %5213 = vmatmul.bf16.gmra.mxu0 %v13282_v55  ;;  %v4658_v51 = vpop.f32.mrf.mxu1  ;;  %v4073_v2 = vadd.f32 %v13187_v34, %v15138_v28  ;;  %v4575_v28 = vadd.f32 %v13079_v38, %v13155_v8 }
 0x7f8   :  { %v13289_v27 = vpack.c.bf16 %v4296_v47, %v4294_v54  ;;  %v4659_v7 = vadd.f32 %v4658_v51, %v4570_v25 }
 0x7f9   :  { %v4161_v57 = vpop.f32.mrf.mxu3  ;;  %v13291_v15 = vpop.f32.mrf.mxu2 }
 0x7fa   :  { %4697 = vmatmul.bf16.gmra.mxu1 %v13289_v27  ;;  %v4162_v23 = vadd.f32 %v4161_v57, %v4073_v2  ;;  %v4911_v17 = vmax.f32 %v4659_v7, 0.0  ;;  %v13307_v37 = vpop.f32.mrf.mxu0  ;;  %v15140_v2 = vld [vmem:[#allocation71_spill] sm:$0xff]  ;;  %v9664_v7 = vld [vmem:[#allocation10 + $0x34] sm:$0xf] }
 0x7fc   :  { %v4234_v54 = vadd.f32 %v12934_v1, %v4162_v23 }
 0x7fe   :  { %v4298_v51 = vmax.f32 %v4234_v54, 0.0 }
 0x7ff   :  { %v4660_v44 = vpop.f32.mrf.mxu1 }
 0x800   :  { %v4661_v16 = vadd.f32 %v4660_v44, %v4572_v41  ;;  %v4078_v41 = vadd.f32 %v13213_v12, %v15140_v2 }
 0x801   :  { %v4163_v50 = vpop.f32.mrf.mxu3  ;;  %v13304_v48 = vpop.f32.mrf.mxu2 }
 0x802   :  { %v4913_v24 = vmax.f32 %v4661_v16, 0.0  ;;  %v4164_v47 = vadd.f32 %v4163_v50, %v4075_v46  ;;  %v13326_v44 = vpop.f32.mrf.mxu0  ;;  %v15141_v50 = vld [vmem:[#allocation72_spill] sm:$0xff] }
 0x804   :  { %v4236_v34 = vadd.f32 %v12934_v1, %v4164_v47  ;;  %v13310_v3 = vpack.c.bf16 %v4913_v24, %v4911_v17  ;;  %v4080_v17 = vadd.f32 %v13224_v59, %v15141_v50 }
 0x806   :  { %v4300_v22 = vmax.f32 %v4236_v34, 0.0  ;;  %4776 = vmatmul.bf16.gmra.mxu2 %v13002_v52  ;;  %4845 = vmatmul.bf16.gmra.mxu3 %v13134_v19  ;;  %v8978_v52 = vld [vmem:[#allocation10 + $0x38] sm:$0xf0]  ;;  %v4577_v19 = vadd.f32 %v13094_v45, %v13155_v8 }
 0x807   :  { %5218 = vmatmul.bf16.gmra.mxu0 %v13310_v3  ;;  %v4663_v32 = vpop.f32.mrf.mxu1  ;;  %v8981_v23 = vor.u32 %v9664_v7, %v8978_v52  ;;  %v9104_v7 = vld [vmem:[%s15122_s14 + $0x30] sm:$0xf]  ;;  %v9697_v52 = vld [vmem:[%s15122_s14 + $0x34] sm:$0xf0] }
 0x808   :  { %v13315_v36 = vpack.c.bf16 %v4300_v22, %v4298_v51  ;;  %v4664_v63 = vadd.f32 %v4663_v32, %v4575_v28  ;;  %v9680_v51 = vld [vmem:[#allocation10 + $0xb4] sm:$0xf]  ;;  %v9042_v22 = vld [vmem:[#allocation10 + $0xb8] sm:$0xf0] }
 0x809   :  { %v4166_v57 = vpop.f32.mrf.mxu3  ;;  %v13317_v25 = vpop.f32.mrf.mxu2  ;;  %5367 = vmatpush.bf16.msrb.mxu2 %v8981_v23  ;;  %v9045_v32 = vor.u32 %v9680_v51, %v9042_v22 }
 0x80a   :  { %4702 = vmatmul.bf16.gmra.mxu1 %v13315_v36  ;;  %v4167_v46 = vadd.f32 %v4166_v57, %v4078_v41  ;;  %v4915_v12 = vmax.f32 %v4664_v63, 0.0  ;;  %v13341_v23 = vpop.f32.mrf.mxu0  ;;  %v9105_v63 = vor.u32 %v9697_v52, %v9104_v7 }
 0x80b   :  { %5456 = vmatpush.bf16.msra.mxu3 %v9045_v32 }
 0x80c   :  { %v4238_v47 = vadd.f32 %v12934_v1, %v4167_v46  ;;  %5839 = vmatpush.bf16.msra.mxu0 %v9105_v63  ;;  %v9662_v63 = vld [vmem:[#allocation10 + $0x24] sm:$0xf] }
 0x80e   :  { %v4302_v59 = vmax.f32 %v4238_v47, 0.0 }
 0x80f   :  { %v4665_v16 = vpop.f32.mrf.mxu1 }
 0x810   :  { %v4666_v54 = vadd.f32 %v4665_v16, %v4577_v19  ;;  %v4582_v16 = vadd.f32 %v13120_v21, %v13155_v8 }
 0x811   :  { %v4168_v38 = vpop.f32.mrf.mxu3  ;;  %v13330_v24 = vpop.f32.mrf.mxu2 }
 0x812   :  { %v4917_v34 = vmax.f32 %v4666_v54, 0.0  ;;  %v4169_v45 = vadd.f32 %v4168_v38, %v4080_v17 }
 0x814   :  { %v4240_v57 = vadd.f32 %v12934_v1, %v4169_v45  ;;  %v13334_v28 = vpack.c.bf16 %v4917_v34, %v4915_v12  ;;  %v13361_v34 = vpop.f32.mrf.mxu0 }
 0x816   :  { %v4304_v2 = vmax.f32 %v4240_v57, 0.0  ;;  %4781 = vmatmul.bf16.gmra.mxu2 %v13029_v61  ;;  %4850 = vmatmul.bf16.gmra.mxu3 %v13157_v9  ;;  %v4580_v61 = vadd.f32 %v13106_v6, %v13155_v8  ;;  %v13351_v9 = vperm.slane %v13150_v31, 1  ;;  %v9200_v57 = vld [vmem:[%s15122_s14 + $0xf0] sm:$0xf] }
 0x817   :  { %5223 = vmatmul.bf16.gmra.mxu0 %v13334_v28  ;;  %v4668_v41 = vpop.f32.mrf.mxu1 }
 0x818   :  { %v13343_v19 = vpack.c.bf16 %v4304_v2, %v4302_v59  ;;  %v4669_v50 = vadd.f32 %v4668_v41, %v4580_v61  ;;  %v4723_v54 = vadd.f32 %v13239_v40, %v13351_v9  ;;  %v4725_v38 = vadd.f32 %v13252_v14, %v13351_v9  ;;  %v9721_v59 = vld [vmem:[%s15122_s14 + $0xf4] sm:$0xf0] }
 0x819   :  { %v13345_v1 = vpop.f32.mrf.mxu2  ;;  %v4811_v46 = vpop.f32.mrf.mxu3  ;;  %v9201_v2 = vor.u32 %v9721_v59, %v9200_v57  ;;  %v8954_v57 = vld [vmem:[#allocation10 + $0x8] sm:$0xf0] }
 0x81a   :  { %4707 = vmatmul.bf16.gmra.mxu1 %v13343_v19  ;;  %v4919_v31 = vmax.f32 %v4669_v50, 0.0  ;;  %v4812_v45 = vadd.f32 %v4811_v46, %v4723_v54  ;;  %v8970_v46 = vld [vmem:[#allocation10 + $0x28] sm:$0xf0]  ;;  %v9660_v50 = vld [vmem:[#allocation10 + $0x14] sm:$0xf]  ;;  %v4587_v54 = vadd.f32 %v13143_v11, %v13155_v8 }
 0x81b   :  { %5924 = vmatpush.bf16.msrb.mxu1 %v9201_v2  ;;  %v8973_v61 = vor.u32 %v9662_v63, %v8970_v46 }
 0x81c   :  { %v4892_v40 = vmax.f32 %v4812_v45, 0.0 }
 0x81d   :  { %5368 = vmatpush.bf16.msrb.mxu2 %v8973_v61 }
 0x81f   :  { %v4670_v17 = vpop.f32.mrf.mxu1 }
 0x820   :  { %v4671_v12 = vadd.f32 %v4670_v17, %v4582_v16  ;;  %v4585_v16 = vadd.f32 %v13128_v10, %v13155_v8  ;;  %v8962_v17 = vld [vmem:[#allocation10 + $0x18] sm:$0xf0] }
 0x821   :  { %v13359_v47 = vpop.f32.mrf.mxu2  ;;  %v4813_v6 = vpop.f32.mrf.mxu3 }
 0x822   :  { %v4921_v51 = vmax.f32 %v4671_v12, 0.0  ;;  %v4814_v22 = vadd.f32 %v4813_v6, %v4725_v38  ;;  %v8965_v38 = vor.u32 %v9660_v50, %v8962_v17  ;;  %v4728_v6 = vadd.f32 %v13265_v33, %v13351_v9  ;;  %v9695_v50 = vld [vmem:[%s15122_s14 + $0x24] sm:$0xf0] }
 0x824   :  { %v4894_v21 = vmax.f32 %v4814_v22, 0.0  ;;  %v13363_v32 = vpack.c.bf16 %v4921_v51, %v4919_v31  ;;  %v4730_v31 = vadd.f32 %v13278_v49, %v13351_v9  ;;  %5369 = vmatpush.bf16.msrb.mxu2 %v8965_v38 }
 0x826   :  { %4786 = vmatmul.bf16.gmra.mxu2 %v13056_v39  ;;  %4855 = vmatmul.bf16.gmra.mxu3 %v13185_v18  ;;  %v13370_v41 = vpack.c.bf16 %v4894_v21, %v4892_v40  ;;  %v13377_v39 = vpop.f32.mrf.mxu0  ;;  %v9658_v21 = vld [vmem:[#allocation10 + $0x4] sm:$0xf] }
 0x827   :  { %5228 = vmatmul.bf16.gmra.mxu0 %v13363_v32  ;;  %v4673_v14 = vpop.f32.mrf.mxu1  ;;  %v9678_v40 = vld [vmem:[#allocation10 + $0xa4] sm:$0xf]  ;;  %v8957_v63 = vor.u32 %v9658_v21, %v8954_v57  ;;  %v4735_v21 = vadd.f32 %v13304_v48, %v13351_v9 }
 0x828   :  { %v4674_v18 = vadd.f32 %v4673_v14, %v4585_v16  ;;  %v9034_v14 = vld [vmem:[#allocation10 + $0xa8] sm:$0xf0] }
 0x829   :  { %v13372_v7 = vpop.f32.mrf.mxu2  ;;  %v4816_v52 = vpop.f32.mrf.mxu3  ;;  %v9037_v33 = vor.u32 %v9678_v40, %v9034_v14  ;;  %5370 = vmatpush.bf16.msrb.mxu2 %v8957_v63 }
 0x82a   :  { %5282 = vmatmul.bf16.vlgmr.msra.gmra.mxu1 %v13370_v41  ;;  %v4923_v10 = vmax.f32 %v4674_v18, 0.0  ;;  %v4817_v59 = vadd.f32 %v4816_v52, %v4728_v6  ;;  %v9096_v18 = vld [vmem:[%s15122_s14 + $0x20] sm:$0xf]  ;;  %v15142_v6 = vld [vmem:[#allocation51_spill] sm:$0xff] }
 0x82b   :  { %5457 = vmatpush.bf16.msra.mxu3 %v9037_v33 }
 0x82c   :  { %v4896_v16 = vmax.f32 %v4817_v59, 0.0 }
 0x82f   :  { %v4675_v12 = vpop.f32.mrf.mxu1 }
 0x830   :  { %v4676_v45 = vadd.f32 %v4675_v12, %v4587_v54  ;;  %v9097_v54 = vor.u32 %v9695_v50, %v9096_v18  ;;  %v15143_v50 = vld [vmem:[#allocation58_spill] sm:$0xff] }
 0x831   :  { %v13385_v51 = vpop.f32.mrf.mxu2  ;;  %v4818_v22 = vpop.f32.mrf.mxu3 }
 0x832   :  { %v4925_v2 = vmax.f32 %v4676_v45, 0.0  ;;  %v4819_v11 = vadd.f32 %v4818_v22, %v4730_v31  ;;  %5840 = vmatpush.bf16.msra.mxu0 %v9097_v54  ;;  %v4590_v31 = vadd.f32 %v15142_v6, %v13155_v8  ;;  %v4733_v22 = vadd.f32 %v13291_v15, %v13351_v9 }
 0x834   :  { %v4898_v46 = vmax.f32 %v4819_v11, 0.0  ;;  %v13387_v61 = vpop.f32.mrf.mxu0  ;;  %v13389_v49 = vpack.c.bf16 %v4925_v2, %v4923_v10 }
 0x836   :  { %4791 = vmatmul.bf16.gmra.mxu2 %v13083_v58  ;;  %4860 = vmatmul.bf16.gmra.mxu3 %v13211_v35  ;;  %v13396_v17 = vpack.c.bf16 %v4898_v46, %v4896_v16  ;;  %v4592_v35 = vadd.f32 %v13175_v20, %v13155_v8  ;;  %v9192_v16 = vld [vmem:[%s15122_s14 + $0xe0] sm:$0xf] }
 0x837   :  { %5233 = vmatmul.bf16.gmra.mxu0 %v13389_v49  ;;  %v4678_v52 = vpop.f32.mrf.mxu1 }
 0x838   :  { %v4679_v45 = vadd.f32 %v4678_v52, %v4590_v31  ;;  %v9719_v52 = vld [vmem:[%s15122_s14 + $0xe4] sm:$0xf0]  ;;  %v4595_v31 = vadd.f32 %v13196_v13, %v13155_v8 }
 0x839   :  { %v13398_v38 = vpop.f32.mrf.mxu2  ;;  %v4821_v12 = vpop.f32.mrf.mxu3  ;;  %v9193_v18 = vor.u32 %v9719_v52, %v9192_v16 }
 0x83a   :  { %5287 = vmatmul.bf16.gmra.mxu1 %v13396_v17  ;;  %v4927_v11 = vmax.f32 %v4679_v45, 0.0  ;;  %v4822_v40 = vadd.f32 %v4821_v12, %v4733_v22  ;;  %v4597_v45 = vadd.f32 %v13209_v5, %v13155_v8  ;;  %v4738_v22 = vadd.f32 %v13317_v25, %v13351_v9  ;;  %v9026_v5 = vld [vmem:[#allocation10 + $0x98] sm:$0xf0] }
 0x83b   :  { %5925 = vmatpush.bf16.msrb.mxu1 %v9193_v18 }
 0x83c   :  { %v13403_v58 = vpop.f32.mrf.mxu0  ;;  %v4900_v15 = vmax.f32 %v4822_v40, 0.0 }
 0x83f   :  { %v4680_v10 = vpop.f32.mrf.mxu1 }
 0x840   :  { %v4681_v57 = vadd.f32 %v4680_v10, %v4592_v35 }
 0x841   :  { %v13411_v59 = vpop.f32.mrf.mxu2  ;;  %v4823_v2 = vpop.f32.mrf.mxu3 }
 0x842   :  { %v4929_v14 = vmax.f32 %v4681_v57, 0.0  ;;  %v4824_v63 = vadd.f32 %v4823_v2, %v4735_v21  ;;  %v4740_v21 = vadd.f32 %v13330_v24, %v13351_v9 }
 0x844   :  { %v4902_v33 = vmax.f32 %v4824_v63, 0.0  ;;  %v13413_v46 = vpop.f32.mrf.mxu0  ;;  %v13415_v20 = vpack.c.bf16 %v4929_v14, %v4927_v11 }
 0x846   :  { %4796 = vmatmul.bf16.gmra.mxu2 %v15143_v50  ;;  %4865 = vmatmul.bf16.gmra.mxu3 %v13237_v53  ;;  %v13422_v54 = vpack.c.bf16 %v4902_v33, %v4900_v15  ;;  %v9676_v33 = vld [vmem:[#allocation10 + $0x94] sm:$0xf]  ;;  %v9088_v50 = vld [vmem:[%s15122_s14 + $0x10] sm:$0xf] }
 0x847   :  { %5238 = vmatmul.bf16.gmra.mxu0 %v13415_v20  ;;  %v4683_v48 = vpop.f32.mrf.mxu1  ;;  %v9029_v16 = vor.u32 %v9676_v33, %v9026_v5 }
 0x848   :  { %v4684_v53 = vadd.f32 %v4683_v48, %v4595_v31  ;;  %v9693_v48 = vld [vmem:[%s15122_s14 + $0x14] sm:$0xf0] }
 0x849   :  { %v13424_v12 = vpop.f32.mrf.mxu2  ;;  %v4826_v6 = vpop.f32.mrf.mxu3  ;;  %5458 = vmatpush.bf16.msra.mxu3 %v9029_v16  ;;  %v9089_v31 = vor.u32 %v9693_v48, %v9088_v50 }
 0x84a   :  { %5292 = vmatmul.bf16.gmra.mxu1 %v13422_v54  ;;  %v4931_v40 = vmax.f32 %v4684_v53, 0.0  ;;  %v4827_v13 = vadd.f32 %v4826_v6, %v4738_v22 }
 0x84b   :  { %5841 = vmatpush.bf16.msra.mxu0 %v9089_v31 }
 0x84c   :  { %v13429_v35 = vpop.f32.mrf.mxu0  ;;  %v4904_v24 = vmax.f32 %v4827_v13, 0.0 }
 0x84f   :  { %v4685_v10 = vpop.f32.mrf.mxu1 }
 0x850   :  { %v4686_v57 = vadd.f32 %v4685_v10, %v4597_v45  ;;  %v4600_v10 = vadd.f32 %v13226_v26, %v13155_v8 }
 0x851   :  { %v13437_v2 = vpop.f32.mrf.mxu2  ;;  %v4828_v11 = vpop.f32.mrf.mxu3 }
 0x852   :  { %v4933_v14 = vmax.f32 %v4686_v57, 0.0  ;;  %v4829_v63 = vadd.f32 %v4828_v11, %v4740_v21  ;;  %v4743_v57 = vadd.f32 %v13345_v1, %v13351_v9  ;;  %v4745_v11 = vadd.f32 %v13359_v47, %v13351_v9 }
 0x854   :  { %v4906_v52 = vmax.f32 %v4829_v63, 0.0  ;;  %v13439_v18 = vpop.f32.mrf.mxu0  ;;  %v13441_v25 = vpack.c.bf16 %v4933_v14, %v4931_v40 }
 0x856   :  { %4870 = vmatmul.bf16.gmra.mxu3 %v13263_v4  ;;  %5371 = vmatmul.bf16.vlgmr.msrb.gmra.mxu2 %v13177_v62  ;;  %v13448_v6 = vpack.c.bf16 %v4906_v52, %v4904_v24  ;;  %v4602_v62 = vadd.f32 %v13246_v56, %v13155_v8  ;;  %v9184_v24 = vld [vmem:[%s15122_s14 + $0xd0] sm:$0xf] }
 0x857   :  { %5243 = vmatmul.bf16.gmra.mxu0 %v13441_v25  ;;  %v4688_v15 = vpop.f32.mrf.mxu1 }
 0x858   :  { %v4689_v22 = vadd.f32 %v4688_v15, %v4600_v10  ;;  %v9717_v15 = vld [vmem:[%s15122_s14 + $0xd4] sm:$0xf0]  ;;  %v4605_v10 = vadd.f32 %v13258_v29, %v13155_v8  ;;  %v9674_v29 = vld [vmem:[#allocation10 + $0x84] sm:$0xf] }
 0x859   :  { %v13450_v45 = vpop.f32.mrf.mxu2  ;;  %v4831_v53 = vpop.f32.mrf.mxu3  ;;  %v9185_v50 = vor.u32 %v9717_v15, %v9184_v24 }
 0x85a   :  { %5297 = vmatmul.bf16.gmra.mxu1 %v13448_v6  ;;  %v4935_v26 = vmax.f32 %v4689_v22, 0.0  ;;  %v4832_v63 = vadd.f32 %v4831_v53, %v4743_v57  ;;  %v4750_v57 = vadd.f32 %v13385_v51, %v13351_v9 }
 0x85b   :  { %5926 = vmatpush.bf16.msrb.mxu1 %v9185_v50 }
 0x85c   :  { %v13455_v4 = vpop.f32.mrf.mxu0  ;;  %v4908_v1 = vmax.f32 %v4832_v63, 0.0  ;;  %v9018_v63 = vld [vmem:[#allocation10 + $0x88] sm:$0xf0] }
 0x85f   :  { %v4690_v21 = vpop.f32.mrf.mxu1 }
 0x860   :  { %v4691_v40 = vadd.f32 %v4690_v21, %v4602_v62  ;;  %v4748_v21 = vadd.f32 %v13372_v7, %v13351_v9 }
 0x861   :  { %v13463_v13 = vpop.f32.mrf.mxu2  ;;  %v4833_v14 = vpop.f32.mrf.mxu3 }
 0x862   :  { %v4937_v33 = vmax.f32 %v4691_v40, 0.0  ;;  %v4834_v5 = vadd.f32 %v4833_v14, %v4745_v11 }
 0x864   :  { %v4910_v16 = vmax.f32 %v4834_v5, 0.0  ;;  %v13465_v52 = vpop.f32.mrf.mxu0  ;;  %v13467_v56 = vpack.c.bf16 %v4937_v33, %v4935_v26 }
 0x866   :  { %4875 = vmatmul.bf16.gmra.mxu3 %v13289_v27  ;;  %5376 = vmatmul.bf16.gmra.mxu2 %v13204_v60  ;;  %v13474_v48 = vpack.c.bf16 %v4910_v16, %v4908_v1  ;;  %v4607_v60 = vadd.f32 %v13276_v43, %v13155_v8  ;;  %v9021_v43 = vor.u32 %v9674_v29, %v9018_v63  ;;  %v9080_v1 = vld [vmem:[%s15122_s14] sm:$0xf] }
 0x867   :  { %5248 = vmatmul.bf16.gmra.mxu0 %v13467_v56  ;;  %v4693_v47 = vpop.f32.mrf.mxu1 }
 0x868   :  { %v4694_v22 = vadd.f32 %v4693_v47, %v4605_v10  ;;  %5459 = vmatpush.bf16.msra.mxu3 %v9021_v43  ;;  %v9691_v47 = vld [vmem:[%s15122_s14 + $0x4] sm:$0xf0] }
 0x869   :  { %v13476_v31 = vpop.f32.mrf.mxu2  ;;  %v4836_v53 = vpop.f32.mrf.mxu3  ;;  %v9081_v10 = vor.u32 %v9691_v47, %v9080_v1 }
 0x86a   :  { %5302 = vmatmul.bf16.gmra.mxu1 %v13474_v48  ;;  %v4939_v40 = vmax.f32 %v4694_v22, 0.0  ;;  %v4837_v33 = vadd.f32 %v4836_v53, %v4748_v21 }
 0x86b   :  { %5842 = vmatpush.bf16.msra.mxu0 %v9081_v10 }
 0x86c   :  { %v13481_v62 = vpop.f32.mrf.mxu0  ;;  %v4912_v51 = vmax.f32 %v4837_v33, 0.0 }
 0x86f   :  { %v4695_v27 = vpop.f32.mrf.mxu1 }
 0x870   :  { %v4696_v11 = vadd.f32 %v4695_v27, %v4607_v60  ;;  %v4610_v27 = vadd.f32 %v13293_v42, %v13155_v8 }
 0x871   :  { %v13489_v14 = vpop.f32.mrf.mxu2  ;;  %v4838_v26 = vpop.f32.mrf.mxu3 }
 0x872   :  { %v4941_v5 = vmax.f32 %v4696_v11, 0.0  ;;  %v4839_v16 = vadd.f32 %v4838_v26, %v4750_v57  ;;  %v4753_v11 = vadd.f32 %v13398_v38, %v13351_v9 }
 0x874   :  { %v4914_v24 = vmax.f32 %v4839_v16, 0.0  ;;  %v13491_v15 = vpop.f32.mrf.mxu0  ;;  %v13493_v7 = vpack.c.bf16 %v4941_v5, %v4939_v40  ;;  %v4755_v40 = vadd.f32 %v13411_v59, %v13351_v9 }
 0x876   :  { %4880 = vmatmul.bf16.gmra.mxu3 %v13315_v36  ;;  %5381 = vmatmul.bf16.gmra.mxu2 %v13230_v0  ;;  %v13500_v53 = vpack.c.bf16 %v4914_v24, %v4912_v51  ;;  %v4612_v0 = vadd.f32 %v13307_v37, %v13155_v8  ;;  %v9176_v51 = vld [vmem:[%s15122_s14 + $0xc0] sm:$0xf] }
 0x877   :  { %5253 = vmatmul.bf16.gmra.mxu0 %v13493_v7  ;;  %v4698_v50 = vpop.f32.mrf.mxu1 }
 0x878   :  { %v4699_v21 = vadd.f32 %v4698_v50, %v4610_v27  ;;  %v9715_v50 = vld [vmem:[%s15122_s14 + $0xc4] sm:$0xf0]  ;;  %v4615_v27 = vadd.f32 %v13326_v44, %v13155_v8 }
 0x879   :  { %v13502_v22 = vpop.f32.mrf.mxu2  ;;  %v4841_v60 = vpop.f32.mrf.mxu3  ;;  %v9177_v1 = vor.u32 %v9715_v50, %v9176_v51 }
 0x87a   :  { %5307 = vmatmul.bf16.gmra.mxu1 %v13500_v53  ;;  %v4943_v42 = vmax.f32 %v4699_v21, 0.0  ;;  %v4842_v33 = vadd.f32 %v4841_v60, %v4753_v11  ;;  %v4760_v11 = vadd.f32 %v13437_v2, %v13351_v9  ;;  %v6193_v2 = vld [vmem:[%s15144_s10 + $0x8] sm:$0xf] }
 0x87b   :  { %5927 = vmatpush.bf16.msrb.mxu1 %v9177_v1  ;;  %v6279_v1 = vunpack.c.l.b16 %v6193_v2 }
 0x87c   :  { %v13507_v36 = vpop.f32.mrf.mxu0  ;;  %v4916_v38 = vmax.f32 %v4842_v33, 0.0 }
 0x87f   :  { %v4700_v57 = vpop.f32.mrf.mxu1 }
 0x880   :  { %v4701_v26 = vadd.f32 %v4700_v57, %v4612_v0  ;;  %v4758_v57 = vadd.f32 %v13424_v12, %v13351_v9 }
 0x881   :  { %v13515_v29 = vpop.f32.mrf.mxu2  ;;  %v4843_v63 = vpop.f32.mrf.mxu3 }
 0x882   :  { %v4945_v5 = vmax.f32 %v4701_v26, 0.0  ;;  %v4844_v16 = vadd.f32 %v4843_v63, %v4755_v40 }
 0x884   :  { %v4918_v43 = vmax.f32 %v4844_v16, 0.0  ;;  %v13517_v24 = vpop.f32.mrf.mxu0  ;;  %v13519_v37 = vpack.c.bf16 %v4945_v5, %v4943_v42 }
 0x886   :  { %4885 = vmatmul.bf16.gmra.mxu3 %v13343_v19  ;;  %5386 = vmatmul.bf16.gmra.mxu2 %v13256_v30  ;;  %v13526_v47 = vpack.c.bf16 %v4918_v43, %v4916_v38  ;;  %v4617_v19 = vadd.f32 %v13341_v23, %v13155_v8 }
 0x887   :  { %5258 = vmatmul.bf16.gmra.mxu0 %v13519_v37  ;;  %v4703_v59 = vpop.f32.mrf.mxu1 }
 0x888   :  { %v4704_v30 = vadd.f32 %v4703_v59, %v4615_v27  ;;  %v4620_v27 = vadd.f32 %v13361_v34, %v13155_v8 }
 0x889   :  { %v13528_v10 = vpop.f32.mrf.mxu2  ;;  %v4846_v60 = vpop.f32.mrf.mxu3 }
 0x88a   :  { %5312 = vmatmul.bf16.gmra.mxu1 %v13526_v47  ;;  %v4947_v42 = vmax.f32 %v4704_v30, 0.0  ;;  %v4847_v44 = vadd.f32 %v4846_v60, %v4758_v57  ;;  %v6281_v60 = vpack.c.b16 %v6279_v1, %v6279_v1  ;;  %v4763_v57 = vadd.f32 %v13450_v45, %v13351_v9  ;;  %v13575_v45 = vld [vmem:[%s15145_s4] sm:$0x3] }
 0x88c   :  { %v13533_v0 = vpop.f32.mrf.mxu0  ;;  %v4920_v51 = vmax.f32 %v4847_v44, 0.0 }
 0x88f   :  { %v4705_v21 = vpop.f32.mrf.mxu1 }
 0x890   :  { %v4706_v40 = vadd.f32 %v4705_v21, %v4617_v19  ;;  %v4622_v19 = vadd.f32 %v13377_v39, %v13155_v8 }
 0x891   :  { %v13541_v26 = vpop.f32.mrf.mxu2  ;;  %v4848_v63 = vpop.f32.mrf.mxu3 }
 0x892   :  { %v4949_v33 = vmax.f32 %v4706_v40, 0.0  ;;  %v4849_v5 = vadd.f32 %v4848_v63, %v4760_v11  ;;  %v4765_v11 = vadd.f32 %v13463_v13, %v13351_v9 }
 0x894   :  { %v4922_v16 = vmax.f32 %v4849_v5, 0.0  ;;  %v13543_v43 = vpop.f32.mrf.mxu0  ;;  %v13545_v23 = vpack.c.bf16 %v4949_v33, %v4947_v42 }
 0x896   :  { %5391 = vmatmul.bf16.gmra.mxu2 %v13282_v55  ;;  %5460 = vmatmul.bf16.vlgmr.msra.gmra.mxu3 %v13370_v41  ;;  %v13551_v50 = vpack.c.bf16 %v4922_v16, %v4920_v51  ;;  %v6334_v41 = vsel %vm6332_vm2, %v6281_v60, 0  ;;  %v9168_v51 = vld [vmem:[%s15122_s14 + $0xb0] sm:$0xf] }
 0x897   :  { %5263 = vmatmul.bf16.gmra.mxu0 %v13545_v23  ;;  %v4708_v12 = vpop.f32.mrf.mxu1 }
 0x898   :  { %6342 = vmatpush.bf16.msrb.mxu0 %v6334_v41  ;;  %v4709_v30 = vadd.f32 %v4708_v12, %v4620_v27  ;;  %v9713_v12 = vld [vmem:[%s15122_s14 + $0xb4] sm:$0xf0] }
 0x899   :  { %v13553_v38 = vpop.f32.mrf.mxu2  ;;  %v4851_v59 = vpop.f32.mrf.mxu3  ;;  %v9169_v13 = vor.u32 %v9713_v12, %v9168_v51 }
 0x89a   :  { %5317 = vmatmul.bf16.gmra.mxu1 %v13551_v50  ;;  %v4951_v42 = vmax.f32 %v4709_v30, 0.0  ;;  %v4852_v44 = vadd.f32 %v4851_v59, %v4763_v57  ;;  %v13581_v59 = vperm.slane %v13575_v45, 0  ;;  %v9138_v30 = vld [vmem:[%s15122_s14 + $0x78] sm:$0xf0] }
 0x89b   :  { %5928 = vmatpush.bf16.msrb.mxu1 %v9169_v13 }
 0x89c   :  { %v13558_v55 = vpop.f32.mrf.mxu0  ;;  %v4924_v2 = vmax.f32 %v4852_v44, 0.0 }
 0x89f   :  { %v4710_v21 = vpop.f32.mrf.mxu1 }
 0x8a0   :  { %v4711_v40 = vadd.f32 %v4710_v21, %v4622_v19  ;;  %v5195_v19 = vadd.f32 %v13387_v61, %v13581_v59  ;;  %v5197_v21 = vadd.f32 %v13403_v58, %v13581_v59 }
 0x8a1   :  { %v13566_v34 = vpop.f32.mrf.mxu2  ;;  %v4853_v63 = vpop.f32.mrf.mxu3 }
 0x8a2   :  { %v4953_v33 = vmax.f32 %v4711_v40, 0.0  ;;  %v4854_v5 = vadd.f32 %v4853_v63, %v4765_v11  ;;  %v4768_v63 = vadd.f32 %v13476_v31, %v13351_v9 }
 0x8a4   :  { %v4926_v16 = vmax.f32 %v4854_v5, 0.0  ;;  %v13568_v8 = vpop.f32.mrf.mxu0  ;;  %v13570_v39 = vpack.c.bf16 %v4953_v33, %v4951_v42  ;;  %v4770_v42 = vadd.f32 %v13489_v14, %v13351_v9 }
 0x8a6   :  { %5396 = vmatmul.bf16.gmra.mxu2 %v13310_v3  ;;  %5465 = vmatmul.bf16.gmra.mxu3 %v13396_v17  ;;  %v13583_v60 = vpack.c.bf16 %v4926_v16, %v4924_v2  ;;  %v9704_v17 = vld [vmem:[%s15122_s14 + $0x74] sm:$0xf] }
 0x8a7   :  { %5268 = vmatmul.bf16.gmra.mxu0 %v13570_v39  ;;  %v5283_v1 = vpop.f32.mrf.mxu1  ;;  %v9141_v11 = vor.u32 %v9704_v17, %v9138_v30  ;;  %v5200_v17 = vadd.f32 %v13413_v46, %v13581_v59 }
 0x8a8   :  { %v5284_v57 = vadd.f32 %v5283_v1, %v5195_v19 }
 0x8a9   :  { %v13585_v27 = vpop.f32.mrf.mxu2  ;;  %v4856_v41 = vpop.f32.mrf.mxu3  ;;  %6013 = vmatpush.bf16.msra.mxu2 %v9141_v11  ;;  %v4775_v11 = vadd.f32 %v13515_v29, %v13351_v9 }
 0x8aa   :  { %5322 = vmatmul.bf16.gmra.mxu1 %v13583_v60  ;;  %v5541_v5 = vmax.f32 %v5284_v57, 0.0  ;;  %v4857_v16 = vadd.f32 %v4856_v41, %v4768_v63  ;;  %v4773_v57 = vadd.f32 %v13502_v22, %v13351_v9  ;;  %v9711_v22 = vld [vmem:[%s15122_s14 + $0xa4] sm:$0xf0] }
 0x8ac   :  { %v13590_v3 = vpop.f32.mrf.mxu0  ;;  %v4928_v1 = vmax.f32 %v4857_v16, 0.0 }
 0x8af   :  { %v5285_v40 = vpop.f32.mrf.mxu1 }
 0x8b0   :  { %v5286_v44 = vadd.f32 %v5285_v40, %v5197_v21 }
 0x8b1   :  { %v13600_v33 = vpop.f32.mrf.mxu2  ;;  %v4858_v61 = vpop.f32.mrf.mxu3 }
 0x8b2   :  { %v5543_v51 = vmax.f32 %v5286_v44, 0.0  ;;  %v4859_v12 = vadd.f32 %v4858_v61, %v4770_v42 }
 0x8b4   :  { %v13602_v13 = vpack.c.bf16 %v5543_v51, %v5541_v5  ;;  %v4930_v58 = vmax.f32 %v4859_v12, 0.0  ;;  %v13604_v2 = vpop.f32.mrf.mxu0  ;;  %v9160_v12 = vld [vmem:[%s15122_s14 + $0xa0] sm:$0xf] }
 0x8b6   :  { %5401 = vmatmul.bf16.gmra.mxu2 %v13334_v28  ;;  %5470 = vmatmul.bf16.gmra.mxu3 %v13422_v54  ;;  %v13609_v14 = vpack.c.bf16 %v4930_v58, %v4928_v1  ;;  %v5202_v28 = vadd.f32 %v13429_v35, %v13581_v59  ;;  %v9161_v58 = vor.u32 %v9711_v22, %v9160_v12 }
 0x8b7   :  { %5843 = vmatmul.bf16.vlgmr.msra.gmra.mxu0 %v13602_v13  ;;  %v5288_v31 = vpop.f32.mrf.mxu1 }
 0x8b8   :  { %v5289_v54 = vadd.f32 %v5288_v31, %v5200_v17  ;;  %5929 = vmatpush.bf16.msrb.mxu1 %v9161_v58 }
 0x8b9   :  { %v13611_v19 = vpop.f32.mrf.mxu2  ;;  %v4861_v41 = vpop.f32.mrf.mxu3 }
 0x8ba   :  { %5327 = vmatmul.bf16.gmra.mxu1 %v13609_v14  ;;  %v5545_v46 = vmax.f32 %v5289_v54, 0.0  ;;  %v4862_v44 = vadd.f32 %v4861_v41, %v4773_v57 }
 0x8bc   :  { %v13616_v30 = vpop.f32.mrf.mxu0  ;;  %v4932_v1 = vmax.f32 %v4862_v44, 0.0 }
 0x8bf   :  { %v5290_v21 = vpop.f32.mrf.mxu1 }
 0x8c0   :  { %v5291_v40 = vadd.f32 %v5290_v21, %v5202_v28  ;;  %v5205_v28 = vadd.f32 %v13439_v18, %v13581_v59  ;;  %v9702_v21 = vld [vmem:[%s15122_s14 + $0x64] sm:$0xf] }
 0x8c1   :  { %v13624_v63 = vpop.f32.mrf.mxu2  ;;  %v4863_v42 = vpop.f32.mrf.mxu3 }
 0x8c2   :  { %v5547_v61 = vmax.f32 %v5291_v40, 0.0  ;;  %v4864_v5 = vadd.f32 %v4863_v42, %v4775_v11  ;;  %v4778_v42 = vadd.f32 %v13528_v10, %v13351_v9 }
 0x8c4   :  { %v4934_v16 = vmax.f32 %v4864_v5, 0.0  ;;  %v13626_v51 = vpop.f32.mrf.mxu0  ;;  %v13628_v35 = vpack.c.bf16 %v5547_v61, %v5545_v46  ;;  %v4780_v46 = vadd.f32 %v13541_v26, %v13351_v9 }
 0x8c6   :  { %5406 = vmatmul.bf16.gmra.mxu2 %v13363_v32  ;;  %5475 = vmatmul.bf16.gmra.mxu3 %v13448_v6  ;;  %v13635_v31 = vpack.c.bf16 %v4934_v16, %v4932_v1  ;;  %v9130_v32 = vld [vmem:[%s15122_s14 + $0x68] sm:$0xf0]  ;;  %v5207_v6 = vadd.f32 %v13455_v4, %v13581_v59 }
 0x8c7   :  { %5848 = vmatmul.bf16.gmra.mxu0 %v13628_v35  ;;  %v5293_v29 = vpop.f32.mrf.mxu1  ;;  %v9133_v11 = vor.u32 %v9702_v21, %v9130_v32 }
 0x8c8   :  { %v5294_v57 = vadd.f32 %v5293_v29, %v5205_v28 }
 0x8c9   :  { %v13637_v41 = vpop.f32.mrf.mxu2  ;;  %v4866_v17 = vpop.f32.mrf.mxu3  ;;  %6014 = vmatpush.bf16.msra.mxu2 %v9133_v11  ;;  %v4785_v11 = vadd.f32 %v13566_v34, %v13351_v9 }
 0x8ca   :  { %5332 = vmatmul.bf16.gmra.mxu1 %v13635_v31  ;;  %v5549_v5 = vmax.f32 %v5294_v57, 0.0  ;;  %v4867_v16 = vadd.f32 %v4866_v17, %v4778_v42  ;;  %v5210_v17 = vadd.f32 %v13465_v52, %v13581_v59  ;;  %v4783_v57 = vadd.f32 %v13553_v38, %v13351_v9  ;;  %v9709_v38 = vld [vmem:[%s15122_s14 + $0x94] sm:$0xf0] }
 0x8cc   :  { %v13642_v54 = vpop.f32.mrf.mxu0  ;;  %v4936_v29 = vmax.f32 %v4867_v16, 0.0 }
 0x8cf   :  { %v5295_v40 = vpop.f32.mrf.mxu1 }
 0x8d0   :  { %v5296_v44 = vadd.f32 %v5295_v40, %v5207_v6 }
 0x8d1   :  { %v13652_v61 = vpop.f32.mrf.mxu2  ;;  %v4868_v18 = vpop.f32.mrf.mxu3 }
 0x8d2   :  { %v5551_v12 = vmax.f32 %v5296_v44, 0.0  ;;  %v4869_v22 = vadd.f32 %v4868_v18, %v4780_v46 }
 0x8d4   :  { %v4938_v58 = vmax.f32 %v4869_v22, 0.0  ;;  %v13654_v4 = vpop.f32.mrf.mxu0  ;;  %v13656_v1 = vpack.c.bf16 %v5551_v12, %v5549_v5  ;;  %v9152_v22 = vld [vmem:[%s15122_s14 + $0x90] sm:$0xf] }
 0x8d6   :  { %5411 = vmatmul.bf16.gmra.mxu2 %v13389_v49  ;;  %5480 = vmatmul.bf16.gmra.mxu3 %v13474_v48  ;;  %v13661_v26 = vpack.c.bf16 %v4938_v58, %v4936_v29  ;;  %v5212_v49 = vadd.f32 %v13481_v62, %v13581_v59  ;;  %v9153_v58 = vor.u32 %v9709_v38, %v9152_v22 }
 0x8d7   :  { %5853 = vmatmul.bf16.gmra.mxu0 %v13656_v1  ;;  %v5298_v10 = vpop.f32.mrf.mxu1 }
 0x8d8   :  { %v5299_v48 = vadd.f32 %v5298_v10, %v5210_v17  ;;  %5930 = vmatpush.bf16.msrb.mxu1 %v9153_v58 }
 0x8d9   :  { %v4871_v28 = vpop.f32.mrf.mxu3  ;;  %v13663_v21 = vpop.f32.mrf.mxu2 }
 0x8da   :  { %5337 = vmatmul.bf16.gmra.mxu1 %v13661_v26  ;;  %v5553_v52 = vmax.f32 %v5299_v48, 0.0  ;;  %v4872_v44 = vadd.f32 %v4871_v28, %v4783_v57 }
 0x8dc   :  { %v13668_v32 = vpop.f32.mrf.mxu0  ;;  %v4940_v29 = vmax.f32 %v4872_v44, 0.0 }
 0x8df   :  { %v5300_v6 = vpop.f32.mrf.mxu1 }
 0x8e0   :  { %v5301_v40 = vadd.f32 %v5300_v6, %v5212_v49  ;;  %v5215_v49 = vadd.f32 %v13491_v15, %v13581_v59  ;;  %v9700_v6 = vld [vmem:[%s15122_s14 + $0x54] sm:$0xf] }
 0x8e1   :  { %v4873_v42 = vpop.f32.mrf.mxu3  ;;  %v13676_v46 = vpop.f32.mrf.mxu2 }
 0x8e2   :  { %v5555_v18 = vmax.f32 %v5301_v40, 0.0  ;;  %v4874_v5 = vadd.f32 %v4873_v42, %v4785_v11  ;;  %v4788_v42 = vadd.f32 %v13585_v27, %v13351_v9 }
 0x8e4   :  { %v4942_v16 = vmax.f32 %v4874_v5, 0.0  ;;  %v13678_v12 = vpop.f32.mrf.mxu0  ;;  %v13680_v62 = vpack.c.bf16 %v5555_v18, %v5553_v52  ;;  %v4790_v52 = vadd.f32 %v13600_v33, %v13351_v9 }
 0x8e6   :  { %5416 = vmatmul.bf16.gmra.mxu2 %v13415_v20  ;;  %5485 = vmatmul.bf16.gmra.mxu3 %v13500_v53  ;;  %v13687_v10 = vpack.c.bf16 %v4942_v16, %v4940_v29  ;;  %v9122_v20 = vld [vmem:[%s15122_s14 + $0x58] sm:$0xf0]  ;;  %v5217_v53 = vadd.f32 %v13507_v36, %v13581_v59 }
 0x8e7   :  { %5858 = vmatmul.bf16.gmra.mxu0 %v13680_v62  ;;  %v5303_v34 = vpop.f32.mrf.mxu1  ;;  %v9125_v11 = vor.u32 %v9700_v6, %v9122_v20 }
 0x8e8   :  { %v5304_v57 = vadd.f32 %v5303_v34, %v5215_v49 }
 0x8e9   :  { %v4876_v28 = vpop.f32.mrf.mxu3  ;;  %v13689_v17 = vpop.f32.mrf.mxu2  ;;  %6015 = vmatpush.bf16.msra.mxu2 %v9125_v11  ;;  %v4795_v11 = vadd.f32 %v13624_v63, %v13351_v9 }
 0x8ea   :  { %5342 = vmatmul.bf16.gmra.mxu1 %v13687_v10  ;;  %v5557_v5 = vmax.f32 %v5304_v57, 0.0  ;;  %v4877_v16 = vadd.f32 %v4876_v28, %v4788_v42  ;;  %v5220_v28 = vadd.f32 %v13517_v24, %v13581_v59  ;;  %v4793_v57 = vadd.f32 %v13611_v19, %v13351_v9  ;;  %v9707_v19 = vld [vmem:[%s15122_s14 + $0x84] sm:$0xf0] }
 0x8ec   :  { %v13694_v48 = vpop.f32.mrf.mxu0  ;;  %v4944_v34 = vmax.f32 %v4877_v16, 0.0 }
 0x8ef   :  { %v5305_v40 = vpop.f32.mrf.mxu1 }
 0x8f0   :  { %v5306_v44 = vadd.f32 %v5305_v40, %v5217_v53 }
 0x8f1   :  { %v4878_v18 = vpop.f32.mrf.mxu3  ;;  %v13704_v15 = vpop.f32.mrf.mxu2 }
 0x8f2   :  { %v5559_v22 = vmax.f32 %v5306_v44, 0.0  ;;  %v4879_v38 = vadd.f32 %v4878_v18, %v4790_v52 }
 0x8f4   :  { %v4946_v58 = vmax.f32 %v4879_v38, 0.0  ;;  %v13706_v36 = vpop.f32.mrf.mxu0  ;;  %v13708_v29 = vpack.c.bf16 %v5559_v22, %v5557_v5  ;;  %v9144_v38 = vld [vmem:[%s15122_s14 + $0x80] sm:$0xf] }
 0x8f5   :  { %v9145_v63 = vor.u32 %v9707_v19, %v9144_v38 }
 0x8f6   :  { %5421 = vmatmul.bf16.gmra.mxu2 %v13441_v25  ;;  %5490 = vmatmul.bf16.gmra.mxu3 %v13526_v47  ;;  %v13713_v33 = vpack.c.bf16 %v4946_v58, %v4944_v34  ;;  %v5222_v25 = vadd.f32 %v13533_v0, %v13581_v59 }
 0x8f7   :  { %5863 = vmatmul.bf16.gmra.mxu0 %v13708_v29  ;;  %v5308_v27 = vpop.f32.mrf.mxu1  ;;  %5931 = vmatpush.bf16.msrb.mxu1 %v9145_v63 }
 0x8f8   :  { %v5309_v47 = vadd.f32 %v5308_v27, %v5220_v28 }
 0x8f9   :  { %v4881_v49 = vpop.f32.mrf.mxu3  ;;  %v13715_v6 = vpop.f32.mrf.mxu2 }
 0x8fa   :  { %5347 = vmatmul.bf16.gmra.mxu1 %v13713_v33  ;;  %v5561_v24 = vmax.f32 %v5309_v47, 0.0  ;;  %v4882_v44 = vadd.f32 %v4881_v49, %v4793_v57 }
 0x8fc   :  { %v13720_v20 = vpop.f32.mrf.mxu0  ;;  %v4948_v58 = vmax.f32 %v4882_v44, 0.0 }
 0x8ff   :  { %v5310_v53 = vpop.f32.mrf.mxu1 }
 0x900   :  { %v5311_v40 = vadd.f32 %v5310_v53, %v5222_v25  ;;  %v5225_v25 = vadd.f32 %v13543_v43, %v13581_v59  ;;  %v9114_v53 = vld [vmem:[%s15122_s14 + $0x48] sm:$0xf0] }
 0x901   :  { %v4883_v42 = vpop.f32.mrf.mxu3  ;;  %v13728_v52 = vpop.f32.mrf.mxu2 }
 0x902   :  { %v5563_v18 = vmax.f32 %v5311_v40, 0.0  ;;  %v4884_v5 = vadd.f32 %v4883_v42, %v4795_v11  ;;  %v4798_v42 = vadd.f32 %v13637_v41, %v13351_v9  ;;  %v9722_v41 = vld [vmem:[%s15144_s10] sm:$0xff] }
 0x903   :  { %6343 = vmatpush.bf16.msrb.mxu0 %v9722_v41 }
 0x904   :  { %v4950_v16 = vmax.f32 %v4884_v5, 0.0  ;;  %v13730_v22 = vpop.f32.mrf.mxu0  ;;  %v13732_v0 = vpack.c.bf16 %v5563_v18, %v5561_v24  ;;  %v4800_v24 = vadd.f32 %v13652_v61, %v13351_v9 }
 0x906   :  { %5426 = vmatmul.bf16.gmra.mxu2 %v13467_v56  ;;  %5495 = vmatmul.bf16.gmra.mxu3 %v13551_v50  ;;  %v13739_v27 = vpack.c.bf16 %v4950_v16, %v4948_v58  ;;  %v9698_v56 = vld [vmem:[%s15122_s14 + $0x44] sm:$0xf]  ;;  %v5227_v50 = vadd.f32 %v13558_v55, %v13581_v59 }
 0x907   :  { %5868 = vmatmul.bf16.gmra.mxu0 %v13732_v0  ;;  %v5313_v34 = vpop.f32.mrf.mxu1  ;;  %v9117_v11 = vor.u32 %v9698_v56, %v9114_v53  ;;  %v5230_v56 = vadd.f32 %v13568_v8, %v13581_v59  ;;  %v13774_v53 = vperm.slane %v13575_v45, 1 }
 0x908   :  { %v5314_v57 = vadd.f32 %v5313_v34, %v5225_v25 }
 0x909   :  { %v4886_v49 = vpop.f32.mrf.mxu3  ;;  %v13741_v28 = vpop.f32.mrf.mxu2  ;;  %6016 = vmatpush.bf16.msra.mxu2 %v9117_v11  ;;  %v5373_v11 = vadd.f32 %v13663_v21, %v13774_v53  ;;  %v9696_v21 = vld [vmem:[%s15122_s14 + $0x34] sm:$0xf] }
 0x90a   :  { %5352 = vmatmul.bf16.gmra.mxu1 %v13739_v27  ;;  %v5565_v5 = vmax.f32 %v5314_v57, 0.0  ;;  %v4887_v16 = vadd.f32 %v4886_v49, %v4798_v42 }
 0x90c   :  { %v13746_v47 = vpop.f32.mrf.mxu0  ;;  %v4952_v34 = vmax.f32 %v4887_v16, 0.0 }
 0x90f   :  { %v5315_v40 = vpop.f32.mrf.mxu1 }
 0x910   :  { %v5316_v44 = vadd.f32 %v5315_v40, %v5227_v50  ;;  %v5375_v40 = vadd.f32 %v13676_v46, %v13774_v53 }
 0x911   :  { %v4888_v43 = vpop.f32.mrf.mxu3  ;;  %v13756_v18 = vpop.f32.mrf.mxu2 }
 0x912   :  { %v5567_v38 = vmax.f32 %v5316_v44, 0.0  ;;  %v4889_v19 = vadd.f32 %v4888_v43, %v4800_v24 }
 0x914   :  { %v4954_v55 = vmax.f32 %v4889_v19, 0.0  ;;  %v13758_v58 = vpop.f32.mrf.mxu0  ;;  %v13760_v63 = vpack.c.bf16 %v5567_v38, %v5565_v5  ;;  %v9730_v19 = vld [vmem:[#allocation12 + $0x38] sm:$0xff] }
 0x915   :  { %6573 = vmatpush.bf16.msra.mxu1 %v9730_v19 }
 0x916   :  { %5431 = vmatmul.bf16.gmra.mxu2 %v13493_v7  ;;  %5500 = vmatmul.bf16.gmra.mxu3 %v13583_v60  ;;  %v13766_v61 = vpack.c.bf16 %v4954_v55, %v4952_v34  ;;  %v5232_v60 = vadd.f32 %v13590_v3, %v13581_v59  ;;  %v9106_v55 = vld [vmem:[%s15122_s14 + $0x38] sm:$0xf0] }
 0x917   :  { %5873 = vmatmul.bf16.gmra.mxu0 %v13760_v63  ;;  %v5318_v9 = vpop.f32.mrf.mxu1  ;;  %v9109_v46 = vor.u32 %v9696_v21, %v9106_v55  ;;  %v9690_v55 = vld [vmem:[%s15122_s14 + $0x4] sm:$0xf] }
 0x918   :  { %v5319_v50 = vadd.f32 %v5318_v9, %v5230_v56 }
 0x919   :  { %v13768_v25 = vpop.f32.mrf.mxu2  ;;  %v5461_v49 = vpop.f32.mrf.mxu3  ;;  %6017 = vmatpush.bf16.msra.mxu2 %v9109_v46 }
 0x91a   :  { %5357 = vmatmul.bf16.gmra.mxu1 %v13766_v61  ;;  %v5569_v24 = vmax.f32 %v5319_v50, 0.0  ;;  %v5462_v44 = vadd.f32 %v5461_v49, %v5373_v11  ;;  %v9098_v50 = vld [vmem:[%s15122_s14 + $0x28] sm:$0xf0] }
 0x91c   :  { %v13776_v7 = vpop.f32.mrf.mxu0  ;;  %v5542_v34 = vmax.f32 %v5462_v44, 0.0 }
 0x91f   :  { %v5320_v57 = vpop.f32.mrf.mxu1 }
 0x920   :  { %v5321_v42 = vadd.f32 %v5320_v57, %v5232_v60  ;;  %v9694_v60 = vld [vmem:[%s15122_s14 + $0x24] sm:$0xf] }
 0x921   :  { %v13784_v8 = vpop.f32.mrf.mxu2  ;;  %v5463_v45 = vpop.f32.mrf.mxu3 }
 0x922   :  { %v5571_v43 = vmax.f32 %v5321_v42, 0.0  ;;  %v5464_v5 = vadd.f32 %v5463_v45, %v5375_v40  ;;  %v9692_v40 = vld [vmem:[%s15122_s14 + $0x14] sm:$0xf]  ;;  %v9090_v42 = vld [vmem:[%s15122_s14 + $0x18] sm:$0xf0]  ;;  %v5237_v45 = vadd.f32 %v13616_v30, %v13581_v59 }
 0x924   :  { %v5544_v16 = vmax.f32 %v5464_v5, 0.0  ;;  %v13786_v3 = vpop.f32.mrf.mxu0  ;;  %v13788_v38 = vpack.c.bf16 %v5571_v43, %v5569_v24  ;;  %v9093_v24 = vor.u32 %v9692_v40, %v9090_v42  ;;  %v5378_v43 = vadd.f32 %v13689_v17, %v13774_v53 }
 0x925   :  { %v5380_v5 = vadd.f32 %v13704_v15, %v13774_v53  ;;  %v5240_v42 = vadd.f32 %v13626_v51, %v13581_v59 }
 0x926   :  { %5436 = vmatmul.bf16.gmra.mxu2 %v13519_v37  ;;  %5505 = vmatmul.bf16.gmra.mxu3 %v13609_v14  ;;  %v13795_v41 = vpack.c.bf16 %v5544_v16, %v5542_v34  ;;  %v9101_v37 = vor.u32 %v9694_v60, %v9098_v50  ;;  %v5235_v14 = vadd.f32 %v13604_v2, %v13581_v59  ;;  %v9082_v34 = vld [vmem:[%s15122_s14 + $0x8] sm:$0xf0] }
 0x927   :  { %5878 = vmatmul.bf16.gmra.mxu0 %v13788_v38  ;;  %v5323_v9 = vpop.f32.mrf.mxu1  ;;  %v9085_v30 = vor.u32 %v9690_v55, %v9082_v34 }
 0x928   :  { %6018 = vmatpush.bf16.msra.mxu2 %v9101_v37  ;;  %v5324_v11 = vadd.f32 %v5323_v9, %v5235_v14 }
 0x929   :  { %v13797_v49 = vpop.f32.mrf.mxu2  ;;  %v5466_v56 = vpop.f32.mrf.mxu3 }
 0x92a   :  { %5932 = vmatmul.bf16.vlgmr.msrb.gmra.mxu1 %v13795_v41  ;;  %v5573_v16 = vmax.f32 %v5324_v11, 0.0  ;;  %v5467_v46 = vadd.f32 %v5466_v56, %v5378_v43  ;;  %v5385_v43 = vadd.f32 %v13728_v52, %v13774_v53 }
 0x92c   :  { %v13804_v57 = vpop.f32.mrf.mxu0  ;;  %6019 = vmatpush.bf16.msra.mxu2 %v9093_v24  ;;  %v5546_v17 = vmax.f32 %v5467_v46, 0.0  ;;  %v9720_v46 = vld [vmem:[%s15122_s14 + $0xf4] sm:$0xf] }
 0x92f   :  { %v5325_v44 = vpop.f32.mrf.mxu1 }
 0x930   :  { %v5326_v2 = vadd.f32 %v5325_v44, %v5237_v45  ;;  %6020 = vmatpush.bf16.msra.mxu2 %v9085_v30  ;;  %v5383_v44 = vadd.f32 %v13715_v6, %v13774_v53  ;;  %v9729_v6 = vld [vmem:[#allocation12 + $0x30] sm:$0xff] }
 0x931   :  { %v13814_v19 = vpop.f32.mrf.mxu2  ;;  %v5468_v21 = vpop.f32.mrf.mxu3  ;;  %6574 = vmatpush.bf16.msra.mxu1 %v9729_v6 }
 0x932   :  { %v5575_v9 = vmax.f32 %v5326_v2, 0.0  ;;  %v5469_v60 = vadd.f32 %v5468_v21, %v5380_v5 }
 0x934   :  { %v5548_v50 = vmax.f32 %v5469_v60, 0.0  ;;  %v13818_v37 = vpop.f32.mrf.mxu0  ;;  %v13820_v14 = vpack.c.bf16 %v5575_v9, %v5573_v16  ;;  %v9202_v9 = vld [vmem:[%s15122_s14 + $0xf8] sm:$0xf0] }
 0x935   :  { %v9205_v60 = vor.u32 %v9720_v46, %v9202_v9 }
 0x936   :  { %5441 = vmatmul.bf16.gmra.mxu2 %v13545_v23  ;;  %5510 = vmatmul.bf16.gmra.mxu3 %v13635_v31  ;;  %v13825_v11 = vpack.c.bf16 %v5548_v50, %v5546_v17  ;;  %v5242_v23 = vadd.f32 %v13642_v54, %v13581_v59 }
 0x937   :  { %5883 = vmatmul.bf16.gmra.mxu0 %v13820_v14  ;;  %v5328_v15 = vpop.f32.mrf.mxu1  ;;  %6102 = vmatpush.bf16.msrb.mxu3 %v9205_v60 }
 0x938   :  { %v5329_v31 = vadd.f32 %v5328_v15, %v5240_v42 }
 0x939   :  { %v13827_v56 = vpop.f32.mrf.mxu2  ;;  %v5471_v40 = vpop.f32.mrf.mxu3 }
 0x93a   :  { %5937 = vmatmul.bf16.gmra.mxu1 %v13825_v11  ;;  %v5577_v21 = vmax.f32 %v5329_v31, 0.0  ;;  %v5472_v55 = vadd.f32 %v5471_v40, %v5383_v44  ;;  %v5388_v44 = vadd.f32 %v13741_v28, %v13774_v53 }
 0x93c   :  { %v13832_v45 = vpop.f32.mrf.mxu0  ;;  %v5550_v17 = vmax.f32 %v5472_v55, 0.0 }
 0x93f   :  { %v5330_v24 = vpop.f32.mrf.mxu1 }
 0x940   :  { %v5331_v5 = vadd.f32 %v5330_v24, %v5242_v23  ;;  %v5245_v23 = vadd.f32 %v13654_v4, %v13581_v59 }
 0x941   :  { %v13840_v2 = vpop.f32.mrf.mxu2  ;;  %v5473_v16 = vpop.f32.mrf.mxu3 }
 0x942   :  { %v5579_v51 = vmax.f32 %v5331_v5, 0.0  ;;  %v5474_v34 = vadd.f32 %v5473_v16, %v5385_v43  ;;  %v5390_v43 = vadd.f32 %v13756_v18, %v13774_v53 }
 0x944   :  { %v5552_v54 = vmax.f32 %v5474_v34, 0.0  ;;  %v13844_v30 = vpop.f32.mrf.mxu0  ;;  %v13846_v50 = vpack.c.bf16 %v5579_v51, %v5577_v21 }
 0x946   :  { %5446 = vmatmul.bf16.gmra.mxu2 %v13570_v39  ;;  %5515 = vmatmul.bf16.gmra.mxu3 %v13661_v26  ;;  %v13851_v15 = vpack.c.bf16 %v5552_v54, %v5550_v17  ;;  %v5247_v39 = vadd.f32 %v13668_v32, %v13581_v59  ;;  %v9718_v17 = vld [vmem:[%s15122_s14 + $0xe4] sm:$0xf] }
 0x947   :  { %5888 = vmatmul.bf16.gmra.mxu0 %v13846_v50  ;;  %v5333_v52 = vpop.f32.mrf.mxu1 }
 0x948   :  { %v5334_v26 = vadd.f32 %v5333_v52, %v5245_v23  ;;  %v9194_v52 = vld [vmem:[%s15122_s14 + $0xe8] sm:$0xf0]  ;;  %v5250_v23 = vadd.f32 %v13678_v12, %v13581_v59 }
 0x949   :  { %v13853_v40 = vpop.f32.mrf.mxu2  ;;  %v5476_v42 = vpop.f32.mrf.mxu3 }
 0x94a   :  { %5942 = vmatmul.bf16.gmra.mxu1 %v13851_v15  ;;  %v5581_v55 = vmax.f32 %v5334_v26, 0.0  ;;  %v5477_v4 = vadd.f32 %v5476_v42, %v5388_v44  ;;  %v9197_v42 = vor.u32 %v9718_v17, %v9194_v52  ;;  %v9186_v26 = vld [vmem:[%s15122_s14 + $0xd8] sm:$0xf0] }
 0x94c   :  { %v13858_v31 = vpop.f32.mrf.mxu0  ;;  %v5554_v60 = vmax.f32 %v5477_v4, 0.0  ;;  %6103 = vmatpush.bf16.msrb.mxu3 %v9197_v42 }
 0x94f   :  { %v5335_v24 = vpop.f32.mrf.mxu1 }
 0x950   :  { %v5336_v5 = vadd.f32 %v5335_v24, %v5247_v39  ;;  %v9716_v39 = vld [vmem:[%s15122_s14 + $0xd4] sm:$0xf]  ;;  %v5252_v24 = vadd.f32 %v13694_v48, %v13581_v59 }
 0x951   :  { %v13866_v16 = vpop.f32.mrf.mxu2  ;;  %v5478_v21 = vpop.f32.mrf.mxu3  ;;  %v9189_v44 = vor.u32 %v9716_v39, %v9186_v26 }
 0x952   :  { %v5583_v51 = vmax.f32 %v5336_v5, 0.0  ;;  %v5479_v34 = vadd.f32 %v5478_v21, %v5390_v43  ;;  %v5393_v5 = vadd.f32 %v13768_v25, %v13774_v53  ;;  %v5395_v21 = vadd.f32 %v13784_v8, %v13774_v53  ;;  %v9728_v8 = vld [vmem:[#allocation12 + $0x28] sm:$0xff] }
 0x953   :  { %6104 = vmatpush.bf16.msrb.mxu3 %v9189_v44  ;;  %6575 = vmatpush.bf16.msra.mxu1 %v9728_v8 }
 0x954   :  { %v5556_v46 = vmax.f32 %v5479_v34, 0.0  ;;  %v13868_v32 = vpop.f32.mrf.mxu0  ;;  %v13870_v9 = vpack.c.bf16 %v5583_v51, %v5581_v55  ;;  %v9714_v34 = vld [vmem:[%s15122_s14 + $0xc4] sm:$0xf] }
 0x956   :  { %5520 = vmatmul.bf16.gmra.mxu3 %v13687_v10  ;;  %6021 = vmatmul.bf16.vlgmr.msra.gmra.mxu2 %v13602_v13  ;;  %v13875_v18 = vpack.c.bf16 %v5556_v46, %v5554_v60  ;;  %v9178_v46 = vld [vmem:[%s15122_s14 + $0xc8] sm:$0xf0] }
 0x957   :  { %5893 = vmatmul.bf16.gmra.mxu0 %v13870_v9  ;;  %v5338_v28 = vpop.f32.mrf.mxu1  ;;  %v9181_v17 = vor.u32 %v9714_v34, %v9178_v46  ;;  %v9154_v34 = vld [vmem:[%s15122_s14 + $0x98] sm:$0xf0]  ;;  %v5257_v46 = vadd.f32 %v13720_v20, %v13581_v59 }
 0x958   :  { %v5339_v13 = vadd.f32 %v5338_v28, %v5250_v23  ;;  %v9712_v23 = vld [vmem:[%s15122_s14 + $0xb4] sm:$0xf] }
 0x959   :  { %v13877_v54 = vpop.f32.mrf.mxu2  ;;  %v5481_v6 = vpop.f32.mrf.mxu3  ;;  %6105 = vmatpush.bf16.msrb.mxu3 %v9181_v17  ;;  %v5400_v17 = vadd.f32 %v13814_v19, %v13774_v53 }
 0x95a   :  { %5947 = vmatmul.bf16.gmra.mxu1 %v13875_v18  ;;  %v5585_v55 = vmax.f32 %v5339_v13, 0.0  ;;  %v5482_v60 = vadd.f32 %v5481_v6, %v5393_v5  ;;  %v9170_v13 = vld [vmem:[%s15122_s14 + $0xb8] sm:$0xf0]  ;;  %v9710_v5 = vld [vmem:[%s15122_s14 + $0xa4] sm:$0xf] }
 0x95b   :  { %v9173_v6 = vor.u32 %v9712_v23, %v9170_v13  ;;  %v9706_v13 = vld [vmem:[%s15122_s14 + $0x84] sm:$0xf] }
 0x95c   :  { %v13884_v10 = vpop.f32.mrf.mxu0  ;;  %v5558_v39 = vmax.f32 %v5482_v60, 0.0 }
 0x95d   :  { %6106 = vmatpush.bf16.msrb.mxu3 %v9173_v6 }
 0x95f   :  { %v5340_v43 = vpop.f32.mrf.mxu1 }
 0x960   :  { %v5341_v12 = vadd.f32 %v5340_v43, %v5252_v24 }
 0x961   :  { %v13894_v4 = vpop.f32.mrf.mxu2  ;;  %v5483_v51 = vpop.f32.mrf.mxu3 }
 0x962   :  { %v5587_v48 = vmax.f32 %v5341_v12, 0.0  ;;  %v5484_v28 = vadd.f32 %v5483_v51, %v5395_v21  ;;  %v9162_v21 = vld [vmem:[%s15122_s14 + $0xa8] sm:$0xf0]  ;;  %v9708_v51 = vld [vmem:[%s15122_s14 + $0x94] sm:$0xf] }
 0x963   :  { %v9157_v60 = vor.u32 %v9708_v51, %v9154_v34  ;;  %v5260_v34 = vadd.f32 %v13730_v22, %v13581_v59 }
 0x964   :  { %v5560_v52 = vmax.f32 %v5484_v28, 0.0  ;;  %v13898_v42 = vpop.f32.mrf.mxu0  ;;  %v13900_v25 = vpack.c.bf16 %v5587_v48, %v5585_v55  ;;  %v5398_v28 = vadd.f32 %v13797_v49, %v13774_v53 }
 0x966   :  { %5525 = vmatmul.bf16.gmra.mxu3 %v13713_v33  ;;  %6026 = vmatmul.bf16.gmra.mxu2 %v13628_v35  ;;  %v13907_v24 = vpack.c.bf16 %v5560_v52, %v5558_v39  ;;  %v9165_v33 = vor.u32 %v9710_v5, %v9162_v21  ;;  %v5255_v35 = vadd.f32 %v13706_v36, %v13581_v59  ;;  %v9146_v39 = vld [vmem:[%s15122_s14 + $0x88] sm:$0xf0] }
 0x967   :  { %5898 = vmatmul.bf16.gmra.mxu0 %v13900_v25  ;;  %v5343_v26 = vpop.f32.mrf.mxu1  ;;  %v9149_v20 = vor.u32 %v9706_v13, %v9146_v39 }
 0x968   :  { %6107 = vmatpush.bf16.msrb.mxu3 %v9165_v33  ;;  %v5344_v55 = vadd.f32 %v5343_v26, %v5255_v35 }
 0x969   :  { %v13909_v44 = vpop.f32.mrf.mxu2  ;;  %v5486_v43 = vpop.f32.mrf.mxu3 }
 0x96a   :  { %5952 = vmatmul.bf16.gmra.mxu1 %v13907_v24  ;;  %v5589_v52 = vmax.f32 %v5344_v55, 0.0  ;;  %v5487_v6 = vadd.f32 %v5486_v43, %v5398_v28  ;;  %v5405_v28 = vadd.f32 %v13840_v2, %v13774_v53 }
 0x96c   :  { %v13916_v12 = vpop.f32.mrf.mxu0  ;;  %6108 = vmatpush.bf16.msrb.mxu3 %v9157_v60  ;;  %v5562_v49 = vmax.f32 %v5487_v6, 0.0 }
 0x96f   :  { %v5345_v48 = vpop.f32.mrf.mxu1 }
 0x970   :  { %v5346_v36 = vadd.f32 %v5345_v48, %v5257_v46  ;;  %6109 = vmatpush.bf16.msrb.mxu3 %v9149_v20  ;;  %v5403_v48 = vadd.f32 %v13827_v56, %v13774_v53 }
 0x971   :  { %v13926_v8 = vpop.f32.mrf.mxu2  ;;  %v5488_v23 = vpop.f32.mrf.mxu3 }
 0x972   :  { %v5591_v26 = vmax.f32 %v5346_v36, 0.0  ;;  %v5489_v5 = vadd.f32 %v5488_v23, %v5400_v17 }
 0x974   :  { %v5564_v21 = vmax.f32 %v5489_v5, 0.0  ;;  %v13930_v33 = vpop.f32.mrf.mxu0  ;;  %v13932_v35 = vpack.c.bf16 %v5591_v26, %v5589_v52  ;;  %v9727_v5 = vld [vmem:[#allocation12 + $0x20] sm:$0xff] }
 0x975   :  { %6576 = vmatpush.bf16.msra.mxu1 %v9727_v5 }
 0x976   :  { %5530 = vmatmul.bf16.gmra.mxu3 %v13739_v27  ;;  %6031 = vmatmul.bf16.gmra.mxu2 %v13656_v1  ;;  %v13937_v55 = vpack.c.bf16 %v5564_v21, %v5562_v49  ;;  %v5262_v27 = vadd.f32 %v13746_v47, %v13581_v59 }
 0x977   :  { %5903 = vmatmul.bf16.gmra.mxu0 %v13932_v35  ;;  %v5348_v19 = vpop.f32.mrf.mxu1 }
 0x978   :  { %v5349_v60 = vadd.f32 %v5348_v19, %v5260_v34  ;;  %v5265_v19 = vadd.f32 %v13758_v58, %v13581_v59 }
 0x979   :  { %v13939_v43 = vpop.f32.mrf.mxu2  ;;  %v5491_v51 = vpop.f32.mrf.mxu3 }
 0x97a   :  { %5957 = vmatmul.bf16.gmra.mxu1 %v13937_v55  ;;  %v5593_v23 = vmax.f32 %v5349_v60, 0.0  ;;  %v5492_v13 = vadd.f32 %v5491_v51, %v5403_v48  ;;  %v5410_v60 = vadd.f32 %v13866_v16, %v13774_v53 }
 0x97c   :  { %v13944_v46 = vpop.f32.mrf.mxu0  ;;  %v5566_v20 = vmax.f32 %v5492_v13, 0.0 }
 0x97f   :  { %v5350_v1 = vpop.f32.mrf.mxu1 }
 0x980   :  { %v5351_v17 = vadd.f32 %v5350_v1, %v5262_v27  ;;  %v5408_v27 = vadd.f32 %v13853_v40, %v13774_v53 }
 0x981   :  { %v13952_v36 = vpop.f32.mrf.mxu2  ;;  %v5493_v52 = vpop.f32.mrf.mxu3 }
 0x982   :  { %v5595_v22 = vmax.f32 %v5351_v17, 0.0  ;;  %v5494_v39 = vadd.f32 %v5493_v52, %v5405_v28 }
 0x984   :  { %v5568_v6 = vmax.f32 %v5494_v39, 0.0  ;;  %v13954_v26 = vpop.f32.mrf.mxu0  ;;  %v13956_v47 = vpack.c.bf16 %v5595_v22, %v5593_v23 }
 0x986   :  { %5535 = vmatmul.bf16.gmra.mxu3 %v13766_v61  ;;  %6036 = vmatmul.bf16.gmra.mxu2 %v13680_v62  ;;  %v13961_v2 = vpack.c.bf16 %v5568_v6, %v5566_v20  ;;  %v5267_v61 = vadd.f32 %v13776_v7, %v13581_v59  ;;  %v5270_v20 = vadd.f32 %v13786_v3, %v13581_v59 }
 0x987   :  { %5908 = vmatmul.bf16.gmra.mxu0 %v13956_v47  ;;  %v5353_v56 = vpop.f32.mrf.mxu1 }
 0x988   :  { %v5354_v62 = vadd.f32 %v5353_v56, %v5265_v19 }
 0x989   :  { %v13963_v21 = vpop.f32.mrf.mxu2  ;;  %v5496_v49 = vpop.f32.mrf.mxu3 }
 0x98a   :  { %5962 = vmatmul.bf16.gmra.mxu1 %v13961_v2  ;;  %v5597_v17 = vmax.f32 %v5354_v62, 0.0  ;;  %v5497_v52 = vadd.f32 %v5496_v49, %v5408_v27  ;;  %v13997_v49 = vld [vmem:[%s15146_s19] sm:$0x3]  ;;  %v5415_v62 = vadd.f32 %v13894_v4, %v13774_v53 }
 0x98b   :  { %v14004_v27 = vperm.slane %v13997_v49, 0 }
 0x98c   :  { %v13968_v51 = vpop.f32.mrf.mxu0  ;;  %v5570_v39 = vmax.f32 %v5497_v52, 0.0 }
 0x98d   :  { %v5845_v4 = vadd.f32 %v13818_v37, %v14004_v27 }
 0x98f   :  { %v5355_v34 = vpop.f32.mrf.mxu1 }
 0x990   :  { %v5356_v1 = vadd.f32 %v5355_v34, %v5267_v61  ;;  %v5413_v61 = vadd.f32 %v13877_v54, %v13774_v53  ;;  %v9726_v54 = vld [vmem:[#allocation12 + $0x18] sm:$0xff] }
 0x991   :  { %v13976_v48 = vpop.f32.mrf.mxu2  ;;  %v5498_v28 = vpop.f32.mrf.mxu3  ;;  %6577 = vmatpush.bf16.msra.mxu1 %v9726_v54 }
 0x992   :  { %v5599_v58 = vmax.f32 %v5356_v1, 0.0  ;;  %v5499_v23 = vadd.f32 %v5498_v28, %v5410_v60 }
 0x994   :  { %v5572_v13 = vmax.f32 %v5499_v23, 0.0  ;;  %v13978_v22 = vpop.f32.mrf.mxu0  ;;  %v13980_v7 = vpack.c.bf16 %v5599_v58, %v5597_v17 }
 0x996   :  { %6041 = vmatmul.bf16.gmra.mxu2 %v13708_v29  ;;  %6110 = vmatmul.bf16.vlgmr.msrb.gmra.mxu3 %v13795_v41  ;;  %v13985_v16 = vpack.c.bf16 %v5572_v13, %v5570_v39  ;;  %v5272_v29 = vadd.f32 %v13804_v57, %v13581_v59 }
 0x997   :  { %5913 = vmatmul.bf16.gmra.mxu0 %v13980_v7  ;;  %v5358_v40 = vpop.f32.mrf.mxu1 }
 0x998   :  { %v5359_v41 = vadd.f32 %v5358_v40, %v5270_v20 }
 0x999   :  { %v13987_v6 = vpop.f32.mrf.mxu2  ;;  %v5501_v5 = vpop.f32.mrf.mxu3 }
 0x99a   :  { %5967 = vmatmul.bf16.gmra.mxu1 %v13985_v16  ;;  %v5601_v1 = vmax.f32 %v5359_v41, 0.0  ;;  %v5502_v28 = vadd.f32 %v5501_v5, %v5413_v61  ;;  %v5418_v41 = vadd.f32 %v13909_v44, %v13774_v53 }
 0x99c   :  { %v13992_v56 = vpop.f32.mrf.mxu0  ;;  %v5574_v23 = vmax.f32 %v5502_v28, 0.0  ;;  %v9434_v28 = vld [vmem:[%s15147_s7] sm:$0xff] }
 0x99f   :  { %v5360_v19 = vpop.f32.mrf.mxu1 }
 0x9a0   :  { %v5361_v34 = vadd.f32 %v5360_v19, %v5272_v29  ;;  %v9738_v29 = vld [vmem:[#allocation13 + $0x38] sm:$0xff]  ;;  %v5420_v19 = vadd.f32 %v13926_v8, %v13774_v53 }
 0x9a1   :  { %v14006_v3 = vpop.f32.mrf.mxu2  ;;  %v5503_v60 = vpop.f32.mrf.mxu3  ;;  %6778 = vmatpush.bf16.msrb.mxu2 %v9738_v29 }
 0x9a2   :  { %v5603_v59 = vmax.f32 %v5361_v34, 0.0  ;;  %v5504_v57 = vadd.f32 %v5503_v60, %v5415_v62 }
 0x9a4   :  { %v5576_v17 = vmax.f32 %v5504_v57, 0.0  ;;  %v14008_v52 = vpop.f32.mrf.mxu0  ;;  %v14010_v58 = vpack.c.bf16 %v5603_v59, %v5601_v1 }
 0x9a6   :  { %6046 = vmatmul.bf16.gmra.mxu2 %v13732_v0  ;;  %6115 = vmatmul.bf16.gmra.mxu3 %v13825_v11  ;;  %v14019_v40 = vpack.c.bf16 %v5576_v17, %v5574_v23  ;;  %v5847_v0 = vadd.f32 %v13832_v45, %v14004_v27  ;;  %v5850_v45 = vadd.f32 %v13844_v30, %v14004_v27 }
 0x9a7   :  { %5918 = vmatmul.bf16.gmra.mxu0 %v14010_v58  ;;  %v5933_v13 = vpop.f32.mrf.mxu1 }
 0x9a8   :  { %v14017_v39 = vadd.f32 %v5933_v13, %v5845_v4 }
 0x9a9   :  { %v14021_v5 = vpop.f32.mrf.mxu2  ;;  %v5506_v20 = vpop.f32.mrf.mxu3 }
 0x9aa   :  { %5972 = vmatmul.bf16.gmra.mxu1 %v14019_v40  ;;  %v5507_v60 = vadd.f32 %v5506_v20, %v5418_v41  ;;  %v5425_v20 = vadd.f32 %v13952_v36, %v13774_v53 }
 0x9ac   :  { %v14024_v37 = vpop.f32.mrf.mxu0  ;;  %v5578_v17 = vmax.f32 %v5507_v60, 0.0 }
 0x9af   :  { %v5935_v11 = vpop.f32.mrf.mxu1 }
 0x9b0   :  { %v14032_v61 = vadd.f32 %v5935_v11, %v5847_v0 }
 0x9b1   :  { %v14034_v62 = vpop.f32.mrf.mxu2  ;;  %v5508_v34 = vpop.f32.mrf.mxu3 }
 0x9b2   :  { %v5509_v1 = vadd.f32 %v5508_v34, %v5420_v19  ;;  %v9435_v34 = vld [vmem:[%s15147_s7 + $0x8] sm:$0xff] }
 0x9b4   :  { %v5580_v59 = vmax.f32 %v5509_v1, 0.0  ;;  %v14037_v57 = vpop.f32.mrf.mxu0 }
 0x9b6   :  { %6051 = vmatmul.bf16.gmra.mxu2 %v13760_v63  ;;  %6120 = vmatmul.bf16.gmra.mxu3 %v13851_v15  ;;  %v14046_v54 = vpack.c.bf16 %v5580_v59, %v5578_v17  ;;  %v5852_v63 = vadd.f32 %v13858_v31, %v14004_v27  ;;  %v5423_v15 = vadd.f32 %v13939_v43, %v13774_v53 }
 0x9b7   :  { %9274 = vmatmul.msk.bf16.vlgmr.msrb.gmra.mxu0 %vm6283_vm3, %v9434_v28  ;;  %v5938_v44 = vpop.f32.mrf.mxu1  ;;  %v9725_v28 = vld [vmem:[#allocation12 + $0x10] sm:$0xff]  ;;  %v5855_v31 = vadd.f32 %v13868_v32, %v14004_v27 }
 0x9b8   :  { %v14044_v8 = vadd.f32 %v5938_v44, %v5850_v45  ;;  %6578 = vmatpush.bf16.msra.mxu1 %v9725_v28 }
 0x9b9   :  { %v14048_v4 = vpop.f32.mrf.mxu2  ;;  %v5511_v23 = vpop.f32.mrf.mxu3 }
 0x9ba   :  { %5977 = vmatmul.bf16.gmra.mxu1 %v14046_v54  ;;  %v5512_v41 = vadd.f32 %v5511_v23, %v5423_v15  ;;  %v9737_v23 = vld [vmem:[#allocation13 + $0x30] sm:$0xff] }
 0x9bb   :  { %6779 = vmatpush.bf16.msrb.mxu2 %v9737_v23 }
 0x9bc   :  { %v14051_v13 = vpop.f32.mrf.mxu0  ;;  %v5582_v59 = vmax.f32 %v5512_v41, 0.0 }
 0x9bf   :  { %v5940_v30 = vpop.f32.mrf.mxu1 }
 0x9c0   :  { %v14059_v29 = vadd.f32 %v5940_v30, %v5852_v63  ;;  %v5428_v63 = vadd.f32 %v13963_v21, %v13774_v53  ;;  %v5430_v30 = vadd.f32 %v13976_v48, %v13774_v53 }
 0x9c1   :  { %v14061_v0 = vpop.f32.mrf.mxu2  ;;  %v5513_v11 = vpop.f32.mrf.mxu3 }
 0x9c2   :  { %v5514_v19 = vadd.f32 %v5513_v11, %v5425_v20 }
 0x9c4   :  { %v5584_v60 = vmax.f32 %v5514_v19, 0.0  ;;  %v14064_v1 = vpop.f32.mrf.mxu0 }
 0x9c6   :  { %6056 = vmatmul.bf16.gmra.mxu2 %v13788_v38  ;;  %6125 = vmatmul.bf16.gmra.mxu3 %v13875_v18  ;;  %v14073_v45 = vpack.c.bf16 %v5584_v60, %v5582_v59  ;;  %v5857_v38 = vadd.f32 %v13884_v10, %v14004_v27  ;;  %v5860_v10 = vadd.f32 %v13898_v42, %v14004_v27 }
 0x9c7   :  { %9275 = vmatmul.msk.bf16.gmra.mxu0 %vm6283_vm3, %v9435_v34  ;;  %v5943_v43 = vpop.f32.mrf.mxu1  ;;  %v9436_v34 = vld [vmem:[%s15147_s7 + $0x10] sm:$0xff] }
 0x9c8   :  { %v14071_v36 = vadd.f32 %v5943_v43, %v5855_v31 }
 0x9c9   :  { %v14075_v17 = vpop.f32.mrf.mxu2  ;;  %v5516_v44 = vpop.f32.mrf.mxu3 }
 0x9ca   :  { %5982 = vmatmul.bf16.gmra.mxu1 %v14073_v45  ;;  %v5517_v41 = vadd.f32 %v5516_v44, %v5428_v63 }
 0x9cc   :  { %v14078_v32 = vpop.f32.mrf.mxu0  ;;  %v5586_v31 = vmax.f32 %v5517_v41, 0.0 }
 0x9cf   :  { %v5945_v18 = vpop.f32.mrf.mxu1 }
 0x9d0   :  { %v14086_v15 = vadd.f32 %v5945_v18, %v5857_v38  ;;  %v5435_v38 = vadd.f32 %v14006_v3, %v13774_v53 }
 0x9d1   :  { %v14088_v20 = vpop.f32.mrf.mxu2  ;;  %v5518_v11 = vpop.f32.mrf.mxu3 }
 0x9d2   :  { %v5519_v19 = vadd.f32 %v5518_v11, %v5430_v30 }
 0x9d4   :  { %v5588_v60 = vmax.f32 %v5519_v19, 0.0  ;;  %v14091_v28 = vpop.f32.mrf.mxu0  ;;  %v9437_v19 = vld [vmem:[%s15147_s7 + $0x18] sm:$0xff] }
 0x9d6   :  { %6061 = vmatmul.bf16.gmra.mxu2 %v13820_v14  ;;  %6130 = vmatmul.bf16.gmra.mxu3 %v13907_v24  ;;  %v14100_v59 = vpack.c.bf16 %v5588_v60, %v5586_v31  ;;  %v5862_v14 = vadd.f32 %v13916_v12, %v14004_v27  ;;  %v5433_v24 = vadd.f32 %v13987_v6, %v13774_v53 }
 0x9d7   :  { %9276 = vmatmul.msk.bf16.gmra.mxu0 %vm6283_vm3, %v9436_v34  ;;  %v5948_v21 = vpop.f32.mrf.mxu1  ;;  %v5865_v12 = vadd.f32 %v13930_v33, %v14004_v27 }
 0x9d8   :  { %v14098_v48 = vadd.f32 %v5948_v21, %v5860_v10  ;;  %v9724_v10 = vld [vmem:[#allocation12 + $0x8] sm:$0xff] }
 0x9d9   :  { %v5521_v43 = vpop.f32.mrf.mxu3  ;;  %v14102_v44 = vpop.f32.mrf.mxu2  ;;  %6579 = vmatpush.bf16.msra.mxu1 %v9724_v10  ;;  %v5870_v10 = vadd.f32 %v13954_v26, %v14004_v27 }
 0x9da   :  { %5987 = vmatmul.bf16.gmra.mxu1 %v14100_v59  ;;  %v5522_v30 = vadd.f32 %v5521_v43, %v5433_v24  ;;  %v5440_v24 = vadd.f32 %v14034_v62, %v13774_v53 }
 0x9dc   :  { %v14105_v23 = vpop.f32.mrf.mxu0  ;;  %v5590_v31 = vmax.f32 %v5522_v30, 0.0 }
 0x9df   :  { %v5950_v42 = vpop.f32.mrf.mxu1 }
 0x9e0   :  { %v14113_v18 = vadd.f32 %v5950_v42, %v5862_v14  ;;  %v9736_v42 = vld [vmem:[#allocation13 + $0x28] sm:$0xff] }
 0x9e1   :  { %v5523_v63 = vpop.f32.mrf.mxu3  ;;  %v14115_v41 = vpop.f32.mrf.mxu2  ;;  %6780 = vmatpush.bf16.msrb.mxu2 %v9736_v42 }
 0x9e2   :  { %v5524_v11 = vadd.f32 %v5523_v63, %v5435_v38 }
 0x9e4   :  { %v5592_v34 = vmax.f32 %v5524_v11, 0.0  ;;  %v14118_v60 = vpop.f32.mrf.mxu0  ;;  %v9438_v11 = vld [vmem:[%s15147_s7 + $0x20] sm:$0xff] }
 0x9e6   :  { %6066 = vmatmul.bf16.gmra.mxu2 %v13846_v50  ;;  %6135 = vmatmul.bf16.gmra.mxu3 %v13937_v55  ;;  %v14127_v21 = vpack.c.bf16 %v5592_v34, %v5590_v31  ;;  %v5438_v55 = vadd.f32 %v14021_v5, %v13774_v53 }
 0x9e7   :  { %9277 = vmatmul.msk.bf16.gmra.mxu0 %vm6283_vm3, %v9437_v19  ;;  %v5953_v6 = vpop.f32.mrf.mxu1 }
 0x9e8   :  { %v14125_v3 = vadd.f32 %v5953_v6, %v5865_v12 }
 0x9e9   :  { %v5526_v43 = vpop.f32.mrf.mxu3  ;;  %v14132_v33 = vpop.f32.mrf.mxu2 }
 0x9ea   :  { %5992 = vmatmul.bf16.gmra.mxu1 %v14127_v21  ;;  %v5527_v63 = vadd.f32 %v5526_v43, %v5438_v55 }
 0x9ec   :  { %v14130_v14 = vpop.f32.mrf.mxu0  ;;  %v5594_v12 = vmax.f32 %v5527_v63, 0.0 }
 0x9ef   :  { %v14134_v50 = vpop.f32.mrf.mxu1 }
 0x9f1   :  { %v5528_v38 = vpop.f32.mrf.mxu3  ;;  %v14147_v31 = vpop.f32.mrf.mxu2 }
 0x9f2   :  { %v5529_v30 = vadd.f32 %v5528_v38, %v5440_v24 }
 0x9f4   :  { %v5596_v19 = vmax.f32 %v5529_v30, 0.0  ;;  %v14141_v34 = vpop.f32.mrf.mxu0  ;;  %v9723_v30 = vld [vmem:[#allocation12] sm:$0xff] }
 0x9f5   :  { %6580 = vmatpush.bf16.msra.mxu1 %v9723_v30 }
 0x9f6   :  { %6071 = vmatmul.bf16.gmra.mxu2 %v13870_v9  ;;  %6140 = vmatmul.bf16.gmra.mxu3 %v13961_v2  ;;  %v14152_v6 = vpack.c.bf16 %v5596_v19, %v5594_v12  ;;  %v5443_v9 = vadd.f32 %v14048_v4, %v13774_v53  ;;  %v5445_v2 = vadd.f32 %v14061_v0, %v13774_v53 }
 0x9f7   :  { %9278 = vmatmul.msk.bf16.gmra.mxu0 %vm6283_vm3, %v9438_v11  ;;  %v5958_v5 = vpop.f32.mrf.mxu1  ;;  %v9439_v11 = vld [vmem:[%s15147_s7 + $0x28] sm:$0xff]  ;;  %v5875_v12 = vadd.f32 %v13978_v22, %v14004_v27  ;;  %v9735_v22 = vld [vmem:[#allocation13 + $0x20] sm:$0xff] }
 0x9f8   :  { %v14150_v62 = vadd.f32 %v5958_v5, %v5870_v10  ;;  %6781 = vmatpush.bf16.msrb.mxu2 %v9735_v22  ;;  %v5880_v22 = vadd.f32 %v14008_v52, %v14004_v27 }
 0x9f9   :  { %v5531_v43 = vpop.f32.mrf.mxu3  ;;  %v14163_v55 = vpop.f32.mrf.mxu2 }
 0x9fa   :  { %5997 = vmatmul.bf16.gmra.mxu1 %v14152_v6  ;;  %v5532_v38 = vadd.f32 %v5531_v43, %v5443_v9 }
 0x9fc   :  { %v14155_v42 = vpop.f32.mrf.mxu0  ;;  %v5598_v5 = vmax.f32 %v5532_v38, 0.0 }
 0x9fd   :  { %15148 = vst [vmem:[#allocation45_spill] sm:$0xff] %v14155_v42 }
 0x9ff   :  { %v14157_v26 = vpop.f32.mrf.mxu1 }
 0xa01   :  { %v5533_v24 = vpop.f32.mrf.mxu3 }
 0xa02   :  { %v5534_v63 = vadd.f32 %v5533_v24, %v5445_v2  ;;  %v14178_v2 = vpop.f32.mrf.mxu2 }
 0xa04   :  { %v5600_v19 = vmax.f32 %v5534_v63, 0.0  ;;  %v14166_v10 = vpop.f32.mrf.mxu0 }
 0xa06   :  { %6076 = vmatmul.bf16.gmra.mxu2 %v13900_v25  ;;  %6145 = vmatmul.bf16.gmra.mxu3 %v13985_v16  ;;  %v14175_v43 = vpack.c.bf16 %v5600_v19, %v5598_v5  ;;  %v5448_v25 = vadd.f32 %v14075_v17, %v13774_v53  ;;  %v5450_v16 = vadd.f32 %v14088_v20, %v13774_v53  ;;  %v9440_v19 = vld [vmem:[%s15147_s7 + $0x30] sm:$0xff] }
 0xa07   :  { %9279 = vmatmul.msk.bf16.gmra.mxu0 %vm6283_vm3, %v9439_v11  ;;  %v5963_v4 = vpop.f32.mrf.mxu1 }
 0xa08   :  { %v14173_v0 = vadd.f32 %v5963_v4, %v5875_v12  ;;  %v14190_v12 = vperm.slane %v13997_v49, 1 }
 0xa09   :  { %v5536_v9 = vpop.f32.mrf.mxu3 }
 0xa0a   :  { %6002 = vmatmul.bf16.gmra.mxu1 %v14175_v43  ;;  %v5537_v30 = vadd.f32 %v5536_v9, %v5448_v25  ;;  %v6023_v49 = vadd.f32 %v14102_v44, %v14190_v12 }
 0xa0c   :  { %v14180_v24 = vpop.f32.mrf.mxu0  ;;  %v5602_v42 = vmax.f32 %v5537_v30, 0.0  ;;  %v9441_v30 = vld [vmem:[%s15147_s7 + $0x38] sm:$0xff] }
 0xa0d   :  { %15149 = vst [vmem:[#allocation53_spill] sm:$0xff] %v14180_v24  ;;  %v14194_v24 = vpop.f32.mrf.mxu2 }
 0xa0f   :  { %v14182_v38 = vpop.f32.mrf.mxu1 }
 0xa11   :  { %v5538_v63 = vpop.f32.mrf.mxu3 }
 0xa12   :  { %v5539_v11 = vadd.f32 %v5538_v63, %v5450_v16  ;;  %v6025_v16 = vadd.f32 %v14115_v41, %v14190_v12  ;;  %v6028_v41 = vadd.f32 %v14132_v33, %v14190_v12 }
 0xa14   :  { %v5604_v5 = vmax.f32 %v5539_v11, 0.0  ;;  %v14192_v4 = vpop.f32.mrf.mxu0  ;;  %v5885_v11 = vadd.f32 %v14037_v57, %v14004_v27 }
 0xa16   :  { %6081 = vmatmul.bf16.gmra.mxu2 %v13932_v35  ;;  %6150 = vmatmul.bf16.gmra.mxu3 %v14019_v40  ;;  %v14205_v20 = vpack.c.bf16 %v5604_v5, %v5602_v42  ;;  %v14212_v35 = vpop.f32.mrf.mxu2 }
 0xa17   :  { %9280 = vmatmul.msk.bf16.gmra.mxu0 %vm6283_vm3, %v9440_v19  ;;  %v5968_v53 = vpop.f32.mrf.mxu1 }
 0xa18   :  { %v14203_v17 = vadd.f32 %v5968_v53, %v5880_v22 }
 0xa19   :  { %v6111_v9 = vpop.f32.mrf.mxu3 }
 0xa1a   :  { %v14207_v25 = vadd.f32 %v6111_v9, %v6023_v49  ;;  %6007 = vmatmul.bf16.gmra.mxu1 %v14205_v20 }
 0xa1c   :  { %v14210_v52 = vpop.f32.mrf.mxu0 }
 0xa1e   :  { %v14232_v22 = vpop.f32.mrf.mxu2 }
 0xa1f   :  { %v14214_v40 = vpop.f32.mrf.mxu1 }
 0xa21   :  { %v6113_v63 = vpop.f32.mrf.mxu3 }
 0xa22   :  { %v14218_v44 = vadd.f32 %v6113_v63, %v6025_v16 }
 0xa24   :  { %15150 = vst [vmem:[#allocation35_spill] sm:$0xff] %v14218_v44  ;;  %v14221_v42 = vpop.f32.mrf.mxu0 }
 0xa26   :  { %6086 = vmatmul.bf16.gmra.mxu2 %v13956_v47  ;;  %6155 = vmatmul.bf16.gmra.mxu3 %v14046_v54  ;;  %v9734_v47 = vld [vmem:[#allocation13 + $0x18] sm:$0xff]  ;;  %v6030_v54 = vadd.f32 %v14147_v31, %v14190_v12  ;;  %v14244_v33 = vpop.f32.mrf.mxu2  ;;  %v6033_v31 = vadd.f32 %v14163_v55, %v14190_v12  ;;  %v6035_v55 = vadd.f32 %v14178_v2, %v14190_v12 }
 0xa27   :  { %9281 = vmatmul.msk.bf16.gmra.mxu0 %vm6283_vm3, %v9441_v30  ;;  %v5973_v19 = vpop.f32.mrf.mxu1  ;;  %6782 = vmatpush.bf16.msrb.mxu2 %v9734_v47  ;;  %15153 = vst [vmem:[#allocation55_spill] sm:$0xff] %v14244_v33  ;;  %v9442_v30 = vld [vmem:[%s15147_s7 + $0x40] sm:$0xff] }
 0xa28   :  { %v14230_v5 = vadd.f32 %v5973_v19, %v5885_v11  ;;  %v5890_v19 = vadd.f32 %v14064_v1, %v14004_v27 }
 0xa29   :  { %v6116_v53 = vpop.f32.mrf.mxu3 }
 0xa2a   :  { %v14234_v49 = vadd.f32 %v6116_v53, %v6028_v41 }
 0xa2c   :  { %15151 = vst [vmem:[#allocation54_spill] sm:$0xff] %v14234_v49  ;;  %v14236_v9 = vpop.f32.mrf.mxu0 }
 0xa2e   :  { %v14259_v1 = vpop.f32.mrf.mxu2 }
 0xa2f   :  { %v14238_v57 = vpop.f32.mrf.mxu1 }
 0xa31   :  { %v6118_v16 = vpop.f32.mrf.mxu3 }
 0xa32   :  { %v14242_v63 = vadd.f32 %v6118_v16, %v6030_v54 }
 0xa34   :  { %15152 = vst [vmem:[#allocation46_spill] sm:$0xff] %v14242_v63  ;;  %v6345_v11 = vpop.f32.mrf.mxu0 }
 0xa35   :  { %v6425_v16 = vadd.f32 %v6345_v11, %v14017_v39  ;;  %v9443_v39 = vld [vmem:[%s15147_s7 + $0x48] sm:$0xff] }
 0xa36   :  { %6091 = vmatmul.bf16.gmra.mxu2 %v13980_v7  ;;  %6160 = vmatmul.bf16.gmra.mxu3 %v14073_v45 }
 0xa37   :  { %9282 = vmatmul.msk.bf16.gmra.mxu0 %vm6283_vm3, %v9442_v30  ;;  %v5978_v41 = vpop.f32.mrf.mxu1  ;;  %v6457_v45 = vmax.f32 %v6425_v16, 0.0 }
 0xa38   :  { %v14254_v53 = vadd.f32 %v5978_v41, %v5890_v19  ;;  %v9746_v19 = vld [vmem:[#allocation15 + $0x38] sm:$0xff] }
 0xa39   :  { %v6121_v47 = vpop.f32.mrf.mxu3  ;;  %6983 = vmatpush.bf16.msra.mxu3 %v9746_v19  ;;  %v6040_v19 = vadd.f32 %v14212_v35, %v14190_v12  ;;  %v6043_v35 = vadd.f32 %v14232_v22, %v14190_v12 }
 0xa3a   :  { %v14256_v54 = vadd.f32 %v6121_v47, %v6033_v31  ;;  %v5895_v31 = vadd.f32 %v14091_v28, %v14004_v27 }
 0xa3c   :  { %v6347_v33 = vpop.f32.mrf.mxu0 }
 0xa3d   :  { %v6426_v7 = vadd.f32 %v6347_v33, %v14032_v61  ;;  %v14273_v61 = vpop.f32.mrf.mxu2 }
 0xa3f   :  { %v6458_v63 = vmax.f32 %v6426_v7, 0.0  ;;  %v14262_v30 = vpop.f32.mrf.mxu1 }
 0xa41   :  { %v6489_v41 = vpack.c.bf16 %v6458_v63, %v6457_v45  ;;  %v6123_v49 = vpop.f32.mrf.mxu3 }
 0xa42   :  { %v14266_v44 = vadd.f32 %v6123_v49, %v6035_v55  ;;  %v6038_v49 = vadd.f32 %v14194_v24, %v14190_v12  ;;  %v9733_v55 = vld [vmem:[#allocation13 + $0x10] sm:$0xff] }
 0xa43   :  { %6581 = vmatmul.bf16.vlgmr.msra.gmra.mxu1 %v6489_v41  ;;  %6783 = vmatpush.bf16.msrb.mxu2 %v9733_v55 }
 0xa44   :  { %v6350_v11 = vpop.f32.mrf.mxu0 }
 0xa45   :  { %v6427_v28 = vadd.f32 %v6350_v11, %v14044_v8  ;;  %v6052_v24 = vpop.f32.mrf.mxu2 }
 0xa46   :  { %6096 = vmatmul.bf16.gmra.mxu2 %v14010_v58  ;;  %6165 = vmatmul.bf16.gmra.mxu3 %v14100_v59 }
 0xa47   :  { %9283 = vmatmul.msk.bf16.gmra.mxu0 %vm6283_vm3, %v9443_v39  ;;  %v5983_v2 = vpop.f32.mrf.mxu1  ;;  %v6459_v59 = vmax.f32 %v6427_v28, 0.0 }
 0xa48   :  { %v14278_v63 = vadd.f32 %v5983_v2, %v5895_v31  ;;  %v9444_v2 = vld [vmem:[%s15147_s7 + $0x50] sm:$0xff] }
 0xa49   :  { %v6126_v33 = vpop.f32.mrf.mxu3 }
 0xa4a   :  { %v14280_v47 = vadd.f32 %v6126_v33, %v6038_v49 }
 0xa4c   :  { %v6352_v16 = vpop.f32.mrf.mxu0 }
 0xa4d   :  { %v6428_v58 = vadd.f32 %v6352_v16, %v14059_v29  ;;  %v5900_v29 = vadd.f32 %v14118_v60, %v14004_v27  ;;  %v14301_v16 = vpop.f32.mrf.mxu2 }
 0xa4f   :  { %v6460_v7 = vmax.f32 %v6428_v58, 0.0  ;;  %v14284_v45 = vpop.f32.mrf.mxu1 }
 0xa51   :  { %v6128_v41 = vpop.f32.mrf.mxu3  ;;  %v6490_v39 = vpack.c.bf16 %v6460_v7, %v6459_v59 }
 0xa52   :  { %v14288_v31 = vadd.f32 %v6128_v41, %v6040_v19  ;;  %v9745_v19 = vld [vmem:[#allocation15 + $0x30] sm:$0xff] }
 0xa53   :  { %6586 = vmatmul.bf16.gmra.mxu1 %v6490_v39  ;;  %6984 = vmatpush.bf16.msra.mxu3 %v9745_v19  ;;  %v9445_v39 = vld [vmem:[%s15147_s7 + $0x58] sm:$0xff]  ;;  %v9732_v19 = vld [vmem:[#allocation13 + $0x8] sm:$0xff] }
 0xa54   :  { %v6355_v8 = vpop.f32.mrf.mxu0  ;;  %6784 = vmatpush.bf16.msrb.mxu2 %v9732_v19 }
 0xa55   :  { %v6429_v58 = vadd.f32 %v6355_v8, %v14071_v36 }
 0xa56   :  { %6170 = vmatmul.bf16.gmra.mxu3 %v14127_v21 }
 0xa57   :  { %9284 = vmatmul.msk.bf16.gmra.mxu0 %vm6283_vm3, %v9444_v2  ;;  %v5988_v11 = vpop.f32.mrf.mxu1  ;;  %v6461_v21 = vmax.f32 %v6429_v58, 0.0 }
 0xa58   :  { %v14297_v49 = vadd.f32 %v5988_v11, %v5900_v29  ;;  %v6057_v29 = vpop.f32.mrf.mxu2  ;;  %v5905_v11 = vadd.f32 %v14141_v34, %v14004_v27 }
 0xa59   :  { %v6131_v33 = vpop.f32.mrf.mxu3 }
 0xa5a   :  { %v14299_v28 = vadd.f32 %v6131_v33, %v6043_v35 }
 0xa5c   :  { %v6357_v59 = vpop.f32.mrf.mxu0 }
 0xa5d   :  { %v6430_v60 = vadd.f32 %v6357_v59, %v14086_v15  ;;  %v6048_v15 = vadd.f32 %v14259_v1, %v14190_v12 }
 0xa5f   :  { %v6462_v7 = vmax.f32 %v6430_v60, 0.0  ;;  %v14305_v55 = vpop.f32.mrf.mxu1 }
 0xa60   :  { %v14322_v34 = vpop.f32.mrf.mxu2 }
 0xa61   :  { %v14307_v41 = vpop.f32.mrf.mxu3  ;;  %v6491_v22 = vpack.c.bf16 %v6462_v7, %v6461_v21 }
 0xa63   :  { %6591 = vmatmul.bf16.gmra.mxu1 %v6491_v22 }
 0xa64   :  { %v6360_v2 = vpop.f32.mrf.mxu0 }
 0xa65   :  { %v6431_v58 = vadd.f32 %v6360_v2, %v14098_v48  ;;  %v5910_v48 = vadd.f32 %v14166_v10, %v14004_v27  ;;  %v6053_v2 = vadd.f32 %v6052_v24, %v14190_v12  ;;  %v9744_v24 = vld [vmem:[#allocation15 + $0x28] sm:$0xff] }
 0xa66   :  { %6175 = vmatmul.bf16.gmra.mxu3 %v14152_v6 }
 0xa67   :  { %9285 = vmatmul.msk.bf16.gmra.mxu0 %vm6283_vm3, %v9445_v39  ;;  %v5993_v36 = vpop.f32.mrf.mxu1  ;;  %v6463_v6 = vmax.f32 %v6431_v58, 0.0  ;;  %v9446_v39 = vld [vmem:[%s15147_s7 + $0x60] sm:$0xff]  ;;  %6985 = vmatpush.bf16.msra.mxu3 %v9744_v24 }
 0xa68   :  { %v14316_v8 = vadd.f32 %v5993_v36, %v5905_v11 }
 0xa69   :  { %v6136_v35 = vpop.f32.mrf.mxu3 }
 0xa6a   :  { %v14318_v33 = vadd.f32 %v6136_v35, %v6048_v15  ;;  %v5867_v15 = vadd.f32 %v13944_v46, %v14004_v27  ;;  %v6062_v35 = vpop.f32.mrf.mxu2 }
 0xa6c   :  { %v6362_v59 = vpop.f32.mrf.mxu0 }
 0xa6d   :  { %v6432_v60 = vadd.f32 %v6362_v59, %v14113_v18 }
 0xa6f   :  { %v6464_v21 = vmax.f32 %v6432_v60, 0.0  ;;  %v14324_v7 = vpop.f32.mrf.mxu1  ;;  %v5956_v60 = vadd.f32 %v14134_v50, %v5867_v15  ;;  %v5915_v50 = vadd.f32 %v14192_v4, %v14004_v27 }
 0xa71   :  { %v14326_v22 = vpop.f32.mrf.mxu3  ;;  %v6492_v1 = vpack.c.bf16 %v6464_v21, %v6463_v6 }
 0xa72   :  { %v14346_v46 = vpop.f32.mrf.mxu2 }
 0xa73   :  { %6596 = vmatmul.bf16.gmra.mxu1 %v6492_v1 }
 0xa74   :  { %v6365_v11 = vpop.f32.mrf.mxu0 }
 0xa75   :  { %v6433_v10 = vadd.f32 %v6365_v11, %v14125_v3  ;;  %v6058_v11 = vadd.f32 %v6057_v29, %v14190_v12  ;;  %v9731_v29 = vld [vmem:[#allocation13] sm:$0xff] }
 0xa76   :  { %6180 = vmatmul.bf16.gmra.mxu3 %v14175_v43  ;;  %6785 = vmatpush.bf16.msrb.mxu2 %v9731_v29 }
 0xa77   :  { %9286 = vmatmul.msk.bf16.gmra.mxu0 %vm6283_vm3, %v9446_v39  ;;  %v5998_v18 = vpop.f32.mrf.mxu1  ;;  %v6465_v21 = vmax.f32 %v6433_v10, 0.0 }
 0xa78   :  { %v14334_v36 = vadd.f32 %v5998_v18, %v5910_v48  ;;  %v9447_v18 = vld [vmem:[%s15147_s7 + $0x68] sm:$0xff] }
 0xa79   :  { %v6141_v58 = vpop.f32.mrf.mxu3 }
 0xa7a   :  { %v14338_v59 = vadd.f32 %v6141_v58, %v6053_v2  ;;  %v5872_v58 = vadd.f32 %v13968_v51, %v14004_v27  ;;  %v9448_v51 = vld [vmem:[%s15147_s7 + $0x70] sm:$0xff] }
 0xa7c   :  { %v6367_v43 = vpop.f32.mrf.mxu0 }
 0xa7d   :  { %v6434_v6 = vadd.f32 %v6367_v43, %v5956_v60  ;;  %v5961_v43 = vadd.f32 %v14157_v26, %v5872_v58  ;;  %v5920_v26 = vadd.f32 %v14221_v42, %v14004_v27 }
 0xa7f   :  { %v6466_v19 = vmax.f32 %v6434_v6, 0.0  ;;  %v14342_v1 = vpop.f32.mrf.mxu1 }
 0xa81   :  { %v14344_v39 = vpop.f32.mrf.mxu3  ;;  %v6493_v48 = vpack.c.bf16 %v6466_v19, %v6465_v21 }
 0xa83   :  { %6601 = vmatmul.bf16.gmra.mxu1 %v6493_v48 }
 0xa84   :  { %v6370_v2 = vpop.f32.mrf.mxu0 }
 0xa85   :  { %v6435_v4 = vadd.f32 %v6370_v2, %v14150_v62  ;;  %v6063_v2 = vadd.f32 %v6062_v35, %v14190_v12 }
 0xa86   :  { %6185 = vmatmul.bf16.gmra.mxu3 %v14205_v20  ;;  %v6067_v20 = vpop.f32.mrf.mxu2 }
 0xa87   :  { %9287 = vmatmul.msk.bf16.gmra.mxu0 %vm6283_vm3, %v9447_v18  ;;  %v6003_v3 = vpop.f32.mrf.mxu1  ;;  %v6467_v19 = vmax.f32 %v6435_v4, 0.0 }
 0xa88   :  { %v14354_v15 = vadd.f32 %v6003_v3, %v5915_v50 }
 0xa89   :  { %v6146_v60 = vpop.f32.mrf.mxu3 }
 0xa8a   :  { %v14358_v10 = vadd.f32 %v6146_v60, %v6058_v11  ;;  %v5877_v60 = vadd.f32 %v13992_v56, %v14004_v27  ;;  %v6068_v56 = vadd.f32 %v6067_v20, %v14190_v12 }
 0xa8c   :  { %v6372_v6 = vpop.f32.mrf.mxu0 }
 0xa8d   :  { %v6436_v21 = vadd.f32 %v6372_v6, %v5961_v43  ;;  %v5966_v6 = vadd.f32 %v14182_v38, %v5877_v60 }
 0xa8e   :  { %v14369_v11 = vpop.f32.mrf.mxu2 }
 0xa8f   :  { %v6468_v24 = vmax.f32 %v6436_v21, 0.0  ;;  %v14362_v48 = vpop.f32.mrf.mxu1  ;;  %15154 = vst [vmem:[#allocation60_spill] sm:$0xff] %v14369_v11 }
 0xa91   :  { %v14364_v18 = vpop.f32.mrf.mxu3  ;;  %v6494_v50 = vpack.c.bf16 %v6468_v24, %v6467_v19 }
 0xa93   :  { %6606 = vmatmul.bf16.gmra.mxu1 %v6494_v50 }
 0xa94   :  { %v6375_v3 = vpop.f32.mrf.mxu0 }
 0xa95   :  { %v6437_v42 = vadd.f32 %v6375_v3, %v14173_v0  ;;  %v5882_v0 = vadd.f32 %v14024_v37, %v14004_v27 }
 0xa96   :  { %v6072_v50 = vpop.f32.mrf.mxu2 }
 0xa97   :  { %9288 = vmatmul.msk.bf16.gmra.mxu0 %vm6283_vm3, %v9448_v51  ;;  %v6008_v62 = vpop.f32.mrf.mxu1  ;;  %v6469_v24 = vmax.f32 %v6437_v42, 0.0  ;;  %v6073_v37 = vadd.f32 %v6072_v50, %v14190_v12 }
 0xa98   :  { %v14373_v58 = vadd.f32 %v6008_v62, %v5920_v26  ;;  %v9449_v26 = vld [vmem:[%s15147_s7 + $0x78] sm:$0xff]  ;;  %v9743_v62 = vld [vmem:[#allocation15 + $0x20] sm:$0xff] }
 0xa99   :  { %v6151_v43 = vpop.f32.mrf.mxu3  ;;  %6986 = vmatpush.bf16.msra.mxu3 %v9743_v62 }
 0xa9a   :  { %v14377_v4 = vadd.f32 %v6151_v43, %v6063_v2  ;;  %v5971_v2 = vadd.f32 %v14214_v40, %v5882_v0  ;;  %v5887_v40 = vadd.f32 %v14051_v13, %v14004_v27  ;;  %v9742_v13 = vld [vmem:[#allocation15 + $0x18] sm:$0xff] }
 0xa9c   :  { %v6377_v21 = vpop.f32.mrf.mxu0 }
 0xa9d   :  { %v6438_v19 = vadd.f32 %v6377_v21, %v5966_v6  ;;  %6987 = vmatpush.bf16.msra.mxu3 %v9742_v13 }
 0xa9e   :  { %v14391_v60 = vpop.f32.mrf.mxu2 }
 0xa9f   :  { %v6470_v29 = vmax.f32 %v6438_v19, 0.0  ;;  %15155 = vst [vmem:[#allocation56_spill] sm:$0xff] %v14391_v60 }
 0xaa1   :  { %v14381_v51 = vpop.f32.mrf.mxu3  ;;  %v6495_v35 = vpack.c.bf16 %v6470_v29, %v6469_v24 }
 0xaa3   :  { %6611 = vmatmul.bf16.gmra.mxu1 %v6495_v35 }
 0xaa4   :  { %v6380_v11 = vpop.f32.mrf.mxu0 }
 0xaa5   :  { %v6439_v43 = vadd.f32 %v6380_v11, %v14203_v17  ;;  %v5976_v11 = vadd.f32 %v14238_v57, %v5887_v40 }
 0xaa6   :  { %v6077_v35 = vpop.f32.mrf.mxu2 }
 0xaa7   :  { %9289 = vmatmul.msk.bf16.gmra.mxu0 %vm6283_vm3, %v9449_v26  ;;  %v6471_v21 = vmax.f32 %v6439_v43, 0.0  ;;  %v14397_v26 = vpop.f32.mrf.mxu1 }
 0xaa9   :  { %v6156_v38 = vpop.f32.mrf.mxu3 }
 0xaaa   :  { %v14388_v3 = vadd.f32 %v6156_v38, %v6068_v56 }
 0xaac   :  { %v6382_v6 = vpop.f32.mrf.mxu0 }
 0xaad   :  { %v6440_v42 = vadd.f32 %v6382_v6, %v5971_v2 }
 0xaae   :  { %v14405_v2 = vpop.f32.mrf.mxu2 }
 0xaaf   :  { %v6472_v19 = vmax.f32 %v6440_v42, 0.0  ;;  %15157 = vst [vmem:[#allocation52_spill] sm:$0xff] %v14405_v2 }
 0xab1   :  { %v14394_v24 = vpop.f32.mrf.mxu3  ;;  %v6496_v29 = vpack.c.bf16 %v6472_v19, %v6471_v21  ;;  %v14410_v19 = vld [vmem:[%s15156_s11] ss:$0 sm:$0xff] }
 0xab3   :  { %6616 = vmatmul.bf16.gmra.mxu1 %v6496_v29 }
 0xab4   :  { %v6385_v20 = vpop.f32.mrf.mxu0 }
 0xab5   :  { %v6441_v56 = vadd.f32 %v6385_v20, %v14230_v5  ;;  %v6078_v5 = vadd.f32 %v6077_v35, %v14190_v12 }
 0xab6   :  { %v6082_v40 = vpop.f32.mrf.mxu2 }
 0xab7   :  { %v6473_v43 = vmax.f32 %v6441_v56, 0.0 }
 0xab9   :  { %v6161_v62 = vpop.f32.mrf.mxu3 }
 0xaba   :  { %v14401_v17 = vadd.f32 %v6161_v62, %v6073_v37  ;;  %v5892_v37 = vadd.f32 %v14078_v32, %v14004_v27 }
 0xabc   :  { %v6387_v0 = vpop.f32.mrf.mxu0 }
 0xabd   :  { %v6442_v38 = vadd.f32 %v6387_v0, %v5976_v11  ;;  %v5981_v0 = vadd.f32 %v14262_v30, %v5892_v37 }
 0xabe   :  { %v14423_v2 = vpop.f32.mrf.mxu2 }
 0xabf   :  { %v6474_v6 = vmax.f32 %v6442_v38, 0.0 }
 0xac0   :  { %v6582_v42 = vpop.f32.mrf.mxu1 }
 0xac1   :  { %v14407_v50 = vpop.f32.mrf.mxu3  ;;  %v6497_v21 = vpack.c.bf16 %v6474_v6, %v6473_v43  ;;  %v6583_v57 = vadd.f32 %v14410_v19, %v6582_v42 }
 0xac2   :  { %15158 = vst [vmem:[#allocation57_spill] sm:$0xff] %v14407_v50 }
 0xac3   :  { %6621 = vmatmul.bf16.gmra.mxu1 %v6497_v21  ;;  %v6662_v38 = vmax.f32 %v6583_v57, 0.0  ;;  %v5897_v57 = vadd.f32 %v14105_v23, %v14004_v27 }
 0xac4   :  { %v6390_v29 = vpop.f32.mrf.mxu0 }
 0xac5   :  { %v6443_v43 = vadd.f32 %v6390_v29, %v14254_v53  ;;  %v6083_v53 = vadd.f32 %v6082_v40, %v14190_v12 }
 0xac7   :  { %v6475_v13 = vmax.f32 %v6443_v43, 0.0 }
 0xac8   :  { %v6584_v20 = vpop.f32.mrf.mxu1 }
 0xac9   :  { %v6585_v62 = vadd.f32 %v14410_v19, %v6584_v20  ;;  %v6166_v11 = vpop.f32.mrf.mxu3 }
 0xaca   :  { %v14417_v56 = vadd.f32 %v6166_v11, %v6078_v5  ;;  %v9754_v5 = vld [vmem:[%s10385_s3 + $0x38] sm:$0xff] }
 0xacb   :  { %v6663_v6 = vmax.f32 %v6585_v62, 0.0  ;;  %7188 = vmatpush.bf16.msra.mxu0 %v9754_v5 }
 0xacc   :  { %v6392_v42 = vpop.f32.mrf.mxu0 }
 0xacd   :  { %v6694_v21 = vpack.c.bf16 %v6663_v6, %v6662_v38  ;;  %v6444_v35 = vadd.f32 %v6392_v42, %v5981_v0 }
 0xacf   :  { %v6476_v50 = vmax.f32 %v6444_v35, 0.0  ;;  %6786 = vmatmul.bf16.vlgmr.msrb.gmra.mxu2 %v6694_v21  ;;  %v6087_v21 = vpop.f32.mrf.mxu2 }
 0xad0   :  { %v6587_v32 = vpop.f32.mrf.mxu1 }
 0xad1   :  { %v14421_v60 = vpop.f32.mrf.mxu3  ;;  %v6498_v20 = vpack.c.bf16 %v6476_v50, %v6475_v13  ;;  %v6588_v30 = vadd.f32 %v14410_v19, %v6587_v32  ;;  %v5986_v50 = vadd.f32 %v14284_v45, %v5897_v57  ;;  %v5902_v57 = vadd.f32 %v14130_v14, %v14004_v27 }
 0xad3   :  { %6626 = vmatmul.bf16.gmra.mxu1 %v6498_v20  ;;  %v6664_v38 = vmax.f32 %v6588_v30, 0.0 }
 0xad4   :  { %v6395_v11 = vpop.f32.mrf.mxu0 }
 0xad5   :  { %v6445_v43 = vadd.f32 %v6395_v11, %v14278_v63  ;;  %v6088_v11 = vadd.f32 %v6087_v21, %v14190_v12 }
 0xad7   :  { %v6477_v40 = vmax.f32 %v6445_v43, 0.0  ;;  %v14437_v45 = vpop.f32.mrf.mxu2 }
 0xad8   :  { %v6589_v29 = vpop.f32.mrf.mxu1 }
 0xad9   :  { %v6590_v37 = vadd.f32 %v14410_v19, %v6589_v29  ;;  %v6171_v62 = vpop.f32.mrf.mxu3 }
 0xada   :  { %v14431_v0 = vadd.f32 %v6171_v62, %v6083_v53  ;;  %v9741_v53 = vld [vmem:[#allocation15 + $0x10] sm:$0xff] }
 0xadb   :  { %v6665_v6 = vmax.f32 %v6590_v37, 0.0  ;;  %6988 = vmatpush.bf16.msra.mxu3 %v9741_v53 }
 0xadc   :  { %v6397_v42 = vpop.f32.mrf.mxu0 }
 0xadd   :  { %v6446_v35 = vadd.f32 %v6397_v42, %v5986_v50  ;;  %v6695_v13 = vpack.c.bf16 %v6665_v6, %v6664_v38  ;;  %v5991_v38 = vadd.f32 %v14305_v55, %v5902_v57 }
 0xadf   :  { %v6478_v32 = vmax.f32 %v6446_v35, 0.0  ;;  %6791 = vmatmul.bf16.gmra.mxu2 %v6695_v13  ;;  %v6092_v14 = vpop.f32.mrf.mxu2 }
 0xae0   :  { %v6592_v20 = vpop.f32.mrf.mxu1 }
 0xae1   :  { %v14435_v23 = vpop.f32.mrf.mxu3  ;;  %v6499_v5 = vpack.c.bf16 %v6478_v32, %v6477_v40  ;;  %v6593_v63 = vadd.f32 %v14410_v19, %v6592_v20 }
 0xae3   :  { %6631 = vmatmul.bf16.gmra.mxu1 %v6499_v5  ;;  %v6666_v43 = vmax.f32 %v6593_v63, 0.0  ;;  %v15159_v63 = vld [vmem:[#allocation45_spill] sm:$0xff] }
 0xae4   :  { %v6400_v29 = vpop.f32.mrf.mxu0  ;;  %v5907_v57 = vadd.f32 %v15159_v63, %v14004_v27 }
 0xae5   :  { %v6447_v6 = vadd.f32 %v6400_v29, %v14297_v49  ;;  %v6093_v49 = vadd.f32 %v6092_v14, %v14190_v12 }
 0xae7   :  { %v6479_v21 = vmax.f32 %v6447_v6, 0.0  ;;  %v14459_v6 = vpop.f32.mrf.mxu2 }
 0xae8   :  { %v6594_v30 = vpop.f32.mrf.mxu1 }
 0xae9   :  { %v6595_v37 = vadd.f32 %v14410_v19, %v6594_v30  ;;  %v6176_v62 = vpop.f32.mrf.mxu3 }
 0xaea   :  { %v14444_v50 = vadd.f32 %v6176_v62, %v6088_v11  ;;  %v9753_v11 = vld [vmem:[%s10385_s3 + $0x30] sm:$0xff] }
 0xaeb   :  { %v6667_v42 = vmax.f32 %v6595_v37, 0.0  ;;  %7189 = vmatpush.bf16.msra.mxu0 %v9753_v11 }
 0xaec   :  { %v6402_v35 = vpop.f32.mrf.mxu0 }
 0xaed   :  { %v6448_v13 = vadd.f32 %v6402_v35, %v5991_v38  ;;  %v6696_v40 = vpack.c.bf16 %v6667_v42, %v6666_v43  ;;  %v5996_v43 = vadd.f32 %v14324_v7, %v5907_v57  ;;  %v15160_v57 = vld [vmem:[#allocation53_spill] sm:$0xff] }
 0xaef   :  { %v6480_v32 = vmax.f32 %v6448_v13, 0.0  ;;  %6796 = vmatmul.bf16.gmra.mxu2 %v6696_v40  ;;  %v6097_v7 = vpop.f32.mrf.mxu2 }
 0xaf0   :  { %v6597_v20 = vpop.f32.mrf.mxu1 }
 0xaf1   :  { %v14448_v5 = vpop.f32.mrf.mxu3  ;;  %v6500_v53 = vpack.c.bf16 %v6480_v32, %v6479_v21  ;;  %v6598_v55 = vadd.f32 %v14410_v19, %v6597_v20 }
 0xaf3   :  { %6636 = vmatmul.bf16.gmra.mxu1 %v6500_v53  ;;  %v6668_v42 = vmax.f32 %v6598_v55, 0.0 }
 0xaf4   :  { %v6405_v30 = vpop.f32.mrf.mxu0 }
 0xaf5   :  { %v6449_v35 = vadd.f32 %v6405_v30, %v14316_v8  ;;  %v6098_v8 = vadd.f32 %v6097_v7, %v14190_v12 }
 0xaf7   :  { %v6481_v20 = vmax.f32 %v6449_v35, 0.0 }
 0xaf8   :  { %v6599_v29 = vpop.f32.mrf.mxu1 }
 0xaf9   :  { %v6600_v37 = vadd.f32 %v14410_v19, %v6599_v29  ;;  %v6181_v62 = vpop.f32.mrf.mxu3 }
 0xafa   :  { %v14456_v38 = vadd.f32 %v6181_v62, %v6093_v49  ;;  %v9740_v49 = vld [vmem:[#allocation15 + $0x8] sm:$0xff] }
 0xafb   :  { %v6669_v13 = vmax.f32 %v6600_v37, 0.0  ;;  %6989 = vmatpush.bf16.msra.mxu3 %v9740_v49  ;;  %v5912_v37 = vadd.f32 %v15160_v57, %v14004_v27 }
 0xafc   :  { %v6407_v40 = vpop.f32.mrf.mxu0 }
 0xafd   :  { %v6450_v21 = vadd.f32 %v6407_v40, %v5996_v43  ;;  %v6697_v32 = vpack.c.bf16 %v6669_v13, %v6668_v42  ;;  %v6001_v35 = vadd.f32 %v14342_v1, %v5912_v37  ;;  %v5917_v1 = vadd.f32 %v14210_v52, %v14004_v27 }
 0xaff   :  { %v6482_v14 = vmax.f32 %v6450_v21, 0.0  ;;  %6801 = vmatmul.bf16.gmra.mxu2 %v6697_v32 }
 0xb00   :  { %v6602_v53 = vpop.f32.mrf.mxu1 }
 0xb01   :  { %v14462_v11 = vpop.f32.mrf.mxu3  ;;  %v6501_v29 = vpack.c.bf16 %v6482_v14, %v6481_v20  ;;  %v6603_v55 = vadd.f32 %v14410_v19, %v6602_v53 }
 0xb03   :  { %6641 = vmatmul.bf16.gmra.mxu1 %v6501_v29  ;;  %v6670_v13 = vmax.f32 %v6603_v55, 0.0 }
 0xb04   :  { %v6410_v63 = vpop.f32.mrf.mxu0 }
 0xb05   :  { %v6451_v40 = vadd.f32 %v6410_v63, %v14334_v36  ;;  %v6006_v63 = vadd.f32 %v14362_v48, %v5917_v1 }
 0xb07   :  { %v6483_v53 = vmax.f32 %v6451_v40, 0.0 }
 0xb08   :  { %v6604_v30 = vpop.f32.mrf.mxu1 }
 0xb09   :  { %v6605_v62 = vadd.f32 %v14410_v19, %v6604_v30  ;;  %v6186_v43 = vpop.f32.mrf.mxu3  ;;  %v9752_v30 = vld [vmem:[%s10385_s3 + $0x28] sm:$0xff] }
 0xb0a   :  { %v14469_v42 = vadd.f32 %v6186_v43, %v6098_v8  ;;  %7190 = vmatpush.bf16.msra.mxu0 %v9752_v30 }
 0xb0b   :  { %v6671_v21 = vmax.f32 %v6605_v62, 0.0 }
 0xb0c   :  { %v6412_v32 = vpop.f32.mrf.mxu0 }
 0xb0d   :  { %v6698_v20 = vpack.c.bf16 %v6671_v21, %v6670_v13  ;;  %v6452_v14 = vadd.f32 %v6412_v32, %v6001_v35 }
 0xb0f   :  { %v6484_v29 = vmax.f32 %v6452_v14, 0.0  ;;  %6806 = vmatmul.bf16.gmra.mxu2 %v6698_v20 }
 0xb10   :  { %v6607_v49 = vpop.f32.mrf.mxu1 }
 0xb11   :  { %v6502_v7 = vpack.c.bf16 %v6484_v29, %v6483_v53  ;;  %v6608_v8 = vadd.f32 %v14410_v19, %v6607_v49  ;;  %v9739_v53 = vld [vmem:[#allocation15] sm:$0xff] }
 0xb12   :  { %6990 = vmatpush.bf16.msra.mxu3 %v9739_v53  ;;  %v14491_v53 = vpop.f32.mrf.mxu2 }
 0xb13   :  { %6646 = vmatmul.bf16.gmra.mxu1 %v6502_v7  ;;  %v6672_v55 = vmax.f32 %v6608_v8, 0.0 }
 0xb14   :  { %v6415_v57 = vpop.f32.mrf.mxu0 }
 0xb15   :  { %v6453_v37 = vadd.f32 %v6415_v57, %v14354_v15  ;;  %v5922_v15 = vadd.f32 %v14236_v9, %v14004_v27 }
 0xb17   :  { %v6485_v21 = vmax.f32 %v6453_v37, 0.0  ;;  %v6011_v7 = vadd.f32 %v14397_v26, %v5922_v15 }
 0xb18   :  { %v6609_v43 = vpop.f32.mrf.mxu1 }
 0xb19   :  { %v6610_v36 = vadd.f32 %v14410_v19, %v6609_v43 }
 0xb1b   :  { %v6673_v62 = vmax.f32 %v6610_v36, 0.0 }
 0xb1c   :  { %v6417_v35 = vpop.f32.mrf.mxu0 }
 0xb1d   :  { %v6699_v13 = vpack.c.bf16 %v6673_v62, %v6672_v55  ;;  %v6454_v40 = vadd.f32 %v6417_v35, %v6006_v63  ;;  %v9751_v35 = vld [vmem:[%s10385_s3 + $0x20] sm:$0xff] }
 0xb1e   :  { %7191 = vmatpush.bf16.msra.mxu0 %v9751_v35 }
 0xb1f   :  { %v6486_v32 = vmax.f32 %v6454_v40, 0.0  ;;  %6811 = vmatmul.bf16.gmra.mxu2 %v6699_v13 }
 0xb20   :  { %v6612_v20 = vpop.f32.mrf.mxu1 }
 0xb21   :  { %v6503_v14 = vpack.c.bf16 %v6486_v32, %v6485_v21  ;;  %v6613_v52 = vadd.f32 %v14410_v19, %v6612_v20 }
 0xb23   :  { %6651 = vmatmul.bf16.gmra.mxu1 %v6503_v14  ;;  %v6674_v30 = vmax.f32 %v6613_v52, 0.0 }
 0xb24   :  { %v6420_v29 = vpop.f32.mrf.mxu0 }
 0xb25   :  { %v6455_v57 = vadd.f32 %v6420_v29, %v14373_v58 }
 0xb27   :  { %v6487_v63 = vmax.f32 %v6455_v57, 0.0 }
 0xb28   :  { %v6614_v49 = vpop.f32.mrf.mxu1 }
 0xb29   :  { %v6615_v48 = vadd.f32 %v14410_v19, %v6614_v49 }
 0xb2b   :  { %v6675_v8 = vmax.f32 %v6615_v48, 0.0 }
 0xb2c   :  { %v6422_v43 = vpop.f32.mrf.mxu0 }
 0xb2d   :  { %v6700_v1 = vpack.c.bf16 %v6675_v8, %v6674_v30  ;;  %v6456_v36 = vadd.f32 %v6422_v43, %v6011_v7  ;;  %v14494_v7 = vld [vmem:[%s15161_s18] ss:$0 sm:$0xff]  ;;  %v9750_v30 = vld [vmem:[%s10385_s3 + $0x18] sm:$0xff] }
 0xb2e   :  { %7192 = vmatpush.bf16.msra.mxu0 %v9750_v30 }
 0xb2f   :  { %v6488_v55 = vmax.f32 %v6456_v36, 0.0  ;;  %6816 = vmatmul.bf16.gmra.mxu2 %v6700_v1 }
 0xb30   :  { %v6617_v37 = vpop.f32.mrf.mxu1 }
 0xb31   :  { %v6504_v62 = vpack.c.bf16 %v6488_v55, %v6487_v63  ;;  %v6618_v27 = vadd.f32 %v14410_v19, %v6617_v37 }
 0xb33   :  { %6656 = vmatmul.bf16.gmra.mxu1 %v6504_v62  ;;  %v6676_v13 = vmax.f32 %v6618_v27, 0.0 }
 0xb38   :  { %v6619_v9 = vpop.f32.mrf.mxu1 }
 0xb39   :  { %v6620_v26 = vadd.f32 %v14410_v19, %v6619_v9 }
 0xb3b   :  { %v6677_v58 = vmax.f32 %v6620_v26, 0.0 }
 0xb3d   :  { %v6701_v40 = vpack.c.bf16 %v6677_v58, %v6676_v13 }
 0xb3f   :  { %6821 = vmatmul.bf16.gmra.mxu2 %v6701_v40 }
 0xb40   :  { %v6622_v21 = vpop.f32.mrf.mxu1 }
 0xb41   :  { %v6623_v32 = vadd.f32 %v14410_v19, %v6622_v21 }
 0xb43   :  { %v6678_v29 = vmax.f32 %v6623_v32, 0.0 }
 0xb48   :  { %v6624_v20 = vpop.f32.mrf.mxu1 }
 0xb49   :  { %v6625_v14 = vadd.f32 %v14410_v19, %v6624_v20 }
 0xb4b   :  { %v6679_v52 = vmax.f32 %v6625_v14, 0.0 }
 0xb4d   :  { %v6702_v49 = vpack.c.bf16 %v6679_v52, %v6678_v29 }
 0xb4f   :  { %6826 = vmatmul.bf16.gmra.mxu2 %v6702_v49 }
 0xb50   :  { %v6627_v15 = vpop.f32.mrf.mxu1 }
 0xb51   :  { %v6628_v57 = vadd.f32 %v14410_v19, %v6627_v15 }
 0xb52   :  { %v6787_v48 = vpop.f32.mrf.mxu2 }
 0xb53   :  { %v6788_v43 = vadd.f32 %v14494_v7, %v6787_v48  ;;  %v6680_v63 = vmax.f32 %v6628_v57, 0.0 }
 0xb55   :  { %v6867_v62 = vmax.f32 %v6788_v43, 0.0  ;;  %v9749_v43 = vld [vmem:[%s10385_s3 + $0x10] sm:$0xff] }
 0xb56   :  { %7193 = vmatpush.bf16.msra.mxu0 %v9749_v43 }
 0xb58   :  { %v6629_v8 = vpop.f32.mrf.mxu1 }
 0xb59   :  { %v6630_v1 = vadd.f32 %v14410_v19, %v6629_v8 }
 0xb5a   :  { %v6789_v36 = vpop.f32.mrf.mxu2 }
 0xb5b   :  { %v6681_v55 = vmax.f32 %v6630_v1, 0.0  ;;  %v6790_v37 = vadd.f32 %v14494_v7, %v6789_v36 }
 0xb5d   :  { %v6703_v35 = vpack.c.bf16 %v6681_v55, %v6680_v63  ;;  %v6868_v27 = vmax.f32 %v6790_v37, 0.0 }
 0xb5f   :  { %v6899_v9 = vpack.c.bf16 %v6868_v27, %v6867_v62  ;;  %6831 = vmatmul.bf16.gmra.mxu2 %v6703_v35 }
 0xb60   :  { %v6632_v26 = vpop.f32.mrf.mxu1 }
 0xb61   :  { %6991 = vmatmul.bf16.vlgmr.msra.gmra.mxu3 %v6899_v9  ;;  %v6633_v58 = vadd.f32 %v14410_v19, %v6632_v26 }
 0xb62   :  { %v6792_v13 = vpop.f32.mrf.mxu2 }
 0xb63   :  { %v6793_v21 = vadd.f32 %v14494_v7, %v6792_v13  ;;  %v6682_v14 = vmax.f32 %v6633_v58, 0.0 }
 0xb65   :  { %v6869_v49 = vmax.f32 %v6793_v21, 0.0 }
 0xb68   :  { %v6634_v40 = vpop.f32.mrf.mxu1 }
 0xb69   :  { %v6635_v32 = vadd.f32 %v14410_v19, %v6634_v40 }
 0xb6a   :  { %v6794_v20 = vpop.f32.mrf.mxu2 }
 0xb6b   :  { %v6683_v29 = vmax.f32 %v6635_v32, 0.0  ;;  %v6795_v52 = vadd.f32 %v14494_v7, %v6794_v20 }
 0xb6d   :  { %v6704_v15 = vpack.c.bf16 %v6683_v29, %v6682_v14  ;;  %v6870_v48 = vmax.f32 %v6795_v52, 0.0 }
 0xb6f   :  { %6836 = vmatmul.bf16.gmra.mxu2 %v6704_v15  ;;  %v6900_v30 = vpack.c.bf16 %v6870_v48, %v6869_v49 }
 0xb70   :  { %v6637_v57 = vpop.f32.mrf.mxu1 }
 0xb71   :  { %6996 = vmatmul.bf16.gmra.mxu3 %v6900_v30  ;;  %v6638_v1 = vadd.f32 %v14410_v19, %v6637_v57 }
 0xb72   :  { %v6797_v8 = vpop.f32.mrf.mxu2 }
 0xb73   :  { %v6798_v63 = vadd.f32 %v14494_v7, %v6797_v8  ;;  %v6684_v62 = vmax.f32 %v6638_v1, 0.0 }
 0xb75   :  { %v6871_v9 = vmax.f32 %v6798_v63, 0.0  ;;  %v9748_v63 = vld [vmem:[%s10385_s3 + $0x8] sm:$0xff] }
 0xb76   :  { %7194 = vmatpush.bf16.msra.mxu0 %v9748_v63 }
 0xb78   :  { %v6639_v36 = vpop.f32.mrf.mxu1 }
 0xb79   :  { %v6640_v55 = vadd.f32 %v14410_v19, %v6639_v36 }
 0xb7a   :  { %v6799_v37 = vpop.f32.mrf.mxu2 }
 0xb7b   :  { %v6685_v35 = vmax.f32 %v6640_v55, 0.0  ;;  %v6800_v27 = vadd.f32 %v14494_v7, %v6799_v37 }
 0xb7d   :  { %v6705_v26 = vpack.c.bf16 %v6685_v35, %v6684_v62  ;;  %v6872_v13 = vmax.f32 %v6800_v27, 0.0 }
 0xb7f   :  { %6841 = vmatmul.bf16.gmra.mxu2 %v6705_v26  ;;  %v6901_v58 = vpack.c.bf16 %v6872_v13, %v6871_v9 }
 0xb80   :  { %v6642_v40 = vpop.f32.mrf.mxu1 }
 0xb81   :  { %7001 = vmatmul.bf16.gmra.mxu3 %v6901_v58  ;;  %v6643_v32 = vadd.f32 %v14410_v19, %v6642_v40 }
 0xb82   :  { %v6802_v21 = vpop.f32.mrf.mxu2 }
 0xb83   :  { %v6803_v14 = vadd.f32 %v14494_v7, %v6802_v21  ;;  %v6686_v49 = vmax.f32 %v6643_v32, 0.0 }
 0xb85   :  { %v6873_v30 = vmax.f32 %v6803_v14, 0.0 }
 0xb88   :  { %v6644_v20 = vpop.f32.mrf.mxu1 }
 0xb89   :  { %v6645_v29 = vadd.f32 %v14410_v19, %v6644_v20 }
 0xb8a   :  { %v6804_v52 = vpop.f32.mrf.mxu2 }
 0xb8b   :  { %v6687_v15 = vmax.f32 %v6645_v29, 0.0  ;;  %v6805_v48 = vadd.f32 %v14494_v7, %v6804_v52 }
 0xb8d   :  { %v6706_v57 = vpack.c.bf16 %v6687_v15, %v6686_v49  ;;  %v6874_v8 = vmax.f32 %v6805_v48, 0.0 }
 0xb8f   :  { %6846 = vmatmul.bf16.gmra.mxu2 %v6706_v57  ;;  %v6902_v43 = vpack.c.bf16 %v6874_v8, %v6873_v30 }
 0xb90   :  { %v6647_v1 = vpop.f32.mrf.mxu1 }
 0xb91   :  { %7006 = vmatmul.bf16.gmra.mxu3 %v6902_v43  ;;  %v6648_v55 = vadd.f32 %v14410_v19, %v6647_v1 }
 0xb92   :  { %v6807_v36 = vpop.f32.mrf.mxu2 }
 0xb93   :  { %v6808_v62 = vadd.f32 %v14494_v7, %v6807_v36  ;;  %v6688_v9 = vmax.f32 %v6648_v55, 0.0 }
 0xb95   :  { %v6875_v58 = vmax.f32 %v6808_v62, 0.0  ;;  %v9747_v62 = vld [vmem:[%s10385_s3] sm:$0xff]  ;;  %s10236_s3 = smov 1  }
 0xb96   :  { %7195 = vmatpush.bf16.msra.mxu0 %v9747_v62 }
 0xb98   :  { %v6649_v37 = vpop.f32.mrf.mxu1 }
 0xb99   :  { %v6650_v35 = vadd.f32 %v14410_v19, %v6649_v37 }
 0xb9a   :  { %v6809_v27 = vpop.f32.mrf.mxu2 }
 0xb9b   :  { %v6689_v26 = vmax.f32 %v6650_v35, 0.0  ;;  %v6810_v13 = vadd.f32 %v14494_v7, %v6809_v27 }
 0xb9d   :  { %v6707_v40 = vpack.c.bf16 %v6689_v26, %v6688_v9  ;;  %v6876_v21 = vmax.f32 %v6810_v13, 0.0 }
 0xb9f   :  { %v6903_v32 = vpack.c.bf16 %v6876_v21, %v6875_v58  ;;  %6851 = vmatmul.bf16.gmra.mxu2 %v6707_v40 }
 0xba0   :  { %v6652_v20 = vpop.f32.mrf.mxu1 }
 0xba1   :  { %7011 = vmatmul.bf16.gmra.mxu3 %v6903_v32  ;;  %v6653_v29 = vadd.f32 %v14410_v19, %v6652_v20 }
 0xba2   :  { %v6812_v14 = vpop.f32.mrf.mxu2 }
 0xba3   :  { %v6813_v49 = vadd.f32 %v14494_v7, %v6812_v14  ;;  %v6690_v30 = vmax.f32 %v6653_v29, 0.0 }
 0xba5   :  { %v6877_v43 = vmax.f32 %v6813_v49, 0.0 }
 0xba8   :  { %v6654_v52 = vpop.f32.mrf.mxu1 }
 0xba9   :  { %v6655_v15 = vadd.f32 %v14410_v19, %v6654_v52 }
 0xbaa   :  { %v6814_v48 = vpop.f32.mrf.mxu2 }
 0xbab   :  { %v6691_v57 = vmax.f32 %v6655_v15, 0.0  ;;  %v6815_v8 = vadd.f32 %v14494_v7, %v6814_v48 }
 0xbad   :  { %v6708_v1 = vpack.c.bf16 %v6691_v57, %v6690_v30  ;;  %v6878_v36 = vmax.f32 %v6815_v8, 0.0 }
 0xbaf   :  { %v6904_v63 = vpack.c.bf16 %v6878_v36, %v6877_v43  ;;  %6856 = vmatmul.bf16.gmra.mxu2 %v6708_v1 }
 0xbb0   :  { %v6657_v55 = vpop.f32.mrf.mxu1 }
 0xbb1   :  { %7016 = vmatmul.bf16.gmra.mxu3 %v6904_v63  ;;  %v6658_v35 = vadd.f32 %v14410_v19, %v6657_v55  ;;  %v14532_v63 = vpop.f32.mrf.mxu3 }
 0xbb2   :  { %v6817_v37 = vpop.f32.mrf.mxu2 }
 0xbb3   :  { %v6818_v9 = vadd.f32 %v14494_v7, %v6817_v37  ;;  %v6692_v58 = vmax.f32 %v6658_v35, 0.0 }
 0xbb5   :  { %v6879_v32 = vmax.f32 %v6818_v9, 0.0  ;;  %v14535_v9 = vld [vmem:[%s10380_s12] ss:$0 sm:$0xff] }
 0xbb8   :  { %v6659_v27 = vpop.f32.mrf.mxu1 }
 0xbb9   :  { %v6660_v26 = vadd.f32 %v14410_v19, %v6659_v27 }
 0xbba   :  { %v6819_v13 = vpop.f32.mrf.mxu2 }
 0xbbb   :  { %v6693_v40 = vmax.f32 %v6660_v26, 0.0  ;;  %v6820_v21 = vadd.f32 %v14494_v7, %v6819_v13 }
 0xbbd   :  { %v6709_v20 = vpack.c.bf16 %v6693_v40, %v6692_v58  ;;  %v6880_v14 = vmax.f32 %v6820_v21, 0.0 }
 0xbbf   :  { %v6905_v29 = vpack.c.bf16 %v6880_v14, %v6879_v32  ;;  %6861 = vmatmul.bf16.gmra.mxu2 %v6709_v20 }
 0xbc1   :  { %7021 = vmatmul.bf16.gmra.mxu3 %v6905_v29 }
 0xbc2   :  { %v6822_v52 = vpop.f32.mrf.mxu2 }
 0xbc3   :  { %v6823_v49 = vadd.f32 %v14494_v7, %v6822_v52 }
 0xbc5   :  { %v6881_v30 = vmax.f32 %v6823_v49, 0.0 }
 0xbca   :  { %v6824_v15 = vpop.f32.mrf.mxu2 }
 0xbcb   :  { %v6825_v48 = vadd.f32 %v14494_v7, %v6824_v15 }
 0xbcd   :  { %v6882_v19 = vmax.f32 %v6825_v48, 0.0 }
 0xbcf   :  { %v6906_v57 = vpack.c.bf16 %v6882_v19, %v6881_v30 }
 0xbd1   :  { %7026 = vmatmul.bf16.gmra.mxu3 %v6906_v57 }
 0xbd2   :  { %v6827_v8 = vpop.f32.mrf.mxu2 }
 0xbd3   :  { %v6828_v43 = vadd.f32 %v14494_v7, %v6827_v8 }
 0xbd5   :  { %v6883_v55 = vmax.f32 %v6828_v43, 0.0 }
 0xbda   :  { %v6829_v1 = vpop.f32.mrf.mxu2 }
 0xbdb   :  { %v6830_v36 = vadd.f32 %v14494_v7, %v6829_v1 }
 0xbdd   :  { %v6884_v37 = vmax.f32 %v6830_v36, 0.0 }
 0xbdf   :  { %v6907_v62 = vpack.c.bf16 %v6884_v37, %v6883_v55 }
 0xbe1   :  { %7031 = vmatmul.bf16.gmra.mxu3 %v6907_v62 }
 0xbe2   :  { %v6832_v35 = vpop.f32.mrf.mxu2 }
 0xbe3   :  { %v6833_v26 = vadd.f32 %v14494_v7, %v6832_v35 }
 0xbe4   :  { %v6992_v27 = vpop.f32.mrf.mxu3 }
 0xbe5   :  { %v6993_v58 = vadd.f32 %v14535_v9, %v6992_v27  ;;  %v6885_v32 = vmax.f32 %v6833_v26, 0.0 }
 0xbe7   :  { %v7072_v29 = vmax.f32 %v6993_v58, 0.0 }
 0xbea   :  { %v6834_v13 = vpop.f32.mrf.mxu2 }
 0xbeb   :  { %v6835_v40 = vadd.f32 %v14494_v7, %v6834_v13 }
 0xbec   :  { %v6994_v21 = vpop.f32.mrf.mxu3 }
 0xbed   :  { %v6886_v20 = vmax.f32 %v6835_v40, 0.0  ;;  %v6995_v14 = vadd.f32 %v14535_v9, %v6994_v21 }
 0xbef   :  { %v6908_v52 = vpack.c.bf16 %v6886_v20, %v6885_v32  ;;  %v7073_v49 = vmax.f32 %v6995_v14, 0.0 }
 0xbf1   :  { %v7104_v15 = vpack.c.bf16 %v7073_v49, %v7072_v29  ;;  %7036 = vmatmul.bf16.gmra.mxu3 %v6908_v52 }
 0xbf2   :  { %v6837_v48 = vpop.f32.mrf.mxu2 }
 0xbf3   :  { %7196 = vmatmul.bf16.vlgmr.msra.gmra.mxu0 %v7104_v15  ;;  %v6838_v19 = vadd.f32 %v14494_v7, %v6837_v48 }
 0xbf4   :  { %v6997_v30 = vpop.f32.mrf.mxu3 }
 0xbf5   :  { %v6998_v8 = vadd.f32 %v14535_v9, %v6997_v30  ;;  %v6887_v36 = vmax.f32 %v6838_v19, 0.0 }
 0xbf7   :  { %v7074_v62 = vmax.f32 %v6998_v8, 0.0 }
 0xbfa   :  { %v6839_v57 = vpop.f32.mrf.mxu2 }
 0xbfb   :  { %v6840_v43 = vadd.f32 %v14494_v7, %v6839_v57 }
 0xbfc   :  { %v6999_v1 = vpop.f32.mrf.mxu3 }
 0xbfd   :  { %v6888_v55 = vmax.f32 %v6840_v43, 0.0  ;;  %v7000_v37 = vadd.f32 %v14535_v9, %v6999_v1 }
 0xbff   :  { %v6909_v35 = vpack.c.bf16 %v6888_v55, %v6887_v36  ;;  %v7075_v27 = vmax.f32 %v7000_v37, 0.0 }
 0xc01   :  { %7041 = vmatmul.bf16.gmra.mxu3 %v6909_v35  ;;  %v7105_v26 = vpack.c.bf16 %v7075_v27, %v7074_v62 }
 0xc02   :  { %v6842_v13 = vpop.f32.mrf.mxu2 }
 0xc03   :  { %7201 = vmatmul.bf16.gmra.mxu0 %v7105_v26  ;;  %v6843_v40 = vadd.f32 %v14494_v7, %v6842_v13 }
 0xc04   :  { %v7002_v58 = vpop.f32.mrf.mxu3 }
 0xc05   :  { %v7003_v32 = vadd.f32 %v14535_v9, %v7002_v58  ;;  %v6889_v29 = vmax.f32 %v6843_v40, 0.0 }
 0xc07   :  { %v7076_v15 = vmax.f32 %v7003_v32, 0.0 }
 0xc0a   :  { %v6844_v21 = vpop.f32.mrf.mxu2 }
 0xc0b   :  { %v6845_v20 = vadd.f32 %v14494_v7, %v6844_v21 }
 0xc0c   :  { %v7004_v14 = vpop.f32.mrf.mxu3 }
 0xc0d   :  { %v6890_v52 = vmax.f32 %v6845_v20, 0.0  ;;  %v7005_v49 = vadd.f32 %v14535_v9, %v7004_v14 }
 0xc0f   :  { %v6910_v48 = vpack.c.bf16 %v6890_v52, %v6889_v29  ;;  %v7077_v30 = vmax.f32 %v7005_v49, 0.0 }
 0xc11   :  { %7046 = vmatmul.bf16.gmra.mxu3 %v6910_v48  ;;  %v7106_v19 = vpack.c.bf16 %v7077_v30, %v7076_v15 }
 0xc12   :  { %v6847_v57 = vpop.f32.mrf.mxu2 }
 0xc13   :  { %7206 = vmatmul.bf16.gmra.mxu0 %v7106_v19  ;;  %v6848_v43 = vadd.f32 %v14494_v7, %v6847_v57 }
 0xc14   :  { %v7007_v8 = vpop.f32.mrf.mxu3 }
 0xc15   :  { %v7008_v36 = vadd.f32 %v14535_v9, %v7007_v8  ;;  %v6891_v62 = vmax.f32 %v6848_v43, 0.0 }
 0xc17   :  { %v7078_v26 = vmax.f32 %v7008_v36, 0.0 }
 0xc1a   :  { %v6849_v1 = vpop.f32.mrf.mxu2 }
 0xc1b   :  { %v6850_v55 = vadd.f32 %v14494_v7, %v6849_v1 }
 0xc1c   :  { %v7009_v37 = vpop.f32.mrf.mxu3 }
 0xc1d   :  { %v6892_v35 = vmax.f32 %v6850_v55, 0.0  ;;  %v7010_v27 = vadd.f32 %v14535_v9, %v7009_v37 }
 0xc1f   :  { %v6911_v13 = vpack.c.bf16 %v6892_v35, %v6891_v62  ;;  %v7079_v58 = vmax.f32 %v7010_v27, 0.0 }
 0xc21   :  { %7051 = vmatmul.bf16.gmra.mxu3 %v6911_v13  ;;  %v7107_v40 = vpack.c.bf16 %v7079_v58, %v7078_v26 }
 0xc22   :  { %v6852_v21 = vpop.f32.mrf.mxu2 }
 0xc23   :  { %7211 = vmatmul.bf16.gmra.mxu0 %v7107_v40  ;;  %v6853_v20 = vadd.f32 %v14494_v7, %v6852_v21 }
 0xc24   :  { %v7012_v32 = vpop.f32.mrf.mxu3 }
 0xc25   :  { %v7013_v29 = vadd.f32 %v14535_v9, %v7012_v32  ;;  %v6893_v15 = vmax.f32 %v6853_v20, 0.0 }
 0xc27   :  { %v7080_v19 = vmax.f32 %v7013_v29, 0.0 }
 0xc2a   :  { %v6854_v14 = vpop.f32.mrf.mxu2 }
 0xc2b   :  { %v6855_v52 = vadd.f32 %v14494_v7, %v6854_v14 }
 0xc2c   :  { %v7014_v49 = vpop.f32.mrf.mxu3 }
 0xc2d   :  { %v6894_v48 = vmax.f32 %v6855_v52, 0.0  ;;  %v7015_v30 = vadd.f32 %v14535_v9, %v7014_v49 }
 0xc2f   :  { %v6912_v57 = vpack.c.bf16 %v6894_v48, %v6893_v15  ;;  %v7081_v8 = vmax.f32 %v7015_v30, 0.0 }
 0xc31   :  { %v7108_v43 = vpack.c.bf16 %v7081_v8, %v7080_v19  ;;  %7056 = vmatmul.bf16.gmra.mxu3 %v6912_v57 }
 0xc32   :  { %v6857_v1 = vpop.f32.mrf.mxu2 }
 0xc33   :  { %7216 = vmatmul.bf16.gmra.mxu0 %v7108_v43  ;;  %v6858_v55 = vadd.f32 %v14494_v7, %v6857_v1 }
 0xc34   :  { %v7017_v36 = vpop.f32.mrf.mxu3 }
 0xc35   :  { %v7018_v62 = vadd.f32 %v14535_v9, %v7017_v36  ;;  %v6895_v26 = vmax.f32 %v6858_v55, 0.0 }
 0xc37   :  { %v7082_v40 = vmax.f32 %v7018_v62, 0.0 }
 0xc3a   :  { %v6859_v37 = vpop.f32.mrf.mxu2 }
 0xc3b   :  { %v6860_v35 = vadd.f32 %v14494_v7, %v6859_v37 }
 0xc3c   :  { %v7019_v27 = vpop.f32.mrf.mxu3 }
 0xc3d   :  { %v6896_v13 = vmax.f32 %v6860_v35, 0.0  ;;  %v7020_v58 = vadd.f32 %v14535_v9, %v7019_v27 }
 0xc3f   :  { %v6913_v21 = vpack.c.bf16 %v6896_v13, %v6895_v26  ;;  %v7083_v32 = vmax.f32 %v7020_v58, 0.0 }
 0xc41   :  { %v7109_v20 = vpack.c.bf16 %v7083_v32, %v7082_v40  ;;  %7061 = vmatmul.bf16.gmra.mxu3 %v6913_v21 }
 0xc42   :  { %v6862_v14 = vpop.f32.mrf.mxu2 }
 0xc43   :  { %7221 = vmatmul.bf16.gmra.mxu0 %v7109_v20  ;;  %v6863_v52 = vadd.f32 %v14494_v7, %v6862_v14  ;;  %v14570_v20 = vld [vmem:[%s10390_s24] ss:$0 sm:$0xff] }
 0xc44   :  { %v7022_v29 = vpop.f32.mrf.mxu3 }
 0xc45   :  { %v7023_v15 = vadd.f32 %v14535_v9, %v7022_v29  ;;  %v6897_v19 = vmax.f32 %v6863_v52, 0.0 }
 0xc47   :  { %v7084_v43 = vmax.f32 %v7023_v15, 0.0 }
 0xc4a   :  { %v6864_v49 = vpop.f32.mrf.mxu2 }
 0xc4b   :  { %v6865_v48 = vadd.f32 %v14494_v7, %v6864_v49 }
 0xc4c   :  { %v7024_v30 = vpop.f32.mrf.mxu3 }
 0xc4d   :  { %v6898_v57 = vmax.f32 %v6865_v48, 0.0  ;;  %v7025_v8 = vadd.f32 %v14535_v9, %v7024_v30 }
 0xc4f   :  { %v6914_v1 = vpack.c.bf16 %v6898_v57, %v6897_v19  ;;  %v7085_v36 = vmax.f32 %v7025_v8, 0.0 }
 0xc51   :  { %v7110_v55 = vpack.c.bf16 %v7085_v36, %v7084_v43  ;;  %7066 = vmatmul.bf16.gmra.mxu3 %v6914_v1 }
 0xc53   :  { %7226 = vmatmul.bf16.gmra.mxu0 %v7110_v55 }
 0xc54   :  { %v7027_v37 = vpop.f32.mrf.mxu3 }
 0xc55   :  { %v7028_v62 = vadd.f32 %v14535_v9, %v7027_v37 }
 0xc57   :  { %v7086_v26 = vmax.f32 %v7028_v62, 0.0 }
 0xc5c   :  { %v7029_v35 = vpop.f32.mrf.mxu3 }
 0xc5d   :  { %v7030_v27 = vadd.f32 %v14535_v9, %v7029_v35 }
 0xc5f   :  { %v7087_v7 = vmax.f32 %v7030_v27, 0.0 }
 0xc61   :  { %v7111_v13 = vpack.c.bf16 %v7087_v7, %v7086_v26 }
 0xc63   :  { %7231 = vmatmul.bf16.gmra.mxu0 %v7111_v13 }
 0xc64   :  { %v7032_v58 = vpop.f32.mrf.mxu3 }
 0xc65   :  { %v7033_v40 = vadd.f32 %v14535_v9, %v7032_v58 }
 0xc67   :  { %v7088_v14 = vmax.f32 %v7033_v40, 0.0 }
 0xc6c   :  { %v7034_v21 = vpop.f32.mrf.mxu3 }
 0xc6d   :  { %v7035_v32 = vadd.f32 %v14535_v9, %v7034_v21 }
 0xc6f   :  { %v7089_v29 = vmax.f32 %v7035_v32, 0.0 }
 0xc70   :  { %v7197_v52 = vpop.f32.mrf.mxu0 }
 0xc71   :  { %v7112_v49 = vpack.c.bf16 %v7089_v29, %v7088_v14  ;;  %v7198_v15 = vadd.f32 %v14570_v20, %v7197_v52 }
 0xc73   :  { %7236 = vmatmul.bf16.gmra.mxu0 %v7112_v49  ;;  %7309 = vrot.lane.b32.xlu0 %v7198_v15, %s10236_s3 }
 0xc74   :  { %v7037_v48 = vpop.f32.mrf.mxu3 }
 0xc75   :  { %v7038_v57 = vadd.f32 %v14535_v9, %v7037_v48 }
 0xc77   :  { %v7090_v1 = vmax.f32 %v7038_v57, 0.0 }
 0xc78   :  { %v7199_v30 = vpop.f32.mrf.mxu0 }
 0xc79   :  { %v7200_v19 = vadd.f32 %v14570_v20, %v7199_v30 }
 0xc7b   :  { %7311 = vrot.lane.b32.xlu0 %v7200_v19, %s10236_s3 }
 0xc7c   :  { %v7039_v8 = vpop.f32.mrf.mxu3 }
 0xc7d   :  { %v7040_v43 = vadd.f32 %v14535_v9, %v7039_v8 }
 0xc7f   :  { %v7091_v36 = vmax.f32 %v7040_v43, 0.0 }
 0xc80   :  { %v7202_v55 = vpop.f32.mrf.mxu0 }
 0xc81   :  { %v7113_v37 = vpack.c.bf16 %v7091_v36, %v7090_v1  ;;  %v7203_v62 = vadd.f32 %v14570_v20, %v7202_v55 }
 0xc83   :  { %7241 = vmatmul.bf16.gmra.mxu0 %v7113_v37  ;;  %7313 = vrot.lane.b32.xlu1 %v7203_v62, %s10236_s3 }
 0xc84   :  { %v7042_v35 = vpop.f32.mrf.mxu3 }
 0xc85   :  { %v7043_v7 = vadd.f32 %v14535_v9, %v7042_v35 }
 0xc87   :  { %v7092_v40 = vmax.f32 %v7043_v7, 0.0 }
 0xc88   :  { %v7204_v27 = vpop.f32.mrf.mxu0 }
 0xc89   :  { %v7205_v26 = vadd.f32 %v14570_v20, %v7204_v27 }
 0xc8b   :  { %7315 = vrot.lane.b32.xlu1 %v7205_v26, %s10236_s3 }
 0xc8c   :  { %v7044_v13 = vpop.f32.mrf.mxu3 }
 0xc8d   :  { %v7045_v58 = vadd.f32 %v14535_v9, %v7044_v13 }
 0xc8f   :  { %v7093_v21 = vmax.f32 %v7045_v58, 0.0 }
 0xc90   :  { %v7207_v32 = vpop.f32.mrf.mxu0 }
 0xc91   :  { %v7114_v14 = vpack.c.bf16 %v7093_v21, %v7092_v40  ;;  %v7208_v29 = vadd.f32 %v14570_v20, %v7207_v32 }
 0xc93   :  { %7246 = vmatmul.bf16.gmra.mxu0 %v7114_v14  ;;  %7317 = vrot.lane.b32.xlu2 %v7208_v29, %s10236_s3 }
 0xc94   :  { %v7047_v52 = vpop.f32.mrf.mxu3 }
 0xc95   :  { %v7048_v48 = vadd.f32 %v14535_v9, %v7047_v52 }
 0xc97   :  { %v7094_v57 = vmax.f32 %v7048_v48, 0.0 }
 0xc98   :  { %v7209_v49 = vpop.f32.mrf.mxu0 }
 0xc99   :  { %v7210_v15 = vadd.f32 %v14570_v20, %v7209_v49 }
 0xc9b   :  { %7319 = vrot.lane.b32.xlu2 %v7210_v15, %s10236_s3 }
 0xc9c   :  { %v7049_v30 = vpop.f32.mrf.mxu3 }
 0xc9d   :  { %v7050_v19 = vadd.f32 %v14535_v9, %v7049_v30 }
 0xc9f   :  { %v7095_v8 = vmax.f32 %v7050_v19, 0.0 }
 0xca0   :  { %v7212_v43 = vpop.f32.mrf.mxu0 }
 0xca1   :  { %v7115_v1 = vpack.c.bf16 %v7095_v8, %v7094_v57  ;;  %v7213_v36 = vadd.f32 %v14570_v20, %v7212_v43 }
 0xca3   :  { %7251 = vmatmul.bf16.gmra.mxu0 %v7115_v1  ;;  %7321 = vrot.lane.b32.xlu0 %v7213_v36, %s10236_s3 }
 0xca4   :  { %v7052_v55 = vpop.f32.mrf.mxu3 }
 0xca5   :  { %v7053_v35 = vadd.f32 %v14535_v9, %v7052_v55 }
 0xca7   :  { %v7096_v7 = vmax.f32 %v7053_v35, 0.0 }
 0xca8   :  { %v7214_v37 = vpop.f32.mrf.mxu0 }
 0xca9   :  { %v7215_v62 = vadd.f32 %v14570_v20, %v7214_v37 }
 0xcab   :  { %7323 = vrot.lane.b32.xlu1 %v7215_v62, %s10236_s3 }
 0xcac   :  { %v7054_v27 = vpop.f32.mrf.mxu3 }
 0xcad   :  { %v7055_v26 = vadd.f32 %v14535_v9, %v7054_v27 }
 0xcaf   :  { %v7097_v13 = vmax.f32 %v7055_v26, 0.0 }
 0xcb0   :  { %v7217_v58 = vpop.f32.mrf.mxu0 }
 0xcb1   :  { %v7116_v40 = vpack.c.bf16 %v7097_v13, %v7096_v7  ;;  %v7218_v21 = vadd.f32 %v14570_v20, %v7217_v58 }
 0xcb3   :  { %7256 = vmatmul.bf16.gmra.mxu0 %v7116_v40  ;;  %7325 = vrot.lane.b32.xlu2 %v7218_v21, %s10236_s3 }
 0xcb4   :  { %v7057_v32 = vpop.f32.mrf.mxu3 }
 0xcb5   :  { %v7058_v52 = vadd.f32 %v14535_v9, %v7057_v32 }
 0xcb7   :  { %v7098_v48 = vmax.f32 %v7058_v52, 0.0 }
 0xcb8   :  { %v7219_v14 = vpop.f32.mrf.mxu0 }
 0xcb9   :  { %v7220_v29 = vadd.f32 %v14570_v20, %v7219_v14 }
 0xcbb   :  { %7327 = vrot.lane.b32.xlu0 %v7220_v29, %s10236_s3 }
 0xcbc   :  { %v7059_v49 = vpop.f32.mrf.mxu3 }
 0xcbd   :  { %v7060_v15 = vadd.f32 %v14535_v9, %v7059_v49 }
 0xcbf   :  { %v7099_v30 = vmax.f32 %v7060_v15, 0.0 }
 0xcc0   :  { %v7222_v19 = vpop.f32.mrf.mxu0 }
 0xcc1   :  { %v7117_v57 = vpack.c.bf16 %v7099_v30, %v7098_v48  ;;  %v7223_v8 = vadd.f32 %v14570_v20, %v7222_v19 }
 0xcc3   :  { %7261 = vmatmul.bf16.gmra.mxu0 %v7117_v57  ;;  %7329 = vrot.lane.b32.xlu1 %v7223_v8, %s10236_s3 }
 0xcc4   :  { %v7062_v43 = vpop.f32.mrf.mxu3 }
 0xcc5   :  { %v7063_v55 = vadd.f32 %v14535_v9, %v7062_v43 }
 0xcc7   :  { %v7100_v35 = vmax.f32 %v7063_v55, 0.0 }
 0xcc8   :  { %v7224_v1 = vpop.f32.mrf.mxu0 }
 0xcc9   :  { %v7225_v36 = vadd.f32 %v14570_v20, %v7224_v1 }
 0xccb   :  { %7331 = vrot.lane.b32.xlu2 %v7225_v36, %s10236_s3 }
 0xccc   :  { %v7064_v37 = vpop.f32.mrf.mxu3 }
 0xccd   :  { %v7065_v62 = vadd.f32 %v14535_v9, %v7064_v37 }
 0xccf   :  { %v7101_v27 = vmax.f32 %v7065_v62, 0.0 }
 0xcd0   :  { %v7227_v26 = vpop.f32.mrf.mxu0 }
 0xcd1   :  { %v7118_v7 = vpack.c.bf16 %v7101_v27, %v7100_v35  ;;  %v7228_v13 = vadd.f32 %v14570_v20, %v7227_v26  ;;  %v15162_v35 = vld [vmem:[#allocation35_spill] sm:$0xff] }
 0xcd3   :  { %7266 = vmatmul.bf16.gmra.mxu0 %v7118_v7  ;;  %7333 = vrot.lane.b32.xlu0 %v7228_v13, %s10236_s3 }
 0xcd4   :  { %v7067_v58 = vpop.f32.mrf.mxu3 }
 0xcd5   :  { %v7068_v32 = vadd.f32 %v14535_v9, %v7067_v58 }
 0xcd7   :  { %v7102_v52 = vmax.f32 %v7068_v32, 0.0 }
 0xcd8   :  { %v7229_v40 = vpop.f32.mrf.mxu0 }
 0xcd9   :  { %v7230_v21 = vadd.f32 %v14570_v20, %v7229_v40 }
 0xcdb   :  { %7335 = vrot.lane.b32.xlu1 %v7230_v21, %s10236_s3 }
 0xcdc   :  { %v7069_v14 = vpop.f32.mrf.mxu3 }
 0xcdd   :  { %v7070_v29 = vadd.f32 %v14535_v9, %v7069_v14 }
 0xcdf   :  { %v7103_v49 = vmax.f32 %v7070_v29, 0.0 }
 0xce0   :  { %v7232_v15 = vpop.f32.mrf.mxu0 }
 0xce1   :  { %v7119_v48 = vpack.c.bf16 %v7103_v49, %v7102_v52  ;;  %v7233_v30 = vadd.f32 %v14570_v20, %v7232_v15 }
 0xce3   :  { %7271 = vmatmul.bf16.gmra.mxu0 %v7119_v48  ;;  %7337 = vrot.lane.b32.xlu2 %v7233_v30, %s10236_s3  ;;  %v15163_v30 = vld [vmem:[#allocation54_spill] sm:$0xff] }
 0xce5   :  { %v7310_v19 = vpop.permute.xlu0 %7309 }
 0xce6   :  { %v7406_v57 = vsel %vm7405_vm4, %v14207_v25, %v7310_v19 }
 0xce7   :  { %v7470_v8 = vand.u32 2147483647, %v7406_v57 }
 0xce8   :  { %v7234_v43 = vpop.f32.mrf.mxu0 }
 0xce9   :  { %v7502_v1 = vsub.f32 0.0, %v7470_v8  ;;  %v7235_v36 = vadd.f32 %v14570_v20, %v7234_v43 }
 0xceb   :  { %v7534_v9 = vmul.f32 1.442695, %v7502_v1  ;;  %7339 = vrot.lane.b32.xlu0 %v7235_v36, %s10236_s3 }
 0xced   :  { %9823 = vpow2.f32 %v7534_v9  ;;  %v7318_v55 = vpop.permute.xlu2 %7317  ;;  %v7312_v37 = vpop.permute.xlu0 %7311 }
 0xcee   :  { %v14622_v62 = vsel %vm7405_vm4, %v14256_v54, %v7318_v55  ;;  %v14626_v27 = vsel %vm7405_vm4, %v15162_v35, %v7312_v37 }
 0xcef   :  { %v7474_v25 = vand.u32 2147483647, %v14622_v62  ;;  %v7471_v26 = vand.u32 2147483647, %v14626_v27 }
 0xcf0   :  { %v7237_v7 = vpop.f32.mrf.mxu0 }
 0xcf1   :  { %v7506_v13 = vsub.f32 0.0, %v7474_v25  ;;  %v7503_v58 = vsub.f32 0.0, %v7471_v26  ;;  %v7238_v40 = vadd.f32 %v14570_v20, %v7237_v7 }
 0xcf3   :  { %v9824_v21 = vpop.eup %9823  ;;  %v7542_v32 = vmul.f32 1.442695, %v7506_v13  ;;  %v7536_v14 = vmul.f32 1.442695, %v7503_v58  ;;  %7341 = vrot.lane.b32.xlu1 %v7238_v40, %s10236_s3 }
 0xcf4   :  { %v7598_v54 = vadd.f32 1.0, %v9824_v21  ;;  %v7601_v29 = vmul.f32 -0.5, %v9824_v21  ;;  %v7604_v55 = vand.u32 2147483647, %v9824_v21 }
 0xcf5   :  { %9825 = vpow2.f32 %v7542_v32  ;;  %v7320_v52 = vpop.permute.xlu2 %7319  ;;  %v7314_v49 = vpop.permute.xlu1 %7313 }
 0xcf6   :  { %9827 = vlog2.f32 %v7598_v54  ;;  %v14634_v15 = vsel %vm7405_vm4, %v14266_v44, %v7320_v52  ;;  %v14639_v19 = vsel %vm7405_vm4, %v15163_v30, %v7314_v49  ;;  %v7602_v1 = vadd.f32 1.0, %v7601_v29  ;;  %v15164_v30 = vld [vmem:[#allocation46_spill] sm:$0xff] }
 0xcf7   :  { %9829 = vpow2.f32 %v7536_v14  ;;  %v7475_v48 = vand.u32 2147483647, %v14634_v15  ;;  %v7472_v8 = vand.u32 2147483647, %v14639_v19  ;;  %v7438_v54 = vmax.f32 %v7406_v57, 0.0 }
 0xcf8   :  { %v7239_v43 = vpop.f32.mrf.mxu0  ;;  %v7603_v40 = vmul.f32 %v9824_v21, %v7602_v1  ;;  %vm7605_vm5 = vcmp.lt.f32.partialorder %v7604_v55, 0.0004427343 }
 0xcf9   :  { %v7507_v36 = vsub.f32 0.0, %v7475_v48  ;;  %v7240_v9 = vadd.f32 %v14570_v20, %v7239_v43  ;;  %v7504_v37 = vsub.f32 0.0, %v7472_v8 }
 0xcfb   :  { %v9826_v35 = vpop.eup %9825  ;;  %v7544_v25 = vmul.f32 1.442695, %v7507_v36  ;;  %7343 = vrot.lane.b32.xlu2 %v7240_v9, %s10236_s3  ;;  %v7538_v7 = vmul.f32 1.442695, %v7504_v37 }
 0xcfc   :  { %v9828_v44 = vpop.eup %9827  ;;  %v7634_v26 = vadd.f32 1.0, %v9826_v35  ;;  %v7637_v32 = vmul.f32 -0.5, %v9826_v35  ;;  %v7640_v57 = vand.u32 2147483647, %v9826_v35 }
 0xcfd   :  { %v9830_v13 = vpop.eup %9829  ;;  %v7600_v58 = vmul.f32 0.6931472, %v9828_v44  ;;  %9831 = vpow2.f32 %v7544_v25  ;;  %v7316_v14 = vpop.permute.xlu1 %7315 }
 0xcfe   :  { %9833 = vlog2.f32 %v7634_v26  ;;  %v7607_v29 = vadd.f32 1.0, %v9830_v13  ;;  %v7610_v49 = vmul.f32 -0.5, %v9830_v13  ;;  %v14646_v8 = vsel %vm7405_vm4, %v15164_v30, %v7316_v14 }
 0xcff   :  { %v7606_v52 = vsel %vm7605_vm5, %v7603_v40, %v7600_v58  ;;  %9835 = vpow2.f32 %v7538_v7  ;;  %v7638_v21 = vadd.f32 1.0, %v7637_v32  ;;  %v7473_v1 = vand.u32 2147483647, %v14646_v8 }
 0xd00   :  { %v7886_v48 = vadd.f32 %v7606_v52, %v7438_v54  ;;  %9837 = vlog2.f32 %v7607_v29  ;;  %v7242_v43 = vpop.f32.mrf.mxu0  ;;  %v7611_v55 = vadd.f32 1.0, %v7610_v49  ;;  %v7613_v44 = vand.u32 2147483647, %v9830_v13 }
 0xd01   :  { %v7243_v36 = vadd.f32 %v14570_v20, %v7242_v43  ;;  %v7505_v37 = vsub.f32 0.0, %v7473_v1  ;;  %v7639_v40 = vmul.f32 %v9826_v35, %v7638_v21  ;;  %v7442_v29 = vmax.f32 %v14622_v62, 0.0 }
 0xd02   :  { %7919 = vst.msk [vmem:[%s10395_s8] sm:$0xff] %vm7918_vm6, %v7886_v48  ;;  %vm7641_vm7 = vcmp.lt.f32.partialorder %v7640_v57, 0.0004427343  ;;  %v7612_v30 = vmul.f32 %v9830_v13, %v7611_v55  ;;  %vm7614_vm8 = vcmp.lt.f32.partialorder %v7613_v44, 0.0004427343 }
 0xd03   :  { %v9832_v9 = vpop.eup %9831  ;;  %7345 = vrot.lane.b32.xlu0 %v7243_v36, %s10236_s3  ;;  %v7540_v32 = vmul.f32 1.442695, %v7505_v37  ;;  %v7439_v36 = vmax.f32 %v14626_v27, 0.0 }
 0xd04   :  { %v9834_v25 = vpop.eup %9833  ;;  %v7643_v26 = vadd.f32 1.0, %v9832_v9  ;;  %v7646_v14 = vmul.f32 -0.5, %v9832_v9  ;;  %v7649_v57 = vand.u32 2147483647, %v9832_v9 }
 0xd05   :  { %v9836_v7 = vpop.eup %9835  ;;  %v7636_v58 = vmul.f32 0.6931472, %v9834_v25 }
 0xd06   :  { %v9838_v54 = vpop.eup %9837  ;;  %9839 = vlog2.f32 %v7643_v26  ;;  %v7616_v52 = vadd.f32 1.0, %v9836_v7  ;;  %v7619_v43 = vmul.f32 -0.5, %v9836_v7  ;;  %v7647_v37 = vadd.f32 1.0, %v7646_v14 }
 0xd07   :  { %v7642_v48 = vsel %vm7641_vm7, %v7639_v40, %v7636_v58  ;;  %v7609_v49 = vmul.f32 0.6931472, %v9838_v54  ;;  %v7622_v13 = vand.u32 2147483647, %v9836_v7  ;;  %v7443_v14 = vmax.f32 %v14634_v15, 0.0 }
 0xd08   :  { %v7890_v1 = vadd.f32 %v7642_v48, %v7442_v29  ;;  %9841 = vlog2.f32 %v7616_v52  ;;  %v7244_v35 = vpop.f32.mrf.mxu0  ;;  %v7620_v26 = vadd.f32 1.0, %v7619_v43  ;;  %v7648_v55 = vmul.f32 %v9832_v9, %v7647_v37 }
 0xd09   :  { %v7615_v21 = vsel %vm7614_vm8, %v7612_v30, %v7609_v49  ;;  %9843 = vpow2.f32 %v7540_v32  ;;  %v7245_v25 = vadd.f32 %v14570_v20, %v7244_v35  ;;  %vm7650_vm9 = vcmp.lt.f32.partialorder %v7649_v57, 0.0004427343 }
 0xd0a   :  { %7923 = vst.msk [vmem:[%s10395_s8 + $0x20] sm:$0xff] %vm7918_vm6, %v7890_v1  ;;  %v7887_v62 = vadd.f32 %v7615_v21, %v7439_v36  ;;  %v7621_v48 = vmul.f32 %v9836_v7, %v7620_v26  ;;  %v7440_v9 = vmax.f32 %v14639_v19, 0.0  ;;  %vm7623_vm10 = vcmp.lt.f32.partialorder %v7622_v13, 0.0004427343 }
 0xd0b   :  { %7347 = vrot.lane.b32.xlu1 %v7245_v25, %s10236_s3 }
 0xd0c   :  { %v9840_v58 = vpop.eup %9839  ;;  %7920 = vst.msk [vmem:[%s10395_s8 + $0x8] sm:$0xff] %vm7918_vm6, %v7887_v62 }
 0xd0d   :  { %v7645_v27 = vmul.f32 0.6931472, %v9840_v58  ;;  %v7326_v44 = vpop.permute.xlu2 %7325 }
 0xd0e   :  { %v9842_v40 = vpop.eup %9841  ;;  %v14664_v32 = vsel %vm7405_vm4, %v14299_v28, %v7326_v44 }
 0xd0f   :  { %v9844_v54 = vpop.eup %9843  ;;  %v7651_v29 = vsel %vm7650_vm9, %v7648_v55, %v7645_v27  ;;  %v7618_v52 = vmul.f32 0.6931472, %v9842_v40  ;;  %v7478_v49 = vand.u32 2147483647, %v14664_v32  ;;  %v7441_v40 = vmax.f32 %v14646_v8, 0.0 }
 0xd10   :  { %v7891_v30 = vadd.f32 %v7651_v29, %v7443_v14  ;;  %v7625_v43 = vadd.f32 1.0, %v9844_v54  ;;  %v7247_v1 = vpop.f32.mrf.mxu0  ;;  %v7628_v36 = vmul.f32 -0.5, %v9844_v54  ;;  %v7631_v62 = vand.u32 2147483647, %v9844_v54 }
 0xd11   :  { %v7624_v15 = vsel %vm7623_vm10, %v7621_v48, %v7618_v52  ;;  %v7510_v35 = vsub.f32 0.0, %v7478_v49  ;;  %v7248_v21 = vadd.f32 %v14570_v20, %v7247_v1 }
 0xd12   :  { %7924 = vst.msk [vmem:[%s10395_s8 + $0x28] sm:$0xff] %vm7918_vm6, %v7891_v30  ;;  %v7888_v28 = vadd.f32 %v7624_v15, %v7440_v9  ;;  %9845 = vlog2.f32 %v7625_v43  ;;  %v7629_v7 = vadd.f32 1.0, %v7628_v36  ;;  %vm7632_vm11 = vcmp.lt.f32.partialorder %v7631_v62, 0.0004427343 }
 0xd13   :  { %v7550_v37 = vmul.f32 1.442695, %v7510_v35  ;;  %7349 = vrot.lane.b32.xlu2 %v7248_v21, %s10236_s3  ;;  %v6050_v36 = vadd.f32 %v14273_v61, %v14190_v12 }
 0xd14   :  { %7921 = vst.msk [vmem:[%s10395_s8 + $0x10] sm:$0xff] %vm7918_vm6, %v7888_v28  ;;  %v7630_v27 = vmul.f32 %v9844_v54, %v7629_v7 }
 0xd15   :  { %9847 = vpow2.f32 %v7550_v37  ;;  %v7322_v19 = vpop.permute.xlu0 %7321  ;;  %v6139_v7 = vadd.f32 %v14326_v22, %v6050_v36 }
 0xd16   :  { %v14676_v57 = vsel %vm7405_vm4, %v14280_v47, %v7322_v19 }
 0xd17   :  { %v7476_v25 = vand.u32 2147483647, %v14676_v57  ;;  %v7444_v36 = vmax.f32 %v14676_v57, 0.0 }
 0xd18   :  { %v9846_v26 = vpop.eup %9845  ;;  %v7249_v58 = vpop.f32.mrf.mxu0 }
 0xd19   :  { %v7627_v13 = vmul.f32 0.6931472, %v9846_v26  ;;  %v7508_v55 = vsub.f32 0.0, %v7476_v25  ;;  %v7250_v44 = vadd.f32 %v14570_v20, %v7249_v58  ;;  %v7446_v58 = vmax.f32 %v14664_v32, 0.0 }
 0xd1b   :  { %v9848_v14 = vpop.eup %9847  ;;  %v7633_v29 = vsel %vm7632_vm11, %v7630_v27, %v7627_v13  ;;  %v7546_v52 = vmul.f32 1.442695, %v7508_v55  ;;  %7351 = vrot.lane.b32.xlu0 %v7250_v44, %s10236_s3 }
 0xd1c   :  { %v7889_v47 = vadd.f32 %v7633_v29, %v7441_v40  ;;  %v7670_v48 = vadd.f32 1.0, %v9848_v14  ;;  %v7673_v49 = vmul.f32 -0.5, %v9848_v14  ;;  %v7676_v35 = vand.u32 2147483647, %v9848_v14  ;;  %v15165_v29 = vld [vmem:[#allocation55_spill] sm:$0xff] }
 0xd1d   :  { %9849 = vpow2.f32 %v7546_v52  ;;  %v7324_v30 = vpop.permute.xlu1 %7323  ;;  %v6045_v52 = vadd.f32 %v15165_v29, %v14190_v12 }
 0xd1e   :  { %7922 = vst.msk [vmem:[%s10395_s8 + $0x18] sm:$0xff] %vm7918_vm6, %v7889_v47  ;;  %9851 = vlog2.f32 %v7670_v48  ;;  %v14686_v54 = vsel %vm7405_vm4, %v14288_v31, %v7324_v30  ;;  %v7674_v43 = vadd.f32 1.0, %v7673_v49  ;;  %vm7677_vm12 = vcmp.lt.f32.partialorder %v7676_v35, 0.0004427343 }
 0xd1f   :  { %v7477_v8 = vand.u32 2147483647, %v14686_v54  ;;  %v6134_v30 = vadd.f32 %v14307_v41, %v6045_v52 }
 0xd20   :  { %v7252_v9 = vpop.f32.mrf.mxu0  ;;  %v7675_v62 = vmul.f32 %v9848_v14, %v7674_v43 }
 0xd21   :  { %v7509_v1 = vsub.f32 0.0, %v7477_v8  ;;  %v7253_v15 = vadd.f32 %v14570_v20, %v7252_v9 }
 0xd23   :  { %v9850_v21 = vpop.eup %9849  ;;  %v7548_v28 = vmul.f32 1.442695, %v7509_v1  ;;  %7353 = vrot.lane.b32.xlu1 %v7253_v15, %s10236_s3 }
 0xd24   :  { %v9852_v37 = vpop.eup %9851  ;;  %v7652_v31 = vadd.f32 1.0, %v9850_v21  ;;  %v7655_v25 = vmul.f32 -0.5, %v9850_v21  ;;  %v7658_v32 = vand.u32 2147483647, %v9850_v21 }
 0xd25   :  { %v7672_v19 = vmul.f32 0.6931472, %v9852_v37  ;;  %9853 = vpow2.f32 %v7548_v28  ;;  %v7332_v26 = vpop.permute.xlu2 %7331 }
 0xd26   :  { %9855 = vlog2.f32 %v7652_v31  ;;  %v14696_v61 = vsel %vm7405_vm4, %v6139_v7, %v7332_v26  ;;  %v7656_v22 = vadd.f32 1.0, %v7655_v25  ;;  %vm7659_vm13 = vcmp.lt.f32.partialorder %v7658_v32, 0.0004427343 }
 0xd27   :  { %v7678_v13 = vsel %vm7677_vm12, %v7675_v62, %v7672_v19  ;;  %v7481_v27 = vand.u32 2147483647, %v14696_v61 }
 0xd28   :  { %v7894_v55 = vadd.f32 %v7678_v13, %v7446_v58  ;;  %v7254_v44 = vpop.f32.mrf.mxu0  ;;  %v7657_v43 = vmul.f32 %v9850_v21, %v7656_v22  ;;  %v7445_v22 = vmax.f32 %v14686_v54, 0.0 }
 0xd29   :  { %v7513_v40 = vsub.f32 0.0, %v7481_v27  ;;  %v7255_v14 = vadd.f32 %v14570_v20, %v7254_v44 }
 0xd2a   :  { %7927 = vst.msk [vmem:[%s10395_s8 + $0x40] sm:$0xff] %vm7918_vm6, %v7894_v55 }
 0xd2b   :  { %v9854_v47 = vpop.eup %9853  ;;  %v7556_v48 = vmul.f32 1.442695, %v7513_v40  ;;  %7355 = vrot.lane.b32.xlu2 %v7255_v14, %s10236_s3 }
 0xd2c   :  { %v9856_v49 = vpop.eup %9855  ;;  %v7661_v8 = vadd.f32 1.0, %v9854_v47  ;;  %v7664_v1 = vmul.f32 -0.5, %v9854_v47  ;;  %v7667_v21 = vand.u32 2147483647, %v9854_v47 }
 0xd2d   :  { %v7654_v9 = vmul.f32 0.6931472, %v9856_v49  ;;  %9857 = vpow2.f32 %v7556_v48  ;;  %v7328_v15 = vpop.permute.xlu0 %7327 }
 0xd2e   :  { %9859 = vlog2.f32 %v7661_v8  ;;  %v14708_v35 = vsel %vm7405_vm4, %v6134_v30, %v7328_v15  ;;  %v7665_v41 = vadd.f32 1.0, %v7664_v1  ;;  %vm7668_vm14 = vcmp.lt.f32.partialorder %v7667_v21, 0.0004427343 }
 0xd2f   :  { %v7660_v28 = vsel %vm7659_vm13, %v7657_v43, %v7654_v9  ;;  %v7479_v37 = vand.u32 2147483647, %v14708_v35 }
 0xd30   :  { %v7892_v7 = vadd.f32 %v7660_v28, %v7444_v36  ;;  %v7257_v31 = vpop.f32.mrf.mxu0  ;;  %v7666_v27 = vmul.f32 %v9854_v47, %v7665_v41  ;;  %v7449_v28 = vmax.f32 %v14696_v61, 0.0 }
 0xd31   :  { %v7511_v19 = vsub.f32 0.0, %v7479_v37  ;;  %v7258_v62 = vadd.f32 %v14570_v20, %v7257_v31 }
 0xd32   :  { %7925 = vst.msk [vmem:[%s10395_s8 + $0x30] sm:$0xff] %vm7918_vm6, %v7892_v7 }
 0xd33   :  { %v9858_v25 = vpop.eup %9857  ;;  %v7552_v26 = vmul.f32 1.442695, %v7511_v19  ;;  %7357 = vrot.lane.b32.xlu0 %v7258_v62, %s10236_s3 }
 0xd34   :  { %v9860_v57 = vpop.eup %9859  ;;  %v7697_v58 = vadd.f32 1.0, %v9858_v25  ;;  %v7700_v55 = vmul.f32 -0.5, %v9858_v25  ;;  %v7703_v30 = vand.u32 2147483647, %v9858_v25 }
 0xd35   :  { %v7663_v13 = vmul.f32 0.6931472, %v9860_v57  ;;  %9861 = vpow2.f32 %v7552_v26  ;;  %v7330_v44 = vpop.permute.xlu1 %7329 }
 0xd36   :  { %9863 = vlog2.f32 %v7697_v58  ;;  %v14718_v40 = vsel %vm7405_vm4, %v14318_v33, %v7330_v44  ;;  %v7701_v48 = vadd.f32 1.0, %v7700_v55  ;;  %vm7704_vm15 = vcmp.lt.f32.partialorder %v7703_v30, 0.0004427343 }
 0xd37   :  { %v7669_v14 = vsel %vm7668_vm14, %v7666_v27, %v7663_v13  ;;  %v7480_v29 = vand.u32 2147483647, %v14718_v40 }
 0xd38   :  { %v7893_v52 = vadd.f32 %v7669_v14, %v7445_v22  ;;  %v7259_v32 = vpop.f32.mrf.mxu0  ;;  %v7702_v1 = vmul.f32 %v9858_v25, %v7701_v48  ;;  %v7447_v22 = vmax.f32 %v14708_v35, 0.0 }
 0xd39   :  { %v7512_v49 = vsub.f32 0.0, %v7480_v29  ;;  %v7260_v47 = vadd.f32 %v14570_v20, %v7259_v32 }
 0xd3a   :  { %7926 = vst.msk [vmem:[%s10395_s8 + $0x38] sm:$0xff] %vm7918_vm6, %v7893_v52 }
 0xd3b   :  { %v9862_v8 = vpop.eup %9861  ;;  %v7554_v54 = vmul.f32 1.442695, %v7512_v49  ;;  %7359 = vrot.lane.b32.xlu1 %v7260_v47, %s10236_s3 }
 0xd3c   :  { %v9864_v9 = vpop.eup %9863  ;;  %v7679_v43 = vadd.f32 1.0, %v9862_v8  ;;  %v7682_v15 = vmul.f32 -0.5, %v9862_v8  ;;  %v7685_v26 = vand.u32 2147483647, %v9862_v8 }
 0xd3d   :  { %v7699_v33 = vmul.f32 0.6931472, %v9864_v9  ;;  %9865 = vpow2.f32 %v7554_v54  ;;  %v7338_v36 = vpop.permute.xlu2 %7337 }
 0xd3e   :  { %9867 = vlog2.f32 %v7679_v43  ;;  %v14728_v37 = vsel %vm7405_vm4, %v14358_v10, %v7338_v36  ;;  %v7683_v62 = vadd.f32 1.0, %v7682_v15  ;;  %vm7686_vm0 = vcmp.lt.f32.partialorder %v7685_v26, 0.0004427343 }
 0xd3f   :  { %v7705_v7 = vsel %vm7704_vm15, %v7702_v1, %v7699_v33  ;;  %v7484_v31 = vand.u32 2147483647, %v14728_v37  ;;  %v6065_v26 = vadd.f32 %v14346_v46, %v14190_v12 }
 0xd40   :  { %v7897_v41 = vadd.f32 %v7705_v7, %v7449_v28  ;;  %v7262_v19 = vpop.f32.mrf.mxu0  ;;  %v7684_v27 = vmul.f32 %v9862_v8, %v7683_v62  ;;  %v6055_v8 = vadd.f32 %v14301_v16, %v14190_v12  ;;  %v7448_v7 = vmax.f32 %v14718_v40, 0.0 }
 0xd41   :  { %v7516_v21 = vsub.f32 0.0, %v7484_v31  ;;  %v7263_v25 = vadd.f32 %v14570_v20, %v7262_v19 }
 0xd42   :  { %7930 = vst.msk [vmem:[%s10395_s8 + $0x58] sm:$0xff] %vm7918_vm6, %v7897_v41  ;;  %v6144_v43 = vadd.f32 %v14344_v39, %v6055_v8  ;;  %v6060_v8 = vadd.f32 %v14322_v34, %v14190_v12 }
 0xd43   :  { %v9866_v57 = vpop.eup %9865  ;;  %v7562_v61 = vmul.f32 1.442695, %v7516_v21  ;;  %7361 = vrot.lane.b32.xlu2 %v7263_v25, %s10236_s3 }
 0xd44   :  { %v9868_v58 = vpop.eup %9867  ;;  %v7688_v13 = vadd.f32 1.0, %v9866_v57  ;;  %v7691_v55 = vmul.f32 -0.5, %v9866_v57  ;;  %v7694_v35 = vand.u32 2147483647, %v9866_v57 }
 0xd45   :  { %v7681_v10 = vmul.f32 0.6931472, %v9868_v58  ;;  %9869 = vpow2.f32 %v7562_v61  ;;  %v7334_v44 = vpop.permute.xlu0 %7333 }
 0xd46   :  { %9871 = vlog2.f32 %v7688_v13  ;;  %v14738_v14 = vsel %vm7405_vm4, %v14338_v59, %v7334_v44  ;;  %v7692_v49 = vadd.f32 1.0, %v7691_v55  ;;  %vm7695_vm1 = vcmp.lt.f32.partialorder %v7694_v35, 0.0004427343 }
 0xd47   :  { %v7687_v29 = vsel %vm7686_vm0, %v7684_v27, %v7681_v10  ;;  %v7482_v52 = vand.u32 2147483647, %v14738_v14  ;;  %v6154_v13 = vadd.f32 %v14381_v51, %v6065_v26 }
 0xd48   :  { %v7895_v32 = vadd.f32 %v7687_v29, %v7447_v22  ;;  %v7264_v48 = vpop.f32.mrf.mxu0  ;;  %v7693_v15 = vmul.f32 %v9866_v57, %v7692_v49  ;;  %v7452_v29 = vmax.f32 %v14728_v37, 0.0 }
 0xd49   :  { %v7514_v47 = vsub.f32 0.0, %v7482_v52  ;;  %v7265_v30 = vadd.f32 %v14570_v20, %v7264_v48 }
 0xd4a   :  { %7928 = vst.msk [vmem:[%s10395_s8 + $0x48] sm:$0xff] %vm7918_vm6, %v7895_v32 }
 0xd4b   :  { %v9870_v54 = vpop.eup %9869  ;;  %v7558_v9 = vmul.f32 1.442695, %v7514_v47  ;;  %7363 = vrot.lane.b32.xlu0 %v7265_v30, %s10236_s3 }
 0xd4c   :  { %v9872_v59 = vpop.eup %9871  ;;  %v7724_v33 = vadd.f32 1.0, %v9870_v54  ;;  %v7727_v36 = vmul.f32 -0.5, %v9870_v54  ;;  %v7730_v40 = vand.u32 2147483647, %v9870_v54 }
 0xd4d   :  { %v7690_v1 = vmul.f32 0.6931472, %v9872_v59  ;;  %9873 = vpow2.f32 %v7558_v9  ;;  %v7336_v28 = vpop.permute.xlu1 %7335  ;;  %v6149_v59 = vadd.f32 %v14364_v18, %v6060_v8 }
 0xd4e   :  { %9875 = vlog2.f32 %v7724_v33  ;;  %v14750_v16 = vsel %vm7405_vm4, %v6144_v43, %v7336_v28  ;;  %v7728_v39 = vadd.f32 1.0, %v7727_v36  ;;  %vm7731_vm2 = vcmp.lt.f32.partialorder %v7730_v40, 0.0004427343 }
 0xd4f   :  { %v7696_v31 = vsel %vm7695_vm1, %v7693_v15, %v7690_v1  ;;  %v7483_v41 = vand.u32 2147483647, %v14750_v16  ;;  %v7450_v28 = vmax.f32 %v14738_v14, 0.0 }
 0xd50   :  { %v7896_v19 = vadd.f32 %v7696_v31, %v7448_v7  ;;  %v7267_v62 = vpop.f32.mrf.mxu0  ;;  %v7729_v55 = vmul.f32 %v9870_v54, %v7728_v39 }
 0xd51   :  { %v7515_v21 = vsub.f32 0.0, %v7483_v41  ;;  %v7268_v25 = vadd.f32 %v14570_v20, %v7267_v62 }
 0xd52   :  { %7929 = vst.msk [vmem:[%s10395_s8 + $0x50] sm:$0xff] %vm7918_vm6, %v7896_v19 }
 0xd53   :  { %v9874_v57 = vpop.eup %9873  ;;  %v7560_v61 = vmul.f32 1.442695, %v7515_v21  ;;  %7365 = vrot.lane.b32.xlu1 %v7268_v25, %s10236_s3 }
 0xd54   :  { %v9876_v58 = vpop.eup %9875  ;;  %v7706_v10 = vadd.f32 1.0, %v9874_v57  ;;  %v7709_v44 = vmul.f32 -0.5, %v9874_v57  ;;  %v7712_v37 = vand.u32 2147483647, %v9874_v57 }
 0xd55   :  { %v7726_v27 = vmul.f32 0.6931472, %v9876_v58  ;;  %9877 = vpow2.f32 %v7560_v61  ;;  %v7344_v22 = vpop.permute.xlu2 %7343 }
 0xd56   :  { %9879 = vlog2.f32 %v7706_v10  ;;  %v14762_v46 = vsel %vm7405_vm4, %v6154_v13, %v7344_v22  ;;  %v7710_v51 = vadd.f32 1.0, %v7709_v44  ;;  %vm7713_vm3 = vcmp.lt.f32.partialorder %v7712_v37, 0.0004427343 }
 0xd57   :  { %v7732_v52 = vsel %vm7731_vm2, %v7729_v55, %v7726_v27  ;;  %v7487_v32 = vand.u32 2147483647, %v14762_v46  ;;  %v7451_v10 = vmax.f32 %v14750_v16, 0.0 }
 0xd58   :  { %v7900_v48 = vadd.f32 %v7732_v52, %v7452_v29  ;;  %v7269_v49 = vpop.f32.mrf.mxu0  ;;  %v7711_v1 = vmul.f32 %v9874_v57, %v7710_v51 }
 0xd59   :  { %v7519_v47 = vsub.f32 0.0, %v7487_v32  ;;  %v7270_v30 = vadd.f32 %v14570_v20, %v7269_v49 }
 0xd5a   :  { %7933 = vst.msk [vmem:[%s10395_s8 + $0x70] sm:$0xff] %vm7918_vm6, %v7900_v48 }
 0xd5b   :  { %v9878_v35 = vpop.eup %9877  ;;  %v7568_v54 = vmul.f32 1.442695, %v7519_v47  ;;  %7367 = vrot.lane.b32.xlu2 %v7270_v30, %s10236_s3 }
 0xd5c   :  { %v9880_v9 = vpop.eup %9879  ;;  %v7715_v43 = vadd.f32 1.0, %v9878_v35  ;;  %v7718_v15 = vmul.f32 -0.5, %v9878_v35  ;;  %v7721_v21 = vand.u32 2147483647, %v9878_v35 }
 0xd5d   :  { %v7708_v33 = vmul.f32 0.6931472, %v9880_v9  ;;  %9881 = vpow2.f32 %v7568_v54  ;;  %v7340_v36 = vpop.permute.xlu0 %7339  ;;  %v7455_v54 = vmax.f32 %v14762_v46, 0.0 }
 0xd5e   :  { %9883 = vlog2.f32 %v7715_v43  ;;  %v14774_v34 = vsel %vm7405_vm4, %v6149_v59, %v7340_v36  ;;  %v7719_v18 = vadd.f32 1.0, %v7718_v15  ;;  %vm7722_vm5 = vcmp.lt.f32.partialorder %v7721_v21, 0.0004427343 }
 0xd5f   :  { %v7714_v7 = vsel %vm7713_vm3, %v7711_v1, %v7708_v33  ;;  %v7485_v31 = vand.u32 2147483647, %v14774_v34 }
 0xd60   :  { %v7898_v41 = vadd.f32 %v7714_v7, %v7450_v28  ;;  %v7272_v19 = vpop.f32.mrf.mxu0  ;;  %v7720_v61 = vmul.f32 %v9878_v35, %v7719_v18 }
 0xd61   :  { %v7517_v62 = vsub.f32 0.0, %v7485_v31  ;;  %v7273_v39 = vadd.f32 %v14570_v20, %v7272_v19 }
 0xd62   :  { %7931 = vst.msk [vmem:[%s10395_s8 + $0x60] sm:$0xff] %vm7918_vm6, %v7898_v41 }
 0xd63   :  { %v9882_v25 = vpop.eup %9881  ;;  %v7564_v26 = vmul.f32 1.442695, %v7517_v62  ;;  %7369 = vrot.lane.b32.xlu0 %v7273_v39, %s10236_s3 }
 0xd64   :  { %v9884_v14 = vpop.eup %9883  ;;  %v7751_v40 = vadd.f32 1.0, %v9882_v25  ;;  %v7754_v58 = vmul.f32 -0.5, %v9882_v25  ;;  %v7757_v49 = vand.u32 2147483647, %v9882_v25 }
 0xd65   :  { %v7717_v57 = vmul.f32 0.6931472, %v9884_v14  ;;  %9885 = vpow2.f32 %v7564_v26  ;;  %v7342_v13 = vpop.permute.xlu1 %7341 }
 0xd66   :  { %9887 = vlog2.f32 %v7751_v40  ;;  %v14784_v27 = vsel %vm7405_vm4, %v14377_v4, %v7342_v13  ;;  %v7755_v52 = vadd.f32 1.0, %v7754_v58  ;;  %vm7758_vm7 = vcmp.lt.f32.partialorder %v7757_v49, 0.0004427343 }
 0xd67   :  { %v7723_v55 = vsel %vm7722_vm5, %v7720_v61, %v7717_v57  ;;  %v7486_v44 = vand.u32 2147483647, %v14784_v27  ;;  %v15166_v61 = vld [vmem:[#allocation60_spill] sm:$0xff] }
 0xd68   :  { %v7899_v22 = vadd.f32 %v7723_v55, %v7451_v10  ;;  %v7274_v29 = vpop.f32.mrf.mxu0  ;;  %v7756_v8 = vmul.f32 %v9882_v25, %v7755_v52 }
 0xd69   :  { %v7518_v32 = vsub.f32 0.0, %v7486_v44  ;;  %v7275_v48 = vadd.f32 %v14570_v20, %v7274_v29  ;;  %v7454_v29 = vmax.f32 %v14784_v27, 0.0 }
 0xd6a   :  { %7932 = vst.msk [vmem:[%s10395_s8 + $0x68] sm:$0xff] %vm7918_vm6, %v7899_v22 }
 0xd6b   :  { %v9886_v51 = vpop.eup %9885  ;;  %v7566_v16 = vmul.f32 1.442695, %v7518_v32  ;;  %7371 = vrot.lane.b32.xlu1 %v7275_v48, %s10236_s3 }
 0xd6c   :  { %v9888_v47 = vpop.eup %9887  ;;  %v7733_v4 = vadd.f32 1.0, %v9886_v51  ;;  %v7736_v37 = vmul.f32 -0.5, %v9886_v51  ;;  %v7739_v15 = vand.u32 2147483647, %v9886_v51 }
 0xd6d   :  { %v7753_v30 = vmul.f32 0.6931472, %v9888_v47  ;;  %9889 = vpow2.f32 %v7566_v16  ;;  %v7350_v35 = vpop.permute.xlu2 %7349 }
 0xd6e   :  { %9891 = vlog2.f32 %v7733_v4  ;;  %v14794_v20 = vsel %vm7405_vm4, %v14401_v17, %v7350_v35  ;;  %v7737_v33 = vadd.f32 1.0, %v7736_v37  ;;  %v7453_v17 = vmax.f32 %v14774_v34, 0.0  ;;  %v15167_v4 = vld [vmem:[#allocation52_spill] sm:$0xff] }
 0xd6f   :  { %v7759_v9 = vsel %vm7758_vm7, %v7756_v8, %v7753_v30  ;;  %v7490_v59 = vand.u32 2147483647, %v14794_v20  ;;  %vm7740_vm8 = vcmp.lt.f32.partialorder %v7739_v15, 0.0004427343  ;;  %v6070_v34 = vadd.f32 %v15166_v61, %v14190_v12 }
 0xd70   :  { %v7903_v43 = vadd.f32 %v7759_v9, %v7455_v54  ;;  %v7738_v41 = vmul.f32 %v9886_v51, %v7737_v33  ;;  %v6080_v30 = vadd.f32 %v15167_v4, %v14190_v12 }
 0xd71   :  { %v7522_v1 = vsub.f32 0.0, %v7490_v59  ;;  %v6159_v55 = vadd.f32 %v14394_v24, %v6070_v34 }
 0xd72   :  { %7936 = vst.msk [vmem:[%s10395_s8 + $0x88] sm:$0xff] %vm7918_vm6, %v7903_v43  ;;  %v6169_v35 = vadd.f32 %v14421_v60, %v6080_v30  ;;  %v7458_v43 = vmax.f32 %v14794_v20, 0.0 }
 0xd73   :  { %v9890_v36 = vpop.eup %9889  ;;  %v7574_v28 = vmul.f32 1.442695, %v7522_v1 }
 0xd74   :  { %v9892_v7 = vpop.eup %9891  ;;  %v7742_v46 = vadd.f32 1.0, %v9890_v36  ;;  %v7745_v19 = vmul.f32 -0.5, %v9890_v36  ;;  %v7748_v14 = vand.u32 2147483647, %v9890_v36 }
 0xd75   :  { %v7735_v31 = vmul.f32 0.6931472, %v9892_v7  ;;  %9893 = vpow2.f32 %v7574_v28  ;;  %v7346_v18 = vpop.permute.xlu0 %7345 }
 0xd76   :  { %9895 = vlog2.f32 %v7742_v46  ;;  %v14802_v39 = vsel %vm7405_vm4, %v14388_v3, %v7346_v18  ;;  %v7746_v26 = vadd.f32 1.0, %v7745_v19  ;;  %vm7749_vm9 = vcmp.lt.f32.partialorder %v7748_v14, 0.0004427343  ;;  %v15168_v46 = vld [vmem:[#allocation56_spill] sm:$0xff]  ;;  %v15169_v19 = vld [vmem:[#allocation57_spill] sm:$0xff] }
 0xd77   :  { %v7741_v62 = vsel %vm7740_vm8, %v7738_v41, %v7735_v31  ;;  %v7488_v25 = vand.u32 2147483647, %v14802_v39  ;;  %v6075_v60 = vadd.f32 %v15168_v46, %v14190_v12  ;;  %v7456_v34 = vmax.f32 %v14802_v39, 0.0 }
 0xd78   :  { %v7901_v21 = vadd.f32 %v7741_v62, %v7453_v17  ;;  %v7747_v44 = vmul.f32 %v9890_v36, %v7746_v26 }
 0xd79   :  { %v7520_v40 = vsub.f32 0.0, %v7488_v25  ;;  %v6164_v17 = vadd.f32 %v15169_v19, %v6075_v60 }
 0xd7a   :  { %7934 = vst.msk [vmem:[%s10395_s8 + $0x78] sm:$0xff] %vm7918_vm6, %v7901_v21 }
 0xd7b   :  { %v9894_v57 = vpop.eup %9893  ;;  %v7570_v10 = vmul.f32 1.442695, %v7520_v40 }
 0xd7c   :  { %v9896_v58 = vpop.eup %9895  ;;  %v7778_v13 = vadd.f32 1.0, %v9894_v57  ;;  %v7781_v22 = vmul.f32 -0.5, %v9894_v57  ;;  %v7784_v24 = vand.u32 2147483647, %v9894_v57 }
 0xd7d   :  { %v7744_v3 = vmul.f32 0.6931472, %v9896_v58  ;;  %v7348_v52 = vpop.permute.xlu1 %7347 }
 0xd7e   :  { %9897 = vlog2.f32 %v7778_v13  ;;  %v14812_v48 = vsel %vm7405_vm4, %v6159_v55, %v7348_v52  ;;  %v7782_v16 = vadd.f32 1.0, %v7781_v22  ;;  %vm7785_vm10 = vcmp.lt.f32.partialorder %v7784_v24, 0.0004427343 }
 0xd7f   :  { %v7750_v32 = vsel %vm7749_vm9, %v7747_v44, %v7744_v3  ;;  %9899 = vpow2.f32 %v7570_v10  ;;  %v7489_v51 = vand.u32 2147483647, %v14812_v48 }
 0xd80   :  { %v7902_v49 = vadd.f32 %v7750_v32, %v7454_v29  ;;  %v7783_v9 = vmul.f32 %v9894_v57, %v7782_v16  ;;  %v7457_v16 = vmax.f32 %v14812_v48, 0.0 }
 0xd81   :  { %v7521_v47 = vsub.f32 0.0, %v7489_v51 }
 0xd82   :  { %7935 = vst.msk [vmem:[%s10395_s8 + $0x80] sm:$0xff] %vm7918_vm6, %v7902_v49 }
 0xd83   :  { %v7572_v8 = vmul.f32 1.442695, %v7521_v47 }
 0xd84   :  { %v9898_v27 = vpop.eup %9897 }
 0xd85   :  { %v9900_v37 = vpop.eup %9899  ;;  %v7780_v54 = vmul.f32 0.6931472, %v9898_v27  ;;  %v7356_v59 = vpop.permute.xlu2 %7355  ;;  %9901 = vpow2.f32 %v7572_v8 }
 0xd86   :  { %v7760_v33 = vadd.f32 1.0, %v9900_v37  ;;  %v7763_v15 = vmul.f32 -0.5, %v9900_v37  ;;  %v14822_v36 = vsel %vm7405_vm4, %v6169_v35, %v7356_v59  ;;  %v7766_v18 = vand.u32 2147483647, %v9900_v37 }
 0xd87   :  { %v7786_v1 = vsel %vm7785_vm10, %v7783_v9, %v7780_v54  ;;  %v7493_v7 = vand.u32 2147483647, %v14822_v36 }
 0xd88   :  { %v7906_v28 = vadd.f32 %v7786_v1, %v7458_v43  ;;  %9903 = vlog2.f32 %v7760_v33  ;;  %v7764_v31 = vadd.f32 1.0, %v7763_v15  ;;  %vm7767_vm11 = vcmp.lt.f32.partialorder %v7766_v18, 0.0004427343 }
 0xd89   :  { %v7525_v41 = vsub.f32 0.0, %v7493_v7  ;;  %v7461_v7 = vmax.f32 %v14822_v36, 0.0 }
 0xd8a   :  { %7939 = vst.msk [vmem:[%s10395_s8 + $0xa0] sm:$0xff] %vm7918_vm6, %v7906_v28  ;;  %v7765_v61 = vmul.f32 %v9900_v37, %v7764_v31 }
 0xd8b   :  { %v9902_v20 = vpop.eup %9901  ;;  %v7580_v21 = vmul.f32 1.442695, %v7525_v41 }
 0xd8c   :  { %v7769_v62 = vadd.f32 1.0, %v9902_v20  ;;  %v7772_v14 = vmul.f32 -0.5, %v9902_v20  ;;  %v7775_v44 = vand.u32 2147483647, %v9902_v20 }
 0xd8d   :  { %v7352_v25 = vpop.permute.xlu0 %7351 }
 0xd8e   :  { %v9904_v26 = vpop.eup %9903  ;;  %v14831_v40 = vsel %vm7405_vm4, %v6164_v17, %v7352_v25  ;;  %9905 = vlog2.f32 %v7769_v62  ;;  %v7773_v55 = vadd.f32 1.0, %v7772_v14  ;;  %vm7776_vm12 = vcmp.lt.f32.partialorder %v7775_v44, 0.0004427343 }
 0xd8f   :  { %v7762_v57 = vmul.f32 0.6931472, %v9904_v26  ;;  %9907 = vpow2.f32 %v7580_v21  ;;  %v7491_v58 = vand.u32 2147483647, %v14831_v40  ;;  %v7459_v14 = vmax.f32 %v14831_v40, 0.0 }
 0xd90   :  { %v7774_v51 = vmul.f32 %v9902_v20, %v7773_v55 }
 0xd91   :  { %v7768_v13 = vsel %vm7767_vm11, %v7765_v61, %v7762_v57  ;;  %v7523_v3 = vsub.f32 0.0, %v7491_v58  ;;  %v6085_v58 = vadd.f32 %v14423_v2, %v14190_v12 }
 0xd92   :  { %v7904_v10 = vadd.f32 %v7768_v13, %v7456_v34 }
 0xd93   :  { %v7576_v22 = vmul.f32 1.442695, %v7523_v3 }
 0xd94   :  { %7937 = vst.msk [vmem:[%s10395_s8 + $0x90] sm:$0xff] %vm7918_vm6, %v7904_v10  ;;  %v9906_v29 = vpop.eup %9905 }
 0xd95   :  { %v7354_v52 = vpop.permute.xlu1 %7353  ;;  %v9908_v32 = vpop.eup %9907  ;;  %v7771_v49 = vmul.f32 0.6931472, %v9906_v29  ;;  %9909 = vpow2.f32 %v7576_v22 }
 0xd96   :  { %v14839_v39 = vsel %vm7405_vm4, %v14417_v56, %v7354_v52  ;;  %v7805_v24 = vadd.f32 1.0, %v9908_v32  ;;  %v7808_v4 = vmul.f32 -0.5, %v9908_v32  ;;  %v7811_v9 = vand.u32 2147483647, %v9908_v32 }
 0xd97   :  { %v7777_v47 = vsel %vm7776_vm12, %v7774_v51, %v7771_v49  ;;  %v7492_v30 = vand.u32 2147483647, %v14839_v39  ;;  %v7460_v2 = vmax.f32 %v14839_v39, 0.0 }
 0xd98   :  { %v7905_v27 = vadd.f32 %v7777_v47, %v7457_v16  ;;  %9911 = vlog2.f32 %v7805_v24  ;;  %v7809_v35 = vadd.f32 1.0, %v7808_v4  ;;  %vm7812_vm13 = vcmp.lt.f32.partialorder %v7811_v9, 0.0004427343 }
 0xd99   :  { %v7524_v8 = vsub.f32 0.0, %v7492_v30  ;;  %v6095_v4 = vadd.f32 %v14459_v6, %v14190_v12 }
 0xd9a   :  { %7938 = vst.msk [vmem:[%s10395_s8 + $0x98] sm:$0xff] %vm7918_vm6, %v7905_v27  ;;  %v7810_v15 = vmul.f32 %v9908_v32, %v7809_v35 }
 0xd9b   :  { %v9910_v37 = vpop.eup %9909  ;;  %v7578_v54 = vmul.f32 1.442695, %v7524_v8 }
 0xd9c   :  { %v7787_v59 = vadd.f32 1.0, %v9910_v37  ;;  %v7790_v56 = vmul.f32 -0.5, %v9910_v37  ;;  %v7793_v20 = vand.u32 2147483647, %v9910_v37 }
 0xd9d   :  { %v7362_v43 = vpop.permute.xlu2 %7361  ;;  %9913 = vpow2.f32 %v7578_v54 }
 0xd9e   :  { %v14847_v48 = vsel %vm7405_vm4, %v14444_v50, %v7362_v43  ;;  %v9912_v33 = vpop.eup %9911  ;;  %9915 = vlog2.f32 %v7787_v59  ;;  %v7791_v46 = vadd.f32 1.0, %v7790_v56  ;;  %vm7794_vm14 = vcmp.lt.f32.partialorder %v7793_v20, 0.0004427343 }
 0xd9f   :  { %v7807_v1 = vmul.f32 0.6931472, %v9912_v33  ;;  %v7496_v28 = vand.u32 2147483647, %v14847_v48  ;;  %v7464_v6 = vmax.f32 %v14847_v48, 0.0 }
 0xda0   :  { %v7792_v50 = vmul.f32 %v9910_v37, %v7791_v46  ;;  %v6184_v37 = vadd.f32 %v14462_v11, %v6095_v4 }
 0xda1   :  { %v7813_v60 = vsel %vm7812_vm13, %v7810_v15, %v7807_v1  ;;  %v7528_v31 = vsub.f32 0.0, %v7496_v28  ;;  %v6090_v28 = vadd.f32 %v14437_v45, %v14190_v12 }
 0xda2   :  { %v7909_v41 = vadd.f32 %v7813_v60, %v7461_v7 }
 0xda3   :  { %v9914_v19 = vpop.eup %9913  ;;  %v7586_v17 = vmul.f32 1.442695, %v7528_v31 }
 0xda4   :  { %v9916_v18 = vpop.eup %9915  ;;  %7942 = vst.msk [vmem:[%s10395_s8 + $0xb8] sm:$0xff] %vm7918_vm6, %v7909_v41  ;;  %v7796_v62 = vadd.f32 1.0, %v9914_v19  ;;  %v7799_v26 = vmul.f32 -0.5, %v9914_v19  ;;  %v7802_v55 = vand.u32 2147483647, %v9914_v19  ;;  %v6179_v41 = vadd.f32 %v14448_v5, %v6090_v28 }
 0xda5   :  { %v7358_v21 = vpop.permute.xlu0 %7357  ;;  %v7789_v25 = vmul.f32 0.6931472, %v9916_v18  ;;  %9917 = vpow2.f32 %v7586_v17 }
 0xda6   :  { %v14855_v36 = vsel %vm7405_vm4, %v14431_v0, %v7358_v21  ;;  %9919 = vlog2.f32 %v7796_v62  ;;  %v7800_v13 = vadd.f32 1.0, %v7799_v26  ;;  %v6174_v0 = vadd.f32 %v14435_v23, %v6085_v58 }
 0xda7   :  { %v7795_v57 = vsel %vm7794_vm14, %v7792_v50, %v7789_v25  ;;  %v7494_v61 = vand.u32 2147483647, %v14855_v36  ;;  %vm7803_vm15 = vcmp.lt.f32.partialorder %v7802_v55, 0.0004427343  ;;  %v7462_v45 = vmax.f32 %v14855_v36, 0.0 }
 0xda8   :  { %v7907_v34 = vadd.f32 %v7795_v57, %v7459_v14  ;;  %v7801_v49 = vmul.f32 %v9914_v19, %v7800_v13 }
 0xda9   :  { %v7526_v10 = vsub.f32 0.0, %v7494_v61 }
 0xdaa   :  { %7940 = vst.msk [vmem:[%s10395_s8 + $0xa8] sm:$0xff] %vm7918_vm6, %v7907_v34 }
 0xdab   :  { %v9918_v3 = vpop.eup %9917  ;;  %v7582_v44 = vmul.f32 1.442695, %v7526_v10 }
 0xdac   :  { %v9920_v22 = vpop.eup %9919  ;;  %v7832_v40 = vadd.f32 1.0, %v9918_v3  ;;  %v7835_v29 = vmul.f32 -0.5, %v9918_v3  ;;  %v7838_v27 = vand.u32 2147483647, %v9918_v3 }
 0xdad   :  { %v7360_v52 = vpop.permute.xlu1 %7359  ;;  %v7798_v32 = vmul.f32 0.6931472, %v9920_v22  ;;  %9921 = vpow2.f32 %v7582_v44 }
 0xdae   :  { %v14865_v51 = vsel %vm7405_vm4, %v6174_v0, %v7360_v52  ;;  %9923 = vlog2.f32 %v7832_v40  ;;  %v7836_v47 = vadd.f32 1.0, %v7835_v29  ;;  %vm7839_vm0 = vcmp.lt.f32.partialorder %v7838_v27, 0.0004427343 }
 0xdaf   :  { %v7804_v16 = vsel %vm7803_vm15, %v7801_v49, %v7798_v32  ;;  %v7495_v24 = vand.u32 2147483647, %v14865_v51  ;;  %v7463_v22 = vmax.f32 %v14865_v51, 0.0 }
 0xdb0   :  { %v7908_v23 = vadd.f32 %v7804_v16, %v7460_v2  ;;  %v7837_v39 = vmul.f32 %v9918_v3, %v7836_v47 }
 0xdb1   :  { %v7527_v30 = vsub.f32 0.0, %v7495_v24 }
 0xdb2   :  { %7941 = vst.msk [vmem:[%s10395_s8 + $0xb0] sm:$0xff] %vm7918_vm6, %v7908_v23 }
 0xdb3   :  { %v9922_v8 = vpop.eup %9921  ;;  %v7584_v35 = vmul.f32 1.442695, %v7527_v30 }
 0xdb4   :  { %v9924_v54 = vpop.eup %9923  ;;  %v7814_v9 = vadd.f32 1.0, %v9922_v8  ;;  %v7817_v43 = vmul.f32 -0.5, %v9922_v8  ;;  %v7820_v60 = vand.u32 2147483647, %v9922_v8 }
 0xdb5   :  { %v7368_v59 = vpop.permute.xlu2 %7367  ;;  %v7834_v56 = vmul.f32 0.6931472, %v9924_v54  ;;  %9925 = vpow2.f32 %v7584_v35 }
 0xdb6   :  { %v14875_v33 = vsel %vm7405_vm4, %v6184_v37, %v7368_v59  ;;  %9927 = vlog2.f32 %v7814_v9  ;;  %v7818_v7 = vadd.f32 1.0, %v7817_v43  ;;  %vm7821_vm1 = vcmp.lt.f32.partialorder %v7820_v60, 0.0004427343 }
 0xdb7   :  { %v7840_v1 = vsel %vm7839_vm0, %v7837_v39, %v7834_v56  ;;  %v7499_v15 = vand.u32 2147483647, %v14875_v33  ;;  %v7467_v51 = vmax.f32 %v14875_v33, 0.0 }
 0xdb8   :  { %v7912_v11 = vadd.f32 %v7840_v1, %v7464_v6  ;;  %v7819_v62 = vmul.f32 %v9922_v8, %v7818_v7  ;;  %v6100_v7 = vadd.f32 %v14491_v53, %v14190_v12 }
 0xdb9   :  { %v7531_v46 = vsub.f32 0.0, %v7499_v15 }
 0xdba   :  { %7945 = vst.msk [vmem:[%s10395_s8 + $0xd0] sm:$0xff] %vm7918_vm6, %v7912_v11 }
 0xdbb   :  { %v9926_v31 = vpop.eup %9925  ;;  %v7592_v20 = vmul.f32 1.442695, %v7531_v46 }
 0xdbc   :  { %v9928_v19 = vpop.eup %9927  ;;  %v7823_v48 = vadd.f32 1.0, %v9926_v31  ;;  %v7826_v17 = vmul.f32 -0.5, %v9926_v31  ;;  %v7829_v61 = vand.u32 2147483647, %v9926_v31 }
 0xdbd   :  { %v7364_v18 = vpop.permute.xlu0 %7363  ;;  %v7816_v50 = vmul.f32 0.6931472, %v9928_v19  ;;  %9929 = vpow2.f32 %v7592_v20 }
 0xdbe   :  { %v7433_v21 = vsel %vm7405_vm4, %v6179_v41, %v7364_v18  ;;  %9931 = vlog2.f32 %v7823_v48  ;;  %v7827_v57 = vadd.f32 1.0, %v7826_v17  ;;  %vm7830_vm2 = vcmp.lt.f32.partialorder %v7829_v61, 0.0004427343 }
 0xdbf   :  { %v7822_v25 = vsel %vm7821_vm1, %v7819_v62, %v7816_v50  ;;  %v7497_v26 = vand.u32 2147483647, %v7433_v21  ;;  %v7465_v33 = vmax.f32 %v7433_v21, 0.0  ;;  %v6189_v41 = vadd.f32 %v14532_v63, %v6100_v7 }
 0xdc0   :  { %v7910_v14 = vadd.f32 %v7822_v25, %v7462_v45  ;;  %v7828_v10 = vmul.f32 %v9926_v31, %v7827_v57 }
 0xdc1   :  { %v7529_v5 = vsub.f32 0.0, %v7497_v26 }
 0xdc2   :  { %7943 = vst.msk [vmem:[%s10395_s8 + $0xc0] sm:$0xff] %vm7918_vm6, %v7910_v14 }
 0xdc3   :  { %v9930_v34 = vpop.eup %9929  ;;  %v7588_v58 = vmul.f32 1.442695, %v7529_v5 }
 0xdc4   :  { %v9932_v13 = vpop.eup %9931  ;;  %v7859_v55 = vadd.f32 1.0, %v9930_v34  ;;  %v7862_v44 = vmul.f32 -0.5, %v9930_v34  ;;  %v7865_v2 = vand.u32 2147483647, %v9930_v34 }
 0xdc5   :  { %v7366_v3 = vpop.permute.xlu1 %7365  ;;  %v7825_v0 = vmul.f32 0.6931472, %v9932_v13  ;;  %9933 = vpow2.f32 %v7588_v58 }
 0xdc6   :  { %v7434_v36 = vsel %vm7405_vm4, %v14456_v38, %v7366_v3  ;;  %9935 = vlog2.f32 %v7859_v55  ;;  %v7863_v32 = vadd.f32 1.0, %v7862_v44  ;;  %vm7866_vm3 = vcmp.lt.f32.partialorder %v7865_v2, 0.0004427343 }
 0xdc7   :  { %v7831_v40 = vsel %vm7830_vm2, %v7828_v10, %v7825_v0  ;;  %v7498_v29 = vand.u32 2147483647, %v7434_v36  ;;  %v7466_v50 = vmax.f32 %v7434_v36, 0.0 }
 0xdc8   :  { %v7911_v52 = vadd.f32 %v7831_v40, %v7463_v22  ;;  %v7864_v30 = vmul.f32 %v9930_v34, %v7863_v32 }
 0xdc9   :  { %v7530_v49 = vsub.f32 0.0, %v7498_v29 }
 0xdca   :  { %7944 = vst.msk [vmem:[%s10395_s8 + $0xc8] sm:$0xff] %vm7918_vm6, %v7911_v52 }
 0xdcb   :  { %v9934_v16 = vpop.eup %9933  ;;  %v7590_v24 = vmul.f32 1.442695, %v7530_v49 }
 0xdcc   :  { %v9936_v23 = vpop.eup %9935  ;;  %v7841_v47 = vadd.f32 1.0, %v9934_v16  ;;  %v7844_v38 = vmul.f32 -0.5, %v9934_v16  ;;  %v7847_v35 = vand.u32 2147483647, %v9934_v16 }
 0xdcd   :  { %v7861_v4 = vmul.f32 0.6931472, %v9936_v23  ;;  %9937 = vpow2.f32 %v7590_v24 }
 0xdce   :  { %9939 = vlog2.f32 %v7841_v47  ;;  %v7845_v37 = vadd.f32 1.0, %v7844_v38  ;;  %vm7848_vm5 = vcmp.lt.f32.partialorder %v7847_v35, 0.0004427343 }
 0xdcf   :  { %v7867_v27 = vsel %vm7866_vm3, %v7864_v30, %v7861_v4 }
 0xdd0   :  { %v7915_v8 = vadd.f32 %v7867_v27, %v7467_v51  ;;  %v7846_v43 = vmul.f32 %v9934_v16, %v7845_v37 }
 0xdd2   :  { %7948 = vst.msk [vmem:[%s10395_s8 + $0xe8] sm:$0xff] %vm7918_vm6, %v7915_v8 }
 0xdd3   :  { %v9938_v54 = vpop.eup %9937 }
 0xdd4   :  { %v9940_v39 = vpop.eup %9939  ;;  %v7850_v9 = vadd.f32 1.0, %v9938_v54  ;;  %v7853_v6 = vmul.f32 -0.5, %v9938_v54  ;;  %v7856_v31 = vand.u32 2147483647, %v9938_v54 }
 0xdd5   :  { %v7370_v59 = vpop.permute.xlu0 %7369  ;;  %v7843_v56 = vmul.f32 0.6931472, %v9940_v39 }
 0xdd6   :  { %v7436_v1 = vsel %vm7405_vm4, %v14469_v42, %v7370_v59  ;;  %9941 = vlog2.f32 %v7850_v9  ;;  %v7854_v46 = vadd.f32 1.0, %v7853_v6  ;;  %vm7857_vm7 = vcmp.lt.f32.partialorder %v7856_v31, 0.0004427343 }
 0xdd7   :  { %v7849_v15 = vsel %vm7848_vm5, %v7846_v43, %v7843_v56  ;;  %v7500_v11 = vand.u32 2147483647, %v7436_v1  ;;  %v7468_v55 = vmax.f32 %v7436_v1, 0.0 }
 0xdd8   :  { %v7913_v28 = vadd.f32 %v7849_v15, %v7465_v33  ;;  %v7855_v17 = vmul.f32 %v9938_v54, %v7854_v46 }
 0xdd9   :  { %v7532_v60 = vsub.f32 0.0, %v7500_v11 }
 0xdda   :  { %7946 = vst.msk [vmem:[%s10395_s8 + $0xd8] sm:$0xff] %vm7918_vm6, %v7913_v28 }
 0xddb   :  { %v7594_v20 = vmul.f32 1.442695, %v7532_v60 }
 0xddc   :  { %v9942_v19 = vpop.eup %9941 }
 0xddd   :  { %v7372_v42 = vpop.permute.xlu1 %7371  ;;  %v7852_v48 = vmul.f32 0.6931472, %v9942_v19  ;;  %9943 = vpow2.f32 %v7594_v20 }
 0xdde   :  { %v7437_v18 = vsel %vm7405_vm4, %v6189_v41, %v7372_v42 }
 0xddf   :  { %v7501_v62 = vand.u32 2147483647, %v7437_v18  ;;  %v7858_v12 = vsel %vm7857_vm7, %v7855_v17, %v7852_v48  ;;  %v7469_v52 = vmax.f32 %v7437_v18, 0.0 }
 0xde0   :  { %v7914_v53 = vadd.f32 %v7858_v12, %v7466_v50 }
 0xde1   :  { %v7533_v21 = vsub.f32 0.0, %v7501_v62 }
 0xde2   :  { %7947 = vst.msk [vmem:[%s10395_s8 + $0xe0] sm:$0xff] %vm7918_vm6, %v7914_v53 }
 0xde3   :  { %v7596_v45 = vmul.f32 1.442695, %v7533_v21  ;;  %v9944_v25 = vpop.eup %9943 }
 0xde4   :  { %v7868_v26 = vadd.f32 1.0, %v9944_v25  ;;  %v7871_v63 = vmul.f32 -0.5, %v9944_v25  ;;  %v7874_v5 = vand.u32 2147483647, %v9944_v25 }
 0xde5   :  { %9945 = vpow2.f32 %v7596_v45 }
 0xde6   :  { %9947 = vlog2.f32 %v7868_v26  ;;  %v7872_v14 = vadd.f32 1.0, %v7871_v63  ;;  %vm7875_vm4 = vcmp.lt.f32.partialorder %v7874_v5, 0.0004427343 }
 0xde8   :  { %v7873_v10 = vmul.f32 %v9944_v25, %v7872_v14 }
 0xdeb   :  { %v9946_v57 = vpop.eup %9945 }
 0xdec   :  { %v7877_v61 = vadd.f32 1.0, %v9946_v57  ;;  %v9948_v34 = vpop.eup %9947  ;;  %v7880_v58 = vmul.f32 -0.5, %v9946_v57  ;;  %v7883_v36 = vand.u32 2147483647, %v9946_v57 }
 0xded   :  { %v7870_v13 = vmul.f32 0.6931472, %v9948_v34 }
 0xdee   :  { %9949 = vlog2.f32 %v7877_v61  ;;  %v7881_v44 = vadd.f32 1.0, %v7880_v58  ;;  %vm7884_vm8 = vcmp.lt.f32.partialorder %v7883_v36, 0.0004427343 }
 0xdef   :  { %v7876_v3 = vsel %vm7875_vm4, %v7873_v10, %v7870_v13 }
 0xdf0   :  { %v7916_v0 = vadd.f32 %v7876_v3, %v7468_v55  ;;  %v7882_v29 = vmul.f32 %v9946_v57, %v7881_v44 }
 0xdf2   :  { %7949 = vst.msk [vmem:[%s10395_s8 + $0xf0] sm:$0xff] %vm7918_vm6, %v7916_v0 }
 0xdf4   :  { %v9950_v22 = vpop.eup %9949 }
 0xdf5   :  { %v7879_v40 = vmul.f32 0.6931472, %v9950_v22 }
 0xdf7   :  { %v7885_v32 = vsel %vm7884_vm8, %v7882_v29, %v7879_v40 }
 0xdf8   :  { %v7917_v49 = vadd.f32 %v7885_v32, %v7469_v52 }
 0xdfa   :  { %7950 = vst.msk [vmem:[%s10395_s8 + $0xf8] sm:$0xff] %vm7918_vm6, %v7917_v49 }
 0xdfb   :  { %7955 = vsyncpa [#allocation3], 1 }
 0xdfc   :  { %7956 = vsyncpa [#allocation5], 1 }
 0xdfd   :  { %7957 = vsyncpa [#allocation8], 1 }
 0xdfe   :  { %7958 = vsyncpa [#allocation11], 1 }
 0xdff   :  { %7959 = vsyncpa [#allocation14], 1 }

</bundles_post_ra>
